<compile_context>
chip_gen: v7x
topology: tpu7x:2x2x1
jax: 0.10.0
libtpu: 0.0.40
codegen_flags: <defaults>
</compile_context>

<pallas_src>
import jax
import jax.numpy as jnp
from jax.experimental import pallas as pl
from jax.experimental.pallas import tpu as pltpu


# ---------------------------------------------------------------------------
# Kernel
# ---------------------------------------------------------------------------
def memory_module_kernel(
    facts_ref, q_ref, m_ref,
    w1_ref, b1_ref, w2_ref, b2_ref,
    wfact_ref, whid_ref, brw_ref, bu_ref,
    wmem_ref, bmem_ref,
    out_ref,
    frw_ref,                      # VMEM scratch (TB, S, 2H) f32
):
    TB, S, H = facts_ref.shape

    # ---- load activations; gate features built directly in bf16 ------------
    f32 = facts_ref[...]                         # (TB, S, H) f32
    q32 = q_ref[...]                             # (TB, H)
    m32 = m_ref[...]                             # (TB, H)
    f = f32.astype(jnp.bfloat16)
    qb = q32.astype(jnp.bfloat16)[:, None, :]
    mb = m32.astype(jnp.bfloat16)[:, None, :]

    # --- gateMatrix: one fused K=4H MXU matmul on a lane-dense bf16 concat ---
    z = jnp.concatenate(
        [f * qb, f * mb, jnp.abs(f - qb), jnp.abs(f - mb)], axis=-1
    )                                            # (TB, S, 4H) bf16
    h1 = jnp.tanh(
        jnp.dot(z.reshape(TB * S, 4 * H), w1_ref[...],
                preferred_element_type=jnp.float32)
        + b1_ref[...]
    )                                            # (TB*S, H) f32

    # W2 (H -> 1) kept as an XLU lane reduce (MXU busy, XLU slot free).
    Z = jnp.sum(h1.reshape(TB, S, H) * w2_ref[...][None, :, :], axis=-1) \
        + b2_ref[0, 0]                           # (TB, S)

    # softmax over the sentence dim (exact reciprocal per review).
    Zs = Z - jnp.max(Z, axis=1, keepdims=True)
    eZ = jnp.exp(Zs)
    G = eZ * pl.reciprocal(jnp.sum(eZ, axis=1, keepdims=True), approx=False)

    # --- AttnGRU: fact-side matmul hoisted, biases folded, staged in VMEM ----
    frw = jnp.dot(f.reshape(TB * S, H), wfact_ref[...],
                  preferred_element_type=jnp.float32).reshape(TB, S, 2 * H)
    frw_ref[...] = frw + brw_ref[...]            # [br+bur | bw] folded once

    whid = whid_ref[...]                         # (H, 2H) bf16 = [Ur | U]
    bu_b = jnp.broadcast_to(bu_ref[...], (TB, H))  # hoisted (no per-step bcast)

    def read_fr(s):
        return frw_ref[:, pl.ds(s, 1), :].reshape(TB, 2 * H)

    def cell(fr, g, hi):
        huu = jnp.dot(hi.astype(jnp.bfloat16), whid,
                      preferred_element_type=jnp.float32)     # (TB, 2H)
        r = jax.nn.sigmoid(fr[:, :H] + huu[:, :H])
        h_t = jnp.tanh(fr[:, H:] + r * (huu[:, H:] + bu_b))
        return hi + g * (h_t - hi)

    hi0 = jnp.zeros((TB, H), dtype=jnp.float32)
    if S <= 16:
        # Small, static S: Python unroll with static slices.
        hi = hi0
        for s in range(S):
            hi = cell(read_fr(s), G[:, s:s + 1], hi)
    else:
        # Large S: bounded live ranges via fori_loop; gate column extracted
        # with a onehot lane-reduce (avoids dynamic lane slicing).
        lane_iota = jax.lax.broadcasted_iota(jnp.int32, (1, S), 1)

        def body(s, hi):
            g = jnp.sum(G * (lane_iota == s).astype(jnp.float32),
                        axis=1, keepdims=True)                # (TB, 1)
            return cell(read_fr(s), g, hi)

        hi = jax.lax.fori_loop(0, S, body, hi0, unroll=2)

    C = hi                                                    # (TB, H)

    # --- next_mem = relu(W_mem(cat([prev_mem, C, questions]))) ---------------
    mcq = jnp.concatenate([m32, C, q32], axis=1).astype(jnp.bfloat16)  # (TB,3H)
    out_ref[...] = jax.nn.relu(
        jnp.dot(mcq, wmem_ref[...], preferred_element_type=jnp.float32)
        + bmem_ref[...]
    )


# ---------------------------------------------------------------------------
# Host-side helpers
# ---------------------------------------------------------------------------
def _choose_batch_tile(B, S, H, vmem_budget):
    """Largest sublane-aligned batch tile that fits the VMEM budget."""
    weight_bytes = 2 * 2 * (11 * H * H + 16 * H)   # bf16 weights, assume 2x buffered
    avail = max(vmem_budget - weight_bytes, 1 << 20)
    per_row = (2 * S * H * 4        # facts block (double-buffered, f32)
               + S * 4 * H * 2      # z (bf16)
               + 2 * S * H * 4      # h1 + gate temps (f32)
               + S * 2 * H * 4      # frw VMEM scratch (f32)
               + 64 * H)            # recurrence vectors / slack
    tb = int(avail // max(per_row, 1))
    tb = max(8, min(512, (tb // 8) * 8))
    if B > 8:
        # keep >=2 grid programs so both v7x TensorCores get work
        half = (((B + 1) // 2) + 7) // 8 * 8
        tb = max(8, min(tb, half))
    tb = min(tb, ((B + 7) // 8) * 8)
    return max(8, tb)


def pack_params(params):
    """One-time weight packing: call once, reuse across every forward call."""
    bf16 = jnp.bfloat16
    return {
        "w1":    params["w1"].astype(bf16),                               # (4H,H)
        "b1":    params["b1"].astype(jnp.float32),                        # (1,H)
        "w2":    params["w2"].astype(jnp.float32),                        # (1,H) row
        "b2":    params["b2"].astype(jnp.float32),                        # (1,1)
        "wfact": jnp.concatenate([params["wr"], params["w"]], axis=1).astype(bf16),   # (H,2H)
        "whid":  jnp.concatenate([params["ur"], params["u"]], axis=1).astype(bf16),   # (H,2H)
        "brw":   jnp.concatenate([params["br"] + params["bur"], params["bw"]],
                                 axis=1).astype(jnp.float32),             # (1,2H)
        "bu":    params["bu"].astype(jnp.float32),                        # (1,H)
        "wmem":  params["wmem"].astype(bf16),                             # (3H,H)
        "bmem":  params["bmem"].astype(jnp.float32),                      # (1,H)
    }


def memory_module(facts, questions, prev_mem, packed):
    """facts: (B,S,H), questions: (B,1,H), prev_mem: (B,1,H) -> (B,1,H)."""
    B, S, H = facts.shape
    facts = facts.astype(jnp.float32)
    q = questions.reshape(B, H).astype(jnp.float32)
    m = prev_mem.reshape(B, H).astype(jnp.float32)

    # Generation-aware VMEM budget (v7x: 64 MiB/TC, v5e/v6e: 128 MiB).
    try:
        vmem_cap = int(pltpu.get_tpu_info().vmem_capacity_bytes)
    except Exception:
        vmem_cap = 64 * 1024 * 1024
    vmem_cap = max(vmem_cap, 32 * 1024 * 1024)
    vmem_budget = min(vmem_cap * 3 // 4, 96 * 1024 * 1024)

    TB = _choose_batch_tile(B, S, H, vmem_budget)
    Bp = -(-B // TB) * TB
    if Bp != B:
        pad = Bp - B
        facts = jnp.pad(facts, ((0, pad), (0, 0), (0, 0)))
        q = jnp.pad(q, ((0, pad), (0, 0)))
        m = jnp.pad(m, ((0, pad), (0, 0)))
    grid = (Bp // TB,)

    def bcast(arr):
        nd = arr.ndim
        return pl.BlockSpec(arr.shape, lambda b: (0,) * nd)

    # TODO(synk): verify via pl.lower_as_mlir that the constant-index weight
    # blocks are single-buffered; if not, try pipeline_mode=pl.Buffered(1).
    in_specs = [
        pl.BlockSpec((TB, S, H), lambda b: (b, 0, 0)),               # facts
        pl.BlockSpec((TB, H), lambda b: (b, 0)),                     # questions
        pl.BlockSpec((TB, H), lambda b: (b, 0)),                     # prev_mem
        bcast(packed["w1"]), bcast(packed["b1"]),                    # W1, b1
        bcast(packed["w2"]),                                         # W2 row
        pl.BlockSpec(memory_space=pltpu.MemorySpace.SMEM),           # b2 scalar
        bcast(packed["wfact"]), bcast(packed["whid"]),               # GRU weights
        bcast(packed["brw"]), bcast(packed["bu"]),                   # folded biases
        bcast(packed["wmem"]), bcast(packed["bmem"]),                # W_mem, b_mem
    ]
    out_spec = pl.BlockSpec((TB, H), lambda b: (b, 0))

    out = pl.pallas_call(
        memory_module_kernel,
        out_shape=jax.ShapeDtypeStruct((Bp, H), jnp.float32),
        grid=grid,
        in_specs=in_specs,
        out_specs=out_spec,
        scratch_shapes=[pltpu.VMEM((TB, S, 2 * H), jnp.float32)],
        compiler_params=pltpu.CompilerParams(
            dimension_semantics=("parallel",),
            vmem_limit_bytes=int(vmem_budget),
        ),
    )(facts, q, m,
      packed["w1"], packed["b1"], packed["w2"], packed["b2"],
      packed["wfact"], packed["whid"], packed["brw"], packed["bu"],
      packed["wmem"], packed["bmem"])
    return out[:B].reshape(B, 1, H)


# ---------------------------------------------------------------------------
# Parameter construction (deterministic, xavier-normal-ish like the module).
# ---------------------------------------------------------------------------
def xavier_normal(key, fan_in, fan_out):
    std = (2.0 / (fan_in + fan_out)) ** 0.5
    # stored pre-transposed: (in_features, out_features)
    return std * jax.random.normal(key, (fan_in, fan_out), dtype=jnp.float32)


def make_params(key, H):
    ks = jax.random.split(key, 16)
    return {
        "w1":   xavier_normal(ks[0], 4 * H, H),
        "b1":   0.01 * jax.random.normal(ks[1], (1, H), dtype=jnp.float32),
        "w2":   xavier_normal(ks[2], H, 1).reshape(1, H),   # stored as a row
        "b2":   0.01 * jax.random.normal(ks[3], (1, 1), dtype=jnp.float32),
        "wr":   xavier_normal(ks[4], H, H),
        "br":   0.01 * jax.random.normal(ks[5], (1, H), dtype=jnp.float32),
        "ur":   xavier_normal(ks[6], H, H),
        "bur":  0.01 * jax.random.normal(ks[7], (1, H), dtype=jnp.float32),
        "w":    xavier_normal(ks[8], H, H),
        "bw":   0.01 * jax.random.normal(ks[9], (1, H), dtype=jnp.float32),
        "u":    xavier_normal(ks[10], H, H),
        "bu":   0.01 * jax.random.normal(ks[11], (1, H), dtype=jnp.float32),
        "wmem": xavier_normal(ks[12], 3 * H, H),
        "bmem": 0.01 * jax.random.normal(ks[13], (1, H), dtype=jnp.float32),
    }


# ---------------------------------------------------------------------------
# Plain-JAX f32 reference (mirrors the PyTorch forward) for a correctness check.
# ---------------------------------------------------------------------------
def memory_module_ref(facts, questions, prev_mem, p):
    B, S, H = facts.shape
    q = questions.reshape(B, 1, H)
    m = prev_mem.reshape(B, 1, H)
    z = jnp.concatenate(
        [facts * q, facts * m, jnp.abs(facts - q), jnp.abs(facts - m)], axis=2
    ).reshape(B * S, 4 * H)
    h1 = jnp.tanh(z @ p["w1"] + p["b1"])
    Z = (h1 @ p["w2"].reshape(H, 1) + p["b2"]).reshape(B, S)
    G = jax.nn.softmax(Z, axis=1)
    hi = jnp.zeros((B, H), jnp.float32)
    for s in range(S):
        fact = facts[:, s, :]
        g = G[:, s:s + 1]
        r = jax.nn.sigmoid(fact @ p["wr"] + p["br"] + hi @ p["ur"] + p["bur"])
        h_t = jnp.tanh(fact @ p["w"] + p["bw"] + r * (hi @ p["u"] + p["bu"]))
        hi = g * h_t + (1.0 - g) * hi
    concat = jnp.concatenate(
        [prev_mem.reshape(B, H), hi, questions.reshape(B, H)], axis=1)
    return jax.nn.relu(concat @ p["wmem"] + p["bmem"]).reshape(B, 1, H)


if __name__ == "__main__":
    B, S, H = 2, 8, 32
    key = jax.random.PRNGKey(0)
    k_f, k_q, k_m, k_p = jax.random.split(key, 4)

    facts = jax.random.normal(k_f, (B, S, H), dtype=jnp.float32)
    questions = jax.random.normal(k_q, (B, 1, H), dtype=jnp.float32)
    prev_mem = jax.random.normal(k_m, (B, 1, H), dtype=jnp.float32)
    params = make_params(k_p, H)
    packed = pack_params(params)          # one-time weight packing

    out = memory_module(facts, questions, prev_mem, packed)
    out = jax.block_until_ready(out)

    ref = memory_module_ref(facts, questions, prev_mem, params)
    assert out.shape == (B, 1, H)
    # bf16 MXU operands => bf16-level agreement vs f32 reference.
    assert jnp.allclose(out, ref, rtol=5e-2, atol=5e-2), "mismatch vs reference"

    print("KERNEL_OK")
</pallas_src>

<mosaic_0001>
module attributes {stable_mosaic.version = 11 : i64} {
  func.func @memory_module_kernel(%arg0: i32, %arg1: memref<8x8x32xf32, #tpu.memory_space<vmem>>, %arg2: memref<8x32xf32, #tpu.memory_space<vmem>>, %arg3: memref<8x32xf32, #tpu.memory_space<vmem>>, %arg4: memref<128x32xbf16, #tpu.memory_space<vmem>>, %arg5: memref<1x32xf32, #tpu.memory_space<vmem>>, %arg6: memref<1x32xf32, #tpu.memory_space<vmem>>, %arg7: memref<1x1xf32, #tpu.memory_space<smem>>, %arg8: memref<32x64xbf16, #tpu.memory_space<vmem>>, %arg9: memref<32x64xbf16, #tpu.memory_space<vmem>>, %arg10: memref<1x64xf32, #tpu.memory_space<vmem>>, %arg11: memref<1x32xf32, #tpu.memory_space<vmem>>, %arg12: memref<96x32xbf16, #tpu.memory_space<vmem>>, %arg13: memref<1x32xf32, #tpu.memory_space<vmem>>, %arg14: memref<8x32xf32, #tpu.memory_space<vmem>>, %arg15: memref<8x8x64xf32, #tpu.memory_space<vmem>>) attributes {dimension_semantics = [#tpu.dimension_semantics<parallel>], iteration_bounds = array<i64: 1>, scalar_prefetch = 0 : i64, scratch_operands = 1 : i64, tpu.core_type = #tpu.core_type<tc>, window_params = [{transform_indices = @transform_0, window_bounds = array<i64: 8, 8, 32>}, {transform_indices = @transform_1, window_bounds = array<i64: 8, 32>}, {transform_indices = @transform_2, window_bounds = array<i64: 8, 32>}, {pipeline_mode = #tpu.pipeline_mode<synchronous>, transform_indices = @transform_3, window_bounds = array<i64: 128, 32>}, {pipeline_mode = #tpu.pipeline_mode<synchronous>, transform_indices = @transform_4, window_bounds = array<i64: 1, 32>}, {pipeline_mode = #tpu.pipeline_mode<synchronous>, transform_indices = @transform_5, window_bounds = array<i64: 1, 32>}, {transform_indices = @transform_6, window_bounds = array<i64: 1, 1>}, {pipeline_mode = #tpu.pipeline_mode<synchronous>, transform_indices = @transform_7, window_bounds = array<i64: 32, 64>}, {pipeline_mode = #tpu.pipeline_mode<synchronous>, transform_indices = @transform_8, window_bounds = array<i64: 32, 64>}, {pipeline_mode = #tpu.pipeline_mode<synchronous>, transform_indices = @transform_9, window_bounds = array<i64: 1, 64>}, {pipeline_mode = #tpu.pipeline_mode<synchronous>, transform_indices = @transform_10, window_bounds = array<i64: 1, 32>}, {pipeline_mode = #tpu.pipeline_mode<synchronous>, transform_indices = @transform_11, window_bounds = array<i64: 96, 32>}, {pipeline_mode = #tpu.pipeline_mode<synchronous>, transform_indices = @transform_12, window_bounds = array<i64: 1, 32>}, {transform_indices = @transform_13, window_bounds = array<i64: 8, 32>}]} {
    %c0 = arith.constant 0 : index
    %c0_0 = arith.constant 0 : index
    %c0_1 = arith.constant 0 : index
    %0 = vector.load %arg1[%c0, %c0_0, %c0_1] : memref<8x8x32xf32, #tpu.memory_space<vmem>>, vector<8x8x32xf32>
    %c0_2 = arith.constant 0 : index
    %c0_3 = arith.constant 0 : index
    %1 = vector.load %arg2[%c0_2, %c0_3] : memref<8x32xf32, #tpu.memory_space<vmem>>, vector<8x32xf32>
    %c0_4 = arith.constant 0 : index
    %c0_5 = arith.constant 0 : index
    %2 = vector.load %arg3[%c0_4, %c0_5] : memref<8x32xf32, #tpu.memory_space<vmem>>, vector<8x32xf32>
    %3 = arith.truncf %0 : vector<8x8x32xf32> to vector<8x8x32xbf16>
    %4 = arith.truncf %1 : vector<8x32xf32> to vector<8x32xbf16>
    %5 = vector.shape_cast %4 : vector<8x32xbf16> to vector<8x1x32xbf16>
    %6 = arith.truncf %2 : vector<8x32xf32> to vector<8x32xbf16>
    %7 = vector.shape_cast %6 : vector<8x32xbf16> to vector<8x1x32xbf16>
    %8 = vector.broadcast %5 : vector<8x1x32xbf16> to vector<8x8x32xbf16>
    %9 = arith.mulf %3, %8 : vector<8x8x32xbf16>
    %10 = vector.broadcast %7 : vector<8x1x32xbf16> to vector<8x8x32xbf16>
    %11 = arith.mulf %3, %10 : vector<8x8x32xbf16>
    %12 = vector.broadcast %5 : vector<8x1x32xbf16> to vector<8x8x32xbf16>
    %13 = arith.subf %3, %12 : vector<8x8x32xbf16>
    %14 = math.absf %13 : vector<8x8x32xbf16>
    %15 = vector.broadcast %7 : vector<8x1x32xbf16> to vector<8x8x32xbf16>
    %16 = arith.subf %3, %15 : vector<8x8x32xbf16>
    %17 = math.absf %16 : vector<8x8x32xbf16>
    %18 = tpu.concatenate %9, %11, %14, %17 in 2 : vector<8x8x32xbf16>, vector<8x8x32xbf16>, vector<8x8x32xbf16>, vector<8x8x32xbf16> -> vector<8x8x128xbf16>
    %19 = vector.shape_cast %18 : vector<8x8x128xbf16> to vector<64x128xbf16>
    %c0_6 = arith.constant 0 : index
    %c0_7 = arith.constant 0 : index
    %20 = vector.load %arg4[%c0_6, %c0_7] : memref<128x32xbf16, #tpu.memory_space<vmem>>, vector<128x32xbf16>
    %cst = arith.constant dense<0.000000e+00> : vector<64x32xf32>
    %21 = tpu.matmul %19, %20, %cst {dimension_numbers = #tpu.dot_dimension_numbers<[1], [0], [0], [1], [0, 0, 1, 1], [], []>} : vector<64x128xbf16>, vector<128x32xbf16>, vector<64x32xf32> -> vector<64x32xf32>
    %c0_8 = arith.constant 0 : index
    %c0_9 = arith.constant 0 : index
    %22 = vector.load %arg5[%c0_8, %c0_9] : memref<1x32xf32, #tpu.memory_space<vmem>>, vector<1x32xf32>
    %23 = vector.broadcast %22 : vector<1x32xf32> to vector<64x32xf32>
    %24 = arith.addf %21, %23 : vector<64x32xf32>
    %25 = math.tanh %24 : vector<64x32xf32>
    %26 = vector.shape_cast %25 : vector<64x32xf32> to vector<8x8x32xf32>
    %c0_10 = arith.constant 0 : index
    %c0_11 = arith.constant 0 : index
    %27 = vector.load %arg6[%c0_10, %c0_11] : memref<1x32xf32, #tpu.memory_space<vmem>>, vector<1x32xf32>
    %28 = vector.shape_cast %27 : vector<1x32xf32> to vector<1x1x32xf32>
    %29 = vector.broadcast %28 : vector<1x1x32xf32> to vector<8x8x32xf32>
    %30 = arith.mulf %26, %29 : vector<8x8x32xf32>
    %cst_12 = arith.constant dense<0.000000e+00> : vector<8x8xf32>
    %31 = vector.multi_reduction <add>, %30, %cst_12 [2] : vector<8x8x32xf32> to vector<8x8xf32>
    %c0_13 = arith.constant 0 : index
    %c0_14 = arith.constant 0 : index
    %32 = memref.load %arg7[%c0_13, %c0_14] : memref<1x1xf32, #tpu.memory_space<smem>>
    %33 = vector.broadcast %32 : f32 to vector<8x8xf32>
    %34 = arith.addf %31, %33 : vector<8x8xf32>
    %cst_15 = arith.constant dense<0xFF800000> : vector<8xf32>
    %35 = vector.multi_reduction <maximumf>, %34, %cst_15 [1] : vector<8x8xf32> to vector<8xf32>
    %36 = vector.shape_cast %35 : vector<8xf32> to vector<8x1xf32>
    %37 = vector.broadcast %36 : vector<8x1xf32> to vector<8x8xf32>
    %38 = arith.subf %34, %37 : vector<8x8xf32>
    %39 = math.exp %38 : vector<8x8xf32>
    %cst_16 = arith.constant dense<0.000000e+00> : vector<8xf32>
    %40 = vector.multi_reduction <add>, %39, %cst_16 [1] : vector<8x8xf32> to vector<8xf32>
    %41 = vector.shape_cast %40 : vector<8xf32> to vector<8x1xf32>
    %42 = tpu.reciprocal %41 : vector<8x1xf32> -> vector<8x1xf32>
    %43 = vector.broadcast %42 : vector<8x1xf32> to vector<8x8xf32>
    %44 = arith.mulf %39, %43 : vector<8x8xf32>
    %45 = vector.shape_cast %3 : vector<8x8x32xbf16> to vector<64x32xbf16>
    %c0_17 = arith.constant 0 : index
    %c0_18 = arith.constant 0 : index
    %46 = vector.load %arg8[%c0_17, %c0_18] : memref<32x64xbf16, #tpu.memory_space<vmem>>, vector<32x64xbf16>
    %cst_19 = arith.constant dense<0.000000e+00> : vector<64x64xf32>
    %47 = tpu.matmul %45, %46, %cst_19 {dimension_numbers = #tpu.dot_dimension_numbers<[1], [0], [0], [1], [0, 0, 1, 1], [], []>} : vector<64x32xbf16>, vector<32x64xbf16>, vector<64x64xf32> -> vector<64x64xf32>
    %48 = vector.shape_cast %47 : vector<64x64xf32> to vector<8x8x64xf32>
    %c0_20 = arith.constant 0 : index
    %c0_21 = arith.constant 0 : index
    %49 = vector.load %arg10[%c0_20, %c0_21] : memref<1x64xf32, #tpu.memory_space<vmem>>, vector<1x64xf32>
    %50 = vector.shape_cast %49 : vector<1x64xf32> to vector<1x1x64xf32>
    %51 = vector.broadcast %50 : vector<1x1x64xf32> to vector<8x8x64xf32>
    %52 = arith.addf %48, %51 : vector<8x8x64xf32>
    %c0_22 = arith.constant 0 : index
    %c0_23 = arith.constant 0 : index
    %c0_24 = arith.constant 0 : index
    %53 = vector.load %arg15[%c0_22, %c0_23, %c0_24] : memref<8x8x64xf32, #tpu.memory_space<vmem>>, vector<8x8x64xf32>
    tpu.vector_store %arg15[%c0_22, %c0_23, %c0_24], %52 {strides = array<i32>} : memref<8x8x64xf32, #tpu.memory_space<vmem>>, vector<8x8x64xf32>,
    %c0_25 = arith.constant 0 : index
    %c0_26 = arith.constant 0 : index
    %54 = vector.load %arg9[%c0_25, %c0_26] : memref<32x64xbf16, #tpu.memory_space<vmem>>, vector<32x64xbf16>
    %c0_27 = arith.constant 0 : index
    %c0_28 = arith.constant 0 : index
    %55 = vector.load %arg11[%c0_27, %c0_28] : memref<1x32xf32, #tpu.memory_space<vmem>>, vector<1x32xf32>
    %56 = vector.shape_cast %55 : vector<1x32xf32> to vector<1x32xf32>
    %57 = vector.broadcast %56 : vector<1x32xf32> to vector<8x32xf32>
    %cst_29 = arith.constant 0.000000e+00 : f32
    %58 = vector.broadcast %cst_29 : f32 to vector<8x32xf32>
    %c0_30 = arith.constant 0 : index
    %c0_31 = arith.constant 0 : index
    %c0_32 = arith.constant 0 : index
    %59 = vector.load %arg15[%c0_30, %c0_31, %c0_32] : memref<8x8x64xf32, #tpu.memory_space<vmem>>, vector<8x1x64xf32>
    %60 = vector.shape_cast %59 : vector<8x1x64xf32> to vector<8x64xf32>
    %61 = vector.extract_strided_slice %44 {offsets = [0, 0], sizes = [8, 1], strides = [1, 1]} : vector<8x8xf32> to vector<8x1xf32>
    %62 = arith.truncf %58 : vector<8x32xf32> to vector<8x32xbf16>
    %cst_33 = arith.constant dense<0.000000e+00> : vector<8x64xf32>
    %63 = tpu.matmul %62, %54, %cst_33 {dimension_numbers = #tpu.dot_dimension_numbers<[1], [0], [0], [1], [0, 0, 1, 1], [], []>} : vector<8x32xbf16>, vector<32x64xbf16>, vector<8x64xf32> -> vector<8x64xf32>
    %64 = vector.extract_strided_slice %60 {offsets = [0, 0], sizes = [8, 32], strides = [1, 1]} : vector<8x64xf32> to vector<8x32xf32>
    %65 = vector.extract_strided_slice %63 {offsets = [0, 0], sizes = [8, 32], strides = [1, 1]} : vector<8x64xf32> to vector<8x32xf32>
    %66 = arith.addf %64, %65 : vector<8x32xf32>
    %67 = arith.negf %66 : vector<8x32xf32>
    %68 = math.exp %67 : vector<8x32xf32>
    %cst_34 = arith.constant 1.000000e+00 : f32
    %69 = vector.broadcast %cst_34 : f32 to vector<8x32xf32>
    %70 = arith.addf %69, %68 : vector<8x32xf32>
    %71 = arith.divf %69, %70 : vector<8x32xf32>
    %72 = vector.extract_strided_slice %60 {offsets = [0, 32], sizes = [8, 32], strides = [1, 1]} : vector<8x64xf32> to vector<8x32xf32>
    %73 = vector.extract_strided_slice %63 {offsets = [0, 32], sizes = [8, 32], strides = [1, 1]} : vector<8x64xf32> to vector<8x32xf32>
    %74 = arith.addf %73, %57 : vector<8x32xf32>
    %75 = arith.mulf %71, %74 : vector<8x32xf32>
    %76 = arith.addf %72, %75 : vector<8x32xf32>
    %77 = math.tanh %76 : vector<8x32xf32>
    %78 = arith.subf %77, %58 : vector<8x32xf32>
    %79 = vector.broadcast %61 : vector<8x1xf32> to vector<8x32xf32>
    %80 = arith.mulf %79, %78 : vector<8x32xf32>
    %81 = arith.addf %58, %80 : vector<8x32xf32>
    %c0_35 = arith.constant 0 : index
    %c1 = arith.constant 1 : index
    %c0_36 = arith.constant 0 : index
    %82 = vector.load %arg15[%c0_35, %c1, %c0_36] : memref<8x8x64xf32, #tpu.memory_space<vmem>>, vector<8x1x64xf32>
    %83 = vector.shape_cast %82 : vector<8x1x64xf32> to vector<8x64xf32>
    %84 = vector.extract_strided_slice %44 {offsets = [0, 1], sizes = [8, 1], strides = [1, 1]} : vector<8x8xf32> to vector<8x1xf32>
    %85 = arith.truncf %81 : vector<8x32xf32> to vector<8x32xbf16>
    %cst_37 = arith.constant dense<0.000000e+00> : vector<8x64xf32>
    %86 = tpu.matmul %85, %54, %cst_37 {dimension_numbers = #tpu.dot_dimension_numbers<[1], [0], [0], [1], [0, 0, 1, 1], [], []>} : vector<8x32xbf16>, vector<32x64xbf16>, vector<8x64xf32> -> vector<8x64xf32>
    %87 = vector.extract_strided_slice %83 {offsets = [0, 0], sizes = [8, 32], strides = [1, 1]} : vector<8x64xf32> to vector<8x32xf32>
    %88 = vector.extract_strided_slice %86 {offsets = [0, 0], sizes = [8, 32], strides = [1, 1]} : vector<8x64xf32> to vector<8x32xf32>
    %89 = arith.addf %87, %88 : vector<8x32xf32>
    %90 = arith.negf %89 : vector<8x32xf32>
    %91 = math.exp %90 : vector<8x32xf32>
    %cst_38 = arith.constant 1.000000e+00 : f32
    %92 = vector.broadcast %cst_38 : f32 to vector<8x32xf32>
    %93 = arith.addf %92, %91 : vector<8x32xf32>
    %94 = arith.divf %92, %93 : vector<8x32xf32>
    %95 = vector.extract_strided_slice %83 {offsets = [0, 32], sizes = [8, 32], strides = [1, 1]} : vector<8x64xf32> to vector<8x32xf32>
    %96 = vector.extract_strided_slice %86 {offsets = [0, 32], sizes = [8, 32], strides = [1, 1]} : vector<8x64xf32> to vector<8x32xf32>
    %97 = arith.addf %96, %57 : vector<8x32xf32>
    %98 = arith.mulf %94, %97 : vector<8x32xf32>
    %99 = arith.addf %95, %98 : vector<8x32xf32>
    %100 = math.tanh %99 : vector<8x32xf32>
    %101 = arith.subf %100, %81 : vector<8x32xf32>
    %102 = vector.broadcast %84 : vector<8x1xf32> to vector<8x32xf32>
    %103 = arith.mulf %102, %101 : vector<8x32xf32>
    %104 = arith.addf %81, %103 : vector<8x32xf32>
    %c0_39 = arith.constant 0 : index
    %c2 = arith.constant 2 : index
    %c0_40 = arith.constant 0 : index
    %105 = vector.load %arg15[%c0_39, %c2, %c0_40] : memref<8x8x64xf32, #tpu.memory_space<vmem>>, vector<8x1x64xf32>
    %106 = vector.shape_cast %105 : vector<8x1x64xf32> to vector<8x64xf32>
    %107 = vector.extract_strided_slice %44 {offsets = [0, 2], sizes = [8, 1], strides = [1, 1]} : vector<8x8xf32> to vector<8x1xf32>
    %108 = arith.truncf %104 : vector<8x32xf32> to vector<8x32xbf16>
    %cst_41 = arith.constant dense<0.000000e+00> : vector<8x64xf32>
    %109 = tpu.matmul %108, %54, %cst_41 {dimension_numbers = #tpu.dot_dimension_numbers<[1], [0], [0], [1], [0, 0, 1, 1], [], []>} : vector<8x32xbf16>, vector<32x64xbf16>, vector<8x64xf32> -> vector<8x64xf32>
    %110 = vector.extract_strided_slice %106 {offsets = [0, 0], sizes = [8, 32], strides = [1, 1]} : vector<8x64xf32> to vector<8x32xf32>
    %111 = vector.extract_strided_slice %109 {offsets = [0, 0], sizes = [8, 32], strides = [1, 1]} : vector<8x64xf32> to vector<8x32xf32>
    %112 = arith.addf %110, %111 : vector<8x32xf32>
    %113 = arith.negf %112 : vector<8x32xf32>
    %114 = math.exp %113 : vector<8x32xf32>
    %cst_42 = arith.constant 1.000000e+00 : f32
    %115 = vector.broadcast %cst_42 : f32 to vector<8x32xf32>
    %116 = arith.addf %115, %114 : vector<8x32xf32>
    %117 = arith.divf %115, %116 : vector<8x32xf32>
    %118 = vector.extract_strided_slice %106 {offsets = [0, 32], sizes = [8, 32], strides = [1, 1]} : vector<8x64xf32> to vector<8x32xf32>
    %119 = vector.extract_strided_slice %109 {offsets = [0, 32], sizes = [8, 32], strides = [1, 1]} : vector<8x64xf32> to vector<8x32xf32>
    %120 = arith.addf %119, %57 : vector<8x32xf32>
    %121 = arith.mulf %117, %120 : vector<8x32xf32>
    %122 = arith.addf %118, %121 : vector<8x32xf32>
    %123 = math.tanh %122 : vector<8x32xf32>
    %124 = arith.subf %123, %104 : vector<8x32xf32>
    %125 = vector.broadcast %107 : vector<8x1xf32> to vector<8x32xf32>
    %126 = arith.mulf %125, %124 : vector<8x32xf32>
    %127 = arith.addf %104, %126 : vector<8x32xf32>
    %c0_43 = arith.constant 0 : index
    %c3 = arith.constant 3 : index
    %c0_44 = arith.constant 0 : index
    %128 = vector.load %arg15[%c0_43, %c3, %c0_44] : memref<8x8x64xf32, #tpu.memory_space<vmem>>, vector<8x1x64xf32>
    %129 = vector.shape_cast %128 : vector<8x1x64xf32> to vector<8x64xf32>
    %130 = vector.extract_strided_slice %44 {offsets = [0, 3], sizes = [8, 1], strides = [1, 1]} : vector<8x8xf32> to vector<8x1xf32>
    %131 = arith.truncf %127 : vector<8x32xf32> to vector<8x32xbf16>
    %cst_45 = arith.constant dense<0.000000e+00> : vector<8x64xf32>
    %132 = tpu.matmul %131, %54, %cst_45 {dimension_numbers = #tpu.dot_dimension_numbers<[1], [0], [0], [1], [0, 0, 1, 1], [], []>} : vector<8x32xbf16>, vector<32x64xbf16>, vector<8x64xf32> -> vector<8x64xf32>
    %133 = vector.extract_strided_slice %129 {offsets = [0, 0], sizes = [8, 32], strides = [1, 1]} : vector<8x64xf32> to vector<8x32xf32>
    %134 = vector.extract_strided_slice %132 {offsets = [0, 0], sizes = [8, 32], strides = [1, 1]} : vector<8x64xf32> to vector<8x32xf32>
    %135 = arith.addf %133, %134 : vector<8x32xf32>
    %136 = arith.negf %135 : vector<8x32xf32>
    %137 = math.exp %136 : vector<8x32xf32>
    %cst_46 = arith.constant 1.000000e+00 : f32
    %138 = vector.broadcast %cst_46 : f32 to vector<8x32xf32>
    %139 = arith.addf %138, %137 : vector<8x32xf32>
    %140 = arith.divf %138, %139 : vector<8x32xf32>
    %141 = vector.extract_strided_slice %129 {offsets = [0, 32], sizes = [8, 32], strides = [1, 1]} : vector<8x64xf32> to vector<8x32xf32>
    %142 = vector.extract_strided_slice %132 {offsets = [0, 32], sizes = [8, 32], strides = [1, 1]} : vector<8x64xf32> to vector<8x32xf32>
    %143 = arith.addf %142, %57 : vector<8x32xf32>
    %144 = arith.mulf %140, %143 : vector<8x32xf32>
    %145 = arith.addf %141, %144 : vector<8x32xf32>
    %146 = math.tanh %145 : vector<8x32xf32>
    %147 = arith.subf %146, %127 : vector<8x32xf32>
    %148 = vector.broadcast %130 : vector<8x1xf32> to vector<8x32xf32>
    %149 = arith.mulf %148, %147 : vector<8x32xf32>
    %150 = arith.addf %127, %149 : vector<8x32xf32>
    %c0_47 = arith.constant 0 : index
    %c4 = arith.constant 4 : index
    %c0_48 = arith.constant 0 : index
    %151 = vector.load %arg15[%c0_47, %c4, %c0_48] : memref<8x8x64xf32, #tpu.memory_space<vmem>>, vector<8x1x64xf32>
    %152 = vector.shape_cast %151 : vector<8x1x64xf32> to vector<8x64xf32>
    %153 = vector.extract_strided_slice %44 {offsets = [0, 4], sizes = [8, 1], strides = [1, 1]} : vector<8x8xf32> to vector<8x1xf32>
    %154 = arith.truncf %150 : vector<8x32xf32> to vector<8x32xbf16>
    %cst_49 = arith.constant dense<0.000000e+00> : vector<8x64xf32>
    %155 = tpu.matmul %154, %54, %cst_49 {dimension_numbers = #tpu.dot_dimension_numbers<[1], [0], [0], [1], [0, 0, 1, 1], [], []>} : vector<8x32xbf16>, vector<32x64xbf16>, vector<8x64xf32> -> vector<8x64xf32>
    %156 = vector.extract_strided_slice %152 {offsets = [0, 0], sizes = [8, 32], strides = [1, 1]} : vector<8x64xf32> to vector<8x32xf32>
    %157 = vector.extract_strided_slice %155 {offsets = [0, 0], sizes = [8, 32], strides = [1, 1]} : vector<8x64xf32> to vector<8x32xf32>
    %158 = arith.addf %156, %157 : vector<8x32xf32>
    %159 = arith.negf %158 : vector<8x32xf32>
    %160 = math.exp %159 : vector<8x32xf32>
    %cst_50 = arith.constant 1.000000e+00 : f32
    %161 = vector.broadcast %cst_50 : f32 to vector<8x32xf32>
    %162 = arith.addf %161, %160 : vector<8x32xf32>
    %163 = arith.divf %161, %162 : vector<8x32xf32>
    %164 = vector.extract_strided_slice %152 {offsets = [0, 32], sizes = [8, 32], strides = [1, 1]} : vector<8x64xf32> to vector<8x32xf32>
    %165 = vector.extract_strided_slice %155 {offsets = [0, 32], sizes = [8, 32], strides = [1, 1]} : vector<8x64xf32> to vector<8x32xf32>
    %166 = arith.addf %165, %57 : vector<8x32xf32>
    %167 = arith.mulf %163, %166 : vector<8x32xf32>
    %168 = arith.addf %164, %167 : vector<8x32xf32>
    %169 = math.tanh %168 : vector<8x32xf32>
    %170 = arith.subf %169, %150 : vector<8x32xf32>
    %171 = vector.broadcast %153 : vector<8x1xf32> to vector<8x32xf32>
    %172 = arith.mulf %171, %170 : vector<8x32xf32>
    %173 = arith.addf %150, %172 : vector<8x32xf32>
    %c0_51 = arith.constant 0 : index
    %c5 = arith.constant 5 : index
    %c0_52 = arith.constant 0 : index
    %174 = vector.load %arg15[%c0_51, %c5, %c0_52] : memref<8x8x64xf32, #tpu.memory_space<vmem>>, vector<8x1x64xf32>
    %175 = vector.shape_cast %174 : vector<8x1x64xf32> to vector<8x64xf32>
    %176 = vector.extract_strided_slice %44 {offsets = [0, 5], sizes = [8, 1], strides = [1, 1]} : vector<8x8xf32> to vector<8x1xf32>
    %177 = arith.truncf %173 : vector<8x32xf32> to vector<8x32xbf16>
    %cst_53 = arith.constant dense<0.000000e+00> : vector<8x64xf32>
    %178 = tpu.matmul %177, %54, %cst_53 {dimension_numbers = #tpu.dot_dimension_numbers<[1], [0], [0], [1], [0, 0, 1, 1], [], []>} : vector<8x32xbf16>, vector<32x64xbf16>, vector<8x64xf32> -> vector<8x64xf32>
    %179 = vector.extract_strided_slice %175 {offsets = [0, 0], sizes = [8, 32], strides = [1, 1]} : vector<8x64xf32> to vector<8x32xf32>
    %180 = vector.extract_strided_slice %178 {offsets = [0, 0], sizes = [8, 32], strides = [1, 1]} : vector<8x64xf32> to vector<8x32xf32>
    %181 = arith.addf %179, %180 : vector<8x32xf32>
    %182 = arith.negf %181 : vector<8x32xf32>
    %183 = math.exp %182 : vector<8x32xf32>
    %cst_54 = arith.constant 1.000000e+00 : f32
    %184 = vector.broadcast %cst_54 : f32 to vector<8x32xf32>
    %185 = arith.addf %184, %183 : vector<8x32xf32>
    %186 = arith.divf %184, %185 : vector<8x32xf32>
    %187 = vector.extract_strided_slice %175 {offsets = [0, 32], sizes = [8, 32], strides = [1, 1]} : vector<8x64xf32> to vector<8x32xf32>
    %188 = vector.extract_strided_slice %178 {offsets = [0, 32], sizes = [8, 32], strides = [1, 1]} : vector<8x64xf32> to vector<8x32xf32>
    %189 = arith.addf %188, %57 : vector<8x32xf32>
    %190 = arith.mulf %186, %189 : vector<8x32xf32>
    %191 = arith.addf %187, %190 : vector<8x32xf32>
    %192 = math.tanh %191 : vector<8x32xf32>
    %193 = arith.subf %192, %173 : vector<8x32xf32>
    %194 = vector.broadcast %176 : vector<8x1xf32> to vector<8x32xf32>
    %195 = arith.mulf %194, %193 : vector<8x32xf32>
    %196 = arith.addf %173, %195 : vector<8x32xf32>
    %c0_55 = arith.constant 0 : index
    %c6 = arith.constant 6 : index
    %c0_56 = arith.constant 0 : index
    %197 = vector.load %arg15[%c0_55, %c6, %c0_56] : memref<8x8x64xf32, #tpu.memory_space<vmem>>, vector<8x1x64xf32>
    %198 = vector.shape_cast %197 : vector<8x1x64xf32> to vector<8x64xf32>
    %199 = vector.extract_strided_slice %44 {offsets = [0, 6], sizes = [8, 1], strides = [1, 1]} : vector<8x8xf32> to vector<8x1xf32>
    %200 = arith.truncf %196 : vector<8x32xf32> to vector<8x32xbf16>
    %cst_57 = arith.constant dense<0.000000e+00> : vector<8x64xf32>
    %201 = tpu.matmul %200, %54, %cst_57 {dimension_numbers = #tpu.dot_dimension_numbers<[1], [0], [0], [1], [0, 0, 1, 1], [], []>} : vector<8x32xbf16>, vector<32x64xbf16>, vector<8x64xf32> -> vector<8x64xf32>
    %202 = vector.extract_strided_slice %198 {offsets = [0, 0], sizes = [8, 32], strides = [1, 1]} : vector<8x64xf32> to vector<8x32xf32>
    %203 = vector.extract_strided_slice %201 {offsets = [0, 0], sizes = [8, 32], strides = [1, 1]} : vector<8x64xf32> to vector<8x32xf32>
    %204 = arith.addf %202, %203 : vector<8x32xf32>
    %205 = arith.negf %204 : vector<8x32xf32>
    %206 = math.exp %205 : vector<8x32xf32>
    %cst_58 = arith.constant 1.000000e+00 : f32
    %207 = vector.broadcast %cst_58 : f32 to vector<8x32xf32>
    %208 = arith.addf %207, %206 : vector<8x32xf32>
    %209 = arith.divf %207, %208 : vector<8x32xf32>
    %210 = vector.extract_strided_slice %198 {offsets = [0, 32], sizes = [8, 32], strides = [1, 1]} : vector<8x64xf32> to vector<8x32xf32>
    %211 = vector.extract_strided_slice %201 {offsets = [0, 32], sizes = [8, 32], strides = [1, 1]} : vector<8x64xf32> to vector<8x32xf32>
    %212 = arith.addf %211, %57 : vector<8x32xf32>
    %213 = arith.mulf %209, %212 : vector<8x32xf32>
    %214 = arith.addf %210, %213 : vector<8x32xf32>
    %215 = math.tanh %214 : vector<8x32xf32>
    %216 = arith.subf %215, %196 : vector<8x32xf32>
    %217 = vector.broadcast %199 : vector<8x1xf32> to vector<8x32xf32>
    %218 = arith.mulf %217, %216 : vector<8x32xf32>
    %219 = arith.addf %196, %218 : vector<8x32xf32>
    %c0_59 = arith.constant 0 : index
    %c7 = arith.constant 7 : index
    %c0_60 = arith.constant 0 : index
    %220 = vector.load %arg15[%c0_59, %c7, %c0_60] : memref<8x8x64xf32, #tpu.memory_space<vmem>>, vector<8x1x64xf32>
    %221 = vector.shape_cast %220 : vector<8x1x64xf32> to vector<8x64xf32>
    %222 = vector.extract_strided_slice %44 {offsets = [0, 7], sizes = [8, 1], strides = [1, 1]} : vector<8x8xf32> to vector<8x1xf32>
    %223 = arith.truncf %219 : vector<8x32xf32> to vector<8x32xbf16>
    %cst_61 = arith.constant dense<0.000000e+00> : vector<8x64xf32>
    %224 = tpu.matmul %223, %54, %cst_61 {dimension_numbers = #tpu.dot_dimension_numbers<[1], [0], [0], [1], [0, 0, 1, 1], [], []>} : vector<8x32xbf16>, vector<32x64xbf16>, vector<8x64xf32> -> vector<8x64xf32>
    %225 = vector.extract_strided_slice %221 {offsets = [0, 0], sizes = [8, 32], strides = [1, 1]} : vector<8x64xf32> to vector<8x32xf32>
    %226 = vector.extract_strided_slice %224 {offsets = [0, 0], sizes = [8, 32], strides = [1, 1]} : vector<8x64xf32> to vector<8x32xf32>
    %227 = arith.addf %225, %226 : vector<8x32xf32>
    %228 = arith.negf %227 : vector<8x32xf32>
    %229 = math.exp %228 : vector<8x32xf32>
    %cst_62 = arith.constant 1.000000e+00 : f32
    %230 = vector.broadcast %cst_62 : f32 to vector<8x32xf32>
    %231 = arith.addf %230, %229 : vector<8x32xf32>
    %232 = arith.divf %230, %231 : vector<8x32xf32>
    %233 = vector.extract_strided_slice %221 {offsets = [0, 32], sizes = [8, 32], strides = [1, 1]} : vector<8x64xf32> to vector<8x32xf32>
    %234 = vector.extract_strided_slice %224 {offsets = [0, 32], sizes = [8, 32], strides = [1, 1]} : vector<8x64xf32> to vector<8x32xf32>
    %235 = arith.addf %234, %57 : vector<8x32xf32>
    %236 = arith.mulf %232, %235 : vector<8x32xf32>
    %237 = arith.addf %233, %236 : vector<8x32xf32>
    %238 = math.tanh %237 : vector<8x32xf32>
    %239 = arith.subf %238, %219 : vector<8x32xf32>
    %240 = vector.broadcast %222 : vector<8x1xf32> to vector<8x32xf32>
    %241 = arith.mulf %240, %239 : vector<8x32xf32>
    %242 = arith.addf %219, %241 : vector<8x32xf32>
    %243 = tpu.concatenate %2, %242, %1 in 1 : vector<8x32xf32>, vector<8x32xf32>, vector<8x32xf32> -> vector<8x96xf32>
    %244 = arith.truncf %243 : vector<8x96xf32> to vector<8x96xbf16>
    %c0_63 = arith.constant 0 : index
    %c0_64 = arith.constant 0 : index
    %245 = vector.load %arg12[%c0_63, %c0_64] : memref<96x32xbf16, #tpu.memory_space<vmem>>, vector<96x32xbf16>
    %cst_65 = arith.constant dense<0.000000e+00> : vector<8x32xf32>
    %246 = tpu.matmul %244, %245, %cst_65 {dimension_numbers = #tpu.dot_dimension_numbers<[1], [0], [0], [1], [0, 0, 1, 1], [], []>} : vector<8x96xbf16>, vector<96x32xbf16>, vector<8x32xf32> -> vector<8x32xf32>
    %c0_66 = arith.constant 0 : index
    %c0_67 = arith.constant 0 : index
    %247 = vector.load %arg13[%c0_66, %c0_67] : memref<1x32xf32, #tpu.memory_space<vmem>>, vector<1x32xf32>
    %248 = vector.broadcast %247 : vector<1x32xf32> to vector<8x32xf32>
    %249 = arith.addf %246, %248 : vector<8x32xf32>
    %cst_68 = arith.constant 0.000000e+00 : f32
    %250 = vector.broadcast %cst_68 : f32 to vector<8x32xf32>
    %251 = arith.maximumf %249, %250 : vector<8x32xf32>
    %c0_69 = arith.constant 0 : index
    %c0_70 = arith.constant 0 : index
    %252 = vector.load %arg14[%c0_69, %c0_70] : memref<8x32xf32, #tpu.memory_space<vmem>>, vector<8x32xf32>
    tpu.vector_store %arg14[%c0_69, %c0_70], %251 {strides = array<i32>} : memref<8x32xf32, #tpu.memory_space<vmem>>, vector<8x32xf32>,
    return
  }
  func.func @transform_0(%arg0: i32) -> (i32, i32, i32) {
    %c0_i32 = arith.constant 0 : i32
    %c0_i32_0 = arith.constant 0 : i32
    %c0_i32_1 = arith.constant 0 : i32
    return %arg0, %c0_i32, %c0_i32_0 : i32, i32, i32
  }
  func.func @transform_1(%arg0: i32) -> (i32, i32) {
    %c0_i32 = arith.constant 0 : i32
    %c0_i32_0 = arith.constant 0 : i32
    return %arg0, %c0_i32 : i32, i32
  }
  func.func @transform_2(%arg0: i32) -> (i32, i32) {
    %c0_i32 = arith.constant 0 : i32
    %c0_i32_0 = arith.constant 0 : i32
    return %arg0, %c0_i32 : i32, i32
  }
  func.func @transform_3(%arg0: i32) -> (i32, i32) {
    %c0_i32 = arith.constant 0 : i32
    %c0_i32_0 = arith.constant 0 : i32
    %c0_i32_1 = arith.constant 0 : i32
    return %c0_i32, %c0_i32_0 : i32, i32
  }
  func.func @transform_4(%arg0: i32) -> (i32, i32) {
    %c0_i32 = arith.constant 0 : i32
    %c0_i32_0 = arith.constant 0 : i32
    %c0_i32_1 = arith.constant 0 : i32
    return %c0_i32, %c0_i32_0 : i32, i32
  }
  func.func @transform_5(%arg0: i32) -> (i32, i32) {
    %c0_i32 = arith.constant 0 : i32
    %c0_i32_0 = arith.constant 0 : i32
    %c0_i32_1 = arith.constant 0 : i32
    return %c0_i32, %c0_i32_0 : i32, i32
  }
  func.func @transform_6(%arg0: i32) -> (i32, i32) {
    %c0_i32 = arith.constant 0 : i32
    %c0_i32_0 = arith.constant 0 : i32
    %c0_i32_1 = arith.constant 0 : i32
    return %c0_i32, %c0_i32_0 : i32, i32
  }
  func.func @transform_7(%arg0: i32) -> (i32, i32) {
    %c0_i32 = arith.constant 0 : i32
    %c0_i32_0 = arith.constant 0 : i32
    %c0_i32_1 = arith.constant 0 : i32
    return %c0_i32, %c0_i32_0 : i32, i32
  }
  func.func @transform_8(%arg0: i32) -> (i32, i32) {
    %c0_i32 = arith.constant 0 : i32
    %c0_i32_0 = arith.constant 0 : i32
    %c0_i32_1 = arith.constant 0 : i32
    return %c0_i32, %c0_i32_0 : i32, i32
  }
  func.func @transform_9(%arg0: i32) -> (i32, i32) {
    %c0_i32 = arith.constant 0 : i32
    %c0_i32_0 = arith.constant 0 : i32
    %c0_i32_1 = arith.constant 0 : i32
    return %c0_i32, %c0_i32_0 : i32, i32
  }
  func.func @transform_10(%arg0: i32) -> (i32, i32) {
    %c0_i32 = arith.constant 0 : i32
    %c0_i32_0 = arith.constant 0 : i32
    %c0_i32_1 = arith.constant 0 : i32
    return %c0_i32, %c0_i32_0 : i32, i32
  }
  func.func @transform_11(%arg0: i32) -> (i32, i32) {
    %c0_i32 = arith.constant 0 : i32
    %c0_i32_0 = arith.constant 0 : i32
    %c0_i32_1 = arith.constant 0 : i32
    return %c0_i32, %c0_i32_0 : i32, i32
  }
  func.func @transform_12(%arg0: i32) -> (i32, i32) {
    %c0_i32 = arith.constant 0 : i32
    %c0_i32_0 = arith.constant 0 : i32
    %c0_i32_1 = arith.constant 0 : i32
    return %c0_i32, %c0_i32_0 : i32, i32
  }
  func.func @transform_13(%arg0: i32) -> (i32, i32) {
    %c0_i32 = arith.constant 0 : i32
    %c0_i32_0 = arith.constant 0 : i32
    return %arg0, %c0_i32 : i32, i32
  }
}

</mosaic_0001>

<bundles_post_ra>
// kernel: tpu_custom_call.1
= control target key start
LH: loop header
LB: loop body
LE: loop exit
PB: predicated region body
PF: predicated region fallthrough
CT: control target
= control target key end

     0   :  { %v70_v1 = vlaneseq  ;;  %v10781_v2 = vmov 1966171168   ;;  %s14866_s0 = inlined_call_operand.vmem [shape: f32[8,8,32], index: 0, kind: input, shape index: {}]   ;;  %s14867_s1 = inlined_call_operand.vmem [shape: f32[8,32], index: 1, kind: input, shape index: {}]   ;;  %s14868_s2 = inlined_call_operand.vmem [shape: f32[8,32], index: 2, kind: input, shape index: {}]   ;;  %s14869_s3 = inlined_call_operand.vmem [shape: bf16[128,32], index: 3, kind: input, shape index: {}]   ;;  %s14870_s4 = inlined_call_operand.vmem [shape: f32[1,32], index: 4, kind: input, shape index: {}]   ;;  %s14871_s5 = inlined_call_operand.vmem [shape: f32[1,32], index: 5, kind: input, shape index: {}]   ;;  %s14872_s6 = inlined_call_operand.<no memory space> [shape: f32[1,1], index: 6, kind: input, shape index: {}]   ;;  %s14873_s7 = inlined_call_operand.vmem [shape: bf16[32,64], index: 7, kind: input, shape index: {}]   ;;  %s14874_s8 = inlined_call_operand.vmem [shape: bf16[32,64], index: 8, kind: input, shape index: {}]   ;;  %s14875_s9 = inlined_call_operand.vmem [shape: f32[1,64], index: 9, kind: input, shape index: {}]   ;;  %s14876_s10 = inlined_call_operand.vmem [shape: f32[1,32], index: 10, kind: input, shape index: {}]   ;;  %s14877_s11 = inlined_call_operand.vmem [shape: bf16[96,32], index: 11, kind: input, shape index: {}]   ;;  %s14878_s12 = inlined_call_operand.vmem [shape: f32[1,32], index: 12, kind: input, shape index: {}]   ;;  %s14879_s13 = inlined_call_operand.hbm [shape: f32[8,32], index: 13, kind: output, shape index: {}]  }
   0x1   :  { %v56_v0 = vld [vmem:[%s14868_s2] sm:$0xff]  ;;  %v68_v3 = vunpack.c.l.s4 %v10781_v2  ;;  %v10865_v4 = vld [vmem:[%s14866_s0 + $0x10] sm:$0xff]  ;;  %v10870_v5 = vld [vmem:[%s14866_s0 + $0x18] sm:$0xff] }
   0x2   :  { %v55_v6 = vld [vmem:[%s14867_s1] sm:$0xff]  ;;  %v10876_v7 = vshrl.u32 %v70_v1, 7  ;;  %v10047_v8 = vpack.c.bf16 %v10870_v5, %v10865_v4  ;;  %v99_v10 = vpack.c.bf16 %v56_v0, %v56_v0  ;;  %v10895_v17 = vld [vmem:[%s14866_s0 + $0x8] sm:$0xff]  ;;  %v10311_v28 = vld [vmem:[%s14869_s3 + $0x10] sm:$0xff]   ;;  %v10911_v29 = vpack.c.bf16 %v10865_v4, %v10865_v4 }
   0x3   :  { %v69_v9 = vunpack.c.0.s8 %v68_v3  ;;  %v65_v11 = vpack.c.bf16 %v55_v6, %v55_v6  ;;  %v10309_v12 = vld [vmem:[%s14869_s3] sm:$0xff]   ;;  %v10310_v18 = vld [vmem:[%s14869_s3 + $0x8] sm:$0xff]   ;;  %v10915_v30 = vpack.c.bf16 %v10895_v17, %v10895_v17  ;;  %v10312_v45 = vld [vmem:[%s14869_s3 + $0x18] sm:$0xff]   ;;  %v10932_v54 = vpack.c.bf16 %v10870_v5, %v10870_v5 }
   0x4   :  { %15123 = vst [vmem:[#allocation7_spill] sm:$0xff] %v10876_v7  ;;  %v10887_v14 = vld [vmem:[%s14866_s0] sm:$0xff]  ;;  %10099 = vmatprep.subr.bf16.mxu0 %v10309_v12  ;;  %v10890_v16 = vsub.s32 0, %v10876_v7 }
   0x5   :  { %v72_v13 = vsub.s32 %v69_v9, %v10876_v7  ;;  %10100 = vmatpush3.bf16.msra.mxu0 %v10309_v12  ;;  %v10902_v22 = vpack.c.bf16 %v10887_v14, %v10887_v14 }
   0x6   :  { %15124 = vst [vmem:[#allocation8_spill] sm:$0xff] %v10890_v16  ;;  %10101 = vmatprep.subr.bf16.mxu0 %v10310_v18 }
   0x7   :  { %v107_v15 = vrot.slane %v99_v10, %v72_v13  ;;  %v73_v19 = vrot.slane %v65_v11, %v72_v13 }
   0x9   :  { %v115_v20 = vrot.slane %v107_v15, %v72_v13  ;;  %v108_v21 = vcombine.high %v107_v15, %v107_v15  ;;  %v81_v23 = vrot.slane %v73_v19, %v72_v13  ;;  %10102 = vmatpush3.bf16.msra.mxu0 %v10310_v18  ;;  %v74_v40 = vcombine.high %v73_v19, %v73_v19 }
   0xa   :  { %10103 = vmatprep.subr.bf16.mxu0 %v10311_v28 }
   0xb   :  { %v9935_v24 = vpack.i.b16 %v115_v20, %v115_v20  ;;  %v10904_v25 = vrot.slane %v108_v21, %v72_v13  ;;  %v126_v26 = vunpack.i.h.s16 %v115_v20  ;;  %v123_v27 = vcombine.high %v115_v20, %v115_v20 }
   0xc   :  { %v9931_v31 = vpack.i.b16 %v81_v23, %v81_v23  ;;  %v92_v32 = vunpack.i.h.s16 %v81_v23  ;;  %v88_v57 = vrot.slane %v74_v40, %v72_v13 }
   0xd   :  { %v248_v33 = vrot.slane %v9935_v24, %v10890_v16  ;;  %v9936_v34 = vpack.i.b16 %v10904_v25, %v10904_v25  ;;  %v238_v35 = vpack.i.b16 %v126_v26, %v126_v26  ;;  %v128_v36 = vunpack.i.h.s16 %v10904_v25  ;;  %10104 = vmatpush3.bf16.msra.mxu0 %v10311_v28 }
   0xe   :  { %v144_v37 = vrot.slane %v9931_v31, %v10890_v16  ;;  %v134_v38 = vpack.i.b16 %v92_v32, %v92_v32  ;;  %v130_v39 = vunpack.i.h.s16 %v123_v27  ;;  %v9937_v48 = vpack.i.b16 %v123_v27, %v123_v27  ;;  %10105 = vmatprep.subr.bf16.mxu0 %v10312_v45 }
   0xf   :  { %v278_v41 = vpack.i.b16 %v248_v33, %v248_v33  ;;  %v256_v42 = vrot.slane %v9936_v34, %v10890_v16  ;;  %v252_v43 = vrot.slane %v238_v35, %v10890_v16  ;;  %v240_v44 = vpack.i.b16 %v128_v36, %v128_v36 }
  0x10   :  { %v174_v46 = vpack.i.b16 %v144_v37, %v144_v37  ;;  %v148_v47 = vrot.slane %v134_v38, %v10890_v16  ;;  %v242_v49 = vpack.i.b16 %v130_v39, %v130_v39 }
  0x11   :  { %v283_v50 = vrot.slane %v278_v41, %v10890_v16  ;;  %v292_v51 = vpack.i.b16 %v256_v42, %v256_v42  ;;  %v285_v52 = vpack.i.b16 %v252_v43, %v252_v43  ;;  %v260_v53 = vrot.slane %v240_v44, %v10890_v16 }
  0x12   :  { %v10935_v55 = vrot.slane %v174_v46, %v10890_v16  ;;  %v181_v56 = vpack.i.b16 %v148_v47, %v148_v47 }
  0x13   :  { %19 = vsyncpa [#allocation5], 0  ;;  %v333_v58 = vmul.bf16 %v283_v50, %v10902_v22  ;;  %v10939_v59 = vrot.slane %v292_v51, %v10890_v16  ;;  %v290_v60 = vrot.slane %v285_v52, %v10890_v16  ;;  %v299_v61 = vpack.i.b16 %v260_v53, %v260_v53  ;;  %10106 = vmatpush3.bf16.msra.mxu0 %v10312_v45  ;;  %v10313_v62 = vld [vmem:[%s14869_s3 + $0x20] sm:$0xff]   ;;  %s10782_s30 = smov 32   ;;  %v10972_v18 = vld [vmem:[%s14866_s0 + $0x28] sm:$0xff]  ;;  %s10783_s22 = smov 64  }
  0x14   :  { %v10946_v63 = vrot.slane %v181_v56, %v10890_v16  ;;  %v264_v0 = vrot.slane %v9937_v48, %v10890_v16  ;;  %v268_v2 = vrot.slane %v242_v49, %v10890_v16  ;;  %v341_v10 = vsub.bf16 %v10902_v22, %v10935_v55  ;;  %v10962_v11 = vld [vmem:[%s14866_s0 + $0x20] sm:$0xff]  ;;  %10107 = vmatprep.subr.bf16.mxu0 %v10313_v62  ;;  %v10314_v20 = vld [vmem:[%s14869_s3 + $0x28] sm:$0xff]   ;;  %s10784_s25 = smov 96   ;;  %s10788_s17 = smov [#allocation4]  }
  0x15   :  { %381 = vrot.lane.b32.xlu0 %v333_v58, %s10782_s30  ;;  %v335_v3 = vmul.bf16 %v10939_v59, %v10911_v29  ;;  %v334_v6 = vmul.bf16 %v290_v60, %v10915_v30  ;;  %v10955_v9 = vrot.slane %v299_v61, %v10890_v16  ;;  %v89_v12 = vcombine.high %v81_v23, %v81_v23  ;;  %v10316_v58 = vld [vmem:[%s14869_s3 + $0x38] sm:$0xff]   ;;  %s9923_s18 = sshll.u32 %s10788_s17, 4  ;;  %s9924_s18 = int_to_ptr.vmem [resolvable:$true] %s9923_s18 }
  0x16   :  { %v342_v15 = vsub.bf16 %v10915_v30, %v10946_v63  ;;  %v9932_v19 = vpack.i.b16 %v88_v57, %v88_v57  ;;  %v357_v21 = vsub.bf16 %v10902_v22, %v283_v50  ;;  %v10980_v23 = vpack.c.bf16 %v10962_v11, %v10962_v11  ;;  %p10762_p1 = scmp.lt.s32.totalorder %s9924_s18, %s9924_s18 }
  0x17   :  { %385 = vrot.lane.b32.xlu1 %v335_v3, %s10782_s30  ;;  %v336_v13 = vmul.bf16 %v10955_v9, %v10932_v54  ;;  %10108 = vmatpush3.bf16.msra.mxu0 %v10313_v62  ;;  %v306_v24 = vpack.i.b16 %v264_v0, %v264_v0  ;;  %v94_v26 = vunpack.i.h.s16 %v88_v57  ;;  %v349_v27 = vand.u32 2147450879, %v341_v10 }
  0x18   :  { %v313_v28 = vpack.i.b16 %v268_v2, %v268_v2  ;;  %v152_v31 = vrot.slane %v9932_v19, %v10890_v16  ;;  %v124_v32 = vcombine.high %v10904_v25, %v10904_v25  ;;  %v10988_v33 = vpack.c.bf16 %v10972_v18, %v10972_v18  ;;  %10109 = vmatprep.subr.bf16.mxu0 %v10314_v20  ;;  %v10315_v25 = vld [vmem:[%s14869_s3 + $0x30] sm:$0xff]   ;;  %v11036_v19 = vld [vmem:[%s14866_s0 + $0x38] sm:$0xff] }
  0x19   :  { %383 = vrot.lane.b32.xlu0 %v334_v6, %s10782_s30  ;;  %v136_v34 = vpack.i.b16 %v94_v26, %v94_v26  ;;  %v9933_v35 = vpack.i.b16 %v89_v12, %v89_v12  ;;  %v96_v36 = vunpack.i.h.s16 %v89_v12  ;;  %v350_v37 = vand.u32 2147450879, %v342_v15  ;;  %v11024_v2 = vld [vmem:[%s14866_s0 + $0x30] sm:$0xff] }
  0x1a   :  { %v358_v38 = vsub.bf16 %v10915_v30, %v290_v60  ;;  %v188_v39 = vpack.i.b16 %v152_v31, %v152_v31  ;;  %v132_v40 = vunpack.i.h.s16 %v124_v32  ;;  %v10996_v41 = vrot.slane %v306_v24, %v10890_v16 }
  0x1b   :  { %387 = vrot.lane.b32.xlu1 %v336_v13, %s10782_s30  ;;  %10110 = vmatpush3.bf16.msra.mxu0 %v10314_v20  ;;  %v156_v42 = vrot.slane %v136_v34, %v10890_v16  ;;  %v138_v43 = vpack.i.b16 %v96_v36, %v96_v36  ;;  %v90_v44 = vcombine.high %v88_v57, %v88_v57  ;;  %v365_v45 = vand.u32 2147450879, %v357_v21 }
  0x1c   :  { %v11001_v46 = vrot.slane %v313_v28, %v10890_v16  ;;  %v11004_v47 = vrot.slane %v188_v39, %v10890_v16  ;;  %v9938_v48 = vpack.i.b16 %v124_v32, %v124_v32  ;;  %v244_v50 = vpack.i.b16 %v132_v40, %v132_v40  ;;  %10111 = vmatprep.subr.bf16.mxu0 %v10315_v25 }
  0x1d   :  { %405 = vrot.lane.b32.xlu0 %v349_v27, %s10783_s22  ;;  %v195_v49 = vpack.i.b16 %v156_v42, %v156_v42  ;;  %v160_v51 = vrot.slane %v9933_v35, %v10890_v16  ;;  %v9934_v52 = vpack.i.b16 %v90_v44, %v90_v44  ;;  %v366_v53 = vand.u32 2147450879, %v358_v38 }
  0x1e   :  { %v164_v56 = vrot.slane %v138_v43, %v10890_v16  ;;  %v98_v57 = vunpack.i.h.s16 %v90_v44  ;;  %v337_v60 = vmul.bf16 %v10996_v41, %v10980_v23  ;;  %v343_v0 = vsub.bf16 %v10911_v29, %v11004_v47 }
  0x1f   :  { %407 = vrot.lane.b32.xlu1 %v350_v37, %s10783_s22  ;;  %10112 = vmatpush3.bf16.msra.mxu0 %v10315_v25  ;;  %v11015_v61 = vrot.slane %v195_v49, %v10890_v16  ;;  %v168_v62 = vrot.slane %v9934_v52, %v10890_v16  ;;  %v272_v3 = vrot.slane %v9938_v48, %v10890_v16  ;;  %vm445_vm0 = vcmask 261120  }
  0x20   :  { %v140_v6 = vpack.i.b16 %v98_v57, %v98_v57  ;;  %10113 = vmatprep.subr.bf16.mxu0 %v10316_v58  ;;  %v338_v10 = vmul.bf16 %v11001_v46, %v10988_v33  ;;  %v276_v12 = vrot.slane %v244_v50, %v10890_v16  ;;  %v202_v13 = vpack.i.b16 %v160_v51, %v160_v51 }
  0x21   :  { %429 = vrot.lane.b32.xlu0 %v365_v45, %s10784_s25  ;;  %v344_v15 = vsub.bf16 %v10932_v54, %v11015_v61  ;;  %v209_v20 = vpack.i.b16 %v164_v56, %v164_v56  ;;  %v11041_v24 = vpack.c.bf16 %v11024_v2, %v11024_v2  ;;  %v216_v26 = vpack.i.b16 %v168_v62, %v168_v62 }
  0x22   :  { %v172_v21 = vrot.slane %v140_v6, %v10890_v16  ;;  %v351_v27 = vand.u32 2147450879, %v343_v0  ;;  %v359_v28 = vsub.bf16 %v10911_v29, %v10939_v59  ;;  %v320_v31 = vpack.i.b16 %v272_v3, %v272_v3 }
  0x23   :  { %431 = vrot.lane.b32.xlu1 %v366_v53, %s10784_s25  ;;  %10114 = vmatpush3.bf16.msra.mxu0 %v10316_v58  ;;  %v360_v34 = vsub.bf16 %v10932_v54, %v10955_v9  ;;  %v11050_v35 = vpack.c.bf16 %v11036_v19, %v11036_v19  ;;  %v11053_v36 = vrot.slane %v202_v13, %v10890_v16  ;;  %v352_v38 = vand.u32 2147450879, %v344_v15 }
  0x24   :  { %v223_v32 = vpack.i.b16 %v172_v21, %v172_v21  ;;  %v229_v37 = vmul.bf16 %v10935_v55, %v10902_v22  ;;  %v327_v39 = vpack.i.b16 %v276_v12, %v276_v12  ;;  %v11059_v59 = vrot.slane %v209_v20, %v10890_v16 }
  0x25   :  { %389 = vrot.lane.b32.xlu0 %v337_v60, %s10782_s30  ;;  %v231_v9 = vmul.bf16 %v11004_v47, %v10911_v29  ;;  %v11064_v40 = vrot.slane %v216_v26, %v10890_v16  ;;  %v230_v42 = vmul.bf16 %v10946_v63, %v10915_v30  ;;  %v232_v43 = vmul.bf16 %v11015_v61, %v10932_v54  ;;  %v11110_v26 = vld [vmem:[%s14873_s7] sm:$0xff]  }
  0x26   :  { %v11067_v25 = vrot.slane %v223_v32, %v10890_v16  ;;  %v367_v44 = vand.u32 2147450879, %v359_v28  ;;  %v325_v45 = vrot.slane %v320_v31, %v10890_v16  ;;  %v233_v48 = vmul.bf16 %v11053_v36, %v10980_v23  ;;  %10215 = vmatprep.subr.bf16.mxu1 %v11110_v26  ;;  %10123 = vmatprep.subr.bf16.mxu0 %v11110_v26 }
  0x27   :  { %391 = vrot.lane.b32.xlu1 %v338_v10, %s10782_s30  ;;  %v234_v49 = vmul.bf16 %v11059_v59, %v10988_v33  ;;  %v235_v50 = vmul.bf16 %v11064_v40, %v11041_v24  ;;  %v368_v52 = vand.u32 2147450879, %v360_v34  ;;  %v332_v53 = vrot.slane %v327_v39, %v10890_v16  ;;  %10217 = vmatpush3.bf16.msra.mxu1 %v11110_v26  ;;  %v11134_v34 = vld [vmem:[%s14874_s8] sm:$0xff]  }
  0x28   :  { %v236_v51 = vmul.bf16 %v11067_v25, %v11050_v35  ;;  %v339_v56 = vmul.bf16 %v325_v45, %v11041_v24  ;;  %v345_v57 = vsub.bf16 %v10980_v23, %v11053_v36  ;;  %v346_v60 = vsub.bf16 %v10988_v33, %v11059_v59 }
  0x29   :  { %409 = vrot.lane.b32.xlu0 %v351_v27, %s10783_s22  ;;  %v340_v58 = vmul.bf16 %v332_v53, %v11050_v35  ;;  %v347_v0 = vsub.bf16 %v11041_v24, %v11064_v40  ;;  %v348_v6 = vsub.bf16 %v11050_v35, %v11067_v25  ;;  %v361_v12 = vsub.bf16 %v10980_v23, %v10996_v41  ;;  %v11115_v41 = vld [vmem:[%s14873_s7 + $0x8] sm:$0xff]  }
  0x2a   :  { %v353_v62 = vand.u32 2147450879, %v345_v57  ;;  %v354_v3 = vand.u32 2147450879, %v346_v60  ;;  %v362_v15 = vsub.bf16 %v10988_v33, %v11001_v46  ;;  %v363_v21 = vsub.bf16 %v11041_v24, %v325_v45  ;;  %10216 = vmatprep.subr.bf16.mxu1 %v11115_v41 }
  0x2b   :  { %411 = vrot.lane.b32.xlu1 %v352_v38, %s10783_s22  ;;  %v355_v10 = vand.u32 2147450879, %v347_v0  ;;  %v356_v13 = vand.u32 2147450879, %v348_v6  ;;  %v369_v20 = vand.u32 2147450879, %v361_v12  ;;  %v10048_v27 = vpack.c.bf16 %v10972_v18, %v10962_v11  ;;  %10218 = vmatpush3.bf16.msra.mxu1 %v11115_v41 }
  0x2c   :  { %v370_v46 = vand.u32 2147450879, %v362_v15  ;;  %v364_v28 = vsub.bf16 %v11050_v35, %v332_v53  ;;  %v371_v31 = vand.u32 2147450879, %v363_v21  ;;  %v10785_v11 = vmov 0  }
  0x2d   :  { %433 = vrot.lane.b32.xlu0 %v367_v44, %s10784_s25  ;;  %10131 = vmatprep.mubr.msk.bf16.mxu1 %vm445_vm0, %v10048_v27  ;;  %v10049_v32 = vpack.c.bf16 %v11036_v19, %v11024_v2  ;;  %v14880_v38 = vmov 0.0   ;;  %v11144_v2 = vld [vmem:[%s14874_s8 + $0x8] sm:$0xff]   ;;  %vm10787_vm1 = vmmov 0   ;;  %vm470_vm2 = vcmask 523264  }
  0x2e   :  { %10228 = vset.pattern.permute.xlu1 %v10785_v11  ;;  %v372_v18 = vand.u32 2147450879, %v364_v28  ;;  %10227 = vset.pattern.permute.xlu0 %v10785_v11  ;;  %vm14951_vm3 = vcmask 785408   ;;  %v10046_v24 = vpack.c.bf16 %v10895_v17, %v10887_v14  ;;  %v9939_v14 = vld [vmem:[%s14870_s4] ss:$0 sm:$0xff]  ;;  %vm763_vm4 = vcmask 1041409  }
  0x2f   :  { %435 = vrot.lane.b32.xlu1 %v368_v52, %s10784_s25  ;;  %10135 = vmatprep.subr.bf16.mxu1 %v14880_v38  ;;  %vm765_vm5 = vcmask 1042434   ;;  %vm767_vm6 = vcmask 1043459   ;;  %vm769_vm7 = vcmask 1044484   ;;  %vm771_vm8 = vcmask 1045509  }
  0x30   :  { %10132 = vmatmul.mubr.msk.bf16.vlgmr.msra.gmra.mrb[0].mxu1 %vm445_vm0, %v10049_v32  ;;  %vm773_vm9 = vcmask 1046534   ;;  %vm775_vm10 = vcmask 1047559   ;;  %vm778_vm11 = vcmask 64512   ;;  %vm1818_vm12 = vcmask 130112  }
  0x31   :  { %393 = vrot.lane.b32.xlu0 %v339_v56, %s10782_s30  ;;  %10136 = vmatpush3.bf16.msra.mxu1 %v11134_v34  ;;  %vm1825_vm13 = vcmask 195712   ;;  %vm1832_vm14 = vcmask 261312   ;;  %vm2317_vm15 = vcmask 392512  }
  0x32   :  { %10139 = vmatprep.mubr.msk.bf16.mxu1 %vm10787_vm1, %v14880_v38  ;;  %10137 = vmatprep.subr.bf16.mxu1 %v14880_v38 }
  0x33   :  { %395 = vrot.lane.b32.xlu1 %v340_v58, %s10782_s30 }
  0x35   :  { %413 = vrot.lane.b32.xlu0 %v353_v62, %s10783_s22  ;;  %10138 = vmatpush3.bf16.msra.mxu1 %v11144_v2 }
  0x36   :  { %10143 = vmatprep.subr.bf16.mxu1 %v14880_v38 }
  0x37   :  { %415 = vrot.lane.b32.xlu1 %v354_v3, %s10783_s22 }
  0x38   :  { %10140 = vmatmul.mubr.bf16.vlgmr.msra.gmra.mrb[4].mxu1 %v10785_v11 }
  0x39   :  { %417 = vrot.lane.b32.xlu0 %v355_v10, %s10783_s22  ;;  %10144 = vmatpush3.bf16.msra.mxu1 %v11134_v34 }
  0x3a   :  { %10147 = vmatprep.mubr.msk.bf16.mxu1 %vm10787_vm1, %v14880_v38  ;;  %10145 = vmatprep.subr.bf16.mxu1 %v14880_v38 }
  0x3b   :  { %419 = vrot.lane.b32.xlu1 %v356_v13, %s10783_s22 }
  0x3d   :  { %437 = vrot.lane.b32.xlu0 %v369_v20, %s10784_s25  ;;  %10146 = vmatpush3.bf16.msra.mxu1 %v11144_v2 }
  0x3e   :  { %10151 = vmatprep.subr.bf16.mxu1 %v14880_v38 }
  0x3f   :  { %439 = vrot.lane.b32.xlu1 %v370_v46, %s10784_s25 }
  0x41   :  { %441 = vrot.lane.b32.xlu0 %v371_v31, %s10784_s25 }
  0x43   :  { %443 = vrot.lane.b32.xlu1 %v372_v18, %s10784_s25 }
  0x87   :  { %v382_v19 = vpop.permute.xlu0 %381 }
  0x88   :  { %v448_v57 = vsel %vm445_vm0, %v229_v37, %v382_v19 }
  0x89   :  { %v386_v39 = vpop.permute.xlu1 %385 }
  0x8a   :  { %v454_v30 = vsel %vm445_vm0, %v231_v9, %v386_v39 }
  0x8b   :  { %v384_v44 = vpop.permute.xlu0 %383 }
  0x8c   :  { %v451_v58 = vsel %vm445_vm0, %v230_v42, %v384_v44 }
  0x8d   :  { %v388_v45 = vpop.permute.xlu1 %387 }
  0x8e   :  { %v457_v63 = vsel %vm445_vm0, %v232_v43, %v388_v45 }
  0x8f   :  { %v406_v52 = vpop.permute.xlu0 %405 }
  0x90   :  { %v472_v60 = vsel %vm470_vm2, %v448_v57, %v406_v52 }
  0x91   :  { %v408_v53 = vpop.permute.xlu1 %407 }
  0x92   :  { %v474_v62 = vsel %vm470_vm2, %v451_v58, %v408_v53 }
  0x93   :  { %v430_v56 = vpop.permute.xlu0 %429 }
  0x94   :  { %v489_v3 = vsel %vm14951_vm3, %v472_v60, %v430_v56 }
  0x95   :  { %v432_v0 = vpop.permute.xlu1 %431 }
  0x96   :  { %v491_v6 = vsel %vm14951_vm3, %v474_v62, %v432_v0 }
  0x97   :  { %v390_v10 = vpop.permute.xlu0 %389  ;;  %v9940_v12 = vcombine.low %v489_v3, %v491_v6 }
  0x98   :  { %v460_v43 = vsel %vm445_vm0, %v233_v48, %v390_v10 }
  0x99   :  { %v392_v13 = vpop.permute.xlu1 %391  ;;  %10115 = vmatprep.mubr.bf16.mxu0 %v9940_v12 }
  0x9b   :  { %v410_v22 = vpop.permute.xlu0 %409 }
  0x9c   :  { %v476_v42 = vsel %vm470_vm2, %v454_v30, %v410_v22 }
  0x9d   :  { %v412_v55 = vpop.permute.xlu1 %411 }
  0x9e   :  { %v478_v15 = vsel %vm470_vm2, %v457_v63, %v412_v55 }
  0x9f   :  { %v434_v37 = vpop.permute.xlu0 %433 }
  0xa0   :  { %v493_v21 = vsel %vm14951_vm3, %v476_v42, %v434_v37 }
  0xa1   :  { %v436_v20 = vpop.permute.xlu1 %435 }
  0xa2   :  { %v495_v27 = vsel %vm14951_vm3, %v478_v15, %v436_v20 }
  0xa3   :  { %v9941_v46 = vcombine.low %v493_v21, %v495_v27  ;;  %v394_v28 = vpop.permute.xlu0 %393 }
  0xa4   :  { %v466_v23 = vsel %vm445_vm0, %v235_v50, %v394_v28 }
  0xa5   :  { %v396_v31 = vpop.permute.xlu1 %395  ;;  %10116 = vmatmul.mubr.bf16.vlgmr.msra.gmra.mrb[0].mxu0 %v9941_v46 }
  0xa6   :  { %10124 = vmatpush3.bf16.msra.mxu0 %v11110_v26  ;;  %v463_v26 = vsel %vm445_vm0, %v234_v49, %v392_v13  ;;  %v469_v33 = vsel %vm445_vm0, %v236_v51, %v396_v31  ;;  %v9952_v51 = vld [vmem:[%s14871_s5] ss:$0 sm:$0xff] }
  0xa7   :  { %v414_v29 = vpop.permute.xlu0 %413  ;;  %10125 = vmatprep.subr.bf16.mxu0 %v11115_v41 }
  0xa8   :  { %v480_v11 = vsel %vm470_vm2, %v460_v43, %v414_v29 }
  0xa9   :  { %v416_v54 = vpop.permute.xlu1 %415 }
  0xaa   :  { %10126 = vmatpush3.bf16.msra.mxu0 %v11115_v41  ;;  %v482_v18 = vsel %vm470_vm2, %v463_v26, %v416_v54  ;;  %v9963_v26 = vld [vmem:[%s14875_s9] ss:$0 sm:$0xff] }
  0xab   :  { %v418_v47 = vpop.permute.xlu0 %417  ;;  %10159 = vmatprep.subr.bf16.mxu0 %v14880_v38 }
  0xac   :  { %v484_v36 = vsel %vm470_vm2, %v466_v23, %v418_v47 }
  0xad   :  { %v420_v61 = vpop.permute.xlu1 %419 }
  0xae   :  { %v486_v59 = vsel %vm470_vm2, %v469_v33, %v420_v61 }
  0xaf   :  { %v438_v9 = vpop.permute.xlu0 %437 }
  0xb0   :  { %v497_v32 = vsel %vm14951_vm3, %v480_v11, %v438_v9 }
  0xb1   :  { %v440_v41 = vpop.permute.xlu1 %439 }
  0xb2   :  { %v499_v19 = vsel %vm14951_vm3, %v482_v18, %v440_v41 }
  0xb3   :  { %v9942_v39 = vcombine.low %v497_v32, %v499_v19  ;;  %v442_v44 = vpop.permute.xlu0 %441 }
  0xb4   :  { %v501_v49 = vsel %vm14951_vm3, %v484_v36, %v442_v44  ;;  %v9964_v36 = vld [vmem:[%s14876_s10] ss:$0 sm:$0xff] }
  0xb5   :  { %v444_v48 = vpop.permute.xlu1 %443  ;;  %10119 = vmatprep.mubr.bf16.mxu0 %v9942_v39 }
  0xb6   :  { %v503_v45 = vsel %vm14951_vm3, %v486_v59, %v444_v48  ;;  %vm2331_vm3 = vcmask 523712  }
  0xb7   :  { %v9943_v52 = vcombine.low %v501_v49, %v503_v45 }
  0xb9   :  { %10120 = vmatmul.mubr.bf16.gmra.mrb[4].mxu0 %v9943_v52 }
  0xba   :  { %10127 = vmatprep.mubr.msk.bf16.mxu0 %vm445_vm0, %v10046_v24 }
  0xc1   :  { %10128 = vmatmul.mubr.msk.bf16.vlgmr.msra.gmra.mrb[8].mxu0 %vm445_vm0, %v10047_v8 }
  0xc2   :  { %10160 = vmatpush3.bf16.msra.mxu0 %v11134_v34  ;;  %10163 = vmatprep.mubr.msk.bf16.mxu0 %vm10787_vm1, %v14880_v38 }
  0xc3   :  { %10161 = vmatprep.subr.bf16.mxu0 %v14880_v38 }
  0xc6   :  { %10162 = vmatpush3.bf16.msra.mxu0 %v11144_v2 }
  0xc7   :  { %10175 = vmatprep.subr.bf16.mxu0 %v14880_v38 }
 0x103   :  { %v10133_v43 = vpop.f32.mrb[0].mxu1 }
 0x104   :  { %v1070_v11 = vpop.f32.mrb[1].mxu1  ;;  %v1098_v18 = vadd.f32 %v10133_v43, %v9963_v26 }
 0x105   :  { %v10134_v41 = vpop.f32.mrb[2].mxu1  ;;  %v1096_v32 = vadd.f32 %v9963_v26, %v1070_v11 }
 0x106   :  { %v1099_v19 = vadd.f32 %v10134_v41, %v9963_v26  ;;  %v1073_v39 = vpop.f32.mrb[3].mxu1  ;;  %1106 = vst.msk [vmem:[#allocation2 + $0x30] sm:$0xff] %vm470_vm2, %v1098_v18 }
 0x107   :  { %v1097_v44 = vadd.f32 %v9963_v26, %v1073_v39  ;;  %1104 = vst.msk [vmem:[#allocation2 + $0x20] sm:$0xff] %vm470_vm2, %v1096_v32 }
 0x108   :  { %1107 = vst.msk [vmem:[#allocation2 + $0x38] sm:$0xff] %vm470_vm2, %v1099_v19 }
 0x109   :  { %1105 = vst.msk [vmem:[#allocation2 + $0x28] sm:$0xff] %vm470_vm2, %v1097_v44 }
 0x10b   :  { %v11240_v23 = vpop.f32.mrb[4].mxu1 }
 0x10c   :  { %v10141_v33 = vpop.f32.mrb[5].mxu1  ;;  %v1183_v32 = vrot.slane %v11240_v23, 2  ;;  %v1182_v39 = vrot.slane %v11240_v23, 1 }
 0x10d   :  { %v1178_v59 = vpop.f32.mrb[6].mxu1 }
 0x10e   :  { %v10142_v48 = vpop.f32.mrb[7].mxu1 }
 0x178   :  { %v10117_v17 = vpop.f32.mrb[0].mxu0 }
 0x179   :  { %v642_v35 = vadd.f32 %v10117_v17, %v9939_v14  ;;  %v633_v4 = vpop.f32.mrb[1].mxu0 }
 0x17a   :  { %v634_v5 = vadd.f32 %v9939_v14, %v633_v4  ;;  %v10118_v8 = vpop.f32.mrb[2].mxu0 }
 0x17b   :  { %10327 = vtanh.f32 %v642_v35  ;;  %v645_v40 = vadd.f32 %v10118_v8, %v9939_v14  ;;  %v636_v25 = vpop.f32.mrb[3].mxu0 }
 0x17c   :  { %10329 = vtanh.f32 %v634_v5  ;;  %v637_v50 = vadd.f32 %v9939_v14, %v636_v25  ;;  %v11254_v25 = vand.u32 127, %v70_v1 }
 0x17e   :  { %10331 = vtanh.f32 %v637_v50  ;;  %15125 = vst [vmem:[#allocation9_spill] sm:$0xff] %v11254_v25  ;;  %v712_v50 = vstv %s14872_s6 }
 0x17f   :  { %10333 = vtanh.f32 %v645_v40 }
 0x185   :  { %v10328_v34 = vpop.eup %10327 }
 0x186   :  { %v10330_v2 = vpop.eup %10329  ;;  %v681_v53 = vmul.f32 %v10328_v34, %v9952_v51 }
 0x187   :  { %v679_v58 = vmul.f32 %v10330_v2, %v9952_v51 }
 0x188   :  { %v10332_v56 = vpop.eup %10331  ;;  %v693_v57 = vsel %vm445_vm0, %v681_v53, 0.0  ;;  %v11265_v53 = vsub.s32 %v11254_v25, %v10876_v7 }
 0x189   :  { %v10334_v60 = vpop.eup %10333  ;;  %694 = vadd.xlane.f32.xlu0 %v693_v57  ;;  %v680_v62 = vmul.f32 %v10332_v56, %v9952_v51  ;;  %v687_v6 = vsel %vm445_vm0, %v679_v58, 0.0 }
 0x18a   :  { %v682_v10 = vmul.f32 %v10334_v60, %v9952_v51  ;;  %15126 = vst [vmem:[#allocation10_spill] sm:$0xff] %v11265_v53 }
 0x18b   :  { %v690_v0 = vsel %vm445_vm0, %v680_v62, 0.0 }
 0x18c   :  { %v10121_v3 = vpop.f32.mrb[4].mxu0  ;;  %691 = vadd.xlane.f32.xlu1 %v690_v0  ;;  %v696_v42 = vsel %vm445_vm0, %v682_v10, 0.0 }
 0x18d   :  { %v658_v12 = vadd.f32 %v10121_v3, %v9939_v14  ;;  %v649_v13 = vpop.f32.mrb[5].mxu0  ;;  %688 = vadd.xlane.f32.xlu0 %v687_v6 }
 0x18e   :  { %v650_v22 = vadd.f32 %v9939_v14, %v649_v13  ;;  %v10122_v55 = vpop.f32.mrb[6].mxu0 }
 0x18f   :  { %10335 = vtanh.f32 %v658_v12  ;;  %v661_v37 = vadd.f32 %v10122_v55, %v9939_v14  ;;  %v652_v30 = vpop.f32.mrb[7].mxu0 }
 0x190   :  { %10337 = vtanh.f32 %v650_v22  ;;  %v653_v63 = vadd.f32 %v9939_v14, %v652_v30 }
 0x191   :  { %10339 = vtanh.f32 %v661_v37  ;;  %697 = vadd.xlane.f32.xlu0 %v696_v42 }
 0x192   :  { %10341 = vtanh.f32 %v653_v63 }
 0x194   :  { %v10129_v49 = vpop.f32.mrb[8].mxu0 }
 0x195   :  { %v1094_v45 = vadd.f32 %v10129_v49, %v9963_v26  ;;  %v1054_v52 = vpop.f32.mrb[9].mxu0 }
 0x196   :  { %v1092_v24 = vadd.f32 %v9963_v26, %v1054_v52  ;;  %v10130_v14 = vpop.f32.mrb[10].mxu0  ;;  %v11331_v52 = vsub.s32 1, %v10876_v7 }
 0x197   :  { %1102 = vst.msk [vmem:[#allocation2 + $0x10] sm:$0xff] %vm470_vm2, %v1094_v45  ;;  %v1095_v17 = vadd.f32 %v10130_v14, %v9963_v26  ;;  %v1057_v35 = vpop.f32.mrb[11].mxu0  ;;  %v11337_v14 = vsub.s32 3, %v10876_v7 }
 0x198   :  { %1100 = vst.msk [vmem:[#allocation2] sm:$0xff] %vm470_vm2, %v1092_v24  ;;  %v1093_v4 = vadd.f32 %v9963_v26, %v1057_v35  ;;  %15128 = vst [vmem:[#allocation12_spill] sm:$0xff] %v11331_v52  ;;  %v11334_v24 = vsub.s32 2, %v10876_v7  ;;  %v1186_v35 = vrot.slane %v11240_v23, 5 }
 0x199   :  { %v10336_v15 = vpop.eup %10335  ;;  %1103 = vst.msk [vmem:[#allocation2 + $0x18] sm:$0xff] %vm470_vm2, %v1095_v17  ;;  %15130 = vst [vmem:[#allocation14_spill] sm:$0xff] %v11337_v14 }
 0x19a   :  { %v10338_v20 = vpop.eup %10337  ;;  %v685_v29 = vmul.f32 %v10336_v15, %v9952_v51  ;;  %1101 = vst.msk [vmem:[#allocation2 + $0x8] sm:$0xff] %vm470_vm2, %v1093_v4  ;;  %15129 = vst [vmem:[#allocation13_spill] sm:$0xff] %v11334_v24 }
 0x19b   :  { %v10340_v21 = vpop.eup %10339  ;;  %v683_v27 = vmul.f32 %v10338_v20, %v9952_v51 }
 0x19c   :  { %v10342_v46 = vpop.eup %10341  ;;  %v686_v47 = vmul.f32 %v10340_v21, %v9952_v51  ;;  %v705_v61 = vsel %vm445_vm0, %v685_v29, 0.0 }
 0x19d   :  { %v699_v28 = vsel %vm445_vm0, %v683_v27, 0.0  ;;  %v684_v31 = vmul.f32 %v10342_v46, %v9952_v51 }
 0x19e   :  { %700 = vadd.xlane.f32.xlu1 %v699_v28  ;;  %v708_v9 = vsel %vm445_vm0, %v686_v47, 0.0  ;;  %v11316_v19 = vld [vmem:[#allocation2 + $0x10] sm:$0x1] }
 0x19f   :  { %v702_v54 = vsel %vm445_vm0, %v684_v31, 0.0  ;;  %v11319_v44 = vld [vmem:[#allocation2] sm:$0x1]  ;;  %v1199_v59 = vadd.f32 %v1183_v32, %v11316_v19 }
 0x1a0   :  { %703 = vadd.xlane.f32.xlu0 %v702_v54  ;;  %v11325_v48 = vld [vmem:[#allocation2 + $0x18] sm:$0x1]  ;;  %v1197_v49 = vadd.f32 %v11240_v23, %v11319_v44 }
 0x1a1   :  { %v11321_v33 = vld [vmem:[#allocation2 + $0x8] sm:$0x1]  ;;  %v9969_v4 = vmul.f32 -1.442695, %v1199_v59 }
 0x1a2   :  { %706 = vadd.xlane.f32.xlu1 %v705_v61  ;;  %v1198_v45 = vadd.f32 %v1182_v39, %v11321_v33 }
 0x1a4   :  { %709 = vadd.xlane.f32.xlu0 %v708_v9 }
 0x1ba   :  { %1253 = vrot.lane.b32.xlu0 %v9964_v36, %s10782_s30  ;;  %v1184_v36 = vrot.slane %v11240_v23, 3 }
 0x1bc   :  { %v1200_v17 = vadd.f32 %v1184_v36, %v11325_v48 }
 0x216   :  { %v695_v5 = vpop.xlane.xlu0 %694 }
 0x217   :  { %v11273_v58 = vadd.f32 %v712_v50, %v695_v5  ;;  %v1185_v5 = vrot.slane %v11240_v23, 4 }
 0x219   :  { %v692_v40 = vpop.xlane.xlu1 %691  ;;  %v742_v3 = vrot.slane %v11273_v58, %v11265_v53 }
 0x21a   :  { %v689_v8 = vpop.xlane.xlu0 %688  ;;  %v11259_v51 = vadd.f32 %v712_v50, %v692_v40  ;;  %v11345_v40 = vld [vmem:[#allocation2 + $0x28] sm:$0x1] }
 0x21b   :  { %v11261_v34 = vadd.f32 %v712_v50, %v689_v8  ;;  %v11343_v8 = vsub.s32 5, %v10876_v7 }
 0x21c   :  { %v738_v56 = vrot.slane %v11259_v51, %v11265_v53 }
 0x21d   :  { %v734_v1 = vrot.slane %v11261_v34, %v11265_v53  ;;  %15131 = vst [vmem:[#allocation15_spill] sm:$0xff] %v11343_v8 }
 0x21e   :  { %v698_v2 = vpop.xlane.xlu0 %697 }
 0x21f   :  { %v11271_v57 = vadd.f32 %v712_v50, %v698_v2  ;;  %v764_v60 = vsel %vm763_vm4, %v738_v56, %v734_v1  ;;  %v11349_v2 = vsub.s32 4, %v10876_v7  ;;  %v9967_v1 = vmul.f32 -1.442695, %v1197_v49 }
 0x220   :  { %v766_v12 = vsel %vm765_vm5, %v742_v3, %v764_v60  ;;  %v9968_v60 = vmul.f32 -1.442695, %v1198_v45 }
 0x221   :  { %v746_v62 = vrot.slane %v11271_v57, %v11265_v53  ;;  %15132 = vst [vmem:[#allocation16_spill] sm:$0xff] %v11349_v2 }
 0x222   :  { %10343 = vpow2.f32 %v9968_v60 }
 0x223   :  { %v768_v55 = vsel %vm767_vm6, %v746_v62, %v766_v12  ;;  %v11355_v12 = vld [vmem:[#allocation2 + $0x20] sm:$0x1]  ;;  %10345 = vpow2.f32 %v9967_v1 }
 0x22b   :  { %v701_v0 = vpop.xlane.xlu1 %700 }
 0x22c   :  { %v11280_v6 = vadd.f32 %v712_v50, %v701_v0 }
 0x22d   :  { %v704_v10 = vpop.xlane.xlu0 %703 }
 0x22e   :  { %v750_v13 = vrot.slane %v11280_v6, %v11265_v53  ;;  %v11285_v22 = vadd.f32 %v712_v50, %v704_v10 }
 0x22f   :  { %v707_v37 = vpop.xlane.xlu1 %706 }
 0x230   :  { %v754_v30 = vrot.slane %v11285_v22, %v11265_v53  ;;  %v11290_v63 = vadd.f32 %v712_v50, %v707_v37  ;;  %v770_v42 = vsel %vm769_vm7, %v750_v13, %v768_v55  ;;  %v11358_v13 = vsub.s32 7, %v10876_v7 }
 0x231   :  { %v710_v15 = vpop.xlane.xlu0 %709  ;;  %v9970_v55 = vmul.f32 -1.442695, %v1200_v17  ;;  %v1202_v37 = vadd.f32 %v1186_v35, %v11345_v40  ;;  %v10344_v17 = vpop.eup %10343 }
 0x232   :  { %v758_v20 = vrot.slane %v11290_v63, %v11265_v53  ;;  %v11295_v21 = vadd.f32 %v712_v50, %v710_v15  ;;  %v772_v27 = vsel %vm771_vm8, %v754_v30, %v770_v42  ;;  %v1187_v50 = vrot.slane %v11240_v23, 6  ;;  %15133 = vst [vmem:[#allocation17_spill] sm:$0xff] %v11358_v13  ;;  %v10346_v35 = vpop.eup %10345 }
 0x233   :  { %v1188_v30 = vrot.slane %v11240_v23, 7  ;;  %10347 = vpow2.f32 %v9970_v55  ;;  %v1230_v1 = vadd.f32 1.0, %v10344_v17  ;;  %v1229_v60 = vadd.f32 1.0, %v10346_v35 }
 0x234   :  { %v762_v46 = vrot.slane %v11295_v21, %v11265_v53  ;;  %v774_v28 = vsel %vm773_vm9, %v758_v20, %v772_v27  ;;  %v11365_v27 = vld [vmem:[#allocation2 + $0x38] sm:$0x1] }
 0x235   :  { %v11301_v31 = vpop.permute.xlu0 %1253 }
 0x236   :  { %15127 = vst [vmem:[#allocation11_spill] sm:$0xff] %v11301_v31  ;;  %v1256_v29 = vadd.f32 %v11301_v31, %v11240_v23  ;;  %v776_v54 = vsel %vm775_vm10, %v762_v46, %v774_v28  ;;  %v11369_v28 = vsub.s32 6, %v10876_v7  ;;  %v1201_v23 = vadd.f32 %v1185_v5, %v11355_v12 }
 0x237   :  { %v779_v47 = vsel %vm778_vm11, %v776_v54, -inf }
 0x238   :  { %780 = vmax.xlane.f32.xlu1 %v779_v47  ;;  %v1259_v61 = vrot.slane %v1256_v29, 2  ;;  %v1261_v9 = vrot.slane %v1256_v29, 4  ;;  %v1263_v43 = vrot.slane %v1256_v29, 6  ;;  %v1258_v26 = vrot.slane %v1256_v29, 1  ;;  %15134 = vst [vmem:[#allocation18_spill] sm:$0xff] %v11369_v28 }
 0x239   :  { %v1260_v11 = vrot.slane %v1256_v29, 3  ;;  %v1262_v18 = vrot.slane %v1256_v29, 5  ;;  %v1264_v41 = vrot.slane %v1256_v29, 7 }
 0x23a   :  { %1269 = vrot.lane.b32.xlu0 %v1259_v61, %s10784_s25 }
 0x23e   :  { %1273 = vrot.lane.b32.xlu0 %v1261_v9, %s10784_s25  ;;  %v1204_v9 = vadd.f32 %v1188_v30, %v11365_v27 }
 0x240   :  { %v9974_v39 = vmul.f32 -1.442695, %v1204_v9 }
 0x242   :  { %1277 = vrot.lane.b32.xlu0 %v1263_v43, %s10784_s25 }
 0x249   :  { %1265 = vrot.lane.b32.xlu1 %v1256_v29, %s10784_s25 }
 0x24d   :  { %1267 = vrot.lane.b32.xlu1 %v1258_v26, %s10784_s25 }
 0x251   :  { %1271 = vrot.lane.b32.xlu1 %v1260_v11, %s10784_s25 }
 0x255   :  { %1275 = vrot.lane.b32.xlu1 %v1262_v18, %s10784_s25 }
 0x259   :  { %1279 = vrot.lane.b32.xlu1 %v1264_v41, %s10784_s25  ;;  %v9971_v41 = vmul.f32 -1.442695, %v1201_v23 }
 0x2ac   :  { %v1270_v9 = vpop.permute.xlu0 %1269 }
 0x2c5   :  { %v781_v56 = vpop.xlane.xlu1 %780 }
 0x2c6   :  { %v786_v62 = vrot.slane %v781_v56, %v10890_v16  ;;  %v790_v0 = vrot.slane %v781_v56, %v11331_v52  ;;  %v794_v3 = vrot.slane %v781_v56, %v11334_v24  ;;  %v798_v10 = vrot.slane %v781_v56, %v11337_v14 }
 0x2c7   :  { %v806_v42 = vrot.slane %v781_v56, %v11343_v8  ;;  %v802_v29 = vrot.slane %v781_v56, %v11349_v2  ;;  %v810_v11 = vrot.slane %v781_v56, %v11369_v28 }
 0x2c8   :  { %v823_v15 = vsub.f32 %v11261_v34, %v786_v62  ;;  %v824_v20 = vsub.f32 %v11259_v51, %v790_v0  ;;  %v826_v46 = vsub.f32 %v11271_v57, %v798_v10  ;;  %v825_v54 = vsub.f32 %v11273_v58, %v794_v3  ;;  %v11374_v34 = vld [vmem:[#allocation2 + $0x30] sm:$0x1] }
 0x2c9   :  { %v9972_v51 = vmul.f32 -1.442695, %v1202_v37  ;;  %v814_v57 = vrot.slane %v781_v56, %v11358_v13  ;;  %v828_v26 = vsub.f32 %v11285_v22, %v806_v42  ;;  %v827_v18 = vsub.f32 %v11280_v6, %v802_v29  ;;  %v1266_v56 = vpop.permute.xlu1 %1265 }
 0x2ca   :  { %v831_v47 = vmul.f32 1.442695, %v823_v15  ;;  %v833_v61 = vmul.f32 1.442695, %v824_v20  ;;  %v837_v43 = vmul.f32 1.442695, %v826_v46  ;;  %v1203_v32 = vadd.f32 %v1187_v50, %v11374_v34 }
 0x2cb   :  { %v835_v58 = vmul.f32 1.442695, %v825_v54  ;;  %v841_v36 = vmul.f32 1.442695, %v828_v26  ;;  %v830_v59 = vsub.f32 %v11295_v21, %v814_v57  ;;  %v839_v49 = vmul.f32 1.442695, %v827_v18 }
 0x2cc   :  { %10349 = vpow2.f32 %v831_v47  ;;  %v829_v22 = vsub.f32 %v11290_v63, %v810_v11  ;;  %v9973_v45 = vmul.f32 -1.442695, %v1203_v32 }
 0x2cd   :  { %10351 = vpow2.f32 %v833_v61  ;;  %v845_v6 = vmul.f32 1.442695, %v830_v59  ;;  %v1268_v30 = vpop.permute.xlu1 %1267 }
 0x2ce   :  { %10353 = vpow2.f32 %v9969_v4  ;;  %v10348_v4 = vpop.eup %10347  ;;  %v843_v5 = vmul.f32 1.442695, %v829_v22 }
 0x2cf   :  { %10355 = vpow2.f32 %v9972_v51  ;;  %v1232_v3 = vadd.f32 1.0, %v10348_v4 }
 0x2d0   :  { %10357 = vpow2.f32 %v837_v43 }
 0x2d1   :  { %10359 = vpow2.f32 %v835_v58  ;;  %v1272_v47 = vpop.permute.xlu1 %1271 }
 0x2d2   :  { %10361 = vpow2.f32 %v9971_v41 }
 0x2d3   :  { %10363 = vpow2.f32 %v9974_v39  ;;  %v1274_v39 = vpop.permute.xlu0 %1273 }
 0x2d4   :  { %10365 = vpow2.f32 %v841_v36 }
 0x2d5   :  { %10367 = vpow2.f32 %v839_v49  ;;  %v1276_v41 = vpop.permute.xlu1 %1275 }
 0x2d6   :  { %v11384_v50 = vpop.eup %10349  ;;  %10369 = vpow2.f32 %v9973_v45 }
 0x2d7   :  { %v11386_v21 = vpop.eup %10351  ;;  %856 = vperm.xlu0 %10227, %v11384_v50   ;;  %10371 = vpow2.f32 %v845_v6  ;;  %v1278_v6 = vpop.permute.xlu0 %1277 }
 0x2d8   :  { %v10354_v63 = vpop.eup %10353  ;;  %859 = vperm.xlu1 %10228, %v11386_v21   ;;  %10373 = vpow2.f32 %v843_v5 }
 0x2d9   :  { %v10356_v62 = vpop.eup %10355  ;;  %10375 = vrcp.f32 %v1230_v1  ;;  %v1231_v55 = vadd.f32 1.0, %v10354_v63  ;;  %v1280_v35 = vpop.permute.xlu1 %1279 }
 0x2da   :  { %v11390_v0 = vpop.eup %10357  ;;  %10377 = vrcp.f32 %v1229_v60  ;;  %v1234_v20 = vadd.f32 1.0, %v10356_v62 }
 0x2db   :  { %v11392_v10 = vpop.eup %10359  ;;  %865 = vperm.xlu0 %10227, %v11390_v0   ;;  %10379 = vrcp.f32 %v1232_v3 }
 0x2dc   :  { %v10362_v37 = vpop.eup %10361  ;;  %862 = vperm.xlu1 %10228, %v11392_v10   ;;  %10381 = vrcp.f32 %v1231_v55 }
 0x2dd   :  { %v10364_v42 = vpop.eup %10363  ;;  %v1233_v29 = vadd.f32 1.0, %v10362_v37  ;;  %10383 = vrcp.f32 %v1234_v20 }
 0x2de   :  { %v11396_v15 = vpop.eup %10365  ;;  %v1236_v61 = vadd.f32 1.0, %v10364_v42 }
 0x2df   :  { %v11398_v46 = vpop.eup %10367  ;;  %871 = vperm.xlu0 %10227, %v11396_v15   ;;  %10385 = vrcp.f32 %v1233_v29 }
 0x2e0   :  { %v10370_v54 = vpop.eup %10369  ;;  %868 = vperm.xlu1 %10228, %v11398_v46   ;;  %10387 = vrcp.f32 %v1236_v61 }
 0x2e1   :  { %v11402_v23 = vpop.eup %10371  ;;  %v1235_v57 = vadd.f32 1.0, %v10370_v54 }
 0x2e2   :  { %v11404_v51 = vpop.eup %10373 }
 0x2e3   :  { %877 = vperm.xlu0 %10227, %v11402_v23   ;;  %v10376_v43 = vpop.eup %10375  ;;  %10389 = vrcp.f32 %v1235_v57 }
 0x2e4   :  { %874 = vperm.xlu1 %10228, %v11404_v51   ;;  %v10378_v26 = vpop.eup %10377  ;;  %v1290_v11 = vmul.f32 %v10376_v43, %v1268_v30 }
 0x2e5   :  { %v1289_v58 = vmul.f32 %v10378_v26, %v1266_v56  ;;  %v10380_v18 = vpop.eup %10379 }
 0x2e6   :  { %v10382_v32 = vpop.eup %10381  ;;  %v1292_v36 = vmul.f32 %v10380_v18, %v1272_v47 }
 0x2e7   :  { %1307 = vrot.lane.b32.xlu0 %v1290_v11, %s10782_s30  ;;  %v1291_v59 = vmul.f32 %v10382_v32, %v1270_v9  ;;  %v10384_v49 = vpop.eup %10383 }
 0x2e8   :  { %1305 = vrot.lane.b32.xlu1 %v1289_v58, %s10782_s30  ;;  %v1294_v45 = vmul.f32 %v10384_v49, %v1276_v41 }
 0x2e9   :  { %v10386_v22 = vpop.eup %10385 }
 0x2ea   :  { %v1293_v17 = vmul.f32 %v10386_v22, %v1274_v39  ;;  %v10388_v4 = vpop.eup %10387 }
 0x2eb   :  { %1311 = vrot.lane.b32.xlu0 %v1292_v36, %s10782_s30  ;;  %v1296_v56 = vmul.f32 %v10388_v4, %v1280_v35 }
 0x2ec   :  { %1309 = vrot.lane.b32.xlu1 %v1291_v59, %s10782_s30 }
 0x2ed   :  { %v10390_v5 = vpop.eup %10389 }
 0x2ee   :  { %v1295_v1 = vmul.f32 %v10390_v5, %v1278_v6 }
 0x2ef   :  { %1315 = vrot.lane.b32.xlu0 %v1294_v45, %s10782_s30 }
 0x2f0   :  { %1313 = vrot.lane.b32.xlu1 %v1293_v17, %s10782_s30 }
 0x2f3   :  { %1319 = vrot.lane.b32.xlu0 %v1296_v56, %s10782_s30 }
 0x2f4   :  { %1317 = vrot.lane.b32.xlu1 %v1295_v1, %s10782_s30 }
 0x356   :  { %v11416_v60 = vpop.permute.xlu0 %856 }
 0x357   :  { %v11418_v63 = vpop.permute.xlu1 %859 }
 0x358   :  { %v886_v6 = vrot.slane %v11418_v63, %v11265_v53 }
 0x35a   :  { %v11420_v62 = vpop.permute.xlu0 %865 }
 0x35b   :  { %v11422_v3 = vpop.permute.xlu1 %862  ;;  %v894_v56 = vrot.slane %v11420_v62, %v11265_v53 }
 0x35c   :  { %v890_v4 = vrot.slane %v11422_v3, %v11265_v53 }
 0x35e   :  { %v11424_v55 = vpop.permute.xlu0 %871 }
 0x35f   :  { %v11426_v37 = vpop.permute.xlu1 %868 }
 0x362   :  { %v11428_v30 = vpop.permute.xlu0 %877 }
 0x363   :  { %v11430_v42 = vpop.permute.xlu1 %874  ;;  %v910_v62 = vrot.slane %v11428_v30, %v11265_v53 }
 0x364   :  { %v906_v3 = vrot.slane %v11430_v42, %v11265_v53 }
 0x366   :  { %v1308_v20 = vpop.permute.xlu0 %1307 }
 0x367   :  { %v1306_v29 = vpop.permute.xlu1 %1305  ;;  %v1330_v61 = vadd.f32 %v1308_v20, %v11321_v33  ;;  %v898_v20 = vrot.slane %v11426_v37, %v11265_v53 }
 0x368   :  { %v1329_v54 = vadd.f32 %v1306_v29, %v11319_v44 }
 0x36a   :  { %10391 = vtanh.f32 %v1329_v54  ;;  %v1312_v47 = vpop.permute.xlu0 %1311 }
 0x36b   :  { %v1310_v9 = vpop.permute.xlu1 %1309  ;;  %v1332_v57 = vadd.f32 %v1312_v47, %v11325_v48 }
 0x36c   :  { %v1331_v43 = vadd.f32 %v1310_v9, %v11316_v19 }
 0x36e   :  { %10393 = vtanh.f32 %v1331_v43  ;;  %v1316_v18 = vpop.permute.xlu0 %1315 }
 0x36f   :  { %10395 = vtanh.f32 %v1330_v61  ;;  %v1314_v26 = vpop.permute.xlu1 %1313  ;;  %v1334_v33 = vadd.f32 %v1316_v18, %v11345_v40 }
 0x370   :  { %10397 = vtanh.f32 %v1332_v57  ;;  %v1333_v11 = vadd.f32 %v1314_v26, %v11355_v12 }
 0x372   :  { %10399 = vtanh.f32 %v1333_v11  ;;  %v1320_v54 = vpop.permute.xlu0 %1319 }
 0x373   :  { %10401 = vtanh.f32 %v1334_v33  ;;  %v1318_v19 = vpop.permute.xlu1 %1317  ;;  %v1336_v37 = vadd.f32 %v1320_v54, %v11365_v27 }
 0x374   :  { %v10392_v58 = vpop.eup %10391  ;;  %v1335_v49 = vadd.f32 %v1318_v19, %v11374_v34  ;;  %v882_v34 = vrot.slane %v11416_v60, %v11265_v53  ;;  %v902_v60 = vrot.slane %v11424_v55, %v11265_v53 }
 0x375   :  { %v1388_v44 = vrot.slane %v10392_v58, %v10890_v16 }
 0x376   :  { %10403 = vtanh.f32 %v1335_v49  ;;  %v911_v5 = vsel %vm763_vm4, %v886_v6, %v882_v34 }
 0x377   :  { %1391 = vbcast.lane.b32.xlu0 %v1388_v44, 288  ;;  %v912_v1 = vsel %vm765_vm5, %v890_v4, %v911_v5  ;;  %10405 = vtanh.f32 %v1336_v37 }
 0x378   :  { %v10394_v41 = vpop.eup %10393  ;;  %v913_v63 = vsel %vm767_vm6, %v894_v56, %v912_v1 }
 0x379   :  { %v10396_v32 = vpop.eup %10395  ;;  %v1428_v48 = vrot.slane %v10394_v41, %v10890_v16  ;;  %v914_v29 = vsel %vm769_vm7, %v898_v20, %v913_v63 }
 0x37a   :  { %v10398_v39 = vpop.eup %10397  ;;  %v1408_v36 = vrot.slane %v10396_v32, %v10890_v16  ;;  %v915_v47 = vsel %vm771_vm8, %v902_v60, %v914_v29 }
 0x37b   :  { %1395 = vbcast.lane.b32.xlu0 %v1388_v44, 296  ;;  %1435 = vbcast.lane.b32.xlu1 %v1428_v48, 296  ;;  %v1448_v12 = vrot.slane %v10398_v39, %v10890_v16  ;;  %v916_v61 = vsel %vm773_vm9, %v906_v3, %v915_v47 }
 0x37c   :  { %v10400_v59 = vpop.eup %10399  ;;  %v917_v55 = vsel %vm775_vm10, %v910_v62, %v916_v61 }
 0x37d   :  { %v1468_v22 = vrot.slane %v10400_v59, %v10890_v16  ;;  %v10402_v40 = vpop.eup %10401  ;;  %v919_v9 = vsel %vm778_vm11, %v917_v55, 0.0  ;;  %vm2324_vm11 = vcmask 458112  }
 0x37e   :  { %v1488_v45 = vrot.slane %v10402_v40, %v10890_v16 }
 0x37f   :  { %1411 = vbcast.lane.b32.xlu0 %v1408_v36, 288  ;;  %1459 = vbcast.lane.b32.xlu1 %v1448_v12, 304 }
 0x380   :  { %v10404_v17 = vpop.eup %10403 }
 0x381   :  { %v1508_v35 = vrot.slane %v10404_v17, %v10890_v16  ;;  %v10406_v42 = vpop.eup %10405 }
 0x382   :  { %v1528_v30 = vrot.slane %v10406_v42, %v10890_v16 }
 0x383   :  { %1415 = vbcast.lane.b32.xlu0 %v1408_v36, 296  ;;  %1471 = vbcast.lane.b32.xlu1 %v1468_v22, 288 }
 0x387   :  { %1399 = vbcast.lane.b32.xlu0 %v1388_v44, 304  ;;  %1479 = vbcast.lane.b32.xlu1 %v1468_v22, 304 }
 0x38b   :  { %1403 = vbcast.lane.b32.xlu0 %v1388_v44, 312  ;;  %1491 = vbcast.lane.b32.xlu1 %v1488_v45, 288 }
 0x38f   :  { %1419 = vbcast.lane.b32.xlu0 %v1408_v36, 304  ;;  %1499 = vbcast.lane.b32.xlu1 %v1488_v45, 304 }
 0x393   :  { %1423 = vbcast.lane.b32.xlu0 %v1408_v36, 312  ;;  %1511 = vbcast.lane.b32.xlu1 %v1508_v35, 288 }
 0x397   :  { %1431 = vbcast.lane.b32.xlu0 %v1428_v48, 288  ;;  %1519 = vbcast.lane.b32.xlu1 %v1508_v35, 304 }
 0x39b   :  { %1439 = vbcast.lane.b32.xlu0 %v1428_v48, 304 }
 0x39f   :  { %1443 = vbcast.lane.b32.xlu0 %v1428_v48, 312 }
 0x3a3   :  { %1451 = vbcast.lane.b32.xlu0 %v1448_v12, 288 }
 0x3a7   :  { %1455 = vbcast.lane.b32.xlu0 %v1448_v12, 296 }
 0x3ab   :  { %1463 = vbcast.lane.b32.xlu0 %v1448_v12, 312 }
 0x3af   :  { %1475 = vbcast.lane.b32.xlu0 %v1468_v22, 296 }
 0x3b3   :  { %1483 = vbcast.lane.b32.xlu0 %v1468_v22, 312 }
 0x3b7   :  { %1495 = vbcast.lane.b32.xlu0 %v1488_v45, 296 }
 0x3bb   :  { %1503 = vbcast.lane.b32.xlu0 %v1488_v45, 312  ;;  %920 = vadd.xlane.f32.xlu1 %v919_v9 }
 0x3bf   :  { %1515 = vbcast.lane.b32.xlu0 %v1508_v35, 296 }
 0x3c3   :  { %1523 = vbcast.lane.b32.xlu0 %v1508_v35, 312 }
 0x3c7   :  { %1535 = vbcast.lane.b32.xlu0 %v1528_v30, 296 }
 0x3cb   :  { %1543 = vbcast.lane.b32.xlu0 %v1528_v30, 312 }
 0x3cc   :  { %1531 = vbcast.lane.b32.xlu1 %v1528_v30, 288 }
 0x3d0   :  { %1539 = vbcast.lane.b32.xlu1 %v1528_v30, 304 }
 0x3e9   :  { %v1392_v27 = vpop.permute.xlu0 %1391 }
 0x3ed   :  { %v1396_v57 = vpop.permute.xlu0 %1395  ;;  %v1436_v43 = vpop.permute.xlu1 %1435 }
 0x3f1   :  { %v1412_v26 = vpop.permute.xlu0 %1411  ;;  %v11472_v11 = vpop.permute.xlu1 %1459 }
 0x3f5   :  { %v1416_v58 = vpop.permute.xlu0 %1415  ;;  %v11474_v18 = vpop.permute.xlu1 %1471 }
 0x3f9   :  { %v1400_v44 = vpop.permute.xlu0 %1399  ;;  %v11476_v41 = vpop.permute.xlu1 %1479 }
 0x3fd   :  { %v1404_v33 = vpop.permute.xlu0 %1403  ;;  %v11478_v32 = vpop.permute.xlu1 %1491 }
 0x401   :  { %v1420_v48 = vpop.permute.xlu0 %1419  ;;  %v11480_v39 = vpop.permute.xlu1 %1499 }
 0x405   :  { %v1424_v19 = vpop.permute.xlu0 %1423  ;;  %v11482_v36 = vpop.permute.xlu1 %1511 }
 0x409   :  { %v1432_v12 = vpop.permute.xlu0 %1431  ;;  %v11484_v59 = vpop.permute.xlu1 %1519 }
 0x40d   :  { %v1440_v49 = vpop.permute.xlu0 %1439 }
 0x411   :  { %v1444_v40 = vpop.permute.xlu0 %1443 }
 0x415   :  { %v1452_v17 = vpop.permute.xlu0 %1451 }
 0x419   :  { %v1456_v20 = vpop.permute.xlu0 %1455 }
 0x41d   :  { %v1464_v61 = vpop.permute.xlu0 %1463 }
 0x448   :  { %v921_v22 = vpop.xlane.xlu1 %920 }
 0x449   :  { %10407 = vrcp.f32 %v921_v22 }
 0x453   :  { %v11486_v45 = vpop.eup %10407 }
 0x454   :  { %v927_v35 = vrot.slane %v11486_v45, %v10890_v16  ;;  %v931_v34 = vrot.slane %v11486_v45, %v11331_v52  ;;  %v935_v5 = vrot.slane %v11486_v45, %v11334_v24  ;;  %v939_v54 = vrot.slane %v11486_v45, %v11337_v14 }
 0x456   :  { %v11493_v6 = vmul.f32 %v11384_v50, %v927_v35  ;;  %v11496_v4 = vmul.f32 %v11386_v21, %v931_v34  ;;  %v11505_v60 = vmul.f32 %v11392_v10, %v935_v5 }
 0x458   :  { %15135 = vst [vmem:[#allocation19_spill] sm:$0xff] %v11493_v6  ;;  %15136 = vst [vmem:[#allocation20_spill] sm:$0xff] %v11496_v4  ;;  %v1348_v56 = vrot.slane %v11493_v6, %v10890_v16  ;;  %v1352_v1 = vrot.slane %v11496_v4, %v10890_v16  ;;  %v1356_v37 = vrot.slane %v11505_v60, %v10890_v16 }
 0x459   :  { %15137 = vst [vmem:[#allocation21_spill] sm:$0xff] %v11505_v60 }
 0x45a   :  { %v11507_v63 = vmul.f32 %v1392_v27, %v1348_v56  ;;  %v11509_v50 = vmul.f32 %v1396_v57, %v1348_v56  ;;  %v11511_v29 = vmul.f32 %v1412_v26, %v1352_v1  ;;  %v11513_v21 = vmul.f32 %v1416_v58, %v1352_v1 }
 0x45b   :  { %v11521_v47 = vmul.f32 %v1420_v48, %v1352_v1  ;;  %v11523_v10 = vmul.f32 %v1424_v19, %v1352_v1  ;;  %v11527_v42 = vmul.f32 %v1400_v44, %v1348_v56  ;;  %v11529_v30 = vmul.f32 %v1404_v33, %v1348_v56  ;;  %v1476_v44 = vpop.permute.xlu0 %1475 }
 0x45c   :  { %15138 = vst [vmem:[#allocation22_spill] sm:$0xff] %v11507_v63  ;;  %15139 = vst [vmem:[#allocation23_spill] sm:$0xff] %v11509_v50  ;;  %v1649_v3 = vpack.c.bf16 %v11509_v50, %v11507_v63  ;;  %v1651_v62 = vpack.c.bf16 %v11513_v21, %v11511_v29  ;;  %v11533_v57 = vmul.f32 %v1432_v12, %v1356_v37 }
 0x45d   :  { %15140 = vst [vmem:[#allocation24_spill] sm:$0xff] %v11511_v29  ;;  %15141 = vst [vmem:[#allocation25_spill] sm:$0xff] %v11513_v21  ;;  %v1652_v27 = vpack.c.bf16 %v11523_v10, %v11521_v47  ;;  %v11536_v26 = vmul.f32 %v11390_v0, %v939_v54  ;;  %v1650_v19 = vpack.c.bf16 %v11529_v30, %v11527_v42 }
 0x45e   :  { %15142 = vst [vmem:[#allocation26_spill] sm:$0xff] %v11521_v47  ;;  %v1682_v55 = vunpack.c.h.b16 %v1649_v3  ;;  %v1681_v9 = vunpack.c.l.b16 %v1649_v3  ;;  %15143 = vst [vmem:[#allocation27_spill] sm:$0xff] %v11527_v42  ;;  %v1686_v58 = vunpack.c.h.b16 %v1651_v62  ;;  %v1685_v48 = vunpack.c.l.b16 %v1651_v62 }
 0x45f   :  { %15144 = vst [vmem:[#allocation28_spill] sm:$0xff] %v11533_v57  ;;  %15145 = vst [vmem:[#allocation29_spill] sm:$0xff] %v11536_v26  ;;  %v11540_v22 = vmul.f32 %v1436_v43, %v1356_v37  ;;  %v1360_v33 = vrot.slane %v11536_v26, %v10890_v16  ;;  %v943_v12 = vrot.slane %v11486_v45, %v11349_v2  ;;  %v1687_v35 = vunpack.c.l.b16 %v1652_v27  ;;  %v1484_v1 = vpop.permute.xlu0 %1483 }
 0x460   :  { %1717 = vperm.xlu0 %10227, %v1682_v55   ;;  %1714 = vperm.xlu1 %10228, %v1681_v9   ;;  %v1683_v34 = vunpack.c.l.b16 %v1650_v19  ;;  %v11555_v62 = vmul.f32 %v1440_v49, %v1356_v37  ;;  %v11557_v55 = vmul.f32 %v1444_v40, %v1356_v37  ;;  %v1827_v26 = vadd.s32 4294967272, %v11254_v25 }
 0x461   :  { %15146 = vst [vmem:[#allocation30_spill] sm:$0xff] %v11540_v22  ;;  %v1653_v0 = vpack.c.bf16 %v11540_v22, %v11533_v57  ;;  %v11548_v5 = vmul.f32 %v1452_v17, %v1360_v33  ;;  %v11550_v43 = vmul.f32 %v1456_v20, %v1360_v33  ;;  %v11553_v56 = vmul.f32 %v11398_v46, %v943_v12 }
 0x462   :  { %v947_v17 = vrot.slane %v11486_v45, %v11343_v8  ;;  %v1688_v20 = vunpack.c.h.b16 %v1652_v27 }
 0x463   :  { %15147 = vst [vmem:[#allocation31_spill] sm:$0xff] %v11553_v56  ;;  %v1690_v3 = vunpack.c.h.b16 %v1653_v0  ;;  %v1689_v54 = vunpack.c.l.b16 %v1653_v0  ;;  %v1364_v9 = vrot.slane %v11553_v56, %v10890_v16  ;;  %v1655_v46 = vpack.c.bf16 %v11550_v43, %v11548_v5  ;;  %v1496_v49 = vpop.permute.xlu0 %1495 }
 0x464   :  { %1729 = vperm.xlu0 %10227, %v1686_v58   ;;  %1726 = vperm.xlu1 %10228, %v1685_v48   ;;  %v1684_v58 = vunpack.c.h.b16 %v1650_v19  ;;  %v1654_v48 = vpack.c.bf16 %v11557_v55, %v11555_v62  ;;  %v11573_v12 = vmul.f32 %v11396_v15, %v947_v17  ;;  %v11576_v19 = vmul.f32 %v11472_v11, %v1360_v33 }
 0x465   :  { %v11568_v40 = vmul.f32 %v11474_v18, %v1364_v9  ;;  %v11570_v37 = vmul.f32 %v1476_v44, %v1364_v9  ;;  %v951_v18 = vrot.slane %v11486_v45, %v11369_v28  ;;  %v1820_v56 = vadd.s32 4294967280, %v11254_v25 }
 0x466   :  { %15148 = vst [vmem:[#allocation32_spill] sm:$0xff] %v11573_v12  ;;  %v1691_v27 = vunpack.c.l.b16 %v1654_v48  ;;  %v1368_v0 = vrot.slane %v11573_v12, %v10890_v16  ;;  %v1813_v12 = vadd.s32 4294967288, %v11254_v25 }
 0x467   :  { %v1504_v44 = vpop.permute.xlu0 %1503  ;;  %v1657_v15 = vpack.c.bf16 %v11570_v37, %v11568_v40  ;;  %v11594_v17 = vmul.f32 %v11404_v51, %v951_v18  ;;  %v11672_v60 = vsub.s32 %v1820_v56, %v10876_v7 }
 0x468   :  { %1732 = vperm.xlu0 %10227, %v1687_v35   ;;  %1720 = vperm.xlu1 %10228, %v1683_v34   ;;  %v1693_v35 = vunpack.c.l.b16 %v1655_v46  ;;  %v11578_v34 = vmul.f32 %v1464_v61, %v1360_v33  ;;  %v11589_v61 = vmul.f32 %v11478_v32, %v1368_v0  ;;  %v11591_v33 = vmul.f32 %v1496_v49, %v1368_v0 }
 0x469   :  { %15151 = vst [vmem:[#allocation35_spill] sm:$0xff] %v11594_v17  ;;  %v1372_v32 = vrot.slane %v11594_v17, %v10890_v16  ;;  %15164 = vst [vmem:[#allocation48_spill] sm:$0xff] %v11672_v60 }
 0x46a   :  { %v1656_v11 = vpack.c.bf16 %v11578_v34, %v11576_v19  ;;  %15149 = vst [vmem:[#allocation33_spill] sm:$0xff] %v11589_v61  ;;  %15150 = vst [vmem:[#allocation34_spill] sm:$0xff] %v11591_v33  ;;  %v1659_v51 = vpack.c.bf16 %v11591_v33, %v11589_v61 }
 0x46c   :  { %1741 = vperm.xlu0 %10227, %v1690_v3   ;;  %1738 = vperm.xlu1 %10228, %v1689_v54   ;;  %v1692_v3 = vunpack.c.h.b16 %v1654_v48  ;;  %v1694_v54 = vunpack.c.h.b16 %v1655_v46  ;;  %v11597_v46 = vmul.f32 %v11476_v41, %v1364_v9  ;;  %v11599_v48 = vmul.f32 %v1484_v1, %v1364_v9 }
 0x46d   :  { %v1696_v49 = vunpack.c.h.b16 %v1656_v11  ;;  %v11613_v9 = vmul.f32 %v11482_v36, %v1372_v32 }
 0x46e   :  { %v1658_v41 = vpack.c.bf16 %v11599_v48, %v11597_v46 }
 0x46f   :  { %15153 = vst [vmem:[#allocation37_spill] sm:$0xff] %v11613_v9 }
 0x470   :  { %1735 = vperm.xlu0 %10227, %v1688_v20   ;;  %1723 = vperm.xlu1 %10228, %v1684_v58   ;;  %v1697_v20 = vunpack.c.l.b16 %v1657_v15  ;;  %v1695_v58 = vunpack.c.l.b16 %v1656_v11  ;;  %v1699_v11 = vunpack.c.l.b16 %v1658_v41 }
 0x474   :  { %1750 = vperm.xlu0 %10227, %v1693_v35   ;;  %1744 = vperm.xlu1 %10228, %v1691_v27   ;;  %v1516_v35 = vpop.permute.xlu0 %1515  ;;  %v955_v27 = vrot.slane %v11486_v45, %v11358_v13 }
 0x475   :  { %v11615_v45 = vmul.f32 %v1516_v35, %v1372_v32 }
 0x476   :  { %v11610_v1 = vmul.f32 %v11402_v23, %v955_v27  ;;  %v1700_v23 = vunpack.c.h.b16 %v1658_v41  ;;  %v1702_v27 = vunpack.c.h.b16 %v1659_v51 }
 0x477   :  { %15154 = vst [vmem:[#allocation38_spill] sm:$0xff] %v11615_v45  ;;  %v1661_v36 = vpack.c.bf16 %v11615_v45, %v11613_v9 }
 0x478   :  { %1747 = vperm.xlu0 %10227, %v1692_v3   ;;  %1753 = vperm.xlu1 %10228, %v1694_v54   ;;  %v1698_v3 = vunpack.c.h.b16 %v1657_v15  ;;  %15152 = vst [vmem:[#allocation36_spill] sm:$0xff] %v11610_v1  ;;  %v1524_v18 = vpop.permute.xlu0 %1523  ;;  %v1701_v54 = vunpack.c.l.b16 %v1659_v51  ;;  %v11618_v15 = vmul.f32 %v11480_v39, %v1368_v0 }
 0x479   :  { %v11635_v51 = vmul.f32 %v1524_v18, %v1372_v32  ;;  %v1706_v13 = vunpack.c.h.b16 %v1661_v36 }
 0x47a   :  { %15155 = vst [vmem:[#allocation39_spill] sm:$0xff] %v11618_v15 }
 0x47b   :  { %15160 = vst [vmem:[#allocation44_spill] sm:$0xff] %v11635_v51 }
 0x47c   :  { %1762 = vperm.xlu0 %10227, %v1697_v20   ;;  %1756 = vperm.xlu1 %10228, %v1695_v58   ;;  %v11620_v20 = vmul.f32 %v1504_v44, %v1368_v0  ;;  %v1376_v58 = vrot.slane %v11610_v1, %v10890_v16  ;;  %v1705_v44 = vunpack.c.l.b16 %v1661_v36 }
 0x47e   :  { %15156 = vst [vmem:[#allocation40_spill] sm:$0xff] %v11620_v20  ;;  %v1660_v35 = vpack.c.bf16 %v11620_v20, %v11618_v15 }
 0x480   :  { %1759 = vperm.xlu0 %10227, %v1696_v49   ;;  %1765 = vperm.xlu1 %10228, %v1698_v3   ;;  %v1536_v49 = vpop.permute.xlu0 %1535  ;;  %v1532_v3 = vpop.permute.xlu1 %1531  ;;  %v1704_v38 = vunpack.c.h.b16 %v1660_v35 }
 0x481   :  { %v11628_v39 = vmul.f32 %v1536_v49, %v1376_v58  ;;  %v11630_v0 = vmul.f32 %v1532_v3, %v1376_v58 }
 0x483   :  { %15157 = vst [vmem:[#allocation41_spill] sm:$0xff] %v11628_v39  ;;  %15158 = vst [vmem:[#allocation42_spill] sm:$0xff] %v11630_v0  ;;  %v1663_v41 = vpack.c.bf16 %v11628_v39, %v11630_v0 }
 0x484   :  { %1774 = vperm.xlu0 %10227, %v1701_v54   ;;  %1768 = vperm.xlu1 %10228, %v1699_v11   ;;  %v1703_v54 = vunpack.c.l.b16 %v1660_v35  ;;  %v11633_v11 = vmul.f32 %v11484_v59, %v1372_v32  ;;  %v1540_v49 = vpop.permute.xlu1 %1539 }
 0x485   :  { %v11643_v59 = vmul.f32 %v1540_v49, %v1376_v58  ;;  %v1709_v18 = vunpack.c.l.b16 %v1663_v41  ;;  %v1710_v35 = vunpack.c.h.b16 %v1663_v41 }
 0x486   :  { %15159 = vst [vmem:[#allocation43_spill] sm:$0xff] %v11633_v11 }
 0x487   :  { %15162 = vst [vmem:[#allocation46_spill] sm:$0xff] %v11643_v59 }
 0x488   :  { %1771 = vperm.xlu0 %10227, %v1700_v23   ;;  %1777 = vperm.xlu1 %10228, %v1702_v27   ;;  %v1662_v23 = vpack.c.bf16 %v11635_v51, %v11633_v11  ;;  %v1544_v27 = vpop.permute.xlu0 %1543 }
 0x489   :  { %v11641_v3 = vmul.f32 %v1544_v27, %v1376_v58 }
 0x48a   :  { %v1707_v32 = vunpack.c.l.b16 %v1662_v23  ;;  %v1708_v36 = vunpack.c.h.b16 %v1662_v23 }
 0x48b   :  { %15161 = vst [vmem:[#allocation45_spill] sm:$0xff] %v11641_v3 }
 0x48c   :  { %1786 = vperm.xlu0 %10227, %v1705_v44   ;;  %1780 = vperm.xlu1 %10228, %v1703_v54   ;;  %v1664_v44 = vpack.c.bf16 %v11641_v3, %v11643_v59 }
 0x48e   :  { %v1712_v54 = vunpack.c.h.b16 %v1664_v44 }
 0x490   :  { %1783 = vperm.xlu0 %10227, %v1704_v38   ;;  %1789 = vperm.xlu1 %10228, %v1706_v13   ;;  %v1711_v38 = vunpack.c.l.b16 %v1664_v44 }
 0x494   :  { %1792 = vperm.xlu1 %10228, %v1707_v32   ;;  %1798 = vperm.xlu0 %10227, %v1709_v18  }
 0x498   :  { %1801 = vperm.xlu1 %10228, %v1710_v35   ;;  %1795 = vperm.xlu0 %10227, %v1708_v36  }
 0x49c   :  { %1807 = vperm.xlu0 %10227, %v1712_v54   ;;  %1804 = vperm.xlu1 %10228, %v1711_v38  }
 0x4a0   :  { %2212 = vperm.xlu0 %10227, %v11507_v63   ;;  %2215 = vperm.xlu1 %10228, %v11509_v50  }
 0x4a4   :  { %2224 = vperm.xlu0 %10227, %v11511_v29   ;;  %2227 = vperm.xlu1 %10228, %v11513_v21   ;;  %v11675_v29 = vsub.s32 %v1827_v26, %v10876_v7 }
 0x4a6   :  { %15165 = vst [vmem:[#allocation49_spill] sm:$0xff] %v11675_v29 }
 0x4a8   :  { %2230 = vperm.xlu0 %10227, %v11521_v47   ;;  %2218 = vperm.xlu1 %10228, %v11527_v42   ;;  %v11669_v47 = vsub.s32 %v1813_v12, %v10876_v7 }
 0x4aa   :  { %15163 = vst [vmem:[#allocation47_spill] sm:$0xff] %v11669_v47 }
 0x4ac   :  { %2239 = vperm.xlu0 %10227, %v11540_v22   ;;  %2236 = vperm.xlu1 %10228, %v11533_v57  }
 0x4df   :  { %v1718_v13 = vpop.permute.xlu0 %1717  ;;  %v1715_v58 = vpop.permute.xlu1 %1714 }
 0x4e0   :  { %v1817_v4 = vrot.slane %v1718_v13, %v11669_v47  ;;  %v1812_v63 = vrot.slane %v1715_v58, %v11265_v53 }
 0x4e3   :  { %v1730_v41 = vpop.permute.xlu0 %1729  ;;  %v1727_v23 = vpop.permute.xlu1 %1726 }
 0x4e4   :  { %v1841_v50 = vrot.slane %v1730_v41, %v11669_v47  ;;  %v1837_v6 = vrot.slane %v1727_v23, %v11265_v53  ;;  %v1819_v23 = vsel %vm1818_vm12, %v1817_v4, %v1812_v63 }
 0x4e6   :  { %v1842_v25 = vsel %vm1818_vm12, %v1841_v50, %v1837_v6 }
 0x4e7   :  { %v1733_v27 = vpop.permute.xlu0 %1732  ;;  %v1721_v49 = vpop.permute.xlu1 %1720 }
 0x4e8   :  { %v1846_v12 = vrot.slane %v1733_v27, %v11672_v60  ;;  %v1824_v56 = vrot.slane %v1721_v49, %v11672_v60 }
 0x4ea   :  { %v1847_v49 = vsel %vm1825_vm13, %v1846_v12, %v1842_v25 }
 0x4eb   :  { %v1742_v32 = vpop.permute.xlu0 %1741  ;;  %v1739_v18 = vpop.permute.xlu1 %1738 }
 0x4ec   :  { %v1860_v52 = vrot.slane %v1742_v32, %v11669_v47  ;;  %v1856_v26 = vrot.slane %v1739_v18, %v11265_v53  ;;  %v1826_v32 = vsel %vm1825_vm13, %v1824_v56, %v1819_v23 }
 0x4ee   :  { %v1861_v18 = vsel %vm1818_vm12, %v1860_v52, %v1856_v26 }
 0x4ef   :  { %v1736_v44 = vpop.permute.xlu0 %1735  ;;  %v1724_v35 = vpop.permute.xlu1 %1723 }
 0x4f0   :  { %v1851_v16 = vrot.slane %v1736_v44, %v11675_v29  ;;  %v1831_v13 = vrot.slane %v1724_v35, %v11675_v29 }
 0x4f2   :  { %v1852_v44 = vsel %vm1832_vm14, %v1851_v16, %v1847_v49  ;;  %v1833_v35 = vsel %vm1832_vm14, %v1831_v13, %v1826_v32 }
 0x4f3   :  { %v1751_v36 = vpop.permute.xlu0 %1750  ;;  %v1745_v54 = vpop.permute.xlu1 %1744 }
 0x4f4   :  { %v1865_v41 = vrot.slane %v1745_v54, %v11672_v60  ;;  %v1875_v4 = vrot.slane %v1751_v36, %v11265_v53 }
 0x4f6   :  { %v1866_v6 = vsel %vm1825_vm13, %v1865_v41, %v1861_v18  ;;  %v1967_v41 = vsel %vm763_vm4, %v1852_v44, %v1833_v35 }
 0x4f7   :  { %v1748_v38 = vpop.permute.xlu0 %1747  ;;  %v1754_v28 = vpop.permute.xlu1 %1753 }
 0x4f8   :  { %v1870_v27 = vrot.slane %v1748_v38, %v11675_v29  ;;  %v1879_v59 = vrot.slane %v1754_v28, %v11669_v47 }
 0x4fa   :  { %v1871_v50 = vsel %vm1832_vm14, %v1870_v27, %v1866_v6  ;;  %v1880_v12 = vsel %vm1818_vm12, %v1879_v59, %v1875_v4 }
 0x4fb   :  { %v11655_v8 = vpop.permute.xlu0 %1762  ;;  %v1757_v2 = vpop.permute.xlu1 %1756 }
 0x4fc   :  { %v1884_v63 = vrot.slane %v1757_v2, %v11672_v60  ;;  %v1894_v38 = vrot.slane %v11655_v8, %v11265_v53 }
 0x4fe   :  { %v1885_v8 = vsel %vm1825_vm13, %v1884_v63, %v1880_v12  ;;  %v15166_v12 = vmov 0.0  }
 0x4ff   :  { %v11657_v14 = vpop.permute.xlu0 %1759  ;;  %v1766_v24 = vpop.permute.xlu1 %1765 }
 0x500   :  { %v1898_v25 = vrot.slane %v1766_v24, %v11669_v47  ;;  %v1889_v52 = vrot.slane %v11657_v14, %v11675_v29 }
 0x502   :  { %v1899_v13 = vsel %vm1818_vm12, %v1898_v25, %v1894_v38 }
 0x503   :  { %v11659_v1 = vpop.permute.xlu0 %1774  ;;  %v11661_v17 = vpop.permute.xlu1 %1768 }
 0x504   :  { %v1903_v16 = vrot.slane %v11661_v17, %v11672_v60  ;;  %v1913_v14 = vrot.slane %v11659_v1, %v11265_v53 }
 0x506   :  { %v1904_v59 = vsel %vm1825_vm13, %v1903_v16, %v1899_v13 }
 0x507   :  { %v11666_v57 = vpop.permute.xlu0 %1771  ;;  %v1778_v22 = vpop.permute.xlu1 %1777 }
 0x508   :  { %v1917_v28 = vrot.slane %v1778_v22, %v11669_v47  ;;  %v1908_v36 = vrot.slane %v11666_v57, %v11675_v29 }
 0x50a   :  { %v1918_v1 = vsel %vm1818_vm12, %v1917_v28, %v1913_v14  ;;  %v1909_v23 = vsel %vm1832_vm14, %v1908_v36, %v1904_v59  ;;  %v10746_v14 = vld [vmem:[%s14874_s8 + $0x8] sm:$0xff]  }
 0x50b   :  { %v1787_v21 = vpop.permute.xlu0 %1786  ;;  %v1781_v42 = vpop.permute.xlu1 %1780 }
 0x50c   :  { %v1922_v2 = vrot.slane %v1781_v42, %v11672_v60  ;;  %v1932_v57 = vrot.slane %v1787_v21, %v11265_v53  ;;  %v1968_v21 = vsel %vm765_vm5, %v1871_v50, %v1967_v41 }
 0x50e   :  { %v1923_v27 = vsel %vm1825_vm13, %v1922_v2, %v1918_v1 }
 0x50f   :  { %v1784_v7 = vpop.permute.xlu0 %1783  ;;  %v1790_v58 = vpop.permute.xlu1 %1789 }
 0x510   :  { %v1936_v24 = vrot.slane %v1790_v58, %v11669_v47  ;;  %v1927_v56 = vrot.slane %v1784_v7, %v11675_v29  ;;  %v1890_v58 = vsel %vm1832_vm14, %v1889_v52, %v1885_v8 }
 0x511   :  { %v1969_v63 = vsel %vm767_vm6, %v1890_v58, %v1968_v21  ;;  %v11796_v21 = vld [vmem:[#allocation2 + $0x9] sm:$0x1] }
 0x512   :  { %v1937_v49 = vsel %vm1818_vm12, %v1936_v24, %v1932_v57  ;;  %v1928_v32 = vsel %vm1832_vm14, %v1927_v56, %v1923_v27  ;;  %v1970_v52 = vsel %vm769_vm7, %v1909_v23, %v1969_v63  ;;  %v10745_v24 = vld [vmem:[%s14874_s8] sm:$0xff]  }
 0x513   :  { %v1799_v3 = vpop.permute.xlu0 %1798  ;;  %v1793_v54 = vpop.permute.xlu1 %1792  ;;  %v1971_v16 = vsel %vm771_vm8, %v1928_v32, %v1970_v52  ;;  %v11791_v23 = vld [vmem:[#allocation2 + $0x1] sm:$0x1] }
 0x514   :  { %v1941_v17 = vrot.slane %v1793_v54, %v11672_v60  ;;  %v1951_v18 = vrot.slane %v1799_v3, %v11265_v53  ;;  %v11807_v52 = vld [vmem:[#allocation2 + $0x21] sm:$0x1] }
 0x516   :  { %v1942_v54 = vsel %vm1825_vm13, %v1941_v17, %v1937_v49 }
 0x517   :  { %v1796_v22 = vpop.permute.xlu0 %1795  ;;  %v1802_v26 = vpop.permute.xlu1 %1801 }
 0x518   :  { %v1946_v42 = vrot.slane %v1796_v22, %v11675_v29  ;;  %v1955_v7 = vrot.slane %v1802_v26, %v11669_v47  ;;  %v15169_v47 = vld [vmem:[#allocation9_spill] sm:$0xff] }
 0x519   :  { %v2307_v53 = vadd.s32 4294967264, %v15169_v47 }
 0x51a   :  { %v1947_v44 = vsel %vm1832_vm14, %v1946_v42, %v1942_v54  ;;  %v1956_v50 = vsel %vm1818_vm12, %v1955_v7, %v1951_v18  ;;  %v11800_v54 = vld [vmem:[#allocation2 + $0x11] sm:$0x1] }
 0x51b   :  { %v1808_v4 = vpop.permute.xlu0 %1807  ;;  %v1805_v6 = vpop.permute.xlu1 %1804  ;;  %v1972_v28 = vsel %vm773_vm9, %v1947_v44, %v1971_v16  ;;  %v11804_v44 = vld [vmem:[#allocation2 + $0x19] sm:$0x1] }
 0x51c   :  { %v1965_v35 = vrot.slane %v1808_v4, %v11675_v29  ;;  %v1960_v25 = vrot.slane %v1805_v6, %v11672_v60 }
 0x51e   :  { %v1961_v3 = vsel %vm1825_vm13, %v1960_v25, %v1956_v50 }
 0x51f   :  { %v1966_v38 = vsel %vm1832_vm14, %v1965_v35, %v1961_v3 }
 0x520   :  { %v1973_v36 = vsel %vm775_vm10, %v1966_v38, %v1972_v28 }
 0x521   :  { %v1974_v2 = vpack.c.b16 %v1973_v36, %v1973_v36  ;;  %v11812_v36 = vld [vmem:[#allocation2 + $0x29] sm:$0x1] }
 0x523   :  { %10148 = vmatmul.mubr.msk.bf16.vlgmr.msra.gmra.mrb[8].mxu1 %vm445_vm0, %v1974_v2 }
 0x524   :  { %10152 = vmatpush3.bf16.msra.mxu1 %v10745_v24  ;;  %10155 = vmatprep.mubr.msk.bf16.mxu1 %vm10787_vm1, %v15166_v12  ;;  %v11815_v24 = vld [vmem:[#allocation2 + $0x31] sm:$0x1] }
 0x525   :  { %10153 = vmatprep.subr.bf16.mxu1 %v15166_v12 }
 0x528   :  { %10154 = vmatpush3.bf16.msra.mxu1 %v10746_v14 }
 0x529   :  { %10167 = vmatprep.subr.bf16.mxu1 %v15166_v12 }
 0x5f6   :  { %v11756_v56 = vpop.f32.mrb[8].mxu1 }
 0x5f7   :  { %v2090_v17 = vadd.f32 %v11756_v56, %v11301_v31  ;;  %v10149_v22 = vpop.f32.mrb[9].mxu1  ;;  %v2019_v41 = vrot.slane %v11756_v56, 1  ;;  %v2034_v27 = vadd.f32 %v11756_v56, %v11791_v23  ;;  %v2020_v49 = vrot.slane %v11756_v56, 2 }
 0x5f8   :  { %v2015_v26 = vpop.f32.mrb[10].mxu1  ;;  %v2021_v18 = vrot.slane %v11756_v56, 3  ;;  %v2022_v63 = vrot.slane %v11756_v56, 4  ;;  %v2023_v50 = vrot.slane %v11756_v56, 5  ;;  %v2024_v28 = vrot.slane %v11756_v56, 6 }
 0x5f9   :  { %2099 = vrot.lane.b32.xlu1 %v2090_v17, %s10784_s25  ;;  %v10150_v8 = vpop.f32.mrb[11].mxu1  ;;  %v2092_v13 = vrot.slane %v2090_v17, 1  ;;  %v2093_v57 = vrot.slane %v2090_v17, 2  ;;  %v2094_v42 = vrot.slane %v2090_v17, 3  ;;  %v2095_v58 = vrot.slane %v2090_v17, 4  ;;  %v11819_v26 = vpop.permute.xlu1 %2215 }
 0x5fa   :  { %v2096_v59 = vrot.slane %v2090_v17, 5  ;;  %v2097_v1 = vrot.slane %v2090_v17, 6  ;;  %v2098_v7 = vrot.slane %v2090_v17, 7  ;;  %v2035_v32 = vadd.f32 %v2019_v41, %v11796_v21  ;;  %v11821_v8 = vpop.permute.xlu0 %2212 }
 0x5fb   :  { %2101 = vrot.lane.b32.xlu0 %v2092_v13, %s10784_s25  ;;  %v9976_v4 = vmul.f32 -1.442695, %v2034_v27  ;;  %v2036_v6 = vadd.f32 %v2020_v49, %v11800_v54  ;;  %v2037_v25 = vadd.f32 %v2021_v18, %v11804_v44  ;;  %v2038_v3 = vadd.f32 %v2022_v63, %v11807_v52 }
 0x5fc   :  { %v9977_v35 = vmul.f32 -1.442695, %v2035_v32  ;;  %v2039_v2 = vadd.f32 %v2023_v50, %v11812_v36  ;;  %v2040_v17 = vadd.f32 %v2024_v28, %v11815_v24  ;;  %v2025_v22 = vrot.slane %v11756_v56, 7 }
 0x5fd   :  { %2103 = vrot.lane.b32.xlu1 %v2093_v57, %s10784_s25  ;;  %10409 = vpow2.f32 %v9976_v4  ;;  %v9978_v16 = vmul.f32 -1.442695, %v2036_v6  ;;  %v9979_v38 = vmul.f32 -1.442695, %v2037_v25  ;;  %v9980_v14 = vmul.f32 -1.442695, %v2038_v3 }
 0x5fe   :  { %10411 = vpow2.f32 %v9977_v35  ;;  %v9981_v13 = vmul.f32 -1.442695, %v2039_v2  ;;  %v11823_v57 = vld [vmem:[#allocation2 + $0x39] sm:$0x1]  ;;  %v11828_v56 = vpop.permute.xlu0 %2224 }
 0x5ff   :  { %2105 = vrot.lane.b32.xlu0 %v2094_v42, %s10784_s25  ;;  %10413 = vpow2.f32 %v9978_v16  ;;  %v9982_v42 = vmul.f32 -1.442695, %v2040_v17 }
 0x600   :  { %10415 = vpow2.f32 %v9979_v38 }
 0x601   :  { %2107 = vrot.lane.b32.xlu1 %v2095_v58, %s10784_s25  ;;  %10417 = vpow2.f32 %v9980_v14  ;;  %v2041_v58 = vadd.f32 %v2025_v22, %v11823_v57 }
 0x602   :  { %10419 = vpow2.f32 %v9981_v13  ;;  %v11832_v35 = vpop.permute.xlu0 %2230 }
 0x603   :  { %2109 = vrot.lane.b32.xlu0 %v2096_v59, %s10784_s25  ;;  %10421 = vpow2.f32 %v9982_v42  ;;  %v9983_v41 = vmul.f32 -1.442695, %v2041_v58 }
 0x605   :  { %2111 = vrot.lane.b32.xlu1 %v2097_v1, %s10784_s25  ;;  %v11826_v1 = vpop.permute.xlu1 %2227  ;;  %10423 = vpow2.f32 %v9983_v41 }
 0x606   :  { %v11836_v2 = vpop.permute.xlu0 %2239 }
 0x607   :  { %2113 = vrot.lane.b32.xlu0 %v2098_v7, %s10784_s25  ;;  %v10410_v59 = vpop.eup %10409 }
 0x608   :  { %v10412_v7 = vpop.eup %10411  ;;  %v2066_v27 = vadd.f32 1.0, %v10410_v59 }
 0x609   :  { %2233 = vperm.xlu1 %10228, %v11523_v10   ;;  %v10414_v49 = vpop.eup %10413  ;;  %v2067_v32 = vadd.f32 1.0, %v10412_v7  ;;  %v11830_v4 = vpop.permute.xlu1 %2218 }
 0x60a   :  { %v10416_v18 = vpop.eup %10415  ;;  %10425 = vrcp.f32 %v2066_v27  ;;  %v2068_v6 = vadd.f32 1.0, %v10414_v49 }
 0x60b   :  { %2221 = vperm.xlu0 %10227, %v11529_v30   ;;  %v10418_v63 = vpop.eup %10417  ;;  %10427 = vrcp.f32 %v2067_v32  ;;  %v2069_v25 = vadd.f32 1.0, %v10416_v18 }
 0x60c   :  { %v10420_v50 = vpop.eup %10419  ;;  %10429 = vrcp.f32 %v2068_v6  ;;  %v2070_v16 = vadd.f32 1.0, %v10418_v63 }
 0x60d   :  { %2248 = vperm.xlu1 %10228, %v11548_v5   ;;  %v10422_v3 = vpop.eup %10421  ;;  %v11834_v28 = vpop.permute.xlu1 %2236  ;;  %10431 = vrcp.f32 %v2069_v25  ;;  %v2071_v38 = vadd.f32 1.0, %v10420_v50 }
 0x60e   :  { %10433 = vrcp.f32 %v2070_v16  ;;  %v2072_v14 = vadd.f32 1.0, %v10422_v3 }
 0x60f   :  { %2242 = vperm.xlu0 %10227, %v11555_v62   ;;  %v10424_v17 = vpop.eup %10423  ;;  %10435 = vrcp.f32 %v2071_v38 }
 0x610   :  { %10437 = vrcp.f32 %v2072_v14  ;;  %v2073_v7 = vadd.f32 1.0, %v10424_v17 }
 0x611   :  { %2254 = vperm.xlu1 %10228, %v11576_v19  }
 0x612   :  { %10439 = vrcp.f32 %v2073_v7  ;;  %v15167_v7 = vld [vmem:[#allocation45_spill] sm:$0xff] }
 0x613   :  { %2251 = vperm.xlu0 %10227, %v11550_v43  }
 0x614   :  { %v10426_v22 = vpop.eup %10425 }
 0x615   :  { %2263 = vperm.xlu1 %10228, %v11570_v37   ;;  %v10428_v58 = vpop.eup %10427 }
 0x616   :  { %v10430_v27 = vpop.eup %10429 }
 0x617   :  { %2245 = vperm.xlu0 %10227, %v11557_v55   ;;  %v10432_v18 = vpop.eup %10431 }
 0x618   :  { %v10434_v25 = vpop.eup %10433 }
 0x619   :  { %2257 = vperm.xlu1 %10228, %v11578_v34   ;;  %v10436_v38 = vpop.eup %10435 }
 0x61a   :  { %v10438_v14 = vpop.eup %10437 }
 0x61b   :  { %2260 = vperm.xlu0 %10227, %v11568_v40  }
 0x61d   :  { %2272 = vperm.xlu1 %10228, %v11589_v61  }
 0x61f   :  { %2266 = vperm.xlu0 %10227, %v11597_v46  }
 0x621   :  { %2278 = vperm.xlu1 %10228, %v11618_v15  }
 0x623   :  { %2275 = vperm.xlu0 %10227, %v11591_v33  }
 0x625   :  { %2287 = vperm.xlu1 %10228, %v11615_v45  }
 0x627   :  { %2269 = vperm.xlu0 %10227, %v11599_v48  }
 0x629   :  { %2290 = vperm.xlu1 %10228, %v11633_v11   ;;  %v2326_v11 = vadd.s32 4294967240, %v15169_v47 }
 0x62b   :  { %2284 = vperm.xlu0 %10227, %v11613_v9   ;;  %v15170_v9 = vld [vmem:[#allocation7_spill] sm:$0xff] }
 0x62c   :  { %v11894_v45 = vsub.s32 %v2307_v53, %v15170_v9  ;;  %v11904_v33 = vsub.s32 %v2326_v11, %v15170_v9 }
 0x62d   :  { %2299 = vperm.xlu1 %10228, %v11628_v39  }
 0x62e   :  { %15171 = vst [vmem:[#allocation9_spill] sm:$0xff] %v11894_v45  ;;  %15174 = vst [vmem:[#allocation51_spill] sm:$0xff] %v11904_v33 }
 0x62f   :  { %2281 = vperm.xlu0 %10227, %v11620_v20  }
 0x633   :  { %2296 = vperm.xlu0 %10227, %v11630_v0  }
 0x637   :  { %2293 = vperm.xlu0 %10227, %v11635_v51  }
 0x66b   :  { %v2100_v13 = vpop.permute.xlu1 %2099 }
 0x66c   :  { %v2123_v42 = vmul.f32 %v10426_v22, %v2100_v13 }
 0x66d   :  { %v2102_v59 = vpop.permute.xlu0 %2101 }
 0x66e   :  { %v2124_v41 = vmul.f32 %v10428_v58, %v2102_v59  ;;  %2139 = vrot.lane.b32.xlu1 %v2123_v42, %s10782_s30  ;;  %v10440_v58 = vpop.eup %10439 }
 0x66f   :  { %v2104_v49 = vpop.permute.xlu1 %2103 }
 0x670   :  { %v2125_v32 = vmul.f32 %v10430_v27, %v2104_v49  ;;  %2141 = vrot.lane.b32.xlu0 %v2124_v41, %s10782_s30  ;;  %v15168_v41 = vld [vmem:[#allocation46_spill] sm:$0xff] }
 0x671   :  { %v2106_v6 = vpop.permute.xlu0 %2105 }
 0x672   :  { %v2126_v63 = vmul.f32 %v10432_v18, %v2106_v6  ;;  %2143 = vrot.lane.b32.xlu1 %v2125_v32, %s10782_s30 }
 0x673   :  { %v2108_v50 = vpop.permute.xlu1 %2107 }
 0x674   :  { %v2127_v16 = vmul.f32 %v10434_v25, %v2108_v50  ;;  %2145 = vrot.lane.b32.xlu0 %v2126_v63, %s10782_s30 }
 0x675   :  { %v2110_v3 = vpop.permute.xlu0 %2109 }
 0x676   :  { %2147 = vrot.lane.b32.xlu1 %v2127_v16, %s10782_s30  ;;  %v2128_v22 = vmul.f32 %v10436_v38, %v2110_v3 }
 0x677   :  { %v2112_v17 = vpop.permute.xlu1 %2111 }
 0x678   :  { %v2129_v13 = vmul.f32 %v10438_v14, %v2112_v17 }
 0x679   :  { %v2114_v42 = vpop.permute.xlu0 %2113 }
 0x67a   :  { %2149 = vrot.lane.b32.xlu1 %v2128_v22, %s10782_s30  ;;  %2151 = vrot.lane.b32.xlu0 %v2129_v13, %s10782_s30  ;;  %v2130_v59 = vmul.f32 %v10440_v58, %v2114_v42 }
 0x67e   :  { %2153 = vrot.lane.b32.xlu1 %v2130_v59, %s10782_s30  ;;  %2305 = vperm.xlu0 %10227, %v15167_v7   ;;  %v2319_v7 = vadd.s32 4294967248, %v15169_v47 }
 0x680   :  { %v11901_v61 = vsub.s32 %v2319_v7, %v15170_v9 }
 0x682   :  { %2302 = vperm.xlu1 %10228, %v15168_v41   ;;  %v2312_v41 = vadd.s32 4294967256, %v15169_v47  ;;  %15173 = vst [vmem:[#allocation50_spill] sm:$0xff] %v11901_v61  ;;  %v2323_v53 = vrot.slane %v11830_v4, %v11901_v61  ;;  %v2345_v4 = vrot.slane %v11832_v35, %v11901_v61 }
 0x684   :  { %v11897_v15 = vsub.s32 %v2312_v41, %v15170_v9 }
 0x686   :  { %15172 = vst [vmem:[#allocation7_spill] sm:$0xff] %v11897_v15  ;;  %v2316_v47 = vrot.slane %v11819_v26, %v11897_v15  ;;  %v2336_v26 = vrot.slane %v11828_v56, %v11894_v45  ;;  %v2359_v35 = vrot.slane %v11836_v2, %v11897_v15 }
 0x688   :  { %v2234_v32 = vpop.permute.xlu1 %2233 }
 0x689   :  { %v2350_v41 = vrot.slane %v2234_v32, %v11904_v33  ;;  %v2355_v32 = vrot.slane %v11834_v28, %v11894_v45 }
 0x68a   :  { %v2222_v27 = vpop.permute.xlu0 %2221 }
 0x68c   :  { %v11852_v6 = vpop.permute.xlu1 %2248 }
 0x68e   :  { %v11848_v49 = vpop.permute.xlu0 %2242 }
 0x690   :  { %v11856_v25 = vpop.permute.xlu1 %2254 }
 0x692   :  { %v11850_v18 = vpop.permute.xlu0 %2251 }
 0x693   :  { %v2378_v28 = vrot.slane %v11850_v18, %v11897_v15 }
 0x694   :  { %v11860_v16 = vpop.permute.xlu1 %2263 }
 0x696   :  { %v11854_v63 = vpop.permute.xlu0 %2245 }
 0x698   :  { %v11864_v38 = vpop.permute.xlu1 %2257 }
 0x69a   :  { %v11858_v50 = vpop.permute.xlu0 %2260 }
 0x69c   :  { %v11868_v17 = vpop.permute.xlu1 %2272 }
 0x69e   :  { %v11862_v3 = vpop.permute.xlu0 %2266 }
 0x6a0   :  { %v11872_v13 = vpop.permute.xlu1 %2278 }
 0x6a2   :  { %v11866_v14 = vpop.permute.xlu0 %2275 }
 0x6a4   :  { %v11876_v58 = vpop.permute.xlu1 %2287 }
 0x6a6   :  { %v11870_v22 = vpop.permute.xlu0 %2269 }
 0x6a8   :  { %v11880_v31 = vpop.permute.xlu1 %2290 }
 0x6aa   :  { %v11874_v42 = vpop.permute.xlu0 %2284 }
 0x6ac   :  { %v11884_v29 = vpop.permute.xlu1 %2299 }
 0x6ae   :  { %v11878_v59 = vpop.permute.xlu0 %2281 }
 0x6b2   :  { %v11882_v12 = vpop.permute.xlu0 %2296 }
 0x6b6   :  { %v11886_v60 = vpop.permute.xlu0 %2293 }
 0x6e0   :  { %v2140_v0 = vpop.permute.xlu1 %2139 }
 0x6e1   :  { %v2163_v39 = vadd.f32 %v2140_v0, %v11791_v23  ;;  %v2311_v0 = vrot.slane %v11821_v8, %v11894_v45 }
 0x6e2   :  { %v2142_v51 = vpop.permute.xlu0 %2141 }
 0x6e3   :  { %10441 = vtanh.f32 %v2163_v39  ;;  %v2164_v20 = vadd.f32 %v2142_v51, %v11796_v21  ;;  %v2330_v51 = vrot.slane %v2222_v27, %v11904_v33  ;;  %v2318_v23 = vsel %vm2317_vm15, %v2316_v47, %v2311_v0  ;;  %v15175_v27 = vld [vmem:[#allocation8_spill] sm:$0xff] }
 0x6e4   :  { %v2144_v39 = vpop.permute.xlu1 %2143  ;;  %v2325_v11 = vsel %vm2324_vm11, %v2323_v53, %v2318_v23  ;;  %v2364_v23 = vrot.slane %v11848_v49, %v11901_v61 }
 0x6e5   :  { %10443 = vtanh.f32 %v2164_v20  ;;  %v2165_v9 = vadd.f32 %v2144_v39, %v11800_v54  ;;  %v2340_v20 = vrot.slane %v11826_v1, %v11897_v15  ;;  %v2332_v8 = vsel %vm2331_vm3, %v2330_v51, %v2325_v11 }
 0x6e6   :  { %v2146_v54 = vpop.permute.xlu0 %2145 }
 0x6e7   :  { %10445 = vtanh.f32 %v2165_v9  ;;  %v2341_v53 = vsel %vm2317_vm15, %v2340_v20, %v2336_v26  ;;  %v2166_v39 = vadd.f32 %v2146_v54, %v11804_v44  ;;  %v2369_v9 = vrot.slane %v11854_v63, %v11904_v33 }
 0x6e8   :  { %v2346_v56 = vsel %vm2324_vm11, %v2345_v4, %v2341_v53  ;;  %v2148_v11 = vpop.permute.xlu1 %2147  ;;  %v2360_v26 = vsel %vm2317_vm15, %v2359_v35, %v2355_v32  ;;  %v2374_v63 = vrot.slane %v11852_v6, %v11894_v45 }
 0x6e9   :  { %v2351_v1 = vsel %vm2331_vm3, %v2350_v41, %v2346_v56  ;;  %10447 = vtanh.f32 %v2166_v39  ;;  %v2365_v2 = vsel %vm2324_vm11, %v2364_v23, %v2360_v26  ;;  %v2167_v20 = vadd.f32 %v2148_v11, %v11807_v52 }
 0x6ea   :  { %v2370_v49 = vsel %vm2331_vm3, %v2369_v9, %v2365_v2  ;;  %v2379_v4 = vsel %vm2317_vm15, %v2378_v28, %v2374_v63  ;;  %v2383_v41 = vrot.slane %v11856_v25, %v11901_v61  ;;  %v2402_v56 = vrot.slane %v11862_v3, %v11901_v61 }
 0x6eb   :  { %10449 = vtanh.f32 %v2167_v20  ;;  %v2397_v25 = vrot.slane %v11860_v16, %v11897_v15  ;;  %v2416_v3 = vrot.slane %v11866_v14, %v11897_v15  ;;  %v2426_v11 = vrot.slane %v11878_v59, %v11904_v33 }
 0x6ec   :  { %v2150_v18 = vpop.permute.xlu1 %2149  ;;  %v2384_v52 = vsel %vm2324_vm11, %v2383_v41, %v2379_v4  ;;  %v2152_v39 = vpop.permute.xlu0 %2151  ;;  %v2435_v59 = vrot.slane %v11876_v58, %v11897_v15  ;;  %v2445_v20 = vrot.slane %v11886_v60, %v11904_v33  ;;  %v2440_v63 = vrot.slane %v11880_v31, %v11901_v61 }
 0x6ed   :  { %v10442_v21 = vpop.eup %10441  ;;  %v2169_v16 = vadd.f32 %v2152_v39, %v11815_v24  ;;  %v2454_v60 = vrot.slane %v11884_v29, %v11897_v15 }
 0x6ee   :  { %v2474_v7 = vsub.f32 %v10442_v21, %v2332_v8 }
 0x6ef   :  { %v10444_v47 = vpop.eup %10443 }
 0x6f0   :  { %v2525_v0 = vrot.slane %v2474_v7, %v15175_v27  ;;  %v2475_v51 = vsub.f32 %v10444_v47, %v2351_v1  ;;  %v2388_v7 = vrot.slane %v11864_v38, %v11904_v33  ;;  %v2168_v47 = vadd.f32 %v2150_v18, %v11812_v36  ;;  %v2154_v26 = vpop.permute.xlu1 %2153 }
 0x6f1   :  { %v10446_v44 = vpop.eup %10445  ;;  %v2393_v38 = vrot.slane %v11858_v50, %v11894_v45  ;;  %v2407_v1 = vrot.slane %v11870_v22, %v11904_v33  ;;  %v2412_v22 = vrot.slane %v11868_v17, %v11894_v45  ;;  %v2431_v17 = vrot.slane %v11874_v42, %v11894_v45 }
 0x6f2   :  { %2532 = vbcast.lane.b32.xlu0 %v2525_v0, 296  ;;  %2528 = vbcast.lane.b32.xlu1 %v2525_v0, 288  ;;  %v2545_v21 = vrot.slane %v2475_v51, %v15175_v27  ;;  %v2476_v8 = vsub.f32 %v10446_v44, %v2370_v49  ;;  %v2389_v6 = vsel %vm2331_vm3, %v2388_v7, %v2384_v52  ;;  %10451 = vtanh.f32 %v2168_v47 }
 0x6f3   :  { %v2398_v35 = vsel %vm2317_vm15, %v2397_v25, %v2393_v38  ;;  %v2417_v9 = vsel %vm2317_vm15, %v2416_v3, %v2412_v22  ;;  %10453 = vtanh.f32 %v2169_v16  ;;  %v2170_v49 = vadd.f32 %v2154_v26, %v11823_v57  ;;  %v15176_v38 = vld [vmem:[#allocation12_spill] sm:$0xff]  ;;  %v15180_v3 = vld [vmem:[#allocation22_spill] sm:$0xff] }
 0x6f4   :  { %v2565_v54 = vrot.slane %v2476_v8, %v15175_v27  ;;  %v2403_v50 = vsel %vm2324_vm11, %v2402_v56, %v2398_v35  ;;  %v2450_v7 = vrot.slane %v11882_v12, %v11894_v45  ;;  %v15177_v56 = vld [vmem:[#allocation19_spill] sm:$0xff] }
 0x6f5   :  { %v2408_v32 = vsel %vm2331_vm3, %v2407_v1, %v2403_v50  ;;  %10455 = vtanh.f32 %v2170_v49  ;;  %v2485_v25 = vrot.slane %v15177_v56, %v15176_v38  ;;  %v15178_v35 = vld [vmem:[#allocation23_spill] sm:$0xff] }
 0x6f6   :  { %2540 = vbcast.lane.b32.xlu0 %v2525_v0, 312  ;;  %2536 = vbcast.lane.b32.xlu1 %v2525_v0, 304  ;;  %v10448_v0 = vpop.eup %10447 }
 0x6f7   :  { %v2477_v53 = vsub.f32 %v10448_v0, %v2389_v6  ;;  %v10450_v36 = vpop.eup %10449 }
 0x6f8   :  { %v2478_v23 = vsub.f32 %v10450_v36, %v2408_v32 }
 0x6f9   :  { %v2585_v51 = vrot.slane %v2477_v53, %v15175_v27 }
 0x6fa   :  { %2552 = vbcast.lane.b32.xlu0 %v2545_v21, 296  ;;  %2548 = vbcast.lane.b32.xlu1 %v2545_v21, 288  ;;  %v2605_v14 = vrot.slane %v2478_v23, %v15175_v27 }
 0x6fc   :  { %v10452_v44 = vpop.eup %10451 }
 0x6fd   :  { %v10454_v4 = vpop.eup %10453  ;;  %v2306_v18 = vpop.permute.xlu0 %2305 }
 0x6fe   :  { %2560 = vbcast.lane.b32.xlu0 %v2545_v21, 312  ;;  %2556 = vbcast.lane.b32.xlu1 %v2545_v21, 304  ;;  %v2421_v21 = vrot.slane %v11872_v13, %v11901_v61  ;;  %v2436_v13 = vsel %vm2317_vm15, %v2435_v59, %v2431_v17  ;;  %v2464_v12 = vrot.slane %v2306_v18, %v11904_v33  ;;  %v15189_v18 = vld [vmem:[#allocation21_spill] sm:$0xff] }
 0x6ff   :  { %v2441_v57 = vsel %vm2324_vm11, %v2440_v63, %v2436_v13  ;;  %v10456_v47 = vpop.eup %10455 }
 0x700   :  { %v2422_v24 = vsel %vm2324_vm11, %v2421_v21, %v2417_v9  ;;  %v2446_v41 = vsel %vm2331_vm3, %v2445_v20, %v2441_v57  ;;  %v15182_v21 = vld [vmem:[#allocation20_spill] sm:$0xff] }
 0x701   :  { %v2427_v2 = vsel %vm2331_vm3, %v2426_v11, %v2422_v24  ;;  %v2303_v8 = vpop.permute.xlu1 %2302  ;;  %v2480_v31 = vsub.f32 %v10454_v4, %v2446_v41  ;;  %v15183_v24 = vld [vmem:[#allocation27_spill] sm:$0xff] }
 0x702   :  { %2572 = vbcast.lane.b32.xlu0 %v2565_v54, 296  ;;  %2568 = vbcast.lane.b32.xlu1 %v2565_v54, 288  ;;  %v2479_v28 = vsub.f32 %v10452_v44, %v2427_v2  ;;  %v2459_v58 = vrot.slane %v2303_v8, %v11901_v61  ;;  %v15185_v8 = vld [vmem:[#allocation25_spill] sm:$0xff] }
 0x703   :  { %v2645_v52 = vrot.slane %v2480_v31, %v15175_v27  ;;  %v2493_v31 = vrot.slane %v15189_v18, %v15176_v38 }
 0x704   :  { %v2625_v42 = vrot.slane %v2479_v28, %v15175_v27 }
 0x706   :  { %2580 = vbcast.lane.b32.xlu0 %v2565_v54, 312  ;;  %2576 = vbcast.lane.b32.xlu1 %v2565_v54, 304  ;;  %v2455_v54 = vsel %vm2317_vm15, %v2454_v60, %v2450_v7 }
 0x707   :  { %v2460_v0 = vsel %vm2324_vm11, %v2459_v58, %v2455_v54 }
 0x708   :  { %v2465_v6 = vsel %vm2331_vm3, %v2464_v12, %v2460_v0  ;;  %v15190_v0 = vld [vmem:[#allocation26_spill] sm:$0xff] }
 0x709   :  { %v2481_v29 = vsub.f32 %v10456_v47, %v2465_v6 }
 0x70a   :  { %2592 = vbcast.lane.b32.xlu0 %v2585_v51, 296  ;;  %2588 = vbcast.lane.b32.xlu1 %v2585_v51, 288 }
 0x70b   :  { %v2665_v53 = vrot.slane %v2481_v29, %v15175_v27 }
 0x70e   :  { %2600 = vbcast.lane.b32.xlu0 %v2585_v51, 312  ;;  %2596 = vbcast.lane.b32.xlu1 %v2585_v51, 304 }
 0x712   :  { %2612 = vbcast.lane.b32.xlu0 %v2605_v14, 296  ;;  %2608 = vbcast.lane.b32.xlu1 %v2605_v14, 288 }
 0x716   :  { %2620 = vbcast.lane.b32.xlu0 %v2605_v14, 312  ;;  %2616 = vbcast.lane.b32.xlu1 %v2605_v14, 304  ;;  %v2489_v14 = vrot.slane %v15182_v21, %v15176_v38 }
 0x71a   :  { %2632 = vbcast.lane.b32.xlu0 %v2625_v42, 296  ;;  %2628 = vbcast.lane.b32.xlu1 %v2625_v42, 288 }
 0x71e   :  { %2640 = vbcast.lane.b32.xlu0 %v2625_v42, 312  ;;  %2636 = vbcast.lane.b32.xlu1 %v2625_v42, 304  ;;  %v15187_v42 = vld [vmem:[#allocation24_spill] sm:$0xff] }
 0x722   :  { %2652 = vbcast.lane.b32.xlu0 %v2645_v52, 296  ;;  %2648 = vbcast.lane.b32.xlu1 %v2645_v52, 288 }
 0x726   :  { %2660 = vbcast.lane.b32.xlu0 %v2645_v52, 312  ;;  %2656 = vbcast.lane.b32.xlu1 %v2645_v52, 304 }
 0x72a   :  { %2672 = vbcast.lane.b32.xlu0 %v2665_v53, 296  ;;  %2668 = vbcast.lane.b32.xlu1 %v2665_v53, 288 }
 0x72e   :  { %2680 = vbcast.lane.b32.xlu0 %v2665_v53, 312  ;;  %2676 = vbcast.lane.b32.xlu1 %v2665_v53, 304 }
 0x764   :  { %v2533_v1 = vpop.permute.xlu0 %2532  ;;  %v2529_v39 = vpop.permute.xlu1 %2528 }
 0x765   :  { %v2715_v51 = vmul.f32 %v2533_v1, %v2485_v25  ;;  %v2714_v36 = vmul.f32 %v2529_v39, %v2485_v25  ;;  %v15192_v39 = vld [vmem:[#allocation30_spill] sm:$0xff] }
 0x767   :  { %v12007_v50 = vadd.f32 %v2715_v51, %v15178_v35  ;;  %v12010_v32 = vadd.f32 %v2714_v36, %v15180_v3  ;;  %v15194_v36 = vld [vmem:[#allocation28_spill] sm:$0xff] }
 0x768   :  { %v2541_v16 = vpop.permute.xlu0 %2540  ;;  %v2537_v23 = vpop.permute.xlu1 %2536 }
 0x769   :  { %15179 = vst [vmem:[#allocation12_spill] sm:$0xff] %v12007_v50  ;;  %15181 = vst [vmem:[#allocation23_spill] sm:$0xff] %v12010_v32  ;;  %v2786_v22 = vpack.c.bf16 %v12007_v50, %v12010_v32  ;;  %v2717_v9 = vmul.f32 %v2541_v16, %v2485_v25  ;;  %v2716_v11 = vmul.f32 %v2537_v23, %v2485_v25 }
 0x76b   :  { %v12017_v44 = vadd.f32 %v2717_v9, %v11529_v30  ;;  %v12020_v26 = vadd.f32 %v2716_v11, %v15183_v24  ;;  %v2819_v17 = vunpack.c.h.b16 %v2786_v22  ;;  %v2818_v2 = vunpack.c.l.b16 %v2786_v22 }
 0x76c   :  { %v2553_v28 = vpop.permute.xlu0 %2552  ;;  %v2549_v59 = vpop.permute.xlu1 %2548 }
 0x76d   :  { %15184 = vst [vmem:[#allocation22_spill] sm:$0xff] %v12020_v26  ;;  %v2787_v49 = vpack.c.bf16 %v12017_v44, %v12020_v26  ;;  %v2719_v13 = vmul.f32 %v2553_v28, %v2489_v14  ;;  %v2718_v20 = vmul.f32 %v2549_v59, %v2489_v14  ;;  %2854 = vperm.xlu0 %10227, %v2819_v17  }
 0x76e   :  { %2851 = vperm.xlu1 %10228, %v2818_v2  }
 0x76f   :  { %v12025_v63 = vadd.f32 %v2719_v13, %v15185_v8  ;;  %v12028_v30 = vadd.f32 %v2718_v20, %v15187_v42  ;;  %v2820_v4 = vunpack.c.l.b16 %v2787_v49  ;;  %v2821_v52 = vunpack.c.h.b16 %v2787_v49 }
 0x770   :  { %v2561_v7 = vpop.permute.xlu0 %2560  ;;  %v2557_v57 = vpop.permute.xlu1 %2556 }
 0x771   :  { %15186 = vst [vmem:[#allocation27_spill] sm:$0xff] %v12025_v63  ;;  %15188 = vst [vmem:[#allocation25_spill] sm:$0xff] %v12028_v30  ;;  %v2788_v58 = vpack.c.bf16 %v12025_v63, %v12028_v30  ;;  %v2721_v60 = vmul.f32 %v2561_v7, %v2489_v14  ;;  %v2720_v41 = vmul.f32 %v2557_v57, %v2489_v14  ;;  %v15196_v14 = vld [vmem:[#allocation29_spill] sm:$0xff] }
 0x772   :  { %2857 = vperm.xlu1 %10228, %v2820_v4   ;;  %v2497_v24 = vrot.slane %v15196_v14, %v15176_v38  ;;  %v15225_v14 = vld [vmem:[#allocation10_spill] sm:$0xff] }
 0x773   :  { %v12035_v54 = vadd.f32 %v2721_v60, %v11523_v10  ;;  %v12038_v12 = vadd.f32 %v2720_v41, %v15190_v0  ;;  %v2823_v6 = vunpack.c.h.b16 %v2788_v58  ;;  %v2822_v35 = vunpack.c.l.b16 %v2788_v58  ;;  %v15197_v0 = vld [vmem:[#allocation31_spill] sm:$0xff] }
 0x774   :  { %v2573_v47 = vpop.permute.xlu0 %2572  ;;  %v2569_v29 = vpop.permute.xlu1 %2568 }
 0x775   :  { %15191 = vst [vmem:[#allocation24_spill] sm:$0xff] %v12038_v12  ;;  %v2789_v53 = vpack.c.bf16 %v12035_v54, %v12038_v12  ;;  %v2723_v25 = vmul.f32 %v2573_v47, %v2493_v31  ;;  %v2722_v1 = vmul.f32 %v2569_v29, %v2493_v31  ;;  %2866 = vperm.xlu0 %10227, %v2823_v6  }
 0x776   :  { %2860 = vperm.xlu1 %10228, %v2821_v52   ;;  %v2501_v52 = vrot.slane %v15197_v0, %v15176_v38 }
 0x777   :  { %v12043_v51 = vadd.f32 %v2723_v25, %v15192_v39  ;;  %v12046_v10 = vadd.f32 %v2722_v1, %v15194_v36  ;;  %v2824_v3 = vunpack.c.l.b16 %v2789_v53  ;;  %v2825_v7 = vunpack.c.h.b16 %v2789_v53 }
 0x778   :  { %v2581_v16 = vpop.permute.xlu0 %2580  ;;  %v2577_v23 = vpop.permute.xlu1 %2576 }
 0x779   :  { %15193 = vst [vmem:[#allocation26_spill] sm:$0xff] %v12043_v51  ;;  %15195 = vst [vmem:[#allocation30_spill] sm:$0xff] %v12046_v10  ;;  %v2790_v22 = vpack.c.bf16 %v12043_v51, %v12046_v10  ;;  %v2725_v9 = vmul.f32 %v2581_v16, %v2493_v31  ;;  %v2724_v11 = vmul.f32 %v2577_v23, %v2493_v31  ;;  %2869 = vperm.xlu0 %10227, %v2824_v3  }
 0x77a   :  { %2863 = vperm.xlu1 %10228, %v2822_v35  }
 0x77b   :  { %v12053_v17 = vadd.f32 %v2725_v9, %v11557_v55  ;;  %v12056_v2 = vadd.f32 %v2724_v11, %v11555_v62  ;;  %v2827_v28 = vunpack.c.h.b16 %v2790_v22  ;;  %v2826_v59 = vunpack.c.l.b16 %v2790_v22  ;;  %v15198_v11 = vld [vmem:[#allocation32_spill] sm:$0xff] }
 0x77c   :  { %v2593_v49 = vpop.permute.xlu0 %2592  ;;  %v2589_v13 = vpop.permute.xlu1 %2588 }
 0x77d   :  { %v2791_v20 = vpack.c.bf16 %v12053_v17, %v12056_v2  ;;  %v2727_v8 = vmul.f32 %v2593_v49, %v2497_v24  ;;  %v2726_v42 = vmul.f32 %v2589_v13, %v2497_v24  ;;  %2878 = vperm.xlu0 %10227, %v2827_v28  }
 0x77e   :  { %2875 = vperm.xlu1 %10228, %v2826_v59  }
 0x77f   :  { %v12061_v4 = vadd.f32 %v2727_v8, %v11550_v43  ;;  %v12064_v55 = vadd.f32 %v2726_v42, %v11548_v5  ;;  %v2828_v62 = vunpack.c.l.b16 %v2791_v20  ;;  %v2829_v35 = vunpack.c.h.b16 %v2791_v20 }
 0x780   :  { %v2601_v57 = vpop.permute.xlu0 %2600  ;;  %v2597_v58 = vpop.permute.xlu1 %2596 }
 0x781   :  { %v2792_v60 = vpack.c.bf16 %v12061_v4, %v12064_v55  ;;  %v2729_v41 = vmul.f32 %v2601_v57, %v2497_v24  ;;  %v2728_v31 = vmul.f32 %v2597_v58, %v2497_v24  ;;  %2872 = vperm.xlu0 %10227, %v2825_v7   ;;  %v2505_v24 = vrot.slane %v15198_v11, %v15176_v38  ;;  %v15199_v7 = vld [vmem:[#allocation34_spill] sm:$0xff]  ;;  %v15201_v57 = vld [vmem:[#allocation33_spill] sm:$0xff] }
 0x782   :  { %2881 = vperm.xlu1 %10228, %v2828_v62  }
 0x783   :  { %v12071_v43 = vadd.f32 %v2729_v41, %v11578_v34  ;;  %v12074_v5 = vadd.f32 %v2728_v31, %v11576_v19  ;;  %v2831_v6 = vunpack.c.h.b16 %v2792_v60  ;;  %v2830_v47 = vunpack.c.l.b16 %v2792_v60 }
 0x784   :  { %v2613_v29 = vpop.permute.xlu0 %2612  ;;  %v2609_v53 = vpop.permute.xlu1 %2608 }
 0x785   :  { %v2793_v25 = vpack.c.bf16 %v12071_v43, %v12074_v5  ;;  %v2731_v1 = vmul.f32 %v2613_v29, %v2501_v52  ;;  %v2730_v39 = vmul.f32 %v2609_v53, %v2501_v52  ;;  %2887 = vperm.xlu0 %10227, %v2830_v47   ;;  %v15203_v47 = vld [vmem:[#allocation35_spill] sm:$0xff]  ;;  %v15204_v53 = vld [vmem:[#allocation40_spill] sm:$0xff] }
 0x786   :  { %2890 = vperm.xlu1 %10228, %v2831_v6   ;;  %v2509_v29 = vrot.slane %v15203_v47, %v15176_v38 }
 0x787   :  { %v12079_v36 = vadd.f32 %v2731_v1, %v11570_v37  ;;  %v12082_v34 = vadd.f32 %v2730_v39, %v11568_v40  ;;  %v2832_v19 = vunpack.c.l.b16 %v2793_v25  ;;  %v2833_v58 = vunpack.c.h.b16 %v2793_v25  ;;  %v15206_v39 = vld [vmem:[#allocation39_spill] sm:$0xff] }
 0x788   :  { %v2621_v3 = vpop.permute.xlu0 %2620  ;;  %v2617_v16 = vpop.permute.xlu1 %2616 }
 0x789   :  { %v2794_v23 = vpack.c.bf16 %v12079_v36, %v12082_v34  ;;  %v2733_v22 = vmul.f32 %v2621_v3, %v2501_v52  ;;  %v2732_v9 = vmul.f32 %v2617_v16, %v2501_v52  ;;  %2884 = vperm.xlu0 %10227, %v2829_v35  }
 0x78a   :  { %2893 = vperm.xlu1 %10228, %v2832_v19  }
 0x78b   :  { %v12089_v37 = vadd.f32 %v2733_v22, %v11599_v48  ;;  %v12092_v40 = vadd.f32 %v2732_v9, %v11597_v46  ;;  %v2835_v28 = vunpack.c.h.b16 %v2794_v23  ;;  %v2834_v59 = vunpack.c.l.b16 %v2794_v23 }
 0x78c   :  { %v2633_v49 = vpop.permute.xlu0 %2632  ;;  %v2629_v13 = vpop.permute.xlu1 %2628 }
 0x78d   :  { %v2795_v20 = vpack.c.bf16 %v12089_v37, %v12092_v40  ;;  %v2735_v8 = vmul.f32 %v2633_v49, %v2505_v24  ;;  %v2734_v42 = vmul.f32 %v2629_v13, %v2505_v24  ;;  %2899 = vperm.xlu0 %10227, %v2834_v59   ;;  %v15210_v59 = vld [vmem:[#allocation37_spill] sm:$0xff] }
 0x78e   :  { %2902 = vperm.xlu1 %10228, %v2835_v28  }
 0x78f   :  { %v12097_v62 = vadd.f32 %v2735_v8, %v15199_v7  ;;  %v12100_v48 = vadd.f32 %v2734_v42, %v15201_v57  ;;  %v2836_v46 = vunpack.c.l.b16 %v2795_v20  ;;  %v2837_v13 = vunpack.c.h.b16 %v2795_v20 }
 0x790   :  { %v2641_v60 = vpop.permute.xlu0 %2640  ;;  %v2637_v41 = vpop.permute.xlu1 %2636 }
 0x791   :  { %15200 = vst [vmem:[#allocation28_spill] sm:$0xff] %v12097_v62  ;;  %15202 = vst [vmem:[#allocation34_spill] sm:$0xff] %v12100_v48  ;;  %v2796_v31 = vpack.c.bf16 %v12097_v62, %v12100_v48  ;;  %v2737_v52 = vmul.f32 %v2641_v60, %v2505_v24  ;;  %v2736_v6 = vmul.f32 %v2637_v41, %v2505_v24  ;;  %2896 = vperm.xlu0 %10227, %v2833_v58   ;;  %v15208_v24 = vld [vmem:[#allocation38_spill] sm:$0xff]  ;;  %v15212_v60 = vld [vmem:[#allocation36_spill] sm:$0xff] }
 0x792   :  { %2905 = vperm.xlu1 %10228, %v2836_v46   ;;  %v2513_v41 = vrot.slane %v15212_v60, %v15176_v38  ;;  %v15219_v38 = vld [vmem:[#allocation42_spill] sm:$0xff] }
 0x793   :  { %v12107_v1 = vadd.f32 %v2737_v52, %v15204_v53  ;;  %v12110_v35 = vadd.f32 %v2736_v6, %v15206_v39  ;;  %v2839_v25 = vunpack.c.h.b16 %v2796_v31  ;;  %v2838_v19 = vunpack.c.l.b16 %v2796_v31  ;;  %v15213_v31 = vld [vmem:[#allocation44_spill] sm:$0xff]  ;;  %v15215_v6 = vld [vmem:[#allocation43_spill] sm:$0xff] }
 0x794   :  { %v2653_v3 = vpop.permute.xlu0 %2652  ;;  %v2649_v16 = vpop.permute.xlu1 %2648 }
 0x795   :  { %15205 = vst [vmem:[#allocation33_spill] sm:$0xff] %v12107_v1  ;;  %15207 = vst [vmem:[#allocation40_spill] sm:$0xff] %v12110_v35  ;;  %v2797_v23 = vpack.c.bf16 %v12107_v1, %v12110_v35  ;;  %v2739_v22 = vmul.f32 %v2653_v3, %v2509_v29  ;;  %v2738_v9 = vmul.f32 %v2649_v16, %v2509_v29  ;;  %2911 = vperm.xlu0 %10227, %v2838_v19  }
 0x796   :  { %2914 = vperm.xlu1 %10228, %v2839_v25  }
 0x797   :  { %v12115_v28 = vadd.f32 %v2739_v22, %v15208_v24  ;;  %v12118_v49 = vadd.f32 %v2738_v9, %v15210_v59  ;;  %v2840_v8 = vunpack.c.l.b16 %v2797_v23  ;;  %v15217_v22 = vld [vmem:[#allocation41_spill] sm:$0xff]  ;;  %v2841_v59 = vunpack.c.h.b16 %v2797_v23 }
 0x798   :  { %v2661_v42 = vpop.permute.xlu0 %2660  ;;  %v2657_v7 = vpop.permute.xlu1 %2656 }
 0x799   :  { %15209 = vst [vmem:[#allocation39_spill] sm:$0xff] %v12115_v28  ;;  %15211 = vst [vmem:[#allocation38_spill] sm:$0xff] %v12118_v49  ;;  %v2798_v57 = vpack.c.bf16 %v12115_v28, %v12118_v49  ;;  %v2741_v58 = vmul.f32 %v2661_v42, %v2509_v29  ;;  %v2740_v46 = vmul.f32 %v2657_v7, %v2509_v29  ;;  %2908 = vperm.xlu0 %10227, %v2837_v13  }
 0x79a   :  { %2917 = vperm.xlu1 %10228, %v2840_v8  }
 0x79b   :  { %v12125_v52 = vadd.f32 %v2741_v58, %v15213_v31  ;;  %v12128_v53 = vadd.f32 %v2740_v46, %v15215_v6  ;;  %v2843_v20 = vunpack.c.h.b16 %v2798_v57  ;;  %v2842_v39 = vunpack.c.l.b16 %v2798_v57  ;;  %v15221_v46 = vld [vmem:[#allocation45_spill] sm:$0xff]  ;;  %v15223_v6 = vld [vmem:[#allocation46_spill] sm:$0xff] }
 0x79c   :  { %v2673_v25 = vpop.permute.xlu0 %2672  ;;  %v2669_v19 = vpop.permute.xlu1 %2668 }
 0x79d   :  { %15214 = vst [vmem:[#allocation37_spill] sm:$0xff] %v12125_v52  ;;  %15216 = vst [vmem:[#allocation44_spill] sm:$0xff] %v12128_v53  ;;  %v2799_v3 = vpack.c.bf16 %v12125_v52, %v12128_v53  ;;  %v2743_v16 = vmul.f32 %v2673_v25, %v2513_v41  ;;  %v2742_v29 = vmul.f32 %v2669_v19, %v2513_v41  ;;  %2923 = vperm.xlu0 %10227, %v2842_v39  }
 0x79e   :  { %2926 = vperm.xlu1 %10228, %v2843_v20  }
 0x79f   :  { %v12133_v9 = vadd.f32 %v2743_v16, %v15217_v22  ;;  %v12136_v24 = vadd.f32 %v2742_v29, %v15219_v38  ;;  %v2844_v13 = vunpack.c.l.b16 %v2799_v3  ;;  %v2845_v19 = vunpack.c.h.b16 %v2799_v3 }
 0x7a0   :  { %v2681_v8 = vpop.permute.xlu0 %2680  ;;  %v2677_v42 = vpop.permute.xlu1 %2676 }
 0x7a1   :  { %15218 = vst [vmem:[#allocation43_spill] sm:$0xff] %v12133_v9  ;;  %15220 = vst [vmem:[#allocation41_spill] sm:$0xff] %v12136_v24  ;;  %v2800_v7 = vpack.c.bf16 %v12133_v9, %v12136_v24  ;;  %v2745_v57 = vmul.f32 %v2681_v8, %v2513_v41  ;;  %v2744_v58 = vmul.f32 %v2677_v42, %v2513_v41  ;;  %2920 = vperm.xlu0 %10227, %v2841_v59  }
 0x7a2   :  { %2929 = vperm.xlu1 %10228, %v2844_v13  }
 0x7a3   :  { %v12141_v31 = vadd.f32 %v2745_v57, %v15221_v46  ;;  %v12144_v20 = vadd.f32 %v2744_v58, %v15223_v6  ;;  %v2847_v39 = vunpack.c.h.b16 %v2800_v7  ;;  %v2846_v25 = vunpack.c.l.b16 %v2800_v7 }
 0x7a5   :  { %15222 = vst [vmem:[#allocation42_spill] sm:$0xff] %v12141_v31  ;;  %15224 = vst [vmem:[#allocation45_spill] sm:$0xff] %v12144_v20  ;;  %v2801_v23 = vpack.c.bf16 %v12141_v31, %v12144_v20  ;;  %2935 = vperm.xlu0 %10227, %v2846_v25  }
 0x7a6   :  { %2938 = vperm.xlu1 %10228, %v2847_v39  }
 0x7a7   :  { %v2848_v16 = vunpack.c.l.b16 %v2801_v23  ;;  %v2849_v41 = vunpack.c.h.b16 %v2801_v23 }
 0x7a9   :  { %2932 = vperm.xlu0 %10227, %v2845_v19  }
 0x7aa   :  { %2941 = vperm.xlu1 %10228, %v2848_v16  }
 0x7ad   :  { %2944 = vperm.xlu0 %10227, %v2849_v41  }
 0x7ae   :  { %3346 = vperm.xlu1 %10228, %v12007_v50   ;;  %v15228_v50 = vld [vmem:[#allocation49_spill] sm:$0xff] }
 0x7b1   :  { %3343 = vperm.xlu0 %10227, %v12010_v32  }
 0x7b2   :  { %3358 = vperm.xlu1 %10228, %v12025_v63  }
 0x7b5   :  { %3355 = vperm.xlu0 %10227, %v12028_v30  }
 0x7b6   :  { %3349 = vperm.xlu1 %10228, %v12020_v26   ;;  %v15227_v26 = vld [vmem:[#allocation48_spill] sm:$0xff] }
 0x7b9   :  { %3361 = vperm.xlu0 %10227, %v12038_v12  }
 0x7ba   :  { %3367 = vperm.xlu1 %10228, %v12046_v10  }
 0x7bd   :  { %3370 = vperm.xlu0 %10227, %v12043_v51   ;;  %v15226_v51 = vld [vmem:[#allocation47_spill] sm:$0xff] }
 0x7ec   :  { %v2855_v29 = vpop.permute.xlu0 %2854 }
 0x7ed   :  { %v2852_v3 = vpop.permute.xlu1 %2851  ;;  %v2953_v12 = vrot.slane %v2855_v29, %v15226_v51 }
 0x7ee   :  { %v2949_v18 = vrot.slane %v2852_v3, %v15225_v14 }
 0x7f0   :  { %v2954_v29 = vsel %vm1818_vm12, %v2953_v12, %v2949_v18 }
 0x7f1   :  { %v2858_v22 = vpop.permute.xlu1 %2857 }
 0x7f2   :  { %v2958_v21 = vrot.slane %v2858_v22, %v15227_v26 }
 0x7f4   :  { %v2867_v38 = vpop.permute.xlu0 %2866  ;;  %v2959_v22 = vsel %vm1825_vm13, %v2958_v21, %v2954_v29 }
 0x7f5   :  { %v2861_v59 = vpop.permute.xlu1 %2860  ;;  %v2972_v32 = vrot.slane %v2867_v38, %v15226_v51 }
 0x7f6   :  { %v2963_v56 = vrot.slane %v2861_v59, %v15228_v50 }
 0x7f8   :  { %v2870_v13 = vpop.permute.xlu0 %2869 }
 0x7f9   :  { %v2864_v8 = vpop.permute.xlu1 %2863  ;;  %v2977_v27 = vrot.slane %v2870_v13, %v15227_v26 }
 0x7fa   :  { %v2968_v10 = vrot.slane %v2864_v8, %v15225_v14 }
 0x7fc   :  { %v2879_v42 = vpop.permute.xlu0 %2878  ;;  %v2973_v33 = vsel %vm1818_vm12, %v2972_v32, %v2968_v10  ;;  %v2964_v32 = vsel %vm1832_vm14, %v2963_v56, %v2959_v22 }
 0x7fd   :  { %v2876_v7 = vpop.permute.xlu1 %2875  ;;  %v2991_v15 = vrot.slane %v2879_v42, %v15226_v51  ;;  %v2978_v10 = vsel %vm1825_vm13, %v2977_v27, %v2973_v33 }
 0x7fe   :  { %v2987_v8 = vrot.slane %v2876_v7, %v15225_v14 }
 0x800   :  { %v2873_v57 = vpop.permute.xlu0 %2872  ;;  %v2992_v42 = vsel %vm1818_vm12, %v2991_v15, %v2987_v8 }
 0x801   :  { %v2882_v58 = vpop.permute.xlu1 %2881  ;;  %v2982_v3 = vrot.slane %v2873_v57, %v15228_v50 }
 0x802   :  { %v2996_v38 = vrot.slane %v2882_v58, %v15227_v26 }
 0x803   :  { %v2983_v21 = vsel %vm1832_vm14, %v2982_v3, %v2978_v10 }
 0x804   :  { %v2888_v46 = vpop.permute.xlu0 %2887  ;;  %v2997_v33 = vsel %vm1825_vm13, %v2996_v38, %v2992_v42 }
 0x805   :  { %v2891_v6 = vpop.permute.xlu1 %2890  ;;  %v3006_v59 = vrot.slane %v2888_v46, %v15225_v14 }
 0x806   :  { %v3010_v13 = vrot.slane %v2891_v6, %v15226_v51 }
 0x808   :  { %v2885_v39 = vpop.permute.xlu0 %2884  ;;  %v3011_v15 = vsel %vm1818_vm12, %v3010_v13, %v3006_v59 }
 0x809   :  { %v2894_v25 = vpop.permute.xlu1 %2893  ;;  %v3001_v57 = vrot.slane %v2885_v39, %v15228_v50 }
 0x80a   :  { %v3015_v18 = vrot.slane %v2894_v25, %v15227_v26 }
 0x80c   :  { %v2900_v23 = vpop.permute.xlu0 %2899 }
 0x80d   :  { %v2903_v19 = vpop.permute.xlu1 %2902  ;;  %v3025_v12 = vrot.slane %v2900_v23, %v15225_v14 }
 0x80e   :  { %v3029_v7 = vrot.slane %v2903_v19, %v15226_v51 }
 0x810   :  { %v2897_v16 = vpop.permute.xlu0 %2896  ;;  %v3030_v8 = vsel %vm1818_vm12, %v3029_v7, %v3025_v12 }
 0x811   :  { %v2906_v41 = vpop.permute.xlu1 %2905  ;;  %v3020_v58 = vrot.slane %v2897_v16, %v15228_v50 }
 0x812   :  { %v3034_v46 = vrot.slane %v2906_v41, %v15227_v26  ;;  %v3016_v41 = vsel %vm1825_vm13, %v3015_v18, %v3011_v15 }
 0x814   :  { %v2912_v60 = vpop.permute.xlu0 %2911 }
 0x815   :  { %v2915_v47 = vpop.permute.xlu1 %2914  ;;  %v3044_v27 = vrot.slane %v2912_v60, %v15225_v14  ;;  %v3098_v60 = vsel %vm763_vm4, %v2983_v21, %v2964_v32 }
 0x816   :  { %v3048_v25 = vrot.slane %v2915_v47, %v15226_v51  ;;  %v3002_v47 = vsel %vm1832_vm14, %v3001_v57, %v2997_v33 }
 0x817   :  { %v3099_v42 = vsel %vm765_vm5, %v3002_v47, %v3098_v60 }
 0x818   :  { %v2909_v11 = vpop.permute.xlu0 %2908 }
 0x819   :  { %v2918_v0 = vpop.permute.xlu1 %2917  ;;  %v3039_v23 = vrot.slane %v2909_v11, %v15228_v50  ;;  %v3021_v11 = vsel %vm1832_vm14, %v3020_v58, %v3016_v41 }
 0x81a   :  { %v3053_v19 = vrot.slane %v2918_v0, %v15227_v26  ;;  %v3035_v0 = vsel %vm1825_vm13, %v3034_v46, %v3030_v8  ;;  %v3100_v7 = vsel %vm767_vm6, %v3021_v11, %v3099_v42  ;;  %v15230_v8 = vld [vmem:[#allocation11_spill] sm:$0xff] }
 0x81c   :  { %v2924_v30 = vpop.permute.xlu0 %2923 }
 0x81d   :  { %v2927_v63 = vpop.permute.xlu1 %2926  ;;  %v3063_v39 = vrot.slane %v2924_v30, %v15225_v14 }
 0x81e   :  { %v3067_v16 = vrot.slane %v2927_v63, %v15226_v51  ;;  %v3049_v63 = vsel %vm1818_vm12, %v3048_v25, %v3044_v27 }
 0x81f   :  { %v3054_v13 = vsel %vm1825_vm13, %v3053_v19, %v3049_v63  ;;  %v10747_v19 = vld [vmem:[%s14874_s8] sm:$0xff]  }
 0x820   :  { %v2921_v61 = vpop.permute.xlu0 %2920  ;;  %v3068_v32 = vsel %vm1818_vm12, %v3067_v16, %v3063_v39  ;;  %v15229_v39 = vmov 0.0   ;;  %v10748_v16 = vld [vmem:[%s14874_s8 + $0x8] sm:$0xff]  }
 0x821   :  { %v2930_v45 = vpop.permute.xlu1 %2929  ;;  %v3058_v29 = vrot.slane %v2921_v61, %v15228_v50 }
 0x822   :  { %v3072_v3 = vrot.slane %v2930_v45, %v15227_v26  ;;  %v3040_v45 = vsel %vm1832_vm14, %v3039_v23, %v3035_v0 }
 0x823   :  { %v3059_v18 = vsel %vm1832_vm14, %v3058_v29, %v3054_v13  ;;  %v3101_v58 = vsel %vm769_vm7, %v3040_v45, %v3100_v7  ;;  %v12265_v45 = vld [vmem:[#allocation2 + $0x2] sm:$0x1] }
 0x824   :  { %v2936_v6 = vpop.permute.xlu0 %2935  ;;  %v3073_v12 = vsel %vm1825_vm13, %v3072_v3, %v3068_v32 }
 0x825   :  { %v2939_v56 = vpop.permute.xlu1 %2938  ;;  %v3082_v38 = vrot.slane %v2936_v6, %v15225_v14 }
 0x826   :  { %v3086_v59 = vrot.slane %v2939_v56, %v15226_v51  ;;  %v3102_v56 = vsel %vm771_vm8, %v3059_v18, %v3101_v58  ;;  %v12278_v58 = vld [vmem:[#allocation2 + $0x1a] sm:$0x1] }
 0x828   :  { %v2933_v22 = vpop.permute.xlu0 %2932  ;;  %v3087_v46 = vsel %vm1818_vm12, %v3086_v59, %v3082_v38 }
 0x829   :  { %v2942_v30 = vpop.permute.xlu1 %2941  ;;  %v3077_v61 = vrot.slane %v2933_v22, %v15228_v50 }
 0x82a   :  { %v3091_v10 = vrot.slane %v2942_v30, %v15227_v26 }
 0x82b   :  { %v3078_v21 = vsel %vm1832_vm14, %v3077_v61, %v3073_v12  ;;  %v12274_v12 = vld [vmem:[#allocation2 + $0x12] sm:$0x1] }
 0x82c   :  { %v2945_v57 = vpop.permute.xlu0 %2944  ;;  %v3092_v33 = vsel %vm1825_vm13, %v3091_v10, %v3087_v46  ;;  %v3103_v15 = vsel %vm773_vm9, %v3078_v21, %v3102_v56  ;;  %v12270_v10 = vld [vmem:[#allocation2 + $0xa] sm:$0x1]  ;;  %v12281_v56 = vld [vmem:[#allocation2 + $0x22] sm:$0x1] }
 0x82d   :  { %v3096_v6 = vrot.slane %v2945_v57, %v15228_v50 }
 0x82f   :  { %v3097_v27 = vsel %vm1832_vm14, %v3096_v6, %v3092_v33 }
 0x830   :  { %v3104_v25 = vsel %vm775_vm10, %v3097_v27, %v3103_v15 }
 0x831   :  { %v3105_v23 = vpack.c.b16 %v3104_v25, %v3104_v25 }
 0x833   :  { %10156 = vmatmul.mubr.msk.bf16.vlgmr.msra.gmra.mrb[12].mxu1 %vm445_vm0, %v3105_v23 }
 0x834   :  { %10168 = vmatpush3.bf16.msra.mxu1 %v10747_v19  ;;  %10171 = vmatprep.mubr.msk.bf16.mxu1 %vm10787_vm1, %v15229_v39  ;;  %v12286_v19 = vld [vmem:[#allocation2 + $0x2a] sm:$0x1] }
 0x835   :  { %10169 = vmatprep.subr.bf16.mxu1 %v15229_v39 }
 0x838   :  { %10170 = vmatpush3.bf16.msra.mxu1 %v10748_v16 }
 0x839   :  { %10183 = vmatprep.subr.bf16.mxu1 %v15229_v39 }
 0x906   :  { %v12230_v41 = vpop.f32.mrb[12].mxu1 }
 0x907   :  { %v3221_v29 = vadd.f32 %v12230_v41, %v15230_v8  ;;  %v10157_v3 = vpop.f32.mrb[13].mxu1  ;;  %v3150_v61 = vrot.slane %v12230_v41, 1  ;;  %v3165_v13 = vadd.f32 %v12230_v41, %v12265_v45  ;;  %v3151_v32 = vrot.slane %v12230_v41, 2 }
 0x908   :  { %v3146_v60 = vpop.f32.mrb[14].mxu1  ;;  %v3152_v18 = vrot.slane %v12230_v41, 3  ;;  %v3153_v57 = vrot.slane %v12230_v41, 4  ;;  %v3154_v33 = vrot.slane %v12230_v41, 5  ;;  %v3155_v25 = vrot.slane %v12230_v41, 6 }
 0x909   :  { %3230 = vrot.lane.b32.xlu1 %v3221_v29, %s10784_s25  ;;  %v10158_v47 = vpop.f32.mrb[15].mxu1  ;;  %v3223_v11 = vrot.slane %v3221_v29, 1  ;;  %v3224_v0 = vrot.slane %v3221_v29, 2  ;;  %v3225_v22 = vrot.slane %v3221_v29, 3  ;;  %v3226_v30 = vrot.slane %v3221_v29, 4 }
 0x90a   :  { %v3227_v63 = vrot.slane %v3221_v29, 5  ;;  %v3228_v38 = vrot.slane %v3221_v29, 6  ;;  %v3229_v59 = vrot.slane %v3221_v29, 7  ;;  %v3166_v42 = vadd.f32 %v3150_v61, %v12270_v10  ;;  %v12289_v29 = vld [vmem:[#allocation2 + $0x32] sm:$0x1] }
 0x90b   :  { %3232 = vrot.lane.b32.xlu0 %v3223_v11, %s10784_s25  ;;  %v9985_v7 = vmul.f32 -1.442695, %v3165_v13  ;;  %v3167_v21 = vadd.f32 %v3151_v32, %v12274_v12  ;;  %v3168_v6 = vadd.f32 %v3152_v18, %v12278_v58  ;;  %v3169_v27 = vadd.f32 %v3153_v57, %v12281_v56  ;;  %v12293_v11 = vpop.permute.xlu1 %3346 }
 0x90c   :  { %v9986_v46 = vmul.f32 -1.442695, %v3166_v42  ;;  %v3170_v16 = vadd.f32 %v3154_v33, %v12286_v19  ;;  %v3171_v60 = vadd.f32 %v3155_v25, %v12289_v29  ;;  %v3156_v47 = vrot.slane %v12230_v41, 7 }
 0x90d   :  { %3234 = vrot.lane.b32.xlu1 %v3224_v0, %s10784_s25  ;;  %10457 = vpow2.f32 %v9985_v7  ;;  %v9987_v15 = vmul.f32 -1.442695, %v3167_v21  ;;  %v9988_v23 = vmul.f32 -1.442695, %v3168_v6  ;;  %v9989_v3 = vmul.f32 -1.442695, %v3169_v27  ;;  %v12295_v0 = vpop.permute.xlu0 %3343 }
 0x90e   :  { %10459 = vpow2.f32 %v9986_v46 }
 0x90f   :  { %3236 = vrot.lane.b32.xlu0 %v3225_v22, %s10784_s25  ;;  %10461 = vpow2.f32 %v9987_v15  ;;  %v9990_v22 = vmul.f32 -1.442695, %v3170_v16  ;;  %v12300_v61 = vpop.permute.xlu1 %3358 }
 0x910   :  { %10463 = vpow2.f32 %v9988_v23 }
 0x911   :  { %3238 = vrot.lane.b32.xlu1 %v3226_v30, %s10784_s25  ;;  %v12297_v30 = vld [vmem:[#allocation2 + $0x3a] sm:$0x1]  ;;  %10465 = vpow2.f32 %v9989_v3  ;;  %v12302_v41 = vpop.permute.xlu0 %3355 }
 0x912   :  { %10467 = vpow2.f32 %v9990_v22 }
 0x913   :  { %3240 = vrot.lane.b32.xlu0 %v3227_v63, %s10784_s25  ;;  %v9991_v63 = vmul.f32 -1.442695, %v3171_v60  ;;  %v12304_v57 = vpop.permute.xlu1 %3349 }
 0x915   :  { %3242 = vrot.lane.b32.xlu1 %v3228_v38, %s10784_s25  ;;  %v3172_v38 = vadd.f32 %v3156_v47, %v12297_v30  ;;  %10469 = vpow2.f32 %v9991_v63  ;;  %v12306_v33 = vpop.permute.xlu0 %3361 }
 0x917   :  { %3244 = vrot.lane.b32.xlu0 %v3229_v59, %s10784_s25  ;;  %v10458_v59 = vpop.eup %10457  ;;  %v9992_v32 = vmul.f32 -1.442695, %v3172_v38  ;;  %v12308_v16 = vpop.permute.xlu1 %3367 }
 0x918   :  { %v10460_v13 = vpop.eup %10459  ;;  %v3197_v42 = vadd.f32 1.0, %v10458_v59 }
 0x919   :  { %3364 = vperm.xlu1 %10228, %v12035_v54   ;;  %v10462_v18 = vpop.eup %10461  ;;  %v3198_v7 = vadd.f32 1.0, %v10460_v13  ;;  %10471 = vpow2.f32 %v9992_v32  ;;  %v12310_v60 = vpop.permute.xlu0 %3370 }
 0x91a   :  { %v10464_v21 = vpop.eup %10463  ;;  %10473 = vrcp.f32 %v3197_v42  ;;  %v3199_v46 = vadd.f32 1.0, %v10462_v18 }
 0x91b   :  { %3352 = vperm.xlu0 %10227, %v12017_v44   ;;  %v10466_v6 = vpop.eup %10465  ;;  %10475 = vrcp.f32 %v3198_v7  ;;  %v3200_v15 = vadd.f32 1.0, %v10464_v21 }
 0x91c   :  { %v10468_v27 = vpop.eup %10467  ;;  %10477 = vrcp.f32 %v3199_v46  ;;  %v3201_v25 = vadd.f32 1.0, %v10466_v6 }
 0x91d   :  { %3379 = vperm.xlu1 %10228, %v12064_v55   ;;  %10479 = vrcp.f32 %v3200_v15  ;;  %v3202_v3 = vadd.f32 1.0, %v10468_v27 }
 0x91e   :  { %10481 = vrcp.f32 %v3201_v25 }
 0x91f   :  { %3373 = vperm.xlu0 %10227, %v12056_v2   ;;  %v10470_v23 = vpop.eup %10469  ;;  %10483 = vrcp.f32 %v3202_v3 }
 0x920   :  { %v3203_v47 = vadd.f32 1.0, %v10470_v23 }
 0x921   :  { %3385 = vperm.xlu1 %10228, %v12074_v5  }
 0x922   :  { %10485 = vrcp.f32 %v3203_v47 }
 0x923   :  { %3382 = vperm.xlu0 %10227, %v12061_v4   ;;  %v10472_v22 = vpop.eup %10471 }
 0x924   :  { %v10474_v63 = vpop.eup %10473  ;;  %v3204_v42 = vadd.f32 1.0, %v10472_v22 }
 0x925   :  { %3394 = vperm.xlu1 %10228, %v12079_v36   ;;  %v10476_v13 = vpop.eup %10475 }
 0x926   :  { %v10478_v7 = vpop.eup %10477  ;;  %10487 = vrcp.f32 %v3204_v42 }
 0x927   :  { %3376 = vperm.xlu0 %10227, %v12053_v17   ;;  %v10480_v6 = vpop.eup %10479 }
 0x928   :  { %v10482_v25 = vpop.eup %10481 }
 0x929   :  { %3388 = vperm.xlu1 %10228, %v12071_v43   ;;  %v10484_v22 = vpop.eup %10483 }
 0x92b   :  { %3391 = vperm.xlu0 %10227, %v12082_v34  }
 0x92d   :  { %3403 = vperm.xlu1 %10228, %v12100_v48  }
 0x92f   :  { %3397 = vperm.xlu0 %10227, %v12092_v40  }
 0x931   :  { %3409 = vperm.xlu1 %10228, %v12110_v35  }
 0x933   :  { %3406 = vperm.xlu0 %10227, %v12097_v62  }
 0x935   :  { %3418 = vperm.xlu1 %10228, %v12115_v28   ;;  %v15233_v28 = vld [vmem:[#allocation7_spill] sm:$0xff] }
 0x936   :  { %v3445_v35 = vrot.slane %v12293_v11, %v15233_v28  ;;  %v3464_v11 = vrot.slane %v12300_v61, %v15233_v28  ;;  %v3483_v61 = vrot.slane %v12310_v60, %v15233_v28 }
 0x937   :  { %3400 = vperm.xlu0 %10227, %v12089_v37  }
 0x939   :  { %3421 = vperm.xlu1 %10228, %v12128_v53   ;;  %v15232_v53 = vld [vmem:[#allocation50_spill] sm:$0xff] }
 0x93b   :  { %3415 = vperm.xlu0 %10227, %v12118_v49  }
 0x93d   :  { %3430 = vperm.xlu1 %10228, %v12133_v9  }
 0x93f   :  { %3412 = vperm.xlu0 %10227, %v12107_v1   ;;  %v15234_v1 = vld [vmem:[#allocation51_spill] sm:$0xff] }
 0x943   :  { %3427 = vperm.xlu0 %10227, %v12136_v24   ;;  %v15231_v24 = vld [vmem:[#allocation9_spill] sm:$0xff] }
 0x944   :  { %v3441_v9 = vrot.slane %v12295_v0, %v15231_v24 }
 0x946   :  { %v3446_v62 = vsel %vm2317_vm15, %v3445_v35, %v3441_v9 }
 0x947   :  { %3424 = vperm.xlu0 %10227, %v12125_v52   ;;  %v3450_v52 = vrot.slane %v12304_v57, %v15232_v53 }
 0x97b   :  { %v3231_v38 = vpop.permute.xlu1 %3230 }
 0x97c   :  { %v3254_v59 = vmul.f32 %v10474_v63, %v3231_v38  ;;  %v10486_v63 = vpop.eup %10485 }
 0x97d   :  { %v3233_v32 = vpop.permute.xlu0 %3232  ;;  %v10488_v42 = vpop.eup %10487 }
 0x97e   :  { %v3255_v18 = vmul.f32 %v10476_v13, %v3233_v32  ;;  %3270 = vrot.lane.b32.xlu1 %v3254_v59, %s10782_s30 }
 0x97f   :  { %v3235_v21 = vpop.permute.xlu1 %3234 }
 0x980   :  { %v3256_v46 = vmul.f32 %v10478_v7, %v3235_v21  ;;  %3272 = vrot.lane.b32.xlu0 %v3255_v18, %s10782_s30 }
 0x981   :  { %v3237_v15 = vpop.permute.xlu0 %3236 }
 0x982   :  { %v3257_v27 = vmul.f32 %v10480_v6, %v3237_v15  ;;  %3274 = vrot.lane.b32.xlu1 %v3256_v46, %s10782_s30 }
 0x983   :  { %v3239_v23 = vpop.permute.xlu1 %3238 }
 0x984   :  { %v3258_v3 = vmul.f32 %v10482_v25, %v3239_v23  ;;  %3276 = vrot.lane.b32.xlu0 %v3257_v27, %s10782_s30 }
 0x985   :  { %v3241_v47 = vpop.permute.xlu0 %3240 }
 0x986   :  { %3278 = vrot.lane.b32.xlu1 %v3258_v3, %s10782_s30  ;;  %v3259_v59 = vmul.f32 %v10484_v22, %v3241_v47 }
 0x987   :  { %v3243_v38 = vpop.permute.xlu1 %3242 }
 0x988   :  { %v3260_v13 = vmul.f32 %v10486_v63, %v3243_v38 }
 0x989   :  { %v3245_v32 = vpop.permute.xlu0 %3244 }
 0x98a   :  { %3280 = vrot.lane.b32.xlu1 %v3259_v59, %s10782_s30  ;;  %3282 = vrot.lane.b32.xlu0 %v3260_v13, %s10782_s30  ;;  %v3261_v18 = vmul.f32 %v10488_v42, %v3245_v32 }
 0x98e   :  { %3284 = vrot.lane.b32.xlu1 %v3261_v18, %s10782_s30  ;;  %3436 = vperm.xlu0 %10227, %v12141_v31  }
 0x992   :  { %3433 = vperm.xlu1 %10228, %v12144_v20  }
 0x998   :  { %v3365_v46 = vpop.permute.xlu1 %3364 }
 0x999   :  { %v3474_v57 = vrot.slane %v3365_v46, %v15234_v1  ;;  %v3479_v46 = vrot.slane %v12308_v16, %v15231_v24 }
 0x99a   :  { %v3353_v7 = vpop.permute.xlu0 %3352 }
 0x99b   :  { %v3455_v48 = vrot.slane %v3353_v7, %v15234_v1 }
 0x99c   :  { %v12326_v15 = vpop.permute.xlu1 %3379 }
 0x99e   :  { %v12322_v21 = vpop.permute.xlu0 %3373 }
 0x99f   :  { %v3488_v7 = vrot.slane %v12322_v21, %v15232_v53 }
 0x9a0   :  { %v12330_v25 = vpop.permute.xlu1 %3385 }
 0x9a2   :  { %v12324_v6 = vpop.permute.xlu0 %3382 }
 0x9a3   :  { %v3502_v21 = vrot.slane %v12324_v6, %v15233_v28 }
 0x9a4   :  { %v12334_v3 = vpop.permute.xlu1 %3394 }
 0x9a6   :  { %v12328_v27 = vpop.permute.xlu0 %3376 }
 0x9a8   :  { %v12338_v22 = vpop.permute.xlu1 %3388 }
 0x9aa   :  { %v12332_v23 = vpop.permute.xlu0 %3391 }
 0x9ac   :  { %v12342_v38 = vpop.permute.xlu1 %3403 }
 0x9ae   :  { %v12336_v47 = vpop.permute.xlu0 %3397 }
 0x9b0   :  { %v12346_v13 = vpop.permute.xlu1 %3409 }
 0x9b2   :  { %v12340_v63 = vpop.permute.xlu0 %3406 }
 0x9b4   :  { %v12350_v42 = vpop.permute.xlu1 %3418 }
 0x9b6   :  { %v12344_v59 = vpop.permute.xlu0 %3400 }
 0x9b8   :  { %v12354_v8 = vpop.permute.xlu1 %3421 }
 0x9ba   :  { %v12348_v32 = vpop.permute.xlu0 %3415 }
 0x9bc   :  { %v12358_v50 = vpop.permute.xlu1 %3430 }
 0x9be   :  { %v12352_v18 = vpop.permute.xlu0 %3412 }
 0x9c2   :  { %v12356_v39 = vpop.permute.xlu0 %3427 }
 0x9c6   :  { %v12360_v26 = vpop.permute.xlu0 %3424 }
 0x9f0   :  { %v3271_v51 = vpop.permute.xlu1 %3270 }
 0x9f1   :  { %v3294_v14 = vadd.f32 %v3271_v51, %v12265_v45  ;;  %v3460_v45 = vrot.slane %v12302_v41, %v15231_v24 }
 0x9f2   :  { %v3273_v20 = vpop.permute.xlu0 %3272 }
 0x9f3   :  { %10489 = vtanh.f32 %v3294_v14  ;;  %v3295_v31 = vadd.f32 %v3273_v20, %v12270_v10  ;;  %v3451_v14 = vsel %vm2324_vm11, %v3450_v52, %v3446_v62  ;;  %v3469_v10 = vrot.slane %v12306_v33, %v15232_v53 }
 0x9f4   :  { %v3275_v49 = vpop.permute.xlu1 %3274  ;;  %v3465_v52 = vsel %vm2317_vm15, %v3464_v11, %v3460_v45  ;;  %v3484_v45 = vsel %vm2317_vm15, %v3483_v61, %v3479_v46  ;;  %v3512_v11 = vrot.slane %v12338_v22, %v15234_v1  ;;  %v3517_v22 = vrot.slane %v12332_v23, %v15231_v24 }
 0x9f5   :  { %10491 = vtanh.f32 %v3295_v31  ;;  %v3296_v51 = vadd.f32 %v3275_v49, %v12274_v12  ;;  %v3456_v31 = vsel %vm2331_vm3, %v3455_v48, %v3451_v14  ;;  %v15235_v49 = vld [vmem:[#allocation8_spill] sm:$0xff]  ;;  %v3470_v12 = vsel %vm2324_vm11, %v3469_v10, %v3465_v52 }
 0x9f6   :  { %v3277_v35 = vpop.permute.xlu0 %3276  ;;  %v3475_v48 = vsel %vm2331_vm3, %v3474_v57, %v3470_v12  ;;  %v3489_v60 = vsel %vm2324_vm11, %v3488_v7, %v3484_v45  ;;  %v3507_v57 = vrot.slane %v12330_v25, %v15232_v53  ;;  %v3526_v12 = vrot.slane %v12336_v47, %v15232_v53 }
 0x9f7   :  { %10493 = vtanh.f32 %v3296_v51  ;;  %v3297_v41 = vadd.f32 %v3277_v35, %v12278_v58  ;;  %v3493_v51 = vrot.slane %v12328_v27, %v15234_v1  ;;  %v3498_v27 = vrot.slane %v12326_v15, %v15231_v24 }
 0x9f8   :  { %v3279_v14 = vpop.permute.xlu1 %3278  ;;  %v3521_v25 = vrot.slane %v12334_v3, %v15233_v28  ;;  %v3540_v47 = vrot.slane %v12340_v63, %v15233_v28 }
 0x9f9   :  { %10495 = vtanh.f32 %v3297_v41  ;;  %v3298_v16 = vadd.f32 %v3279_v14, %v12281_v56  ;;  %v3550_v14 = vrot.slane %v12352_v18, %v15234_v1  ;;  %v3559_v18 = vrot.slane %v12350_v42, %v15233_v28 }
 0x9fa   :  { %v3522_v61 = vsel %vm2317_vm15, %v3521_v25, %v3517_v22  ;;  %v15236_v22 = vld [vmem:[#allocation13_spill] sm:$0xff] }
 0x9fb   :  { %10497 = vtanh.f32 %v3298_v16  ;;  %v3527_v23 = vsel %vm2324_vm11, %v3526_v12, %v3522_v61  ;;  %v3569_v16 = vrot.slane %v12360_v26, %v15234_v1  ;;  %v3578_v26 = vrot.slane %v12358_v50, %v15233_v28  ;;  %v15237_v12 = vld [vmem:[#allocation19_spill] sm:$0xff]  ;;  %v15238_v61 = vld [vmem:[#allocation12_spill] sm:$0xff] }
 0x9fc   :  { %v3281_v6 = vpop.permute.xlu1 %3280  ;;  %v3283_v41 = vpop.permute.xlu0 %3282  ;;  %v3609_v25 = vrot.slane %v15237_v12, %v15236_v22 }
 0x9fd   :  { %v10490_v20 = vpop.eup %10489  ;;  %v3300_v3 = vadd.f32 %v3283_v41, %v12289_v29 }
 0x9fe   :  { %v3598_v0 = vsub.f32 %v10490_v20, %v3456_v31  ;;  %v3494_v31 = vsel %vm2331_vm3, %v3493_v51, %v3489_v60 }
 0x9ff   :  { %v10492_v62 = vpop.eup %10491 }
 0xa00   :  { %v3649_v9 = vrot.slane %v3598_v0, %v15235_v49  ;;  %v3599_v33 = vsub.f32 %v10492_v62, %v3475_v48  ;;  %v3503_v0 = vsel %vm2317_vm15, %v3502_v21, %v3498_v27  ;;  %v3299_v62 = vadd.f32 %v3281_v6, %v12286_v19  ;;  %v3285_v45 = vpop.permute.xlu1 %3284 }
 0xa01   :  { %v10494_v58 = vpop.eup %10493  ;;  %v3508_v56 = vsel %vm2324_vm11, %v3507_v57, %v3503_v0  ;;  %v3531_v48 = vrot.slane %v12344_v59, %v15234_v1  ;;  %v3536_v59 = vrot.slane %v12342_v38, %v15231_v24  ;;  %v3555_v38 = vrot.slane %v12348_v32, %v15231_v24 }
 0xa02   :  { %3656 = vbcast.lane.b32.xlu0 %v3649_v9, 296  ;;  %3652 = vbcast.lane.b32.xlu1 %v3649_v9, 288  ;;  %v3669_v20 = vrot.slane %v3599_v33, %v15235_v49  ;;  %v3600_v10 = vsub.f32 %v10494_v58, %v3494_v31  ;;  %v3513_v15 = vsel %vm2331_vm3, %v3512_v11, %v3508_v56  ;;  %10499 = vtanh.f32 %v3299_v62 }
 0xa03   :  { %v3532_v7 = vsel %vm2331_vm3, %v3531_v48, %v3527_v23  ;;  %v3541_v51 = vsel %vm2317_vm15, %v3540_v47, %v3536_v59  ;;  %10501 = vtanh.f32 %v3300_v3  ;;  %v3301_v31 = vadd.f32 %v3285_v45, %v12297_v30  ;;  %v15240_v47 = vld [vmem:[#allocation23_spill] sm:$0xff] }
 0xa04   :  { %v3689_v35 = vrot.slane %v3600_v10, %v15235_v49  ;;  %v3564_v27 = vrot.slane %v12354_v8, %v15232_v53  ;;  %v3574_v11 = vrot.slane %v12356_v39, %v15231_v24 }
 0xa05   :  { %10503 = vtanh.f32 %v3301_v31 }
 0xa06   :  { %3664 = vbcast.lane.b32.xlu0 %v3649_v9, 312  ;;  %3660 = vbcast.lane.b32.xlu1 %v3649_v9, 304  ;;  %v10496_v9 = vpop.eup %10495 }
 0xa07   :  { %v3601_v52 = vsub.f32 %v10496_v9, %v3513_v15  ;;  %v10498_v19 = vpop.eup %10497 }
 0xa08   :  { %v3602_v46 = vsub.f32 %v10498_v19, %v3532_v7 }
 0xa09   :  { %v3709_v33 = vrot.slane %v3601_v52, %v15235_v49 }
 0xa0a   :  { %3676 = vbcast.lane.b32.xlu0 %v3669_v20, 296  ;;  %3672 = vbcast.lane.b32.xlu1 %v3669_v20, 288  ;;  %v3729_v63 = vrot.slane %v3602_v46, %v15235_v49 }
 0xa0c   :  { %v10500_v58 = vpop.eup %10499 }
 0xa0d   :  { %v10502_v0 = vpop.eup %10501  ;;  %v3437_v6 = vpop.permute.xlu0 %3436 }
 0xa0e   :  { %3684 = vbcast.lane.b32.xlu0 %v3669_v20, 312  ;;  %3680 = vbcast.lane.b32.xlu1 %v3669_v20, 304  ;;  %v3545_v20 = vrot.slane %v12346_v13, %v15232_v53  ;;  %v3560_v13 = vsel %vm2317_vm15, %v3559_v18, %v3555_v38  ;;  %v3588_v39 = vrot.slane %v3437_v6, %v15234_v1  ;;  %v15249_v6 = vld [vmem:[#allocation21_spill] sm:$0xff] }
 0xa0f   :  { %v3565_v30 = vsel %vm2324_vm11, %v3564_v27, %v3560_v13  ;;  %v10504_v62 = vpop.eup %10503 }
 0xa10   :  { %v3546_v29 = vsel %vm2324_vm11, %v3545_v20, %v3541_v51  ;;  %v3570_v57 = vsel %vm2331_vm3, %v3569_v16, %v3565_v30  ;;  %v15242_v20 = vld [vmem:[#allocation20_spill] sm:$0xff] }
 0xa11   :  { %v3551_v60 = vsel %vm2331_vm3, %v3550_v14, %v3546_v29  ;;  %v3434_v10 = vpop.permute.xlu1 %3433  ;;  %v3604_v8 = vsub.f32 %v10502_v0, %v3570_v57  ;;  %v15243_v29 = vld [vmem:[#allocation22_spill] sm:$0xff] }
 0xa12   :  { %3696 = vbcast.lane.b32.xlu0 %v3689_v35, 296  ;;  %3692 = vbcast.lane.b32.xlu1 %v3689_v35, 288  ;;  %v3603_v21 = vsub.f32 %v10500_v58, %v3551_v60  ;;  %v3583_v42 = vrot.slane %v3434_v10, %v15232_v53  ;;  %v15245_v10 = vld [vmem:[#allocation27_spill] sm:$0xff] }
 0xa13   :  { %v3769_v56 = vrot.slane %v3604_v8, %v15235_v49  ;;  %v3617_v8 = vrot.slane %v15249_v6, %v15236_v22 }
 0xa14   :  { %v3749_v32 = vrot.slane %v3603_v21, %v15235_v49 }
 0xa16   :  { %3704 = vbcast.lane.b32.xlu0 %v3689_v35, 312  ;;  %3700 = vbcast.lane.b32.xlu1 %v3689_v35, 304  ;;  %v3579_v35 = vsel %vm2317_vm15, %v3578_v26, %v3574_v11 }
 0xa17   :  { %v3584_v9 = vsel %vm2324_vm11, %v3583_v42, %v3579_v35 }
 0xa18   :  { %v3589_v15 = vsel %vm2331_vm3, %v3588_v39, %v3584_v9  ;;  %v15250_v9 = vld [vmem:[#allocation24_spill] sm:$0xff] }
 0xa19   :  { %v3605_v50 = vsub.f32 %v10504_v62, %v3589_v15 }
 0xa1a   :  { %3716 = vbcast.lane.b32.xlu0 %v3709_v33, 296  ;;  %3712 = vbcast.lane.b32.xlu1 %v3709_v33, 288 }
 0xa1b   :  { %v3789_v52 = vrot.slane %v3605_v50, %v15235_v49 }
 0xa1e   :  { %3724 = vbcast.lane.b32.xlu0 %v3709_v33, 312  ;;  %3720 = vbcast.lane.b32.xlu1 %v3709_v33, 304 }
 0xa22   :  { %3736 = vbcast.lane.b32.xlu0 %v3729_v63, 296  ;;  %3732 = vbcast.lane.b32.xlu1 %v3729_v63, 288 }
 0xa26   :  { %3744 = vbcast.lane.b32.xlu0 %v3729_v63, 312  ;;  %3740 = vbcast.lane.b32.xlu1 %v3729_v63, 304  ;;  %v3613_v63 = vrot.slane %v15242_v20, %v15236_v22 }
 0xa2a   :  { %3756 = vbcast.lane.b32.xlu0 %v3749_v32, 296  ;;  %3752 = vbcast.lane.b32.xlu1 %v3749_v32, 288 }
 0xa2e   :  { %3764 = vbcast.lane.b32.xlu0 %v3749_v32, 312  ;;  %3760 = vbcast.lane.b32.xlu1 %v3749_v32, 304  ;;  %v15247_v32 = vld [vmem:[#allocation25_spill] sm:$0xff] }
 0xa32   :  { %3776 = vbcast.lane.b32.xlu0 %v3769_v56, 296  ;;  %3772 = vbcast.lane.b32.xlu1 %v3769_v56, 288 }
 0xa36   :  { %3784 = vbcast.lane.b32.xlu0 %v3769_v56, 312  ;;  %3780 = vbcast.lane.b32.xlu1 %v3769_v56, 304 }
 0xa3a   :  { %3796 = vbcast.lane.b32.xlu0 %v3789_v52, 296  ;;  %3792 = vbcast.lane.b32.xlu1 %v3789_v52, 288 }
 0xa3e   :  { %3804 = vbcast.lane.b32.xlu0 %v3789_v52, 312  ;;  %3800 = vbcast.lane.b32.xlu1 %v3789_v52, 304 }
 0xa74   :  { %v3657_v48 = vpop.permute.xlu0 %3656  ;;  %v3653_v41 = vpop.permute.xlu1 %3652 }
 0xa75   :  { %v3839_v33 = vmul.f32 %v3657_v48, %v3609_v25  ;;  %v3838_v19 = vmul.f32 %v3653_v41, %v3609_v25  ;;  %v15252_v41 = vld [vmem:[#allocation26_spill] sm:$0xff] }
 0xa77   :  { %v12465_v23 = vadd.f32 %v3839_v33, %v15238_v61  ;;  %v12468_v7 = vadd.f32 %v3838_v19, %v15240_v47  ;;  %v15254_v19 = vld [vmem:[#allocation30_spill] sm:$0xff] }
 0xa78   :  { %v3665_v3 = vpop.permute.xlu0 %3664  ;;  %v3661_v46 = vpop.permute.xlu1 %3660 }
 0xa79   :  { %15239 = vst [vmem:[#allocation46_spill] sm:$0xff] %v12465_v23  ;;  %15241 = vst [vmem:[#allocation13_spill] sm:$0xff] %v12468_v7  ;;  %v3910_v59 = vpack.c.bf16 %v12465_v23, %v12468_v7  ;;  %v3841_v51 = vmul.f32 %v3665_v3, %v3609_v25  ;;  %v3840_v14 = vmul.f32 %v3661_v46, %v3609_v25 }
 0xa7b   :  { %v12475_v58 = vadd.f32 %v3841_v51, %v12017_v44  ;;  %v12478_v45 = vadd.f32 %v3840_v14, %v15243_v29  ;;  %v3943_v38 = vunpack.c.h.b16 %v3910_v59  ;;  %v3942_v60 = vunpack.c.l.b16 %v3910_v59 }
 0xa7c   :  { %v3677_v21 = vpop.permute.xlu0 %3676  ;;  %v3673_v18 = vpop.permute.xlu1 %3672 }
 0xa7d   :  { %15244 = vst [vmem:[#allocation12_spill] sm:$0xff] %v12478_v45  ;;  %v3911_v31 = vpack.c.bf16 %v12475_v58, %v12478_v45  ;;  %v3843_v13 = vmul.f32 %v3677_v21, %v3613_v63  ;;  %v3842_v16 = vmul.f32 %v3673_v18, %v3613_v63  ;;  %3978 = vperm.xlu0 %10227, %v3943_v38  }
 0xa7e   :  { %3975 = vperm.xlu1 %10228, %v3942_v60  }
 0xa7f   :  { %v12483_v27 = vadd.f32 %v3843_v13, %v15245_v10  ;;  %v12486_v44 = vadd.f32 %v3842_v16, %v15247_v32  ;;  %v3944_v0 = vunpack.c.l.b16 %v3911_v31  ;;  %v3945_v56 = vunpack.c.h.b16 %v3911_v31 }
 0xa80   :  { %v3685_v11 = vpop.permute.xlu0 %3684  ;;  %v3681_v30 = vpop.permute.xlu1 %3680 }
 0xa81   :  { %15246 = vst [vmem:[#allocation23_spill] sm:$0xff] %v12483_v27  ;;  %15248 = vst [vmem:[#allocation22_spill] sm:$0xff] %v12486_v44  ;;  %v3912_v42 = vpack.c.bf16 %v12483_v27, %v12486_v44  ;;  %v3845_v26 = vmul.f32 %v3685_v11, %v3613_v63  ;;  %v3844_v57 = vmul.f32 %v3681_v30, %v3613_v63  ;;  %v15256_v63 = vld [vmem:[#allocation29_spill] sm:$0xff] }
 0xa82   :  { %3981 = vperm.xlu1 %10228, %v3944_v0   ;;  %v3621_v29 = vrot.slane %v15256_v63, %v15236_v22  ;;  %v15285_v63 = vld [vmem:[#allocation10_spill] sm:$0xff] }
 0xa83   :  { %v12493_v35 = vadd.f32 %v3845_v26, %v12035_v54  ;;  %v12496_v39 = vadd.f32 %v3844_v57, %v15250_v9  ;;  %v3947_v15 = vunpack.c.h.b16 %v3912_v42  ;;  %v3946_v61 = vunpack.c.l.b16 %v3912_v42  ;;  %v15257_v9 = vld [vmem:[#allocation31_spill] sm:$0xff] }
 0xa84   :  { %v3697_v62 = vpop.permute.xlu0 %3696  ;;  %v3693_v50 = vpop.permute.xlu1 %3692 }
 0xa85   :  { %15251 = vst [vmem:[#allocation27_spill] sm:$0xff] %v12496_v39  ;;  %v3913_v52 = vpack.c.bf16 %v12493_v35, %v12496_v39  ;;  %v3847_v25 = vmul.f32 %v3697_v62, %v3617_v8  ;;  %v3846_v48 = vmul.f32 %v3693_v50, %v3617_v8  ;;  %3990 = vperm.xlu0 %10227, %v3947_v15  }
 0xa86   :  { %3984 = vperm.xlu1 %10228, %v3945_v56   ;;  %v3625_v56 = vrot.slane %v15257_v9, %v15236_v22 }
 0xa87   :  { %v12501_v33 = vadd.f32 %v3847_v25, %v15252_v41  ;;  %v12504_v54 = vadd.f32 %v3846_v48, %v15254_v19  ;;  %v3948_v47 = vunpack.c.l.b16 %v3913_v52  ;;  %v3949_v11 = vunpack.c.h.b16 %v3913_v52 }
 0xa88   :  { %v3705_v3 = vpop.permute.xlu0 %3704  ;;  %v3701_v46 = vpop.permute.xlu1 %3700 }
 0xa89   :  { %15253 = vst [vmem:[#allocation25_spill] sm:$0xff] %v12501_v33  ;;  %15255 = vst [vmem:[#allocation24_spill] sm:$0xff] %v12504_v54  ;;  %v3914_v59 = vpack.c.bf16 %v12501_v33, %v12504_v54  ;;  %v3849_v51 = vmul.f32 %v3705_v3, %v3617_v8  ;;  %v3848_v14 = vmul.f32 %v3701_v46, %v3617_v8  ;;  %3993 = vperm.xlu0 %10227, %v3948_v47  }
 0xa8a   :  { %3987 = vperm.xlu1 %10228, %v3946_v61  }
 0xa8b   :  { %v12511_v38 = vadd.f32 %v3849_v51, %v12053_v17  ;;  %v12514_v60 = vadd.f32 %v3848_v14, %v12056_v2  ;;  %v3951_v21 = vunpack.c.h.b16 %v3914_v59  ;;  %v3950_v18 = vunpack.c.l.b16 %v3914_v59  ;;  %v15258_v14 = vld [vmem:[#allocation32_spill] sm:$0xff] }
 0xa8c   :  { %v3717_v31 = vpop.permute.xlu0 %3716  ;;  %v3713_v13 = vpop.permute.xlu1 %3712 }
 0xa8d   :  { %v3915_v16 = vpack.c.bf16 %v12511_v38, %v12514_v60  ;;  %v3851_v10 = vmul.f32 %v3717_v31, %v3621_v29  ;;  %v3850_v32 = vmul.f32 %v3713_v13, %v3621_v29  ;;  %4002 = vperm.xlu0 %10227, %v3951_v21  }
 0xa8e   :  { %3999 = vperm.xlu1 %10228, %v3950_v18  }
 0xa8f   :  { %v12519_v0 = vadd.f32 %v3851_v10, %v12061_v4  ;;  %v12522_v17 = vadd.f32 %v3850_v32, %v12064_v55  ;;  %v3952_v2 = vunpack.c.l.b16 %v3915_v16  ;;  %v3953_v61 = vunpack.c.h.b16 %v3915_v16 }
 0xa90   :  { %v3725_v30 = vpop.permute.xlu0 %3724  ;;  %v3721_v42 = vpop.permute.xlu1 %3720 }
 0xa91   :  { %v3916_v26 = vpack.c.bf16 %v12519_v0, %v12522_v17  ;;  %v3853_v57 = vmul.f32 %v3725_v30, %v3621_v29  ;;  %v3852_v8 = vmul.f32 %v3721_v42, %v3621_v29  ;;  %3996 = vperm.xlu0 %10227, %v3949_v11   ;;  %v3629_v29 = vrot.slane %v15258_v14, %v15236_v22  ;;  %v15259_v11 = vld [vmem:[#allocation28_spill] sm:$0xff]  ;;  %v15261_v30 = vld [vmem:[#allocation34_spill] sm:$0xff] }
 0xa92   :  { %4005 = vperm.xlu1 %10228, %v3952_v2  }
 0xa93   :  { %v12529_v4 = vadd.f32 %v3853_v57, %v12071_v43  ;;  %v12532_v55 = vadd.f32 %v3852_v8, %v12074_v5  ;;  %v3955_v15 = vunpack.c.h.b16 %v3916_v26  ;;  %v3954_v62 = vunpack.c.l.b16 %v3916_v26 }
 0xa94   :  { %v3737_v50 = vpop.permute.xlu0 %3736  ;;  %v3733_v52 = vpop.permute.xlu1 %3732 }
 0xa95   :  { %v3917_v25 = vpack.c.bf16 %v12529_v4, %v12532_v55  ;;  %v3855_v48 = vmul.f32 %v3737_v50, %v3625_v56  ;;  %v3854_v41 = vmul.f32 %v3733_v52, %v3625_v56  ;;  %4011 = vperm.xlu0 %10227, %v3954_v62   ;;  %v15263_v62 = vld [vmem:[#allocation35_spill] sm:$0xff]  ;;  %v15264_v52 = vld [vmem:[#allocation33_spill] sm:$0xff] }
 0xa96   :  { %4014 = vperm.xlu1 %10228, %v3955_v15   ;;  %v3633_v50 = vrot.slane %v15263_v62, %v15236_v22 }
 0xa97   :  { %v12537_v19 = vadd.f32 %v3855_v48, %v12079_v36  ;;  %v12540_v43 = vadd.f32 %v3854_v41, %v12082_v34  ;;  %v3956_v5 = vunpack.c.l.b16 %v3917_v25  ;;  %v3957_v42 = vunpack.c.h.b16 %v3917_v25  ;;  %v15266_v41 = vld [vmem:[#allocation40_spill] sm:$0xff] }
 0xa98   :  { %v3745_v47 = vpop.permute.xlu0 %3744  ;;  %v3741_v3 = vpop.permute.xlu1 %3740 }
 0xa99   :  { %v3918_v46 = vpack.c.bf16 %v12537_v19, %v12540_v43  ;;  %v3857_v59 = vmul.f32 %v3745_v47, %v3625_v56  ;;  %v3856_v51 = vmul.f32 %v3741_v3, %v3625_v56  ;;  %4008 = vperm.xlu0 %10227, %v3953_v61  }
 0xa9a   :  { %4017 = vperm.xlu1 %10228, %v3956_v5  }
 0xa9b   :  { %v12547_v36 = vadd.f32 %v3857_v59, %v12089_v37  ;;  %v12550_v34 = vadd.f32 %v3856_v51, %v12092_v40  ;;  %v3959_v21 = vunpack.c.h.b16 %v3918_v46  ;;  %v3958_v18 = vunpack.c.l.b16 %v3918_v46 }
 0xa9c   :  { %v3757_v31 = vpop.permute.xlu0 %3756  ;;  %v3753_v13 = vpop.permute.xlu1 %3752 }
 0xa9d   :  { %v3919_v16 = vpack.c.bf16 %v12547_v36, %v12550_v34  ;;  %v3859_v10 = vmul.f32 %v3757_v31, %v3629_v29  ;;  %v3858_v32 = vmul.f32 %v3753_v13, %v3629_v29  ;;  %4023 = vperm.xlu0 %10227, %v3958_v18   ;;  %v15270_v18 = vld [vmem:[#allocation38_spill] sm:$0xff] }
 0xa9e   :  { %4026 = vperm.xlu1 %10228, %v3959_v21  }
 0xa9f   :  { %v12555_v2 = vadd.f32 %v3859_v10, %v15259_v11  ;;  %v12558_v37 = vadd.f32 %v3858_v32, %v15261_v30  ;;  %v3960_v40 = vunpack.c.l.b16 %v3919_v16  ;;  %v3961_v13 = vunpack.c.h.b16 %v3919_v16 }
 0xaa0   :  { %v3765_v26 = vpop.permute.xlu0 %3764  ;;  %v3761_v57 = vpop.permute.xlu1 %3760 }
 0xaa1   :  { %15260 = vst [vmem:[#allocation26_spill] sm:$0xff] %v12555_v2  ;;  %15262 = vst [vmem:[#allocation30_spill] sm:$0xff] %v12558_v37  ;;  %v3920_v8 = vpack.c.bf16 %v12555_v2, %v12558_v37  ;;  %v3861_v56 = vmul.f32 %v3765_v26, %v3629_v29  ;;  %v3860_v15 = vmul.f32 %v3761_v57, %v3629_v29  ;;  %4020 = vperm.xlu0 %10227, %v3957_v42   ;;  %v15268_v29 = vld [vmem:[#allocation39_spill] sm:$0xff]  ;;  %v15272_v26 = vld [vmem:[#allocation36_spill] sm:$0xff] }
 0xaa2   :  { %4029 = vperm.xlu1 %10228, %v3960_v40   ;;  %v3637_v57 = vrot.slane %v15272_v26, %v15236_v22  ;;  %v15279_v22 = vld [vmem:[#allocation41_spill] sm:$0xff] }
 0xaa3   :  { %v12565_v48 = vadd.f32 %v3861_v56, %v15264_v52  ;;  %v12568_v61 = vadd.f32 %v3860_v15, %v15266_v41  ;;  %v3963_v25 = vunpack.c.h.b16 %v3920_v8  ;;  %v3962_v5 = vunpack.c.l.b16 %v3920_v8  ;;  %v15273_v8 = vld [vmem:[#allocation37_spill] sm:$0xff]  ;;  %v15275_v15 = vld [vmem:[#allocation44_spill] sm:$0xff] }
 0xaa4   :  { %v3777_v47 = vpop.permute.xlu0 %3776  ;;  %v3773_v3 = vpop.permute.xlu1 %3772 }
 0xaa5   :  { %15265 = vst [vmem:[#allocation28_spill] sm:$0xff] %v12565_v48  ;;  %15267 = vst [vmem:[#allocation34_spill] sm:$0xff] %v12568_v61  ;;  %v3921_v46 = vpack.c.bf16 %v12565_v48, %v12568_v61  ;;  %v3863_v59 = vmul.f32 %v3777_v47, %v3633_v50  ;;  %v3862_v51 = vmul.f32 %v3773_v3, %v3633_v50  ;;  %4035 = vperm.xlu0 %10227, %v3962_v5  }
 0xaa6   :  { %4038 = vperm.xlu1 %10228, %v3963_v25  }
 0xaa7   :  { %v12573_v21 = vadd.f32 %v3863_v59, %v15268_v29  ;;  %v12576_v31 = vadd.f32 %v3862_v51, %v15270_v18  ;;  %v3964_v10 = vunpack.c.l.b16 %v3921_v46  ;;  %v15277_v59 = vld [vmem:[#allocation43_spill] sm:$0xff]  ;;  %v3965_v18 = vunpack.c.h.b16 %v3921_v46 }
 0xaa8   :  { %v3785_v32 = vpop.permute.xlu0 %3784  ;;  %v3781_v11 = vpop.permute.xlu1 %3780 }
 0xaa9   :  { %15269 = vst [vmem:[#allocation33_spill] sm:$0xff] %v12573_v21  ;;  %15271 = vst [vmem:[#allocation40_spill] sm:$0xff] %v12576_v31  ;;  %v3922_v30 = vpack.c.bf16 %v12573_v21, %v12576_v31  ;;  %v3865_v42 = vmul.f32 %v3785_v32, %v3633_v50  ;;  %v3864_v40 = vmul.f32 %v3781_v11, %v3633_v50  ;;  %4032 = vperm.xlu0 %10227, %v3961_v13  }
 0xaaa   :  { %4041 = vperm.xlu1 %10228, %v3964_v10  }
 0xaab   :  { %v12583_v56 = vadd.f32 %v3865_v42, %v15273_v8  ;;  %v12586_v52 = vadd.f32 %v3864_v40, %v15275_v15  ;;  %v3967_v16 = vunpack.c.h.b16 %v3922_v30  ;;  %v3966_v41 = vunpack.c.l.b16 %v3922_v30  ;;  %v15281_v40 = vld [vmem:[#allocation42_spill] sm:$0xff]  ;;  %v15283_v15 = vld [vmem:[#allocation45_spill] sm:$0xff] }
 0xaac   :  { %v3797_v25 = vpop.permute.xlu0 %3796  ;;  %v3793_v5 = vpop.permute.xlu1 %3792 }
 0xaad   :  { %15274 = vst [vmem:[#allocation39_spill] sm:$0xff] %v12583_v56  ;;  %15276 = vst [vmem:[#allocation38_spill] sm:$0xff] %v12586_v52  ;;  %v3923_v47 = vpack.c.bf16 %v12583_v56, %v12586_v52  ;;  %v3867_v3 = vmul.f32 %v3797_v25, %v3637_v57  ;;  %v3866_v50 = vmul.f32 %v3793_v5, %v3637_v57  ;;  %4047 = vperm.xlu0 %10227, %v3966_v41  }
 0xaae   :  { %4050 = vperm.xlu1 %10228, %v3967_v16  }
 0xaaf   :  { %v12591_v51 = vadd.f32 %v3867_v3, %v15277_v59  ;;  %v12594_v29 = vadd.f32 %v3866_v50, %v15279_v22  ;;  %v3968_v13 = vunpack.c.l.b16 %v3923_v47  ;;  %v3969_v5 = vunpack.c.h.b16 %v3923_v47 }
 0xab0   :  { %v3805_v10 = vpop.permute.xlu0 %3804  ;;  %v3801_v32 = vpop.permute.xlu1 %3800 }
 0xab1   :  { %15278 = vst [vmem:[#allocation37_spill] sm:$0xff] %v12591_v51  ;;  %15280 = vst [vmem:[#allocation44_spill] sm:$0xff] %v12594_v29  ;;  %v3924_v11 = vpack.c.bf16 %v12591_v51, %v12594_v29  ;;  %v3869_v30 = vmul.f32 %v3805_v10, %v3637_v57  ;;  %v3868_v42 = vmul.f32 %v3801_v32, %v3637_v57  ;;  %4044 = vperm.xlu0 %10227, %v3965_v18  }
 0xab2   :  { %4053 = vperm.xlu1 %10228, %v3968_v13  }
 0xab3   :  { %v12599_v8 = vadd.f32 %v3869_v30, %v15281_v40  ;;  %v12602_v16 = vadd.f32 %v3868_v42, %v15283_v15  ;;  %v3971_v41 = vunpack.c.h.b16 %v3924_v11  ;;  %v3970_v25 = vunpack.c.l.b16 %v3924_v11 }
 0xab5   :  { %15282 = vst [vmem:[#allocation43_spill] sm:$0xff] %v12599_v8  ;;  %15284 = vst [vmem:[#allocation41_spill] sm:$0xff] %v12602_v16  ;;  %v3925_v46 = vpack.c.bf16 %v12599_v8, %v12602_v16  ;;  %4059 = vperm.xlu0 %10227, %v3970_v25  }
 0xab6   :  { %4062 = vperm.xlu1 %10228, %v3971_v41  }
 0xab7   :  { %v3972_v3 = vunpack.c.l.b16 %v3925_v46  ;;  %v3973_v57 = vunpack.c.h.b16 %v3925_v46 }
 0xab9   :  { %4056 = vperm.xlu0 %10227, %v3969_v5  }
 0xaba   :  { %4065 = vperm.xlu1 %10228, %v3972_v3  }
 0xabd   :  { %4068 = vperm.xlu0 %10227, %v3973_v57  }
 0xabe   :  { %4470 = vperm.xlu1 %10228, %v12465_v23   ;;  %v15288_v23 = vld [vmem:[#allocation49_spill] sm:$0xff] }
 0xac1   :  { %4467 = vperm.xlu0 %10227, %v12468_v7  }
 0xac2   :  { %4482 = vperm.xlu1 %10228, %v12483_v27  }
 0xac5   :  { %4479 = vperm.xlu0 %10227, %v12486_v44  }
 0xac6   :  { %4473 = vperm.xlu1 %10228, %v12478_v45   ;;  %v15287_v45 = vld [vmem:[#allocation48_spill] sm:$0xff] }
 0xac9   :  { %4485 = vperm.xlu0 %10227, %v12496_v39  }
 0xaca   :  { %4491 = vperm.xlu1 %10228, %v12504_v54  }
 0xacd   :  { %4494 = vperm.xlu0 %10227, %v12501_v33   ;;  %v15286_v33 = vld [vmem:[#allocation47_spill] sm:$0xff] }
 0xafc   :  { %v3979_v50 = vpop.permute.xlu0 %3978 }
 0xafd   :  { %v3976_v47 = vpop.permute.xlu1 %3975  ;;  %v4077_v39 = vrot.slane %v3979_v50, %v15286_v33 }
 0xafe   :  { %v4073_v6 = vrot.slane %v3976_v47, %v15285_v63 }
 0xb00   :  { %v4078_v50 = vsel %vm1818_vm12, %v4077_v39, %v4073_v6 }
 0xb01   :  { %v3982_v59 = vpop.permute.xlu1 %3981 }
 0xb02   :  { %v4082_v20 = vrot.slane %v3982_v59, %v15287_v45 }
 0xb04   :  { %v3991_v22 = vpop.permute.xlu0 %3990  ;;  %v4083_v59 = vsel %vm1825_vm13, %v4082_v20, %v4078_v50 }
 0xb05   :  { %v3985_v18 = vpop.permute.xlu1 %3984  ;;  %v4096_v7 = vrot.slane %v3991_v22, %v15286_v33 }
 0xb06   :  { %v4087_v12 = vrot.slane %v3985_v18, %v15288_v23 }
 0xb08   :  { %v3994_v13 = vpop.permute.xlu0 %3993 }
 0xb09   :  { %v3988_v10 = vpop.permute.xlu1 %3987  ;;  %v4101_v49 = vrot.slane %v3994_v13, %v15287_v45 }
 0xb0a   :  { %v4092_v54 = vrot.slane %v3988_v10, %v15285_v63 }
 0xb0c   :  { %v4003_v32 = vpop.permute.xlu0 %4002  ;;  %v4097_v1 = vsel %vm1818_vm12, %v4096_v7, %v4092_v54  ;;  %v4088_v7 = vsel %vm1832_vm14, %v4087_v12, %v4083_v59 }
 0xb0d   :  { %v4000_v11 = vpop.permute.xlu1 %3999  ;;  %v4115_v28 = vrot.slane %v4003_v32, %v15286_v33  ;;  %v4102_v54 = vsel %vm1825_vm13, %v4101_v49, %v4097_v1 }
 0xb0e   :  { %v4111_v10 = vrot.slane %v4000_v11, %v15285_v63 }
 0xb10   :  { %v3997_v30 = vpop.permute.xlu0 %3996  ;;  %v4116_v32 = vsel %vm1818_vm12, %v4115_v28, %v4111_v10 }
 0xb11   :  { %v4006_v42 = vpop.permute.xlu1 %4005  ;;  %v4106_v47 = vrot.slane %v3997_v30, %v15288_v23 }
 0xb12   :  { %v4120_v22 = vrot.slane %v4006_v42, %v15287_v45 }
 0xb13   :  { %v4107_v20 = vsel %vm1832_vm14, %v4106_v47, %v4102_v54 }
 0xb14   :  { %v4012_v40 = vpop.permute.xlu0 %4011  ;;  %v4121_v1 = vsel %vm1825_vm13, %v4120_v22, %v4116_v32 }
 0xb15   :  { %v4015_v15 = vpop.permute.xlu1 %4014  ;;  %v4130_v18 = vrot.slane %v4012_v40, %v15285_v63 }
 0xb16   :  { %v4134_v13 = vrot.slane %v4015_v15, %v15286_v33 }
 0xb18   :  { %v4009_v41 = vpop.permute.xlu0 %4008  ;;  %v4135_v28 = vsel %vm1818_vm12, %v4134_v13, %v4130_v18 }
 0xb19   :  { %v4018_v25 = vpop.permute.xlu1 %4017  ;;  %v4125_v30 = vrot.slane %v4009_v41, %v15288_v23 }
 0xb1a   :  { %v4139_v6 = vrot.slane %v4018_v25, %v15287_v45 }
 0xb1c   :  { %v4024_v46 = vpop.permute.xlu0 %4023 }
 0xb1d   :  { %v4027_v5 = vpop.permute.xlu1 %4026  ;;  %v4149_v39 = vrot.slane %v4024_v46, %v15285_v63 }
 0xb1e   :  { %v4153_v11 = vrot.slane %v4027_v5, %v15286_v33 }
 0xb20   :  { %v4021_v3 = vpop.permute.xlu0 %4020  ;;  %v4154_v10 = vsel %vm1818_vm12, %v4153_v11, %v4149_v39 }
 0xb21   :  { %v4030_v57 = vpop.permute.xlu1 %4029  ;;  %v4144_v42 = vrot.slane %v4021_v3, %v15288_v23 }
 0xb22   :  { %v4158_v40 = vrot.slane %v4030_v57, %v15287_v45  ;;  %v4140_v57 = vsel %vm1825_vm13, %v4139_v6, %v4135_v28 }
 0xb24   :  { %v4036_v26 = vpop.permute.xlu0 %4035 }
 0xb25   :  { %v4039_v62 = vpop.permute.xlu1 %4038  ;;  %v4168_v49 = vrot.slane %v4036_v26, %v15285_v63  ;;  %v4222_v26 = vsel %vm763_vm4, %v4107_v20, %v4088_v7 }
 0xb26   :  { %v4172_v25 = vrot.slane %v4039_v62, %v15286_v33  ;;  %v4126_v62 = vsel %vm1832_vm14, %v4125_v30, %v4121_v1 }
 0xb27   :  { %v4223_v32 = vsel %vm765_vm5, %v4126_v62, %v4222_v26 }
 0xb28   :  { %v4033_v14 = vpop.permute.xlu0 %4032 }
 0xb29   :  { %v4042_v9 = vpop.permute.xlu1 %4041  ;;  %v4163_v46 = vrot.slane %v4033_v14, %v15288_v23  ;;  %v4145_v14 = vsel %vm1832_vm14, %v4144_v42, %v4140_v57 }
 0xb2a   :  { %v4177_v5 = vrot.slane %v4042_v9, %v15287_v45  ;;  %v4159_v9 = vsel %vm1825_vm13, %v4158_v40, %v4154_v10  ;;  %v4224_v11 = vsel %vm767_vm6, %v4145_v14, %v4223_v32  ;;  %v15290_v10 = vld [vmem:[#allocation11_spill] sm:$0xff] }
 0xb2c   :  { %v4048_v44 = vpop.permute.xlu0 %4047 }
 0xb2d   :  { %v4051_v27 = vpop.permute.xlu1 %4050  ;;  %v4187_v41 = vrot.slane %v4048_v44, %v15285_v63 }
 0xb2e   :  { %v4191_v3 = vrot.slane %v4051_v27, %v15286_v33  ;;  %v4173_v27 = vsel %vm1818_vm12, %v4172_v25, %v4168_v49 }
 0xb2f   :  { %v4178_v13 = vsel %vm1825_vm13, %v4177_v5, %v4173_v27  ;;  %v10749_v5 = vld [vmem:[%s14874_s8] sm:$0xff]  }
 0xb30   :  { %v4045_v53 = vpop.permute.xlu0 %4044  ;;  %v4192_v7 = vsel %vm1818_vm12, %v4191_v3, %v4187_v41  ;;  %v15289_v41 = vmov 0.0   ;;  %v10750_v3 = vld [vmem:[%s14874_s8 + $0x8] sm:$0xff]  }
 0xb31   :  { %v4054_v24 = vpop.permute.xlu1 %4053  ;;  %v4182_v50 = vrot.slane %v4045_v53, %v15288_v23 }
 0xb32   :  { %v4196_v47 = vrot.slane %v4054_v24, %v15287_v45  ;;  %v4164_v24 = vsel %vm1832_vm14, %v4163_v46, %v4159_v9 }
 0xb33   :  { %v4183_v6 = vsel %vm1832_vm14, %v4182_v50, %v4178_v13  ;;  %v4225_v42 = vsel %vm769_vm7, %v4164_v24, %v4224_v11  ;;  %v12723_v24 = vld [vmem:[#allocation2 + $0x3] sm:$0x1] }
 0xb34   :  { %v4060_v15 = vpop.permute.xlu0 %4059  ;;  %v4197_v39 = vsel %vm1825_vm13, %v4196_v47, %v4192_v7 }
 0xb35   :  { %v4063_v12 = vpop.permute.xlu1 %4062  ;;  %v4206_v22 = vrot.slane %v4060_v15, %v15285_v63 }
 0xb36   :  { %v4210_v18 = vrot.slane %v4063_v12, %v15286_v33  ;;  %v4226_v12 = vsel %vm771_vm8, %v4183_v6, %v4225_v42  ;;  %v12736_v42 = vld [vmem:[#allocation2 + $0x1b] sm:$0x1] }
 0xb38   :  { %v4057_v59 = vpop.permute.xlu0 %4056  ;;  %v4211_v40 = vsel %vm1818_vm12, %v4210_v18, %v4206_v22 }
 0xb39   :  { %v4066_v44 = vpop.permute.xlu1 %4065  ;;  %v4201_v53 = vrot.slane %v4057_v59, %v15288_v23 }
 0xb3a   :  { %v4215_v54 = vrot.slane %v4066_v44, %v15287_v45 }
 0xb3b   :  { %v4202_v20 = vsel %vm1832_vm14, %v4201_v53, %v4197_v39  ;;  %v12732_v39 = vld [vmem:[#allocation2 + $0x13] sm:$0x1] }
 0xb3c   :  { %v4069_v30 = vpop.permute.xlu0 %4068  ;;  %v4216_v1 = vsel %vm1825_vm13, %v4215_v54, %v4211_v40  ;;  %v4227_v28 = vsel %vm773_vm9, %v4202_v20, %v4226_v12  ;;  %v12728_v54 = vld [vmem:[#allocation2 + $0xb] sm:$0x1]  ;;  %v12739_v12 = vld [vmem:[#allocation2 + $0x23] sm:$0x1] }
 0xb3d   :  { %v4220_v15 = vrot.slane %v4069_v30, %v15288_v23 }
 0xb3f   :  { %v4221_v49 = vsel %vm1832_vm14, %v4220_v15, %v4216_v1 }
 0xb40   :  { %v4228_v25 = vsel %vm775_vm10, %v4221_v49, %v4227_v28 }
 0xb41   :  { %v4229_v46 = vpack.c.b16 %v4228_v25, %v4228_v25 }
 0xb43   :  { %10164 = vmatmul.mubr.msk.bf16.vlgmr.msra.gmra.mrb[12].mxu0 %vm445_vm0, %v4229_v46 }
 0xb44   :  { %10176 = vmatpush3.bf16.msra.mxu0 %v10749_v5  ;;  %10179 = vmatprep.mubr.msk.bf16.mxu0 %vm10787_vm1, %v15289_v41  ;;  %v12744_v5 = vld [vmem:[#allocation2 + $0x2b] sm:$0x1] }
 0xb45   :  { %10177 = vmatprep.subr.bf16.mxu0 %v15289_v41 }
 0xb48   :  { %10178 = vmatpush3.bf16.msra.mxu0 %v10750_v3 }
 0xb49   :  { %10191 = vmatprep.subr.bf16.mxu0 %v15289_v41 }
 0xc16   :  { %v12688_v57 = vpop.f32.mrb[12].mxu0 }
 0xc17   :  { %v4345_v50 = vadd.f32 %v12688_v57, %v15290_v10  ;;  %v10165_v47 = vpop.f32.mrb[13].mxu0  ;;  %v4274_v53 = vrot.slane %v12688_v57, 1  ;;  %v4289_v13 = vadd.f32 %v12688_v57, %v12723_v24  ;;  %v4275_v7 = vrot.slane %v12688_v57, 2 }
 0xc18   :  { %v4270_v26 = vpop.f32.mrb[14].mxu0  ;;  %v4276_v6 = vrot.slane %v12688_v57, 3  ;;  %v4277_v30 = vrot.slane %v12688_v57, 4  ;;  %v4278_v1 = vrot.slane %v12688_v57, 5  ;;  %v4279_v25 = vrot.slane %v12688_v57, 6 }
 0xc19   :  { %4354 = vrot.lane.b32.xlu1 %v4345_v50, %s10784_s25  ;;  %v10166_v62 = vpop.f32.mrb[15].mxu0  ;;  %v4347_v14 = vrot.slane %v4345_v50, 1  ;;  %v4348_v9 = vrot.slane %v4345_v50, 2  ;;  %v4349_v59 = vrot.slane %v4345_v50, 3  ;;  %v4350_v44 = vrot.slane %v4345_v50, 4 }
 0xc1a   :  { %v4351_v27 = vrot.slane %v4345_v50, 5  ;;  %v4352_v22 = vrot.slane %v4345_v50, 6  ;;  %v4353_v18 = vrot.slane %v4345_v50, 7  ;;  %v4290_v32 = vadd.f32 %v4274_v53, %v12728_v54  ;;  %v12747_v50 = vld [vmem:[#allocation2 + $0x33] sm:$0x1] }
 0xc1b   :  { %4356 = vrot.lane.b32.xlu0 %v4347_v14, %s10784_s25  ;;  %v9994_v11 = vmul.f32 -1.442695, %v4289_v13  ;;  %v4291_v20 = vadd.f32 %v4275_v7, %v12732_v39  ;;  %v4292_v15 = vadd.f32 %v4276_v6, %v12736_v42  ;;  %v4293_v49 = vadd.f32 %v4277_v30, %v12739_v12  ;;  %v12751_v14 = vpop.permute.xlu1 %4470 }
 0xc1c   :  { %v9995_v40 = vmul.f32 -1.442695, %v4290_v32  ;;  %v4294_v3 = vadd.f32 %v4278_v1, %v12744_v5  ;;  %v4295_v26 = vadd.f32 %v4279_v25, %v12747_v50  ;;  %v4280_v62 = vrot.slane %v12688_v57, 7 }
 0xc1d   :  { %4358 = vrot.lane.b32.xlu1 %v4348_v9, %s10784_s25  ;;  %10505 = vpow2.f32 %v9994_v11  ;;  %v9996_v28 = vmul.f32 -1.442695, %v4291_v20  ;;  %v9997_v46 = vmul.f32 -1.442695, %v4292_v15  ;;  %v9998_v47 = vmul.f32 -1.442695, %v4293_v49  ;;  %v12753_v9 = vpop.permute.xlu0 %4467 }
 0xc1e   :  { %10507 = vpow2.f32 %v9995_v40 }
 0xc1f   :  { %4360 = vrot.lane.b32.xlu0 %v4349_v59, %s10784_s25  ;;  %10509 = vpow2.f32 %v9996_v28  ;;  %v9999_v59 = vmul.f32 -1.442695, %v4294_v3  ;;  %v12758_v53 = vpop.permute.xlu1 %4482 }
 0xc20   :  { %10511 = vpow2.f32 %v9997_v46 }
 0xc21   :  { %4362 = vrot.lane.b32.xlu1 %v4350_v44, %s10784_s25  ;;  %v12755_v44 = vld [vmem:[#allocation2 + $0x3b] sm:$0x1]  ;;  %10513 = vpow2.f32 %v9998_v47  ;;  %v12760_v57 = vpop.permute.xlu0 %4479 }
 0xc22   :  { %10515 = vpow2.f32 %v9999_v59 }
 0xc23   :  { %4364 = vrot.lane.b32.xlu0 %v4351_v27, %s10784_s25  ;;  %v10000_v27 = vmul.f32 -1.442695, %v4295_v26  ;;  %v12762_v30 = vpop.permute.xlu1 %4473 }
 0xc25   :  { %4366 = vrot.lane.b32.xlu1 %v4352_v22, %s10784_s25  ;;  %v4296_v22 = vadd.f32 %v4280_v62, %v12755_v44  ;;  %10517 = vpow2.f32 %v10000_v27  ;;  %v12764_v1 = vpop.permute.xlu0 %4485 }
 0xc27   :  { %4368 = vrot.lane.b32.xlu0 %v4353_v18, %s10784_s25  ;;  %v10506_v18 = vpop.eup %10505  ;;  %v10001_v7 = vmul.f32 -1.442695, %v4296_v22  ;;  %v12766_v3 = vpop.permute.xlu1 %4491 }
 0xc28   :  { %v10508_v13 = vpop.eup %10507  ;;  %v4321_v32 = vadd.f32 1.0, %v10506_v18 }
 0xc29   :  { %4488 = vperm.xlu1 %10228, %v12493_v35   ;;  %v10510_v6 = vpop.eup %10509  ;;  %v4322_v11 = vadd.f32 1.0, %v10508_v13  ;;  %10519 = vpow2.f32 %v10001_v7  ;;  %v12768_v26 = vpop.permute.xlu0 %4494 }
 0xc2a   :  { %v10512_v20 = vpop.eup %10511  ;;  %10521 = vrcp.f32 %v4321_v32  ;;  %v4323_v40 = vadd.f32 1.0, %v10510_v6 }
 0xc2b   :  { %4476 = vperm.xlu0 %10227, %v12475_v58   ;;  %v10514_v15 = vpop.eup %10513  ;;  %10523 = vrcp.f32 %v4322_v11  ;;  %v4324_v28 = vadd.f32 1.0, %v10512_v20 }
 0xc2c   :  { %v10516_v49 = vpop.eup %10515  ;;  %10525 = vrcp.f32 %v4323_v40  ;;  %v4325_v25 = vadd.f32 1.0, %v10514_v15 }
 0xc2d   :  { %4503 = vperm.xlu1 %10228, %v12522_v17   ;;  %10527 = vrcp.f32 %v4324_v28  ;;  %v4326_v47 = vadd.f32 1.0, %v10516_v49 }
 0xc2e   :  { %10529 = vrcp.f32 %v4325_v25 }
 0xc2f   :  { %4497 = vperm.xlu0 %10227, %v12514_v60   ;;  %v10518_v46 = vpop.eup %10517  ;;  %10531 = vrcp.f32 %v4326_v47 }
 0xc30   :  { %v4327_v62 = vadd.f32 1.0, %v10518_v46 }
 0xc31   :  { %4509 = vperm.xlu1 %10228, %v12532_v55  }
 0xc32   :  { %10533 = vrcp.f32 %v4327_v62 }
 0xc33   :  { %4506 = vperm.xlu0 %10227, %v12519_v0   ;;  %v10520_v59 = vpop.eup %10519 }
 0xc34   :  { %v10522_v27 = vpop.eup %10521  ;;  %v4328_v32 = vadd.f32 1.0, %v10520_v59 }
 0xc35   :  { %4518 = vperm.xlu1 %10228, %v12537_v19   ;;  %v10524_v13 = vpop.eup %10523 }
 0xc36   :  { %v10526_v11 = vpop.eup %10525  ;;  %10535 = vrcp.f32 %v4328_v32 }
 0xc37   :  { %4500 = vperm.xlu0 %10227, %v12511_v38   ;;  %v10528_v15 = vpop.eup %10527 }
 0xc38   :  { %v10530_v25 = vpop.eup %10529 }
 0xc39   :  { %4512 = vperm.xlu1 %10228, %v12529_v4   ;;  %v10532_v59 = vpop.eup %10531 }
 0xc3b   :  { %4515 = vperm.xlu0 %10227, %v12540_v43  }
 0xc3d   :  { %4527 = vperm.xlu1 %10228, %v12558_v37  }
 0xc3f   :  { %4521 = vperm.xlu0 %10227, %v12550_v34  }
 0xc41   :  { %4533 = vperm.xlu1 %10228, %v12568_v61  }
 0xc43   :  { %4530 = vperm.xlu0 %10227, %v12555_v2  }
 0xc45   :  { %4542 = vperm.xlu1 %10228, %v12573_v21   ;;  %v15293_v21 = vld [vmem:[#allocation7_spill] sm:$0xff] }
 0xc46   :  { %v4569_v61 = vrot.slane %v12751_v14, %v15293_v21  ;;  %v4588_v14 = vrot.slane %v12758_v53, %v15293_v21  ;;  %v4607_v53 = vrot.slane %v12768_v26, %v15293_v21 }
 0xc47   :  { %4524 = vperm.xlu0 %10227, %v12547_v36  }
 0xc49   :  { %4545 = vperm.xlu1 %10228, %v12586_v52   ;;  %v15292_v52 = vld [vmem:[#allocation50_spill] sm:$0xff] }
 0xc4b   :  { %4539 = vperm.xlu0 %10227, %v12576_v31  }
 0xc4d   :  { %4554 = vperm.xlu1 %10228, %v12591_v51  }
 0xc4f   :  { %4536 = vperm.xlu0 %10227, %v12565_v48   ;;  %v15294_v48 = vld [vmem:[#allocation51_spill] sm:$0xff] }
 0xc53   :  { %4551 = vperm.xlu0 %10227, %v12594_v29   ;;  %v15291_v29 = vld [vmem:[#allocation9_spill] sm:$0xff] }
 0xc54   :  { %v4565_v51 = vrot.slane %v12753_v9, %v15291_v29 }
 0xc56   :  { %v4570_v2 = vsel %vm2317_vm15, %v4569_v61, %v4565_v51 }
 0xc57   :  { %4548 = vperm.xlu0 %10227, %v12583_v56   ;;  %v4574_v56 = vrot.slane %v12762_v30, %v15292_v52 }
 0xc8b   :  { %v4355_v22 = vpop.permute.xlu1 %4354 }
 0xc8c   :  { %v4378_v18 = vmul.f32 %v10522_v27, %v4355_v22  ;;  %v10534_v27 = vpop.eup %10533 }
 0xc8d   :  { %v4357_v7 = vpop.permute.xlu0 %4356  ;;  %v10536_v32 = vpop.eup %10535 }
 0xc8e   :  { %v4379_v6 = vmul.f32 %v10524_v13, %v4357_v7  ;;  %4394 = vrot.lane.b32.xlu1 %v4378_v18, %s10782_s30 }
 0xc8f   :  { %v4359_v20 = vpop.permute.xlu1 %4358 }
 0xc90   :  { %v4380_v40 = vmul.f32 %v10526_v11, %v4359_v20  ;;  %4396 = vrot.lane.b32.xlu0 %v4379_v6, %s10782_s30 }
 0xc91   :  { %v4361_v28 = vpop.permute.xlu0 %4360 }
 0xc92   :  { %v4381_v49 = vmul.f32 %v10528_v15, %v4361_v28  ;;  %4398 = vrot.lane.b32.xlu1 %v4380_v40, %s10782_s30 }
 0xc93   :  { %v4363_v46 = vpop.permute.xlu1 %4362 }
 0xc94   :  { %v4382_v47 = vmul.f32 %v10530_v25, %v4363_v46  ;;  %4400 = vrot.lane.b32.xlu0 %v4381_v49, %s10782_s30 }
 0xc95   :  { %v4365_v62 = vpop.permute.xlu0 %4364 }
 0xc96   :  { %4402 = vrot.lane.b32.xlu1 %v4382_v47, %s10782_s30  ;;  %v4383_v18 = vmul.f32 %v10532_v59, %v4365_v62 }
 0xc97   :  { %v4367_v22 = vpop.permute.xlu1 %4366 }
 0xc98   :  { %v4384_v13 = vmul.f32 %v10534_v27, %v4367_v22 }
 0xc99   :  { %v4369_v7 = vpop.permute.xlu0 %4368 }
 0xc9a   :  { %4404 = vrot.lane.b32.xlu1 %v4383_v18, %s10782_s30  ;;  %4406 = vrot.lane.b32.xlu0 %v4384_v13, %s10782_s30  ;;  %v4385_v6 = vmul.f32 %v10536_v32, %v4369_v7 }
 0xc9e   :  { %4408 = vrot.lane.b32.xlu1 %v4385_v6, %s10782_s30  ;;  %4560 = vperm.xlu0 %10227, %v12599_v8  }
 0xca2   :  { %4557 = vperm.xlu1 %10228, %v12602_v16  }
 0xca8   :  { %v4489_v40 = vpop.permute.xlu1 %4488 }
 0xca9   :  { %v4598_v30 = vrot.slane %v4489_v40, %v15294_v48  ;;  %v4603_v40 = vrot.slane %v12766_v3, %v15291_v29 }
 0xcaa   :  { %v4477_v11 = vpop.permute.xlu0 %4476 }
 0xcab   :  { %v4579_v37 = vrot.slane %v4477_v11, %v15294_v48 }
 0xcac   :  { %v12784_v28 = vpop.permute.xlu1 %4503 }
 0xcae   :  { %v12780_v20 = vpop.permute.xlu0 %4497 }
 0xcaf   :  { %v4612_v11 = vrot.slane %v12780_v20, %v15292_v52 }
 0xcb0   :  { %v12788_v25 = vpop.permute.xlu1 %4509 }
 0xcb2   :  { %v12782_v15 = vpop.permute.xlu0 %4506 }
 0xcb3   :  { %v4626_v20 = vrot.slane %v12782_v15, %v15293_v21 }
 0xcb4   :  { %v12792_v47 = vpop.permute.xlu1 %4518 }
 0xcb6   :  { %v12786_v49 = vpop.permute.xlu0 %4500 }
 0xcb8   :  { %v12796_v59 = vpop.permute.xlu1 %4512 }
 0xcba   :  { %v12790_v46 = vpop.permute.xlu0 %4515 }
 0xcbc   :  { %v12800_v22 = vpop.permute.xlu1 %4527 }
 0xcbe   :  { %v12794_v62 = vpop.permute.xlu0 %4521 }
 0xcc0   :  { %v12804_v13 = vpop.permute.xlu1 %4533 }
 0xcc2   :  { %v12798_v27 = vpop.permute.xlu0 %4530 }
 0xcc4   :  { %v12808_v32 = vpop.permute.xlu1 %4542 }
 0xcc6   :  { %v12802_v18 = vpop.permute.xlu0 %4524 }
 0xcc8   :  { %v12812_v10 = vpop.permute.xlu1 %4545 }
 0xcca   :  { %v12806_v7 = vpop.permute.xlu0 %4539 }
 0xccc   :  { %v12816_v23 = vpop.permute.xlu1 %4554 }
 0xcce   :  { %v12810_v6 = vpop.permute.xlu0 %4536 }
 0xcd2   :  { %v12814_v41 = vpop.permute.xlu0 %4551 }
 0xcd6   :  { %v12818_v45 = vpop.permute.xlu0 %4548 }
 0xd00   :  { %v4395_v33 = vpop.permute.xlu1 %4394 }
 0xd01   :  { %v4418_v63 = vadd.f32 %v4395_v33, %v12723_v24  ;;  %v4584_v24 = vrot.slane %v12760_v57, %v15291_v29 }
 0xd02   :  { %v4397_v16 = vpop.permute.xlu0 %4396 }
 0xd03   :  { %10537 = vtanh.f32 %v4418_v63  ;;  %v4419_v8 = vadd.f32 %v4397_v16, %v12728_v54  ;;  %v4575_v63 = vsel %vm2324_vm11, %v4574_v56, %v4570_v2  ;;  %v4593_v54 = vrot.slane %v12764_v1, %v15292_v52 }
 0xd04   :  { %v4399_v31 = vpop.permute.xlu1 %4398  ;;  %v4589_v56 = vsel %vm2317_vm15, %v4588_v14, %v4584_v24  ;;  %v4608_v24 = vsel %vm2317_vm15, %v4607_v53, %v4603_v40  ;;  %v4636_v14 = vrot.slane %v12796_v59, %v15294_v48  ;;  %v4641_v59 = vrot.slane %v12790_v46, %v15291_v29 }
 0xd05   :  { %10539 = vtanh.f32 %v4419_v8  ;;  %v4420_v33 = vadd.f32 %v4399_v31, %v12732_v39  ;;  %v4580_v8 = vsel %vm2331_vm3, %v4579_v37, %v4575_v63  ;;  %v15295_v31 = vld [vmem:[#allocation8_spill] sm:$0xff]  ;;  %v4594_v39 = vsel %vm2324_vm11, %v4593_v54, %v4589_v56 }
 0xd06   :  { %v4401_v61 = vpop.permute.xlu0 %4400  ;;  %v4599_v37 = vsel %vm2331_vm3, %v4598_v30, %v4594_v39  ;;  %v4613_v26 = vsel %vm2324_vm11, %v4612_v11, %v4608_v24  ;;  %v4631_v30 = vrot.slane %v12788_v25, %v15292_v52  ;;  %v4650_v39 = vrot.slane %v12794_v62, %v15292_v52 }
 0xd07   :  { %10541 = vtanh.f32 %v4420_v33  ;;  %v4421_v57 = vadd.f32 %v4401_v61, %v12736_v42  ;;  %v4617_v33 = vrot.slane %v12786_v49, %v15294_v48  ;;  %v4622_v49 = vrot.slane %v12784_v28, %v15291_v29 }
 0xd08   :  { %v4403_v63 = vpop.permute.xlu1 %4402  ;;  %v4645_v25 = vrot.slane %v12792_v47, %v15293_v21  ;;  %v4664_v62 = vrot.slane %v12798_v27, %v15293_v21 }
 0xd09   :  { %10543 = vtanh.f32 %v4421_v57  ;;  %v4422_v3 = vadd.f32 %v4403_v63, %v12739_v12  ;;  %v4674_v63 = vrot.slane %v12810_v6, %v15294_v48  ;;  %v4683_v6 = vrot.slane %v12808_v32, %v15293_v21 }
 0xd0a   :  { %v4646_v53 = vsel %vm2317_vm15, %v4645_v25, %v4641_v59  ;;  %v15296_v59 = vld [vmem:[#allocation14_spill] sm:$0xff] }
 0xd0b   :  { %10545 = vtanh.f32 %v4422_v3  ;;  %v4651_v46 = vsel %vm2324_vm11, %v4650_v39, %v4646_v53  ;;  %v4693_v3 = vrot.slane %v12818_v45, %v15294_v48  ;;  %v4702_v45 = vrot.slane %v12816_v23, %v15293_v21  ;;  %v15297_v39 = vld [vmem:[#allocation19_spill] sm:$0xff]  ;;  %v15298_v53 = vld [vmem:[#allocation46_spill] sm:$0xff] }
 0xd0c   :  { %v4405_v15 = vpop.permute.xlu1 %4404  ;;  %v4407_v57 = vpop.permute.xlu0 %4406  ;;  %v4733_v25 = vrot.slane %v15297_v39, %v15296_v59 }
 0xd0d   :  { %v10538_v16 = vpop.eup %10537  ;;  %v4424_v47 = vadd.f32 %v4407_v57, %v12747_v50 }
 0xd0e   :  { %v4722_v9 = vsub.f32 %v10538_v16, %v4580_v8  ;;  %v4618_v8 = vsel %vm2331_vm3, %v4617_v33, %v4613_v26 }
 0xd0f   :  { %v10540_v2 = vpop.eup %10539 }
 0xd10   :  { %v4773_v51 = vrot.slane %v4722_v9, %v15295_v31  ;;  %v4723_v1 = vsub.f32 %v10540_v2, %v4599_v37  ;;  %v4627_v9 = vsel %vm2317_vm15, %v4626_v20, %v4622_v49  ;;  %v4423_v2 = vadd.f32 %v4405_v15, %v12744_v5  ;;  %v4409_v24 = vpop.permute.xlu1 %4408 }
 0xd11   :  { %v10542_v42 = vpop.eup %10541  ;;  %v4632_v12 = vsel %vm2324_vm11, %v4631_v30, %v4627_v9  ;;  %v4655_v37 = vrot.slane %v12802_v18, %v15294_v48  ;;  %v4660_v18 = vrot.slane %v12800_v22, %v15291_v29  ;;  %v4679_v22 = vrot.slane %v12806_v7, %v15291_v29 }
 0xd12   :  { %4780 = vbcast.lane.b32.xlu0 %v4773_v51, 296  ;;  %4776 = vbcast.lane.b32.xlu1 %v4773_v51, 288  ;;  %v4793_v16 = vrot.slane %v4723_v1, %v15295_v31  ;;  %v4724_v54 = vsub.f32 %v10542_v42, %v4618_v8  ;;  %v4637_v28 = vsel %vm2331_vm3, %v4636_v14, %v4632_v12  ;;  %10547 = vtanh.f32 %v4423_v2 }
 0xd13   :  { %v4656_v11 = vsel %vm2331_vm3, %v4655_v37, %v4651_v46  ;;  %v4665_v33 = vsel %vm2317_vm15, %v4664_v62, %v4660_v18  ;;  %10549 = vtanh.f32 %v4424_v47  ;;  %v4425_v8 = vadd.f32 %v4409_v24, %v12755_v44  ;;  %v15300_v62 = vld [vmem:[#allocation13_spill] sm:$0xff] }
 0xd14   :  { %v4813_v61 = vrot.slane %v4724_v54, %v15295_v31  ;;  %v4688_v49 = vrot.slane %v12812_v10, %v15292_v52  ;;  %v4698_v14 = vrot.slane %v12814_v41, %v15291_v29 }
 0xd15   :  { %10551 = vtanh.f32 %v4425_v8 }
 0xd16   :  { %4788 = vbcast.lane.b32.xlu0 %v4773_v51, 312  ;;  %4784 = vbcast.lane.b32.xlu1 %v4773_v51, 304  ;;  %v10544_v51 = vpop.eup %10543 }
 0xd17   :  { %v4725_v56 = vsub.f32 %v10544_v51, %v4637_v28  ;;  %v10546_v5 = vpop.eup %10545 }
 0xd18   :  { %v4726_v40 = vsub.f32 %v10546_v5, %v4656_v11 }
 0xd19   :  { %v4833_v1 = vrot.slane %v4725_v56, %v15295_v31 }
 0xd1a   :  { %4800 = vbcast.lane.b32.xlu0 %v4793_v16, 296  ;;  %4796 = vbcast.lane.b32.xlu1 %v4793_v16, 288  ;;  %v4853_v27 = vrot.slane %v4726_v40, %v15295_v31 }
 0xd1c   :  { %v10548_v42 = vpop.eup %10547 }
 0xd1d   :  { %v10550_v9 = vpop.eup %10549  ;;  %v4561_v15 = vpop.permute.xlu0 %4560 }
 0xd1e   :  { %4808 = vbcast.lane.b32.xlu0 %v4793_v16, 312  ;;  %4804 = vbcast.lane.b32.xlu1 %v4793_v16, 304  ;;  %v4669_v16 = vrot.slane %v12804_v13, %v15292_v52  ;;  %v4684_v13 = vsel %vm2317_vm15, %v4683_v6, %v4679_v22  ;;  %v4712_v41 = vrot.slane %v4561_v15, %v15294_v48  ;;  %v15309_v15 = vld [vmem:[#allocation21_spill] sm:$0xff] }
 0xd1f   :  { %v4689_v44 = vsel %vm2324_vm11, %v4688_v49, %v4684_v13  ;;  %v10552_v2 = vpop.eup %10551 }
 0xd20   :  { %v4670_v50 = vsel %vm2324_vm11, %v4669_v16, %v4665_v33  ;;  %v4694_v30 = vsel %vm2331_vm3, %v4693_v3, %v4689_v44  ;;  %v15302_v16 = vld [vmem:[#allocation20_spill] sm:$0xff] }
 0xd21   :  { %v4675_v26 = vsel %vm2331_vm3, %v4674_v63, %v4670_v50  ;;  %v4558_v54 = vpop.permute.xlu1 %4557  ;;  %v4728_v10 = vsub.f32 %v10550_v9, %v4694_v30  ;;  %v15303_v50 = vld [vmem:[#allocation12_spill] sm:$0xff] }
 0xd22   :  { %4820 = vbcast.lane.b32.xlu0 %v4813_v61, 296  ;;  %4816 = vbcast.lane.b32.xlu1 %v4813_v61, 288  ;;  %v4727_v20 = vsub.f32 %v10548_v42, %v4675_v26  ;;  %v4707_v32 = vrot.slane %v4558_v54, %v15292_v52  ;;  %v15305_v54 = vld [vmem:[#allocation23_spill] sm:$0xff] }
 0xd23   :  { %v4893_v12 = vrot.slane %v4728_v10, %v15295_v31  ;;  %v4741_v10 = vrot.slane %v15309_v15, %v15296_v59 }
 0xd24   :  { %v4873_v7 = vrot.slane %v4727_v20, %v15295_v31 }
 0xd26   :  { %4828 = vbcast.lane.b32.xlu0 %v4813_v61, 312  ;;  %4824 = vbcast.lane.b32.xlu1 %v4813_v61, 304  ;;  %v4703_v61 = vsel %vm2317_vm15, %v4702_v45, %v4698_v14 }
 0xd27   :  { %v4708_v51 = vsel %vm2324_vm11, %v4707_v32, %v4703_v61 }
 0xd28   :  { %v4713_v28 = vsel %vm2331_vm3, %v4712_v41, %v4708_v51  ;;  %v15310_v51 = vld [vmem:[#allocation27_spill] sm:$0xff] }
 0xd29   :  { %v4729_v23 = vsub.f32 %v10552_v2, %v4713_v28 }
 0xd2a   :  { %4840 = vbcast.lane.b32.xlu0 %v4833_v1, 296  ;;  %4836 = vbcast.lane.b32.xlu1 %v4833_v1, 288 }
 0xd2b   :  { %v4913_v56 = vrot.slane %v4729_v23, %v15295_v31 }
 0xd2e   :  { %4848 = vbcast.lane.b32.xlu0 %v4833_v1, 312  ;;  %4844 = vbcast.lane.b32.xlu1 %v4833_v1, 304 }
 0xd32   :  { %4860 = vbcast.lane.b32.xlu0 %v4853_v27, 296  ;;  %4856 = vbcast.lane.b32.xlu1 %v4853_v27, 288 }
 0xd36   :  { %4868 = vbcast.lane.b32.xlu0 %v4853_v27, 312  ;;  %4864 = vbcast.lane.b32.xlu1 %v4853_v27, 304  ;;  %v4737_v27 = vrot.slane %v15302_v16, %v15296_v59 }
 0xd3a   :  { %4880 = vbcast.lane.b32.xlu0 %v4873_v7, 296  ;;  %4876 = vbcast.lane.b32.xlu1 %v4873_v7, 288 }
 0xd3e   :  { %4888 = vbcast.lane.b32.xlu0 %v4873_v7, 312  ;;  %4884 = vbcast.lane.b32.xlu1 %v4873_v7, 304  ;;  %v15307_v7 = vld [vmem:[#allocation22_spill] sm:$0xff] }
 0xd42   :  { %4900 = vbcast.lane.b32.xlu0 %v4893_v12, 296  ;;  %4896 = vbcast.lane.b32.xlu1 %v4893_v12, 288 }
 0xd46   :  { %4908 = vbcast.lane.b32.xlu0 %v4893_v12, 312  ;;  %4904 = vbcast.lane.b32.xlu1 %v4893_v12, 304 }
 0xd4a   :  { %4920 = vbcast.lane.b32.xlu0 %v4913_v56, 296  ;;  %4916 = vbcast.lane.b32.xlu1 %v4913_v56, 288 }
 0xd4e   :  { %4928 = vbcast.lane.b32.xlu0 %v4913_v56, 312  ;;  %4924 = vbcast.lane.b32.xlu1 %v4913_v56, 304 }
 0xd84   :  { %v4781_v37 = vpop.permute.xlu0 %4780  ;;  %v4777_v57 = vpop.permute.xlu1 %4776 }
 0xd85   :  { %v4963_v1 = vmul.f32 %v4781_v37, %v4733_v25  ;;  %v4962_v5 = vmul.f32 %v4777_v57, %v4733_v25  ;;  %v15312_v57 = vld [vmem:[#allocation25_spill] sm:$0xff] }
 0xd87   :  { %v12923_v46 = vadd.f32 %v4963_v1, %v15298_v53  ;;  %v12926_v11 = vadd.f32 %v4962_v5, %v15300_v62  ;;  %v15314_v5 = vld [vmem:[#allocation24_spill] sm:$0xff] }
 0xd88   :  { %v4789_v47 = vpop.permute.xlu0 %4788  ;;  %v4785_v40 = vpop.permute.xlu1 %4784 }
 0xd89   :  { %15299 = vst [vmem:[#allocation42_spill] sm:$0xff] %v12923_v46  ;;  %15301 = vst [vmem:[#allocation45_spill] sm:$0xff] %v12926_v11  ;;  %v5034_v18 = vpack.c.bf16 %v12923_v46, %v12926_v11  ;;  %v4965_v33 = vmul.f32 %v4789_v47, %v4733_v25  ;;  %v4964_v63 = vmul.f32 %v4785_v40, %v4733_v25 }
 0xd8b   :  { %v12933_v42 = vadd.f32 %v4965_v33, %v12475_v58  ;;  %v12936_v24 = vadd.f32 %v4964_v63, %v15303_v50  ;;  %v5067_v22 = vunpack.c.h.b16 %v5034_v18  ;;  %v5066_v26 = vunpack.c.l.b16 %v5034_v18 }
 0xd8c   :  { %v4801_v20 = vpop.permute.xlu0 %4800  ;;  %v4797_v6 = vpop.permute.xlu1 %4796 }
 0xd8d   :  { %15304 = vst [vmem:[#allocation14_spill] sm:$0xff] %v12936_v24  ;;  %v5035_v8 = vpack.c.bf16 %v12933_v42, %v12936_v24  ;;  %v4967_v13 = vmul.f32 %v4801_v20, %v4737_v27  ;;  %v4966_v3 = vmul.f32 %v4797_v6, %v4737_v27  ;;  %5102 = vperm.xlu0 %10227, %v5067_v22  }
 0xd8e   :  { %5099 = vperm.xlu1 %10228, %v5066_v26  }
 0xd8f   :  { %v12941_v49 = vadd.f32 %v4967_v13, %v15305_v54  ;;  %v12944_v58 = vadd.f32 %v4966_v3, %v15307_v7  ;;  %v5068_v9 = vunpack.c.l.b16 %v5035_v8  ;;  %v5069_v12 = vunpack.c.h.b16 %v5035_v8 }
 0xd90   :  { %v4809_v14 = vpop.permute.xlu0 %4808  ;;  %v4805_v44 = vpop.permute.xlu1 %4804 }
 0xd91   :  { %15306 = vst [vmem:[#allocation46_spill] sm:$0xff] %v12941_v49  ;;  %15308 = vst [vmem:[#allocation13_spill] sm:$0xff] %v12944_v58  ;;  %v5036_v32 = vpack.c.bf16 %v12941_v49, %v12944_v58  ;;  %v4969_v45 = vmul.f32 %v4809_v14, %v4737_v27  ;;  %v4968_v30 = vmul.f32 %v4805_v44, %v4737_v27  ;;  %v15316_v27 = vld [vmem:[#allocation29_spill] sm:$0xff] }
 0xd92   :  { %5105 = vperm.xlu1 %10228, %v5068_v9   ;;  %v4745_v50 = vrot.slane %v15316_v27, %v15296_v59  ;;  %v15345_v27 = vld [vmem:[#allocation10_spill] sm:$0xff] }
 0xd93   :  { %v12951_v61 = vadd.f32 %v4969_v45, %v12493_v35  ;;  %v12954_v41 = vadd.f32 %v4968_v30, %v15310_v51  ;;  %v5071_v28 = vunpack.c.h.b16 %v5036_v32  ;;  %v5070_v53 = vunpack.c.l.b16 %v5036_v32  ;;  %v15317_v51 = vld [vmem:[#allocation31_spill] sm:$0xff] }
 0xd94   :  { %v4821_v2 = vpop.permute.xlu0 %4820  ;;  %v4817_v23 = vpop.permute.xlu1 %4816 }
 0xd95   :  { %15311 = vst [vmem:[#allocation12_spill] sm:$0xff] %v12954_v41  ;;  %v5037_v56 = vpack.c.bf16 %v12951_v61, %v12954_v41  ;;  %v4971_v25 = vmul.f32 %v4821_v2, %v4741_v10  ;;  %v4970_v37 = vmul.f32 %v4817_v23, %v4741_v10  ;;  %5114 = vperm.xlu0 %10227, %v5071_v28  }
 0xd96   :  { %5108 = vperm.xlu1 %10228, %v5069_v12   ;;  %v4749_v12 = vrot.slane %v15317_v51, %v15296_v59 }
 0xd97   :  { %v12959_v1 = vadd.f32 %v4971_v25, %v15312_v57  ;;  %v12962_v35 = vadd.f32 %v4970_v37, %v15314_v5  ;;  %v5072_v62 = vunpack.c.l.b16 %v5037_v56  ;;  %v5073_v14 = vunpack.c.h.b16 %v5037_v56 }
 0xd98   :  { %v4829_v47 = vpop.permute.xlu0 %4828  ;;  %v4825_v40 = vpop.permute.xlu1 %4824 }
 0xd99   :  { %15313 = vst [vmem:[#allocation23_spill] sm:$0xff] %v12959_v1  ;;  %15315 = vst [vmem:[#allocation22_spill] sm:$0xff] %v12962_v35  ;;  %v5038_v18 = vpack.c.bf16 %v12959_v1, %v12962_v35  ;;  %v4973_v33 = vmul.f32 %v4829_v47, %v4741_v10  ;;  %v4972_v63 = vmul.f32 %v4825_v40, %v4741_v10  ;;  %5117 = vperm.xlu0 %10227, %v5072_v62  }
 0xd9a   :  { %5111 = vperm.xlu1 %10228, %v5070_v53  }
 0xd9b   :  { %v12969_v22 = vadd.f32 %v4973_v33, %v12511_v38  ;;  %v12972_v26 = vadd.f32 %v4972_v63, %v12514_v60  ;;  %v5075_v20 = vunpack.c.h.b16 %v5038_v18  ;;  %v5074_v6 = vunpack.c.l.b16 %v5038_v18  ;;  %v15318_v63 = vld [vmem:[#allocation32_spill] sm:$0xff] }
 0xd9c   :  { %v4841_v8 = vpop.permute.xlu0 %4840  ;;  %v4837_v13 = vpop.permute.xlu1 %4836 }
 0xd9d   :  { %v5039_v3 = vpack.c.bf16 %v12969_v22, %v12972_v26  ;;  %v4975_v54 = vmul.f32 %v4841_v8, %v4745_v50  ;;  %v4974_v7 = vmul.f32 %v4837_v13, %v4745_v50  ;;  %5126 = vperm.xlu0 %10227, %v5075_v20  }
 0xd9e   :  { %5123 = vperm.xlu1 %10228, %v5074_v6  }
 0xd9f   :  { %v12977_v9 = vadd.f32 %v4975_v54, %v12519_v0  ;;  %v12980_v38 = vadd.f32 %v4974_v7, %v12522_v17  ;;  %v5076_v60 = vunpack.c.l.b16 %v5039_v3  ;;  %v5077_v53 = vunpack.c.h.b16 %v5039_v3 }
 0xda0   :  { %v4849_v44 = vpop.permute.xlu0 %4848  ;;  %v4845_v32 = vpop.permute.xlu1 %4844 }
 0xda1   :  { %v5040_v45 = vpack.c.bf16 %v12977_v9, %v12980_v38  ;;  %v4977_v30 = vmul.f32 %v4849_v44, %v4745_v50  ;;  %v4976_v10 = vmul.f32 %v4845_v32, %v4745_v50  ;;  %5120 = vperm.xlu0 %10227, %v5073_v14   ;;  %v4753_v50 = vrot.slane %v15318_v63, %v15296_v59  ;;  %v15319_v14 = vld [vmem:[#allocation26_spill] sm:$0xff] }
 0xda2   :  { %5129 = vperm.xlu1 %10228, %v5076_v60   ;;  %v15321_v44 = vld [vmem:[#allocation30_spill] sm:$0xff] }
 0xda3   :  { %v12987_v0 = vadd.f32 %v4977_v30, %v12529_v4  ;;  %v12990_v17 = vadd.f32 %v4976_v10, %v12532_v55  ;;  %v5079_v28 = vunpack.c.h.b16 %v5040_v45  ;;  %v5078_v2 = vunpack.c.l.b16 %v5040_v45 }
 0xda4   :  { %v4861_v23 = vpop.permute.xlu0 %4860  ;;  %v4857_v56 = vpop.permute.xlu1 %4856 }
 0xda5   :  { %v5041_v25 = vpack.c.bf16 %v12987_v0, %v12990_v17  ;;  %v4979_v37 = vmul.f32 %v4861_v23, %v4749_v12  ;;  %v4978_v57 = vmul.f32 %v4857_v56, %v4749_v12  ;;  %5135 = vperm.xlu0 %10227, %v5078_v2   ;;  %v15323_v2 = vld [vmem:[#allocation35_spill] sm:$0xff]  ;;  %v15324_v56 = vld [vmem:[#allocation28_spill] sm:$0xff] }
 0xda6   :  { %5138 = vperm.xlu1 %10228, %v5079_v28   ;;  %v4757_v23 = vrot.slane %v15323_v2, %v15296_v59 }
 0xda7   :  { %v12995_v5 = vadd.f32 %v4979_v37, %v12537_v19  ;;  %v12998_v4 = vadd.f32 %v4978_v57, %v12540_v43  ;;  %v5080_v55 = vunpack.c.l.b16 %v5041_v25  ;;  %v5081_v32 = vunpack.c.h.b16 %v5041_v25  ;;  %v15326_v57 = vld [vmem:[#allocation34_spill] sm:$0xff] }
 0xda8   :  { %v4869_v62 = vpop.permute.xlu0 %4868  ;;  %v4865_v47 = vpop.permute.xlu1 %4864 }
 0xda9   :  { %v5042_v40 = vpack.c.bf16 %v12995_v5, %v12998_v4  ;;  %v4981_v18 = vmul.f32 %v4869_v62, %v4749_v12  ;;  %v4980_v33 = vmul.f32 %v4865_v47, %v4749_v12  ;;  %5132 = vperm.xlu0 %10227, %v5077_v53  }
 0xdaa   :  { %5141 = vperm.xlu1 %10228, %v5080_v55  }
 0xdab   :  { %v13005_v19 = vadd.f32 %v4981_v18, %v12547_v36  ;;  %v13008_v43 = vadd.f32 %v4980_v33, %v12550_v34  ;;  %v5083_v20 = vunpack.c.h.b16 %v5042_v40  ;;  %v5082_v6 = vunpack.c.l.b16 %v5042_v40 }
 0xdac   :  { %v4881_v8 = vpop.permute.xlu0 %4880  ;;  %v4877_v13 = vpop.permute.xlu1 %4876 }
 0xdad   :  { %v5043_v3 = vpack.c.bf16 %v13005_v19, %v13008_v43  ;;  %v4983_v54 = vmul.f32 %v4881_v8, %v4753_v50  ;;  %v4982_v7 = vmul.f32 %v4877_v13, %v4753_v50  ;;  %5147 = vperm.xlu0 %10227, %v5082_v6   ;;  %v15330_v6 = vld [vmem:[#allocation40_spill] sm:$0xff] }
 0xdae   :  { %5150 = vperm.xlu1 %10228, %v5083_v20  }
 0xdaf   :  { %v13013_v60 = vadd.f32 %v4983_v54, %v15319_v14  ;;  %v13016_v36 = vadd.f32 %v4982_v7, %v15321_v44  ;;  %v5084_v34 = vunpack.c.l.b16 %v5043_v3  ;;  %v5085_v13 = vunpack.c.h.b16 %v5043_v3 }
 0xdb0   :  { %v4889_v45 = vpop.permute.xlu0 %4888  ;;  %v4885_v30 = vpop.permute.xlu1 %4884 }
 0xdb1   :  { %15320 = vst [vmem:[#allocation27_spill] sm:$0xff] %v13013_v60  ;;  %15322 = vst [vmem:[#allocation25_spill] sm:$0xff] %v13016_v36  ;;  %v5044_v10 = vpack.c.bf16 %v13013_v60, %v13016_v36  ;;  %v4985_v12 = vmul.f32 %v4889_v45, %v4753_v50  ;;  %v4984_v28 = vmul.f32 %v4885_v30, %v4753_v50  ;;  %5144 = vperm.xlu0 %10227, %v5081_v32   ;;  %v15328_v50 = vld [vmem:[#allocation33_spill] sm:$0xff]  ;;  %v15332_v45 = vld [vmem:[#allocation36_spill] sm:$0xff] }
 0xdb2   :  { %5153 = vperm.xlu1 %10228, %v5084_v34   ;;  %v4761_v30 = vrot.slane %v15332_v45, %v15296_v59  ;;  %v15339_v59 = vld [vmem:[#allocation44_spill] sm:$0xff] }
 0xdb3   :  { %v13023_v37 = vadd.f32 %v4985_v12, %v15324_v56  ;;  %v13026_v53 = vadd.f32 %v4984_v28, %v15326_v57  ;;  %v5087_v25 = vunpack.c.h.b16 %v5044_v10  ;;  %v5086_v55 = vunpack.c.l.b16 %v5044_v10  ;;  %v15333_v10 = vld [vmem:[#allocation39_spill] sm:$0xff]  ;;  %v15335_v28 = vld [vmem:[#allocation38_spill] sm:$0xff] }
 0xdb4   :  { %v4901_v62 = vpop.permute.xlu0 %4900  ;;  %v4897_v47 = vpop.permute.xlu1 %4896 }
 0xdb5   :  { %15325 = vst [vmem:[#allocation24_spill] sm:$0xff] %v13023_v37  ;;  %15327 = vst [vmem:[#allocation26_spill] sm:$0xff] %v13026_v53  ;;  %v5045_v40 = vpack.c.bf16 %v13023_v37, %v13026_v53  ;;  %v4987_v18 = vmul.f32 %v4901_v62, %v4757_v23  ;;  %v4986_v33 = vmul.f32 %v4897_v47, %v4757_v23  ;;  %5159 = vperm.xlu0 %10227, %v5086_v55  }
 0xdb6   :  { %5162 = vperm.xlu1 %10228, %v5087_v25  }
 0xdb7   :  { %v13031_v20 = vadd.f32 %v4987_v18, %v15328_v50  ;;  %v13034_v8 = vadd.f32 %v4986_v33, %v15330_v6  ;;  %v5088_v54 = vunpack.c.l.b16 %v5045_v40  ;;  %v15337_v18 = vld [vmem:[#allocation37_spill] sm:$0xff]  ;;  %v5089_v6 = vunpack.c.h.b16 %v5045_v40 }
 0xdb8   :  { %v4909_v7 = vpop.permute.xlu0 %4908  ;;  %v4905_v14 = vpop.permute.xlu1 %4904 }
 0xdb9   :  { %15329 = vst [vmem:[#allocation30_spill] sm:$0xff] %v13031_v20  ;;  %15331 = vst [vmem:[#allocation28_spill] sm:$0xff] %v13034_v8  ;;  %v5046_v44 = vpack.c.bf16 %v13031_v20, %v13034_v8  ;;  %v4989_v32 = vmul.f32 %v4909_v7, %v4757_v23  ;;  %v4988_v34 = vmul.f32 %v4905_v14, %v4757_v23  ;;  %5156 = vperm.xlu0 %10227, %v5085_v13  }
 0xdba   :  { %5165 = vperm.xlu1 %10228, %v5088_v54  }
 0xdbb   :  { %v13041_v12 = vadd.f32 %v4989_v32, %v15333_v10  ;;  %v13044_v56 = vadd.f32 %v4988_v34, %v15335_v28  ;;  %v5091_v3 = vunpack.c.h.b16 %v5046_v44  ;;  %v5090_v57 = vunpack.c.l.b16 %v5046_v44  ;;  %v15341_v34 = vld [vmem:[#allocation43_spill] sm:$0xff]  ;;  %v15343_v28 = vld [vmem:[#allocation41_spill] sm:$0xff] }
 0xdbc   :  { %v4921_v25 = vpop.permute.xlu0 %4920  ;;  %v4917_v55 = vpop.permute.xlu1 %4916 }
 0xdbd   :  { %15334 = vst [vmem:[#allocation34_spill] sm:$0xff] %v13041_v12  ;;  %15336 = vst [vmem:[#allocation33_spill] sm:$0xff] %v13044_v56  ;;  %v5047_v62 = vpack.c.bf16 %v13041_v12, %v13044_v56  ;;  %v4991_v47 = vmul.f32 %v4921_v25, %v4761_v30  ;;  %v4990_v23 = vmul.f32 %v4917_v55, %v4761_v30  ;;  %5171 = vperm.xlu0 %10227, %v5090_v57  }
 0xdbe   :  { %5174 = vperm.xlu1 %10228, %v5091_v3  }
 0xdbf   :  { %v13049_v33 = vadd.f32 %v4991_v47, %v15337_v18  ;;  %v13052_v50 = vadd.f32 %v4990_v23, %v15339_v59  ;;  %v5092_v13 = vunpack.c.l.b16 %v5047_v62  ;;  %v5093_v55 = vunpack.c.h.b16 %v5047_v62 }
 0xdc0   :  { %v4929_v54 = vpop.permute.xlu0 %4928  ;;  %v4925_v7 = vpop.permute.xlu1 %4924 }
 0xdc1   :  { %15338 = vst [vmem:[#allocation40_spill] sm:$0xff] %v13049_v33  ;;  %15340 = vst [vmem:[#allocation39_spill] sm:$0xff] %v13052_v50  ;;  %v5048_v14 = vpack.c.bf16 %v13049_v33, %v13052_v50  ;;  %v4993_v44 = vmul.f32 %v4929_v54, %v4761_v30  ;;  %v4992_v32 = vmul.f32 %v4925_v7, %v4761_v30  ;;  %5168 = vperm.xlu0 %10227, %v5089_v6  }
 0xdc2   :  { %5177 = vperm.xlu1 %10228, %v5092_v13  }
 0xdc3   :  { %v13057_v10 = vadd.f32 %v4993_v44, %v15341_v34  ;;  %v13060_v3 = vadd.f32 %v4992_v32, %v15343_v28  ;;  %v5095_v57 = vunpack.c.h.b16 %v5048_v14  ;;  %v5094_v25 = vunpack.c.l.b16 %v5048_v14 }
 0xdc5   :  { %15342 = vst [vmem:[#allocation38_spill] sm:$0xff] %v13057_v10  ;;  %15344 = vst [vmem:[#allocation37_spill] sm:$0xff] %v13060_v3  ;;  %v5049_v40 = vpack.c.bf16 %v13057_v10, %v13060_v3  ;;  %5183 = vperm.xlu0 %10227, %v5094_v25  }
 0xdc6   :  { %5186 = vperm.xlu1 %10228, %v5095_v57  }
 0xdc7   :  { %v5096_v47 = vunpack.c.l.b16 %v5049_v40  ;;  %v5097_v30 = vunpack.c.h.b16 %v5049_v40 }
 0xdc9   :  { %5180 = vperm.xlu0 %10227, %v5093_v55  }
 0xdca   :  { %5189 = vperm.xlu1 %10228, %v5096_v47  }
 0xdcd   :  { %5192 = vperm.xlu0 %10227, %v5097_v30  }
 0xdce   :  { %5594 = vperm.xlu1 %10228, %v12923_v46   ;;  %v15348_v46 = vld [vmem:[#allocation49_spill] sm:$0xff] }
 0xdd1   :  { %5591 = vperm.xlu0 %10227, %v12926_v11  }
 0xdd2   :  { %5606 = vperm.xlu1 %10228, %v12941_v49  }
 0xdd5   :  { %5603 = vperm.xlu0 %10227, %v12944_v58  }
 0xdd6   :  { %5597 = vperm.xlu1 %10228, %v12936_v24   ;;  %v15347_v24 = vld [vmem:[#allocation48_spill] sm:$0xff] }
 0xdd9   :  { %5609 = vperm.xlu0 %10227, %v12954_v41  }
 0xdda   :  { %5615 = vperm.xlu1 %10228, %v12962_v35  }
 0xddd   :  { %5618 = vperm.xlu0 %10227, %v12959_v1   ;;  %v15346_v1 = vld [vmem:[#allocation47_spill] sm:$0xff] }
 0xe0c   :  { %v5103_v23 = vpop.permute.xlu0 %5102 }
 0xe0d   :  { %v5100_v62 = vpop.permute.xlu1 %5099  ;;  %v5201_v41 = vrot.slane %v5103_v23, %v15346_v1 }
 0xe0e   :  { %v5197_v15 = vrot.slane %v5100_v62, %v15345_v27 }
 0xe10   :  { %v5202_v23 = vsel %vm1818_vm12, %v5201_v41, %v5197_v15 }
 0xe11   :  { %v5106_v18 = vpop.permute.xlu1 %5105 }
 0xe12   :  { %v5206_v16 = vrot.slane %v5106_v18, %v15347_v24 }
 0xe14   :  { %v5115_v59 = vpop.permute.xlu0 %5114  ;;  %v5207_v18 = vsel %vm1825_vm13, %v5206_v16, %v5202_v23 }
 0xe15   :  { %v5109_v6 = vpop.permute.xlu1 %5108  ;;  %v5220_v11 = vrot.slane %v5115_v59, %v15346_v1 }
 0xe16   :  { %v5211_v39 = vrot.slane %v5109_v6, %v15348_v46 }
 0xe18   :  { %v5118_v13 = vpop.permute.xlu0 %5117 }
 0xe19   :  { %v5112_v54 = vpop.permute.xlu1 %5111  ;;  %v5225_v31 = vrot.slane %v5118_v13, %v15347_v24 }
 0xe1a   :  { %v5216_v35 = vrot.slane %v5112_v54, %v15345_v27 }
 0xe1c   :  { %v5127_v7 = vpop.permute.xlu0 %5126  ;;  %v5221_v48 = vsel %vm1818_vm12, %v5220_v11, %v5216_v35  ;;  %v5212_v11 = vsel %vm1832_vm14, %v5211_v39, %v5207_v18 }
 0xe1d   :  { %v5124_v14 = vpop.permute.xlu1 %5123  ;;  %v5239_v21 = vrot.slane %v5127_v7, %v15346_v1  ;;  %v5226_v35 = vsel %vm1825_vm13, %v5225_v31, %v5221_v48 }
 0xe1e   :  { %v5235_v54 = vrot.slane %v5124_v14, %v15345_v27 }
 0xe20   :  { %v5121_v44 = vpop.permute.xlu0 %5120  ;;  %v5240_v7 = vsel %vm1818_vm12, %v5239_v21, %v5235_v54 }
 0xe21   :  { %v5130_v32 = vpop.permute.xlu1 %5129  ;;  %v5230_v62 = vrot.slane %v5121_v44, %v15348_v46 }
 0xe22   :  { %v5244_v59 = vrot.slane %v5130_v32, %v15347_v24 }
 0xe23   :  { %v5231_v16 = vsel %vm1832_vm14, %v5230_v62, %v5226_v35 }
 0xe24   :  { %v5136_v34 = vpop.permute.xlu0 %5135  ;;  %v5245_v48 = vsel %vm1825_vm13, %v5244_v59, %v5240_v7 }
 0xe25   :  { %v5139_v28 = vpop.permute.xlu1 %5138  ;;  %v5254_v6 = vrot.slane %v5136_v34, %v15345_v27 }
 0xe26   :  { %v5258_v13 = vrot.slane %v5139_v28, %v15346_v1 }
 0xe28   :  { %v5133_v57 = vpop.permute.xlu0 %5132  ;;  %v5259_v21 = vsel %vm1818_vm12, %v5258_v13, %v5254_v6 }
 0xe29   :  { %v5142_v25 = vpop.permute.xlu1 %5141  ;;  %v5249_v44 = vrot.slane %v5133_v57, %v15348_v46 }
 0xe2a   :  { %v5263_v15 = vrot.slane %v5142_v25, %v15347_v24 }
 0xe2c   :  { %v5148_v40 = vpop.permute.xlu0 %5147 }
 0xe2d   :  { %v5151_v55 = vpop.permute.xlu1 %5150  ;;  %v5273_v41 = vrot.slane %v5148_v40, %v15345_v27 }
 0xe2e   :  { %v5277_v14 = vrot.slane %v5151_v55, %v15346_v1 }
 0xe30   :  { %v5145_v47 = vpop.permute.xlu0 %5144  ;;  %v5278_v54 = vsel %vm1818_vm12, %v5277_v14, %v5273_v41 }
 0xe31   :  { %v5154_v30 = vpop.permute.xlu1 %5153  ;;  %v5268_v32 = vrot.slane %v5145_v47, %v15348_v46 }
 0xe32   :  { %v5282_v34 = vrot.slane %v5154_v30, %v15347_v24  ;;  %v5264_v30 = vsel %vm1825_vm13, %v5263_v15, %v5259_v21 }
 0xe34   :  { %v5160_v45 = vpop.permute.xlu0 %5159 }
 0xe35   :  { %v5163_v2 = vpop.permute.xlu1 %5162  ;;  %v5292_v31 = vrot.slane %v5160_v45, %v15345_v27  ;;  %v5346_v45 = vsel %vm763_vm4, %v5231_v16, %v5212_v11 }
 0xe36   :  { %v5296_v25 = vrot.slane %v5163_v2, %v15346_v1  ;;  %v5250_v2 = vsel %vm1832_vm14, %v5249_v44, %v5245_v48 }
 0xe37   :  { %v5347_v7 = vsel %vm765_vm5, %v5250_v2, %v5346_v45 }
 0xe38   :  { %v5157_v63 = vpop.permute.xlu0 %5156 }
 0xe39   :  { %v5166_v51 = vpop.permute.xlu1 %5165  ;;  %v5287_v40 = vrot.slane %v5157_v63, %v15348_v46  ;;  %v5269_v63 = vsel %vm1832_vm14, %v5268_v32, %v5264_v30 }
 0xe3a   :  { %v5301_v55 = vrot.slane %v5166_v51, %v15347_v24  ;;  %v5283_v51 = vsel %vm1825_vm13, %v5282_v34, %v5278_v54  ;;  %v5348_v14 = vsel %vm767_vm6, %v5269_v63, %v5347_v7  ;;  %v15350_v54 = vld [vmem:[#allocation11_spill] sm:$0xff] }
 0xe3c   :  { %v5172_v58 = vpop.permute.xlu0 %5171 }
 0xe3d   :  { %v5175_v49 = vpop.permute.xlu1 %5174  ;;  %v5311_v57 = vrot.slane %v5172_v58, %v15345_v27 }
 0xe3e   :  { %v5315_v47 = vrot.slane %v5175_v49, %v15346_v1  ;;  %v5297_v49 = vsel %vm1818_vm12, %v5296_v25, %v5292_v31 }
 0xe3f   :  { %v5302_v13 = vsel %vm1825_vm13, %v5301_v55, %v5297_v49  ;;  %v10751_v55 = vld [vmem:[%s14874_s8] sm:$0xff]  }
 0xe40   :  { %v5169_v52 = vpop.permute.xlu0 %5168  ;;  %v5316_v11 = vsel %vm1818_vm12, %v5315_v47, %v5311_v57  ;;  %v15349_v57 = vmov 0.0   ;;  %v10752_v47 = vld [vmem:[%s14874_s8 + $0x8] sm:$0xff]  }
 0xe41   :  { %v5178_v29 = vpop.permute.xlu1 %5177  ;;  %v5306_v23 = vrot.slane %v5169_v52, %v15348_v46 }
 0xe42   :  { %v5320_v62 = vrot.slane %v5178_v29, %v15347_v24  ;;  %v5288_v29 = vsel %vm1832_vm14, %v5287_v40, %v5283_v51 }
 0xe43   :  { %v5307_v15 = vsel %vm1832_vm14, %v5306_v23, %v5302_v13  ;;  %v5349_v32 = vsel %vm769_vm7, %v5288_v29, %v5348_v14  ;;  %v13181_v29 = vld [vmem:[#allocation2 + $0x4] sm:$0x1] }
 0xe44   :  { %v5184_v28 = vpop.permute.xlu0 %5183  ;;  %v5321_v41 = vsel %vm1825_vm13, %v5320_v62, %v5316_v11 }
 0xe45   :  { %v5187_v39 = vpop.permute.xlu1 %5186  ;;  %v5330_v59 = vrot.slane %v5184_v28, %v15345_v27 }
 0xe46   :  { %v5334_v6 = vrot.slane %v5187_v39, %v15346_v1  ;;  %v5350_v39 = vsel %vm771_vm8, %v5307_v15, %v5349_v32  ;;  %v13194_v32 = vld [vmem:[#allocation2 + $0x1c] sm:$0x1] }
 0xe48   :  { %v5181_v18 = vpop.permute.xlu0 %5180  ;;  %v5335_v34 = vsel %vm1818_vm12, %v5334_v6, %v5330_v59 }
 0xe49   :  { %v5190_v58 = vpop.permute.xlu1 %5189  ;;  %v5325_v52 = vrot.slane %v5181_v18, %v15348_v46 }
 0xe4a   :  { %v5339_v35 = vrot.slane %v5190_v58, %v15347_v24 }
 0xe4b   :  { %v5326_v16 = vsel %vm1832_vm14, %v5325_v52, %v5321_v41  ;;  %v13190_v41 = vld [vmem:[#allocation2 + $0x14] sm:$0x1] }
 0xe4c   :  { %v5193_v44 = vpop.permute.xlu0 %5192  ;;  %v5340_v48 = vsel %vm1825_vm13, %v5339_v35, %v5335_v34  ;;  %v5351_v21 = vsel %vm773_vm9, %v5326_v16, %v5350_v39  ;;  %v13186_v35 = vld [vmem:[#allocation2 + $0xc] sm:$0x1]  ;;  %v13197_v39 = vld [vmem:[#allocation2 + $0x24] sm:$0x1] }
 0xe4d   :  { %v5344_v28 = vrot.slane %v5193_v44, %v15348_v46 }
 0xe4f   :  { %v5345_v31 = vsel %vm1832_vm14, %v5344_v28, %v5340_v48 }
 0xe50   :  { %v5352_v25 = vsel %vm775_vm10, %v5345_v31, %v5351_v21 }
 0xe51   :  { %v5353_v40 = vpack.c.b16 %v5352_v25, %v5352_v25 }
 0xe53   :  { %10172 = vmatmul.mubr.msk.bf16.vlgmr.msra.gmra.mrb[16].mxu1 %vm445_vm0, %v5353_v40 }
 0xe54   :  { %10184 = vmatpush3.bf16.msra.mxu1 %v10751_v55  ;;  %10187 = vmatprep.mubr.msk.bf16.mxu1 %vm10787_vm1, %v15349_v57  ;;  %v13202_v55 = vld [vmem:[#allocation2 + $0x2c] sm:$0x1] }
 0xe55   :  { %10185 = vmatprep.subr.bf16.mxu1 %v15349_v57 }
 0xe58   :  { %10186 = vmatpush3.bf16.msra.mxu1 %v10752_v47 }
 0xe59   :  { %10199 = vmatprep.subr.bf16.mxu1 %v15349_v57 }
 0xf26   :  { %v13146_v30 = vpop.f32.mrb[16].mxu1 }
 0xf27   :  { %v5469_v23 = vadd.f32 %v13146_v30, %v15350_v54  ;;  %v10173_v62 = vpop.f32.mrb[17].mxu1  ;;  %v5398_v52 = vrot.slane %v13146_v30, 1  ;;  %v5413_v13 = vadd.f32 %v13146_v30, %v13181_v29  ;;  %v5399_v11 = vrot.slane %v13146_v30, 2 }
 0xf28   :  { %v5394_v45 = vpop.f32.mrb[18].mxu1  ;;  %v5400_v15 = vrot.slane %v13146_v30, 3  ;;  %v5401_v44 = vrot.slane %v13146_v30, 4  ;;  %v5402_v48 = vrot.slane %v13146_v30, 5  ;;  %v5403_v25 = vrot.slane %v13146_v30, 6 }
 0xf29   :  { %5478 = vrot.lane.b32.xlu1 %v5469_v23, %s10784_s25  ;;  %v10174_v2 = vpop.f32.mrb[19].mxu1  ;;  %v5471_v63 = vrot.slane %v5469_v23, 1  ;;  %v5472_v51 = vrot.slane %v5469_v23, 2  ;;  %v5473_v18 = vrot.slane %v5469_v23, 3  ;;  %v5474_v58 = vrot.slane %v5469_v23, 4 }
 0xf2a   :  { %v5475_v49 = vrot.slane %v5469_v23, 5  ;;  %v5476_v59 = vrot.slane %v5469_v23, 6  ;;  %v5477_v6 = vrot.slane %v5469_v23, 7  ;;  %v5414_v7 = vadd.f32 %v5398_v52, %v13186_v35  ;;  %v13205_v23 = vld [vmem:[#allocation2 + $0x34] sm:$0x1] }
 0xf2b   :  { %5480 = vrot.lane.b32.xlu0 %v5471_v63, %s10784_s25  ;;  %v10003_v14 = vmul.f32 -1.442695, %v5413_v13  ;;  %v5415_v16 = vadd.f32 %v5399_v11, %v13190_v41  ;;  %v5416_v28 = vadd.f32 %v5400_v15, %v13194_v32  ;;  %v5417_v31 = vadd.f32 %v5401_v44, %v13197_v39  ;;  %v13209_v63 = vpop.permute.xlu1 %5594 }
 0xf2c   :  { %v10004_v34 = vmul.f32 -1.442695, %v5414_v7  ;;  %v5418_v47 = vadd.f32 %v5402_v48, %v13202_v55  ;;  %v5419_v45 = vadd.f32 %v5403_v25, %v13205_v23  ;;  %v5404_v2 = vrot.slane %v13146_v30, 7 }
 0xf2d   :  { %5482 = vrot.lane.b32.xlu1 %v5472_v51, %s10784_s25  ;;  %10553 = vpow2.f32 %v10003_v14  ;;  %v10005_v21 = vmul.f32 -1.442695, %v5415_v16  ;;  %v10006_v40 = vmul.f32 -1.442695, %v5416_v28  ;;  %v10007_v62 = vmul.f32 -1.442695, %v5417_v31  ;;  %v13211_v51 = vpop.permute.xlu0 %5591 }
 0xf2e   :  { %10555 = vpow2.f32 %v10004_v34 }
 0xf2f   :  { %5484 = vrot.lane.b32.xlu0 %v5473_v18, %s10784_s25  ;;  %10557 = vpow2.f32 %v10005_v21  ;;  %v10008_v18 = vmul.f32 -1.442695, %v5418_v47  ;;  %v13216_v52 = vpop.permute.xlu1 %5606 }
 0xf30   :  { %10559 = vpow2.f32 %v10006_v40 }
 0xf31   :  { %5486 = vrot.lane.b32.xlu1 %v5474_v58, %s10784_s25  ;;  %v13213_v58 = vld [vmem:[#allocation2 + $0x3c] sm:$0x1]  ;;  %10561 = vpow2.f32 %v10007_v62  ;;  %v13218_v30 = vpop.permute.xlu0 %5603 }
 0xf32   :  { %10563 = vpow2.f32 %v10008_v18 }
 0xf33   :  { %5488 = vrot.lane.b32.xlu0 %v5475_v49, %s10784_s25  ;;  %v10009_v49 = vmul.f32 -1.442695, %v5419_v45  ;;  %v13220_v44 = vpop.permute.xlu1 %5597 }
 0xf35   :  { %5490 = vrot.lane.b32.xlu1 %v5476_v59, %s10784_s25  ;;  %v5420_v59 = vadd.f32 %v5404_v2, %v13213_v58  ;;  %10565 = vpow2.f32 %v10009_v49  ;;  %v13222_v48 = vpop.permute.xlu0 %5609 }
 0xf37   :  { %5492 = vrot.lane.b32.xlu0 %v5477_v6, %s10784_s25  ;;  %v10554_v6 = vpop.eup %10553  ;;  %v10010_v11 = vmul.f32 -1.442695, %v5420_v59  ;;  %v13224_v47 = vpop.permute.xlu1 %5615 }
 0xf38   :  { %v10556_v13 = vpop.eup %10555  ;;  %v5445_v7 = vadd.f32 1.0, %v10554_v6 }
 0xf39   :  { %5612 = vperm.xlu1 %10228, %v12951_v61   ;;  %v10558_v15 = vpop.eup %10557  ;;  %v5446_v14 = vadd.f32 1.0, %v10556_v13  ;;  %10567 = vpow2.f32 %v10010_v11  ;;  %v13226_v45 = vpop.permute.xlu0 %5618 }
 0xf3a   :  { %v10560_v16 = vpop.eup %10559  ;;  %10569 = vrcp.f32 %v5445_v7  ;;  %v5447_v34 = vadd.f32 1.0, %v10558_v15 }
 0xf3b   :  { %5600 = vperm.xlu0 %10227, %v12933_v42   ;;  %v10562_v28 = vpop.eup %10561  ;;  %10571 = vrcp.f32 %v5446_v14  ;;  %v5448_v21 = vadd.f32 1.0, %v10560_v16 }
 0xf3c   :  { %v10564_v31 = vpop.eup %10563  ;;  %10573 = vrcp.f32 %v5447_v34  ;;  %v5449_v25 = vadd.f32 1.0, %v10562_v28 }
 0xf3d   :  { %5627 = vperm.xlu1 %10228, %v12980_v38   ;;  %10575 = vrcp.f32 %v5448_v21  ;;  %v5450_v62 = vadd.f32 1.0, %v10564_v31 }
 0xf3e   :  { %10577 = vrcp.f32 %v5449_v25 }
 0xf3f   :  { %5621 = vperm.xlu0 %10227, %v12972_v26   ;;  %v10566_v40 = vpop.eup %10565  ;;  %10579 = vrcp.f32 %v5450_v62 }
 0xf40   :  { %v5451_v2 = vadd.f32 1.0, %v10566_v40 }
 0xf41   :  { %5633 = vperm.xlu1 %10228, %v12990_v17  }
 0xf42   :  { %10581 = vrcp.f32 %v5451_v2 }
 0xf43   :  { %5630 = vperm.xlu0 %10227, %v12977_v9   ;;  %v10568_v18 = vpop.eup %10567 }
 0xf44   :  { %v10570_v49 = vpop.eup %10569  ;;  %v5452_v7 = vadd.f32 1.0, %v10568_v18 }
 0xf45   :  { %5642 = vperm.xlu1 %10228, %v12995_v5   ;;  %v10572_v13 = vpop.eup %10571 }
 0xf46   :  { %v10574_v14 = vpop.eup %10573  ;;  %10583 = vrcp.f32 %v5452_v7 }
 0xf47   :  { %5624 = vperm.xlu0 %10227, %v12969_v22   ;;  %v10576_v28 = vpop.eup %10575 }
 0xf48   :  { %v10578_v25 = vpop.eup %10577 }
 0xf49   :  { %5636 = vperm.xlu1 %10228, %v12987_v0   ;;  %v10580_v18 = vpop.eup %10579 }
 0xf4b   :  { %5639 = vperm.xlu0 %10227, %v12998_v4  }
 0xf4d   :  { %5651 = vperm.xlu1 %10228, %v13016_v36  }
 0xf4f   :  { %5645 = vperm.xlu0 %10227, %v13008_v43  }
 0xf51   :  { %5657 = vperm.xlu1 %10228, %v13026_v53  }
 0xf53   :  { %5654 = vperm.xlu0 %10227, %v13013_v60  }
 0xf55   :  { %5666 = vperm.xlu1 %10228, %v13031_v20   ;;  %v15353_v20 = vld [vmem:[#allocation7_spill] sm:$0xff] }
 0xf56   :  { %v5693_v53 = vrot.slane %v13209_v63, %v15353_v20  ;;  %v5712_v63 = vrot.slane %v13216_v52, %v15353_v20  ;;  %v5731_v52 = vrot.slane %v13226_v45, %v15353_v20 }
 0xf57   :  { %5648 = vperm.xlu0 %10227, %v13005_v19  }
 0xf59   :  { %5669 = vperm.xlu1 %10228, %v13044_v56   ;;  %v15352_v56 = vld [vmem:[#allocation50_spill] sm:$0xff] }
 0xf5b   :  { %5663 = vperm.xlu0 %10227, %v13034_v8  }
 0xf5d   :  { %5678 = vperm.xlu1 %10228, %v13049_v33  }
 0xf5f   :  { %5660 = vperm.xlu0 %10227, %v13023_v37   ;;  %v15354_v37 = vld [vmem:[#allocation51_spill] sm:$0xff] }
 0xf63   :  { %5675 = vperm.xlu0 %10227, %v13052_v50   ;;  %v15351_v50 = vld [vmem:[#allocation9_spill] sm:$0xff] }
 0xf64   :  { %v5689_v33 = vrot.slane %v13211_v51, %v15351_v50 }
 0xf66   :  { %v5694_v60 = vsel %vm2317_vm15, %v5693_v53, %v5689_v33 }
 0xf67   :  { %5672 = vperm.xlu0 %10227, %v13041_v12   ;;  %v5698_v12 = vrot.slane %v13220_v44, %v15352_v56 }
 0xf9b   :  { %v5479_v59 = vpop.permute.xlu1 %5478 }
 0xf9c   :  { %v5502_v6 = vmul.f32 %v10570_v49, %v5479_v59  ;;  %v10582_v49 = vpop.eup %10581 }
 0xf9d   :  { %v5481_v11 = vpop.permute.xlu0 %5480  ;;  %v10584_v7 = vpop.eup %10583 }
 0xf9e   :  { %v5503_v15 = vmul.f32 %v10572_v13, %v5481_v11  ;;  %5518 = vrot.lane.b32.xlu1 %v5502_v6, %s10782_s30 }
 0xf9f   :  { %v5483_v16 = vpop.permute.xlu1 %5482 }
 0xfa0   :  { %v5504_v34 = vmul.f32 %v10574_v14, %v5483_v16  ;;  %5520 = vrot.lane.b32.xlu0 %v5503_v15, %s10782_s30 }
 0xfa1   :  { %v5485_v21 = vpop.permute.xlu0 %5484 }
 0xfa2   :  { %v5505_v31 = vmul.f32 %v10576_v28, %v5485_v21  ;;  %5522 = vrot.lane.b32.xlu1 %v5504_v34, %s10782_s30 }
 0xfa3   :  { %v5487_v40 = vpop.permute.xlu1 %5486 }
 0xfa4   :  { %v5506_v62 = vmul.f32 %v10578_v25, %v5487_v40  ;;  %5524 = vrot.lane.b32.xlu0 %v5505_v31, %s10782_s30 }
 0xfa5   :  { %v5489_v2 = vpop.permute.xlu0 %5488 }
 0xfa6   :  { %5526 = vrot.lane.b32.xlu1 %v5506_v62, %s10782_s30  ;;  %v5507_v6 = vmul.f32 %v10580_v18, %v5489_v2 }
 0xfa7   :  { %v5491_v59 = vpop.permute.xlu1 %5490 }
 0xfa8   :  { %v5508_v13 = vmul.f32 %v10582_v49, %v5491_v59 }
 0xfa9   :  { %v5493_v11 = vpop.permute.xlu0 %5492 }
 0xfaa   :  { %5528 = vrot.lane.b32.xlu1 %v5507_v6, %s10782_s30  ;;  %5530 = vrot.lane.b32.xlu0 %v5508_v13, %s10782_s30  ;;  %v5509_v15 = vmul.f32 %v10584_v7, %v5493_v11 }
 0xfae   :  { %5532 = vrot.lane.b32.xlu1 %v5509_v15, %s10782_s30  ;;  %5684 = vperm.xlu0 %10227, %v13057_v10  }
 0xfb2   :  { %5681 = vperm.xlu1 %10228, %v13060_v3  }
 0xfb8   :  { %v5613_v34 = vpop.permute.xlu1 %5612 }
 0xfb9   :  { %v5722_v44 = vrot.slane %v5613_v34, %v15354_v37  ;;  %v5727_v34 = vrot.slane %v13224_v47, %v15351_v50 }
 0xfba   :  { %v5601_v14 = vpop.permute.xlu0 %5600 }
 0xfbb   :  { %v5703_v36 = vrot.slane %v5601_v14, %v15354_v37 }
 0xfbc   :  { %v13242_v21 = vpop.permute.xlu1 %5627 }
 0xfbe   :  { %v13238_v16 = vpop.permute.xlu0 %5621 }
 0xfbf   :  { %v5736_v14 = vrot.slane %v13238_v16, %v15352_v56 }
 0xfc0   :  { %v13246_v25 = vpop.permute.xlu1 %5633 }
 0xfc2   :  { %v13240_v28 = vpop.permute.xlu0 %5630 }
 0xfc3   :  { %v5750_v16 = vrot.slane %v13240_v28, %v15353_v20 }
 0xfc4   :  { %v13250_v62 = vpop.permute.xlu1 %5642 }
 0xfc6   :  { %v13244_v31 = vpop.permute.xlu0 %5624 }
 0xfc8   :  { %v13254_v18 = vpop.permute.xlu1 %5636 }
 0xfca   :  { %v13248_v40 = vpop.permute.xlu0 %5639 }
 0xfcc   :  { %v13258_v59 = vpop.permute.xlu1 %5651 }
 0xfce   :  { %v13252_v2 = vpop.permute.xlu0 %5645 }
 0xfd0   :  { %v13262_v13 = vpop.permute.xlu1 %5657 }
 0xfd2   :  { %v13256_v49 = vpop.permute.xlu0 %5654 }
 0xfd4   :  { %v13266_v7 = vpop.permute.xlu1 %5666 }
 0xfd6   :  { %v13260_v6 = vpop.permute.xlu0 %5648 }
 0xfd8   :  { %v13270_v54 = vpop.permute.xlu1 %5669 }
 0xfda   :  { %v13264_v11 = vpop.permute.xlu0 %5663 }
 0xfdc   :  { %v13274_v46 = vpop.permute.xlu1 %5678 }
 0xfde   :  { %v13268_v15 = vpop.permute.xlu0 %5660 }
 0xfe2   :  { %v13272_v57 = vpop.permute.xlu0 %5675 }
 0xfe6   :  { %v13276_v24 = vpop.permute.xlu0 %5672 }
0x1010   :  { %v5519_v1 = vpop.permute.xlu1 %5518 }
0x1011   :  { %v5542_v27 = vadd.f32 %v5519_v1, %v13181_v29  ;;  %v5708_v29 = vrot.slane %v13218_v30, %v15351_v50 }
0x1012   :  { %v5521_v3 = vpop.permute.xlu0 %5520 }
0x1013   :  { %10585 = vtanh.f32 %v5542_v27  ;;  %v5543_v10 = vadd.f32 %v5521_v3, %v13186_v35  ;;  %v5699_v27 = vsel %vm2324_vm11, %v5698_v12, %v5694_v60  ;;  %v5717_v35 = vrot.slane %v13222_v48, %v15352_v56 }
0x1014   :  { %v5523_v8 = vpop.permute.xlu1 %5522  ;;  %v5713_v12 = vsel %vm2317_vm15, %v5712_v63, %v5708_v29  ;;  %v5732_v29 = vsel %vm2317_vm15, %v5731_v52, %v5727_v34  ;;  %v5760_v63 = vrot.slane %v13254_v18, %v15354_v37  ;;  %v5765_v18 = vrot.slane %v13248_v40, %v15351_v50 }
0x1015   :  { %10587 = vtanh.f32 %v5543_v10  ;;  %v5544_v1 = vadd.f32 %v5523_v8, %v13190_v41  ;;  %v5704_v10 = vsel %vm2331_vm3, %v5703_v36, %v5699_v27  ;;  %v15355_v8 = vld [vmem:[#allocation8_spill] sm:$0xff]  ;;  %v5718_v41 = vsel %vm2324_vm11, %v5717_v35, %v5713_v12 }
0x1016   :  { %v5525_v53 = vpop.permute.xlu0 %5524  ;;  %v5723_v36 = vsel %vm2331_vm3, %v5722_v44, %v5718_v41  ;;  %v5737_v45 = vsel %vm2324_vm11, %v5736_v14, %v5732_v29  ;;  %v5755_v44 = vrot.slane %v13246_v25, %v15352_v56  ;;  %v5774_v41 = vrot.slane %v13252_v2, %v15352_v56 }
0x1017   :  { %10589 = vtanh.f32 %v5544_v1  ;;  %v5545_v30 = vadd.f32 %v5525_v53, %v13194_v32  ;;  %v5741_v1 = vrot.slane %v13244_v31, %v15354_v37  ;;  %v5746_v31 = vrot.slane %v13242_v21, %v15351_v50 }
0x1018   :  { %v5527_v27 = vpop.permute.xlu1 %5526  ;;  %v5769_v25 = vrot.slane %v13250_v62, %v15353_v20  ;;  %v5788_v2 = vrot.slane %v13256_v49, %v15353_v20 }
0x1019   :  { %10591 = vtanh.f32 %v5545_v30  ;;  %v5546_v47 = vadd.f32 %v5527_v27, %v13197_v39  ;;  %v5798_v27 = vrot.slane %v13268_v15, %v15354_v37  ;;  %v5807_v15 = vrot.slane %v13266_v7, %v15353_v20 }
0x101a   :  { %v5770_v52 = vsel %vm2317_vm15, %v5769_v25, %v5765_v18  ;;  %v15356_v18 = vld [vmem:[#allocation16_spill] sm:$0xff] }
0x101b   :  { %10593 = vtanh.f32 %v5546_v47  ;;  %v5775_v40 = vsel %vm2324_vm11, %v5774_v41, %v5770_v52  ;;  %v5817_v47 = vrot.slane %v13276_v24, %v15354_v37  ;;  %v5826_v24 = vrot.slane %v13274_v46, %v15353_v20  ;;  %v15357_v41 = vld [vmem:[#allocation19_spill] sm:$0xff]  ;;  %v15358_v52 = vld [vmem:[#allocation42_spill] sm:$0xff] }
0x101c   :  { %v5529_v28 = vpop.permute.xlu1 %5528  ;;  %v5531_v30 = vpop.permute.xlu0 %5530  ;;  %v5857_v25 = vrot.slane %v15357_v41, %v15356_v18 }
0x101d   :  { %v10586_v3 = vpop.eup %10585  ;;  %v5548_v62 = vadd.f32 %v5531_v30, %v13205_v23 }
0x101e   :  { %v5846_v51 = vsub.f32 %v10586_v3, %v5704_v10  ;;  %v5742_v10 = vsel %vm2331_vm3, %v5741_v1, %v5737_v45 }
0x101f   :  { %v10588_v60 = vpop.eup %10587 }
0x1020   :  { %v5897_v33 = vrot.slane %v5846_v51, %v15355_v8  ;;  %v5847_v48 = vsub.f32 %v10588_v60, %v5723_v36  ;;  %v5751_v51 = vsel %vm2317_vm15, %v5750_v16, %v5746_v31  ;;  %v5547_v60 = vadd.f32 %v5529_v28, %v13202_v55  ;;  %v5533_v29 = vpop.permute.xlu1 %5532 }
0x1021   :  { %v10590_v32 = vpop.eup %10589  ;;  %v5756_v39 = vsel %vm2324_vm11, %v5755_v44, %v5751_v51  ;;  %v5779_v36 = vrot.slane %v13260_v6, %v15354_v37  ;;  %v5784_v6 = vrot.slane %v13258_v59, %v15351_v50  ;;  %v5803_v59 = vrot.slane %v13264_v11, %v15351_v50 }
0x1022   :  { %5904 = vbcast.lane.b32.xlu0 %v5897_v33, 296  ;;  %5900 = vbcast.lane.b32.xlu1 %v5897_v33, 288  ;;  %v5917_v3 = vrot.slane %v5847_v48, %v15355_v8  ;;  %v5848_v35 = vsub.f32 %v10590_v32, %v5742_v10  ;;  %v5761_v21 = vsel %vm2331_vm3, %v5760_v63, %v5756_v39  ;;  %10595 = vtanh.f32 %v5547_v60 }
0x1023   :  { %v5780_v14 = vsel %vm2331_vm3, %v5779_v36, %v5775_v40  ;;  %v5789_v1 = vsel %vm2317_vm15, %v5788_v2, %v5784_v6  ;;  %10597 = vtanh.f32 %v5548_v62  ;;  %v5549_v10 = vadd.f32 %v5533_v29, %v13213_v58  ;;  %v15360_v2 = vld [vmem:[#allocation45_spill] sm:$0xff] }
0x1024   :  { %v5937_v53 = vrot.slane %v5848_v35, %v15355_v8  ;;  %v5812_v31 = vrot.slane %v13270_v54, %v15352_v56  ;;  %v5822_v63 = vrot.slane %v13272_v57, %v15351_v50 }
0x1025   :  { %10599 = vtanh.f32 %v5549_v10 }
0x1026   :  { %5912 = vbcast.lane.b32.xlu0 %v5897_v33, 312  ;;  %5908 = vbcast.lane.b32.xlu1 %v5897_v33, 304  ;;  %v10592_v33 = vpop.eup %10591 }
0x1027   :  { %v5849_v12 = vsub.f32 %v10592_v33, %v5761_v21  ;;  %v10594_v55 = vpop.eup %10593 }
0x1028   :  { %v5850_v34 = vsub.f32 %v10594_v55, %v5780_v14 }
0x1029   :  { %v5957_v48 = vrot.slane %v5849_v12, %v15355_v8 }
0x102a   :  { %5924 = vbcast.lane.b32.xlu0 %v5917_v3, 296  ;;  %5920 = vbcast.lane.b32.xlu1 %v5917_v3, 288  ;;  %v5977_v49 = vrot.slane %v5850_v34, %v15355_v8 }
0x102c   :  { %v10596_v32 = vpop.eup %10595 }
0x102d   :  { %v10598_v51 = vpop.eup %10597  ;;  %v5685_v28 = vpop.permute.xlu0 %5684 }
0x102e   :  { %5932 = vbcast.lane.b32.xlu0 %v5917_v3, 312  ;;  %5928 = vbcast.lane.b32.xlu1 %v5917_v3, 304  ;;  %v5793_v3 = vrot.slane %v13262_v13, %v15352_v56  ;;  %v5808_v13 = vsel %vm2317_vm15, %v5807_v15, %v5803_v59  ;;  %v5836_v57 = vrot.slane %v5685_v28, %v15354_v37  ;;  %v15369_v28 = vld [vmem:[#allocation21_spill] sm:$0xff] }
0x102f   :  { %v5813_v58 = vsel %vm2324_vm11, %v5812_v31, %v5808_v13  ;;  %v10600_v60 = vpop.eup %10599 }
0x1030   :  { %v5794_v23 = vsel %vm2324_vm11, %v5793_v3, %v5789_v1  ;;  %v5818_v44 = vsel %vm2331_vm3, %v5817_v47, %v5813_v58  ;;  %v15362_v3 = vld [vmem:[#allocation20_spill] sm:$0xff] }
0x1031   :  { %v5799_v45 = vsel %vm2331_vm3, %v5798_v27, %v5794_v23  ;;  %v5682_v35 = vpop.permute.xlu1 %5681  ;;  %v5852_v54 = vsub.f32 %v10598_v51, %v5818_v44  ;;  %v15363_v23 = vld [vmem:[#allocation14_spill] sm:$0xff] }
0x1032   :  { %5944 = vbcast.lane.b32.xlu0 %v5937_v53, 296  ;;  %5940 = vbcast.lane.b32.xlu1 %v5937_v53, 288  ;;  %v5851_v16 = vsub.f32 %v10596_v32, %v5799_v45  ;;  %v5831_v7 = vrot.slane %v5682_v35, %v15352_v56  ;;  %v15365_v35 = vld [vmem:[#allocation46_spill] sm:$0xff] }
0x1033   :  { %v6017_v39 = vrot.slane %v5852_v54, %v15355_v8  ;;  %v5865_v54 = vrot.slane %v15369_v28, %v15356_v18 }
0x1034   :  { %v5997_v11 = vrot.slane %v5851_v16, %v15355_v8 }
0x1036   :  { %5952 = vbcast.lane.b32.xlu0 %v5937_v53, 312  ;;  %5948 = vbcast.lane.b32.xlu1 %v5937_v53, 304  ;;  %v5827_v53 = vsel %vm2317_vm15, %v5826_v24, %v5822_v63 }
0x1037   :  { %v5832_v33 = vsel %vm2324_vm11, %v5831_v7, %v5827_v53 }
0x1038   :  { %v5837_v21 = vsel %vm2331_vm3, %v5836_v57, %v5832_v33  ;;  %v15370_v33 = vld [vmem:[#allocation12_spill] sm:$0xff] }
0x1039   :  { %v5853_v46 = vsub.f32 %v10600_v60, %v5837_v21 }
0x103a   :  { %5964 = vbcast.lane.b32.xlu0 %v5957_v48, 296  ;;  %5960 = vbcast.lane.b32.xlu1 %v5957_v48, 288 }
0x103b   :  { %v6037_v12 = vrot.slane %v5853_v46, %v15355_v8 }
0x103e   :  { %5972 = vbcast.lane.b32.xlu0 %v5957_v48, 312  ;;  %5968 = vbcast.lane.b32.xlu1 %v5957_v48, 304 }
0x1042   :  { %5984 = vbcast.lane.b32.xlu0 %v5977_v49, 296  ;;  %5980 = vbcast.lane.b32.xlu1 %v5977_v49, 288 }
0x1046   :  { %5992 = vbcast.lane.b32.xlu0 %v5977_v49, 312  ;;  %5988 = vbcast.lane.b32.xlu1 %v5977_v49, 304  ;;  %v5861_v49 = vrot.slane %v15362_v3, %v15356_v18 }
0x104a   :  { %6004 = vbcast.lane.b32.xlu0 %v5997_v11, 296  ;;  %6000 = vbcast.lane.b32.xlu1 %v5997_v11, 288 }
0x104e   :  { %6012 = vbcast.lane.b32.xlu0 %v5997_v11, 312  ;;  %6008 = vbcast.lane.b32.xlu1 %v5997_v11, 304  ;;  %v15367_v11 = vld [vmem:[#allocation13_spill] sm:$0xff] }
0x1052   :  { %6024 = vbcast.lane.b32.xlu0 %v6017_v39, 296  ;;  %6020 = vbcast.lane.b32.xlu1 %v6017_v39, 288 }
0x1056   :  { %6032 = vbcast.lane.b32.xlu0 %v6017_v39, 312  ;;  %6028 = vbcast.lane.b32.xlu1 %v6017_v39, 304 }
0x105a   :  { %6044 = vbcast.lane.b32.xlu0 %v6037_v12, 296  ;;  %6040 = vbcast.lane.b32.xlu1 %v6037_v12, 288 }
0x105e   :  { %6052 = vbcast.lane.b32.xlu0 %v6037_v12, 312  ;;  %6048 = vbcast.lane.b32.xlu1 %v6037_v12, 304 }
0x1094   :  { %v5905_v36 = vpop.permute.xlu0 %5904  ;;  %v5901_v30 = vpop.permute.xlu1 %5900 }
0x1095   :  { %v6087_v48 = vmul.f32 %v5905_v36, %v5857_v25  ;;  %v6086_v55 = vmul.f32 %v5901_v30, %v5857_v25  ;;  %v15372_v30 = vld [vmem:[#allocation23_spill] sm:$0xff] }
0x1097   :  { %v13381_v40 = vadd.f32 %v6087_v48, %v15358_v52  ;;  %v13384_v14 = vadd.f32 %v6086_v55, %v15360_v2  ;;  %v15374_v55 = vld [vmem:[#allocation22_spill] sm:$0xff] }
0x1098   :  { %v5913_v62 = vpop.permute.xlu0 %5912  ;;  %v5909_v34 = vpop.permute.xlu1 %5908 }
0x1099   :  { %15359 = vst [vmem:[#allocation44_spill] sm:$0xff] %v13381_v40  ;;  %15361 = vst [vmem:[#allocation43_spill] sm:$0xff] %v13384_v14  ;;  %v6158_v6 = vpack.c.bf16 %v13381_v40, %v13384_v14  ;;  %v6089_v1 = vmul.f32 %v5913_v62, %v5857_v25  ;;  %v6088_v27 = vmul.f32 %v5909_v34, %v5857_v25 }
0x109b   :  { %v13391_v32 = vadd.f32 %v6089_v1, %v12933_v42  ;;  %v13394_v29 = vadd.f32 %v6088_v27, %v15363_v23  ;;  %v6191_v59 = vunpack.c.h.b16 %v6158_v6  ;;  %v6190_v45 = vunpack.c.l.b16 %v6158_v6 }
0x109c   :  { %v5925_v16 = vpop.permute.xlu0 %5924  ;;  %v5921_v15 = vpop.permute.xlu1 %5920 }
0x109d   :  { %15364 = vst [vmem:[#allocation41_spill] sm:$0xff] %v13394_v29  ;;  %v6159_v10 = vpack.c.bf16 %v13391_v32, %v13394_v29  ;;  %v6091_v13 = vmul.f32 %v5925_v16, %v5861_v49  ;;  %v6090_v47 = vmul.f32 %v5921_v15, %v5861_v49  ;;  %6226 = vperm.xlu0 %10227, %v6191_v59  }
0x109e   :  { %6223 = vperm.xlu1 %10228, %v6190_v45  }
0x109f   :  { %v13399_v31 = vadd.f32 %v6091_v13, %v15365_v35  ;;  %v13402_v42 = vadd.f32 %v6090_v47, %v15367_v11  ;;  %v6192_v51 = vunpack.c.l.b16 %v6159_v10  ;;  %v6193_v39 = vunpack.c.h.b16 %v6159_v10 }
0x10a0   :  { %v5933_v63 = vpop.permute.xlu0 %5932  ;;  %v5929_v58 = vpop.permute.xlu1 %5928 }
0x10a1   :  { %15366 = vst [vmem:[#allocation16_spill] sm:$0xff] %v13399_v31  ;;  %15368 = vst [vmem:[#allocation42_spill] sm:$0xff] %v13402_v42  ;;  %v6160_v7 = vpack.c.bf16 %v13399_v31, %v13402_v42  ;;  %v6093_v24 = vmul.f32 %v5933_v63, %v5861_v49  ;;  %v6092_v44 = vmul.f32 %v5929_v58, %v5861_v49  ;;  %v15376_v49 = vld [vmem:[#allocation29_spill] sm:$0xff] }
0x10a2   :  { %6229 = vperm.xlu1 %10228, %v6192_v51   ;;  %v5869_v23 = vrot.slane %v15376_v49, %v15356_v18  ;;  %v15405_v49 = vld [vmem:[#allocation10_spill] sm:$0xff] }
0x10a3   :  { %v13409_v53 = vadd.f32 %v6093_v24, %v12951_v61  ;;  %v13412_v57 = vadd.f32 %v6092_v44, %v15370_v33  ;;  %v6195_v21 = vunpack.c.h.b16 %v6160_v7  ;;  %v6194_v52 = vunpack.c.l.b16 %v6160_v7  ;;  %v15377_v33 = vld [vmem:[#allocation31_spill] sm:$0xff] }
0x10a4   :  { %v5945_v60 = vpop.permute.xlu0 %5944  ;;  %v5941_v46 = vpop.permute.xlu1 %5940 }
0x10a5   :  { %15371 = vst [vmem:[#allocation45_spill] sm:$0xff] %v13412_v57  ;;  %v6161_v12 = vpack.c.bf16 %v13409_v53, %v13412_v57  ;;  %v6095_v25 = vmul.f32 %v5945_v60, %v5865_v54  ;;  %v6094_v36 = vmul.f32 %v5941_v46, %v5865_v54  ;;  %6238 = vperm.xlu0 %10227, %v6195_v21  }
0x10a6   :  { %6232 = vperm.xlu1 %10228, %v6193_v39   ;;  %v5873_v39 = vrot.slane %v15377_v33, %v15356_v18 }
0x10a7   :  { %v13417_v48 = vadd.f32 %v6095_v25, %v15372_v30  ;;  %v13420_v61 = vadd.f32 %v6094_v36, %v15374_v55  ;;  %v6196_v2 = vunpack.c.l.b16 %v6161_v12  ;;  %v6197_v63 = vunpack.c.h.b16 %v6161_v12 }
0x10a8   :  { %v5953_v62 = vpop.permute.xlu0 %5952  ;;  %v5949_v34 = vpop.permute.xlu1 %5948 }
0x10a9   :  { %15373 = vst [vmem:[#allocation14_spill] sm:$0xff] %v13417_v48  ;;  %15375 = vst [vmem:[#allocation46_spill] sm:$0xff] %v13420_v61  ;;  %v6162_v6 = vpack.c.bf16 %v13417_v48, %v13420_v61  ;;  %v6097_v1 = vmul.f32 %v5953_v62, %v5865_v54  ;;  %v6096_v27 = vmul.f32 %v5949_v34, %v5865_v54  ;;  %6241 = vperm.xlu0 %10227, %v6196_v2  }
0x10aa   :  { %6235 = vperm.xlu1 %10228, %v6194_v52  }
0x10ab   :  { %v13427_v59 = vadd.f32 %v6097_v1, %v12969_v22  ;;  %v13430_v45 = vadd.f32 %v6096_v27, %v12972_v26  ;;  %v6199_v16 = vunpack.c.h.b16 %v6162_v6  ;;  %v6198_v15 = vunpack.c.l.b16 %v6162_v6  ;;  %v15378_v27 = vld [vmem:[#allocation32_spill] sm:$0xff] }
0x10ac   :  { %v5965_v10 = vpop.permute.xlu0 %5964  ;;  %v5961_v13 = vpop.permute.xlu1 %5960 }
0x10ad   :  { %v6163_v47 = vpack.c.bf16 %v13427_v59, %v13430_v45  ;;  %v6099_v35 = vmul.f32 %v5965_v10, %v5869_v23  ;;  %v6098_v11 = vmul.f32 %v5961_v13, %v5869_v23  ;;  %6250 = vperm.xlu0 %10227, %v6199_v16  }
0x10ae   :  { %6247 = vperm.xlu1 %10228, %v6198_v15  }
0x10af   :  { %v13435_v51 = vadd.f32 %v6099_v35, %v12977_v9  ;;  %v13438_v22 = vadd.f32 %v6098_v11, %v12980_v38  ;;  %v6200_v26 = vunpack.c.l.b16 %v6163_v47  ;;  %v6201_v52 = vunpack.c.h.b16 %v6163_v47 }
0x10b0   :  { %v5973_v58 = vpop.permute.xlu0 %5972  ;;  %v5969_v7 = vpop.permute.xlu1 %5968 }
0x10b1   :  { %v6164_v24 = vpack.c.bf16 %v13435_v51, %v13438_v22  ;;  %v6101_v44 = vmul.f32 %v5973_v58, %v5869_v23  ;;  %v6100_v54 = vmul.f32 %v5969_v7, %v5869_v23  ;;  %6244 = vperm.xlu0 %10227, %v6197_v63   ;;  %v5877_v23 = vrot.slane %v15378_v27, %v15356_v18  ;;  %v15379_v63 = vld [vmem:[#allocation27_spill] sm:$0xff]  ;;  %v15381_v58 = vld [vmem:[#allocation25_spill] sm:$0xff] }
0x10b2   :  { %6253 = vperm.xlu1 %10228, %v6200_v26  }
0x10b3   :  { %v13445_v9 = vadd.f32 %v6101_v44, %v12987_v0  ;;  %v13448_v38 = vadd.f32 %v6100_v54, %v12990_v17  ;;  %v6203_v21 = vunpack.c.h.b16 %v6164_v24  ;;  %v6202_v60 = vunpack.c.l.b16 %v6164_v24 }
0x10b4   :  { %v5985_v46 = vpop.permute.xlu0 %5984  ;;  %v5981_v12 = vpop.permute.xlu1 %5980 }
0x10b5   :  { %v6165_v25 = vpack.c.bf16 %v13445_v9, %v13448_v38  ;;  %v6103_v36 = vmul.f32 %v5985_v46, %v5873_v39  ;;  %v6102_v30 = vmul.f32 %v5981_v12, %v5873_v39  ;;  %6259 = vperm.xlu0 %10227, %v6202_v60   ;;  %v15383_v60 = vld [vmem:[#allocation35_spill] sm:$0xff]  ;;  %v15384_v12 = vld [vmem:[#allocation24_spill] sm:$0xff] }
0x10b6   :  { %6262 = vperm.xlu1 %10228, %v6203_v21   ;;  %v5881_v46 = vrot.slane %v15383_v60, %v15356_v18 }
0x10b7   :  { %v13453_v55 = vadd.f32 %v6103_v36, %v12995_v5  ;;  %v13456_v0 = vadd.f32 %v6102_v30, %v12998_v4  ;;  %v6204_v17 = vunpack.c.l.b16 %v6165_v25  ;;  %v6205_v7 = vunpack.c.h.b16 %v6165_v25  ;;  %v15386_v30 = vld [vmem:[#allocation26_spill] sm:$0xff] }
0x10b8   :  { %v5993_v2 = vpop.permute.xlu0 %5992  ;;  %v5989_v62 = vpop.permute.xlu1 %5988 }
0x10b9   :  { %v6166_v34 = vpack.c.bf16 %v13453_v55, %v13456_v0  ;;  %v6105_v6 = vmul.f32 %v5993_v2, %v5873_v39  ;;  %v6104_v1 = vmul.f32 %v5989_v62, %v5873_v39  ;;  %6256 = vperm.xlu0 %10227, %v6201_v52  }
0x10ba   :  { %6265 = vperm.xlu1 %10228, %v6204_v17  }
0x10bb   :  { %v13463_v5 = vadd.f32 %v6105_v6, %v13005_v19  ;;  %v13466_v4 = vadd.f32 %v6104_v1, %v13008_v43  ;;  %v6207_v16 = vunpack.c.h.b16 %v6166_v34  ;;  %v6206_v15 = vunpack.c.l.b16 %v6166_v34 }
0x10bc   :  { %v6005_v10 = vpop.permute.xlu0 %6004  ;;  %v6001_v13 = vpop.permute.xlu1 %6000 }
0x10bd   :  { %v6167_v47 = vpack.c.bf16 %v13463_v5, %v13466_v4  ;;  %v6107_v35 = vmul.f32 %v6005_v10, %v5877_v23  ;;  %v6106_v11 = vmul.f32 %v6001_v13, %v5877_v23  ;;  %6271 = vperm.xlu0 %10227, %v6206_v15   ;;  %v15390_v15 = vld [vmem:[#allocation28_spill] sm:$0xff] }
0x10be   :  { %6274 = vperm.xlu1 %10228, %v6207_v16  }
0x10bf   :  { %v13471_v26 = vadd.f32 %v6107_v35, %v15379_v63  ;;  %v13474_v19 = vadd.f32 %v6106_v11, %v15381_v58  ;;  %v6208_v43 = vunpack.c.l.b16 %v6167_v47  ;;  %v6209_v13 = vunpack.c.h.b16 %v6167_v47 }
0x10c0   :  { %v6013_v24 = vpop.permute.xlu0 %6012  ;;  %v6009_v44 = vpop.permute.xlu1 %6008 }
0x10c1   :  { %15380 = vst [vmem:[#allocation13_spill] sm:$0xff] %v13471_v26  ;;  %15382 = vst [vmem:[#allocation12_spill] sm:$0xff] %v13474_v19  ;;  %v6168_v54 = vpack.c.bf16 %v13471_v26, %v13474_v19  ;;  %v6109_v39 = vmul.f32 %v6013_v24, %v5877_v23  ;;  %v6108_v21 = vmul.f32 %v6009_v44, %v5877_v23  ;;  %6268 = vperm.xlu0 %10227, %v6205_v7   ;;  %v15388_v23 = vld [vmem:[#allocation30_spill] sm:$0xff]  ;;  %v15392_v24 = vld [vmem:[#allocation36_spill] sm:$0xff] }
0x10c2   :  { %6277 = vperm.xlu1 %10228, %v6208_v43   ;;  %v5885_v44 = vrot.slane %v15392_v24, %v15356_v18  ;;  %v15399_v18 = vld [vmem:[#allocation39_spill] sm:$0xff] }
0x10c3   :  { %v13481_v36 = vadd.f32 %v6109_v39, %v15384_v12  ;;  %v13484_v52 = vadd.f32 %v6108_v21, %v15386_v30  ;;  %v6211_v25 = vunpack.c.h.b16 %v6168_v54  ;;  %v6210_v17 = vunpack.c.l.b16 %v6168_v54  ;;  %v15393_v54 = vld [vmem:[#allocation34_spill] sm:$0xff]  ;;  %v15395_v21 = vld [vmem:[#allocation33_spill] sm:$0xff] }
0x10c4   :  { %v6025_v2 = vpop.permute.xlu0 %6024  ;;  %v6021_v62 = vpop.permute.xlu1 %6020 }
0x10c5   :  { %15385 = vst [vmem:[#allocation23_spill] sm:$0xff] %v13481_v36  ;;  %15387 = vst [vmem:[#allocation22_spill] sm:$0xff] %v13484_v52  ;;  %v6169_v34 = vpack.c.bf16 %v13481_v36, %v13484_v52  ;;  %v6111_v6 = vmul.f32 %v6025_v2, %v5881_v46  ;;  %v6110_v1 = vmul.f32 %v6021_v62, %v5881_v46  ;;  %6283 = vperm.xlu0 %10227, %v6210_v17  }
0x10c6   :  { %6286 = vperm.xlu1 %10228, %v6211_v25  }
0x10c7   :  { %v13489_v16 = vadd.f32 %v6111_v6, %v15388_v23  ;;  %v13492_v10 = vadd.f32 %v6110_v1, %v15390_v15  ;;  %v6212_v35 = vunpack.c.l.b16 %v6169_v34  ;;  %v15397_v6 = vld [vmem:[#allocation40_spill] sm:$0xff]  ;;  %v6213_v15 = vunpack.c.h.b16 %v6169_v34 }
0x10c8   :  { %v6033_v11 = vpop.permute.xlu0 %6032  ;;  %v6029_v63 = vpop.permute.xlu1 %6028 }
0x10c9   :  { %15389 = vst [vmem:[#allocation27_spill] sm:$0xff] %v13489_v16  ;;  %15391 = vst [vmem:[#allocation25_spill] sm:$0xff] %v13492_v10  ;;  %v6170_v58 = vpack.c.bf16 %v13489_v16, %v13492_v10  ;;  %v6113_v7 = vmul.f32 %v6033_v11, %v5881_v46  ;;  %v6112_v43 = vmul.f32 %v6029_v63, %v5881_v46  ;;  %6280 = vperm.xlu0 %10227, %v6209_v13  }
0x10ca   :  { %6289 = vperm.xlu1 %10228, %v6212_v35  }
0x10cb   :  { %v13499_v39 = vadd.f32 %v6113_v7, %v15393_v54  ;;  %v13502_v12 = vadd.f32 %v6112_v43, %v15395_v21  ;;  %v6215_v47 = vunpack.c.h.b16 %v6170_v58  ;;  %v6214_v30 = vunpack.c.l.b16 %v6170_v58  ;;  %v15401_v43 = vld [vmem:[#allocation38_spill] sm:$0xff]  ;;  %v15403_v21 = vld [vmem:[#allocation37_spill] sm:$0xff] }
0x10cc   :  { %v6045_v25 = vpop.permute.xlu0 %6044  ;;  %v6041_v17 = vpop.permute.xlu1 %6040 }
0x10cd   :  { %15394 = vst [vmem:[#allocation24_spill] sm:$0xff] %v13499_v39  ;;  %15396 = vst [vmem:[#allocation26_spill] sm:$0xff] %v13502_v12  ;;  %v6171_v2 = vpack.c.bf16 %v13499_v39, %v13502_v12  ;;  %v6115_v62 = vmul.f32 %v6045_v25, %v5885_v44  ;;  %v6114_v46 = vmul.f32 %v6041_v17, %v5885_v44  ;;  %6295 = vperm.xlu0 %10227, %v6214_v30  }
0x10ce   :  { %6298 = vperm.xlu1 %10228, %v6215_v47  }
0x10cf   :  { %v13507_v1 = vadd.f32 %v6115_v62, %v15397_v6  ;;  %v13510_v23 = vadd.f32 %v6114_v46, %v15399_v18  ;;  %v6216_v13 = vunpack.c.l.b16 %v6171_v2  ;;  %v6217_v17 = vunpack.c.h.b16 %v6171_v2 }
0x10d0   :  { %v6053_v35 = vpop.permute.xlu0 %6052  ;;  %v6049_v11 = vpop.permute.xlu1 %6048 }
0x10d1   :  { %15398 = vst [vmem:[#allocation30_spill] sm:$0xff] %v13507_v1  ;;  %15400 = vst [vmem:[#allocation28_spill] sm:$0xff] %v13510_v23  ;;  %v6172_v63 = vpack.c.bf16 %v13507_v1, %v13510_v23  ;;  %v6117_v58 = vmul.f32 %v6053_v35, %v5885_v44  ;;  %v6116_v7 = vmul.f32 %v6049_v11, %v5885_v44  ;;  %6292 = vperm.xlu0 %10227, %v6213_v15  }
0x10d2   :  { %6301 = vperm.xlu1 %10228, %v6216_v13  }
0x10d3   :  { %v13515_v54 = vadd.f32 %v6117_v58, %v15401_v43  ;;  %v13518_v47 = vadd.f32 %v6116_v7, %v15403_v21  ;;  %v6219_v30 = vunpack.c.h.b16 %v6172_v63  ;;  %v6218_v25 = vunpack.c.l.b16 %v6172_v63 }
0x10d5   :  { %15402 = vst [vmem:[#allocation34_spill] sm:$0xff] %v13515_v54  ;;  %15404 = vst [vmem:[#allocation33_spill] sm:$0xff] %v13518_v47  ;;  %v6173_v34 = vpack.c.bf16 %v13515_v54, %v13518_v47  ;;  %6307 = vperm.xlu0 %10227, %v6218_v25  }
0x10d6   :  { %6310 = vperm.xlu1 %10228, %v6219_v30  }
0x10d7   :  { %v6220_v62 = vunpack.c.l.b16 %v6173_v34  ;;  %v6221_v44 = vunpack.c.h.b16 %v6173_v34 }
0x10d9   :  { %6304 = vperm.xlu0 %10227, %v6217_v17  }
0x10da   :  { %6313 = vperm.xlu1 %10228, %v6220_v62  }
0x10dd   :  { %6316 = vperm.xlu0 %10227, %v6221_v44  }
0x10de   :  { %6718 = vperm.xlu1 %10228, %v13381_v40   ;;  %v15408_v40 = vld [vmem:[#allocation49_spill] sm:$0xff] }
0x10e1   :  { %6715 = vperm.xlu0 %10227, %v13384_v14  }
0x10e2   :  { %6730 = vperm.xlu1 %10228, %v13399_v31  }
0x10e5   :  { %6727 = vperm.xlu0 %10227, %v13402_v42  }
0x10e6   :  { %6721 = vperm.xlu1 %10228, %v13394_v29   ;;  %v15407_v29 = vld [vmem:[#allocation48_spill] sm:$0xff] }
0x10e9   :  { %6733 = vperm.xlu0 %10227, %v13412_v57  }
0x10ea   :  { %6739 = vperm.xlu1 %10228, %v13420_v61  }
0x10ed   :  { %6742 = vperm.xlu0 %10227, %v13417_v48   ;;  %v15406_v48 = vld [vmem:[#allocation47_spill] sm:$0xff] }
0x111c   :  { %v6227_v46 = vpop.permute.xlu0 %6226 }
0x111d   :  { %v6224_v2 = vpop.permute.xlu1 %6223  ;;  %v6325_v57 = vrot.slane %v6227_v46, %v15406_v48 }
0x111e   :  { %v6321_v28 = vrot.slane %v6224_v2, %v15405_v49 }
0x1120   :  { %v6326_v46 = vsel %vm1818_vm12, %v6325_v57, %v6321_v28 }
0x1121   :  { %v6230_v6 = vpop.permute.xlu1 %6229 }
0x1122   :  { %v6330_v3 = vrot.slane %v6230_v6, %v15407_v29 }
0x1124   :  { %v6239_v18 = vpop.permute.xlu0 %6238  ;;  %v6331_v6 = vsel %vm1825_vm13, %v6330_v3, %v6326_v46 }
0x1125   :  { %v6233_v15 = vpop.permute.xlu1 %6232  ;;  %v6344_v14 = vrot.slane %v6239_v18, %v15406_v48 }
0x1126   :  { %v6335_v41 = vrot.slane %v6233_v15, %v15408_v40 }
0x1128   :  { %v6242_v13 = vpop.permute.xlu0 %6241 }
0x1129   :  { %v6236_v35 = vpop.permute.xlu1 %6235  ;;  %v6349_v8 = vrot.slane %v6242_v13, %v15407_v29 }
0x112a   :  { %v6340_v61 = vrot.slane %v6236_v35, %v15405_v49 }
0x112c   :  { %v6251_v11 = vpop.permute.xlu0 %6250  ;;  %v6345_v37 = vsel %vm1818_vm12, %v6344_v14, %v6340_v61  ;;  %v6336_v14 = vsel %vm1832_vm14, %v6335_v41, %v6331_v6 }
0x112d   :  { %v6248_v63 = vpop.permute.xlu1 %6247  ;;  %v6363_v20 = vrot.slane %v6251_v11, %v15406_v48  ;;  %v6350_v61 = vsel %vm1825_vm13, %v6349_v8, %v6345_v37 }
0x112e   :  { %v6359_v35 = vrot.slane %v6248_v63, %v15405_v49 }
0x1130   :  { %v6245_v58 = vpop.permute.xlu0 %6244  ;;  %v6364_v11 = vsel %vm1818_vm12, %v6363_v20, %v6359_v35 }
0x1131   :  { %v6254_v7 = vpop.permute.xlu1 %6253  ;;  %v6354_v2 = vrot.slane %v6245_v58, %v15408_v40 }
0x1132   :  { %v6368_v18 = vrot.slane %v6254_v7, %v15407_v29 }
0x1133   :  { %v6355_v3 = vsel %vm1832_vm14, %v6354_v2, %v6350_v61 }
0x1134   :  { %v6260_v43 = vpop.permute.xlu0 %6259  ;;  %v6369_v37 = vsel %vm1825_vm13, %v6368_v18, %v6364_v11 }
0x1135   :  { %v6263_v21 = vpop.permute.xlu1 %6262  ;;  %v6378_v15 = vrot.slane %v6260_v43, %v15405_v49 }
0x1136   :  { %v6382_v13 = vrot.slane %v6263_v21, %v15406_v48 }
0x1138   :  { %v6257_v30 = vpop.permute.xlu0 %6256  ;;  %v6383_v20 = vsel %vm1818_vm12, %v6382_v13, %v6378_v15 }
0x1139   :  { %v6266_v25 = vpop.permute.xlu1 %6265  ;;  %v6373_v58 = vrot.slane %v6257_v30, %v15408_v40 }
0x113a   :  { %v6387_v28 = vrot.slane %v6266_v25, %v15407_v29 }
0x113c   :  { %v6272_v34 = vpop.permute.xlu0 %6271 }
0x113d   :  { %v6275_v17 = vpop.permute.xlu1 %6274  ;;  %v6397_v57 = vrot.slane %v6272_v34, %v15405_v49 }
0x113e   :  { %v6401_v63 = vrot.slane %v6275_v17, %v15406_v48 }
0x1140   :  { %v6269_v62 = vpop.permute.xlu0 %6268  ;;  %v6402_v35 = vsel %vm1818_vm12, %v6401_v63, %v6397_v57 }
0x1141   :  { %v6278_v44 = vpop.permute.xlu1 %6277  ;;  %v6392_v7 = vrot.slane %v6269_v62, %v15408_v40 }
0x1142   :  { %v6406_v43 = vrot.slane %v6278_v44, %v15407_v29  ;;  %v6388_v44 = vsel %vm1825_vm13, %v6387_v28, %v6383_v20 }
0x1144   :  { %v6284_v24 = vpop.permute.xlu0 %6283 }
0x1145   :  { %v6287_v60 = vpop.permute.xlu1 %6286  ;;  %v6416_v8 = vrot.slane %v6284_v24, %v15405_v49  ;;  %v6470_v24 = vsel %vm763_vm4, %v6355_v3, %v6336_v14 }
0x1146   :  { %v6420_v25 = vrot.slane %v6287_v60, %v15406_v48  ;;  %v6374_v60 = vsel %vm1832_vm14, %v6373_v58, %v6369_v37 }
0x1147   :  { %v6471_v11 = vsel %vm765_vm5, %v6374_v60, %v6470_v24 }
0x1148   :  { %v6281_v27 = vpop.permute.xlu0 %6280 }
0x1149   :  { %v6290_v33 = vpop.permute.xlu1 %6289  ;;  %v6411_v34 = vrot.slane %v6281_v27, %v15408_v40  ;;  %v6393_v27 = vsel %vm1832_vm14, %v6392_v7, %v6388_v44 }
0x114a   :  { %v6425_v17 = vrot.slane %v6290_v33, %v15407_v29  ;;  %v6407_v33 = vsel %vm1825_vm13, %v6406_v43, %v6402_v35  ;;  %v6472_v63 = vsel %vm767_vm6, %v6393_v27, %v6471_v11  ;;  %v15410_v35 = vld [vmem:[#allocation11_spill] sm:$0xff] }
0x114c   :  { %v6296_v42 = vpop.permute.xlu0 %6295 }
0x114d   :  { %v6299_v31 = vpop.permute.xlu1 %6298  ;;  %v6435_v30 = vrot.slane %v6296_v42, %v15405_v49 }
0x114e   :  { %v6439_v62 = vrot.slane %v6299_v31, %v15406_v48  ;;  %v6421_v31 = vsel %vm1818_vm12, %v6420_v25, %v6416_v8 }
0x114f   :  { %v6426_v13 = vsel %vm1825_vm13, %v6425_v17, %v6421_v31  ;;  %v10753_v17 = vld [vmem:[%s14874_s8] sm:$0xff]  }
0x1150   :  { %v6293_v56 = vpop.permute.xlu0 %6292  ;;  %v6440_v14 = vsel %vm1818_vm12, %v6439_v62, %v6435_v30  ;;  %v15409_v30 = vmov 0.0   ;;  %v10754_v62 = vld [vmem:[%s14874_s8 + $0x8] sm:$0xff]  }
0x1151   :  { %v6302_v50 = vpop.permute.xlu1 %6301  ;;  %v6430_v46 = vrot.slane %v6293_v56, %v15408_v40 }
0x1152   :  { %v6444_v2 = vrot.slane %v6302_v50, %v15407_v29  ;;  %v6412_v50 = vsel %vm1832_vm14, %v6411_v34, %v6407_v33 }
0x1153   :  { %v6431_v28 = vsel %vm1832_vm14, %v6430_v46, %v6426_v13  ;;  %v6473_v7 = vsel %vm769_vm7, %v6412_v50, %v6472_v63  ;;  %v13638_v50 = vld [vmem:[#allocation2 + $0x5] sm:$0x1] }
0x1154   :  { %v6308_v21 = vpop.permute.xlu0 %6307  ;;  %v6445_v57 = vsel %vm1825_vm13, %v6444_v2, %v6440_v14 }
0x1155   :  { %v6311_v41 = vpop.permute.xlu1 %6310  ;;  %v6454_v18 = vrot.slane %v6308_v21, %v15405_v49 }
0x1156   :  { %v6458_v15 = vrot.slane %v6311_v41, %v15406_v48  ;;  %v6474_v41 = vsel %vm771_vm8, %v6431_v28, %v6473_v7  ;;  %v13651_v7 = vld [vmem:[#allocation2 + $0x1d] sm:$0x1] }
0x1158   :  { %v6305_v6 = vpop.permute.xlu0 %6304  ;;  %v6459_v43 = vsel %vm1818_vm12, %v6458_v15, %v6454_v18 }
0x1159   :  { %v6314_v42 = vpop.permute.xlu1 %6313  ;;  %v6449_v56 = vrot.slane %v6305_v6, %v15408_v40 }
0x115a   :  { %v6463_v61 = vrot.slane %v6314_v42, %v15407_v29 }
0x115b   :  { %v6450_v3 = vsel %vm1832_vm14, %v6449_v56, %v6445_v57  ;;  %v13647_v57 = vld [vmem:[#allocation2 + $0x15] sm:$0x1] }
0x115c   :  { %v6317_v58 = vpop.permute.xlu0 %6316  ;;  %v6464_v37 = vsel %vm1825_vm13, %v6463_v61, %v6459_v43  ;;  %v6475_v20 = vsel %vm773_vm9, %v6450_v3, %v6474_v41  ;;  %v13643_v61 = vld [vmem:[#allocation2 + $0xd] sm:$0x1]  ;;  %v13654_v41 = vld [vmem:[#allocation2 + $0x25] sm:$0x1] }
0x115d   :  { %v6468_v21 = vrot.slane %v6317_v58, %v15408_v40 }
0x115f   :  { %v6469_v8 = vsel %vm1832_vm14, %v6468_v21, %v6464_v37 }
0x1160   :  { %v6476_v25 = vsel %vm775_vm10, %v6469_v8, %v6475_v20 }
0x1161   :  { %v6477_v34 = vpack.c.b16 %v6476_v25, %v6476_v25 }
0x1163   :  { %10180 = vmatmul.mubr.msk.bf16.vlgmr.msra.gmra.mrb[16].mxu0 %vm445_vm0, %v6477_v34 }
0x1164   :  { %10192 = vmatpush3.bf16.msra.mxu0 %v10753_v17  ;;  %10195 = vmatprep.mubr.msk.bf16.mxu0 %vm10787_vm1, %v15409_v30  ;;  %v13659_v17 = vld [vmem:[#allocation2 + $0x2d] sm:$0x1] }
0x1165   :  { %10193 = vmatprep.subr.bf16.mxu0 %v15409_v30 }
0x1168   :  { %10194 = vmatpush3.bf16.msra.mxu0 %v10754_v62 }
0x1236   :  { %v13603_v44 = vpop.f32.mrb[16].mxu0 }
0x1237   :  { %v6593_v46 = vadd.f32 %v13603_v44, %v15410_v35  ;;  %v10181_v2 = vpop.f32.mrb[17].mxu0  ;;  %v6522_v56 = vrot.slane %v13603_v44, 1  ;;  %v6537_v13 = vadd.f32 %v13603_v44, %v13638_v50  ;;  %v6523_v14 = vrot.slane %v13603_v44, 2 }
0x1238   :  { %v6518_v24 = vpop.f32.mrb[18].mxu0  ;;  %v6524_v28 = vrot.slane %v13603_v44, 3  ;;  %v6525_v58 = vrot.slane %v13603_v44, 4  ;;  %v6526_v37 = vrot.slane %v13603_v44, 5  ;;  %v6527_v25 = vrot.slane %v13603_v44, 6 }
0x1239   :  { %6602 = vrot.lane.b32.xlu1 %v6593_v46, %s10784_s25  ;;  %v10182_v60 = vpop.f32.mrb[19].mxu0  ;;  %v6595_v27 = vrot.slane %v6593_v46, 1  ;;  %v6596_v33 = vrot.slane %v6593_v46, 2  ;;  %v6597_v6 = vrot.slane %v6593_v46, 3  ;;  %v6598_v42 = vrot.slane %v6593_v46, 4 }
0x123a   :  { %v6599_v31 = vrot.slane %v6593_v46, 5  ;;  %v6600_v18 = vrot.slane %v6593_v46, 6  ;;  %v6601_v15 = vrot.slane %v6593_v46, 7  ;;  %v6538_v11 = vadd.f32 %v6522_v56, %v13643_v61  ;;  %v13662_v46 = vld [vmem:[#allocation2 + $0x35] sm:$0x1] }
0x123b   :  { %6604 = vrot.lane.b32.xlu0 %v6595_v27, %s10784_s25  ;;  %v10012_v63 = vmul.f32 -1.442695, %v6537_v13  ;;  %v6539_v3 = vadd.f32 %v6523_v14, %v13647_v57  ;;  %v6540_v21 = vadd.f32 %v6524_v28, %v13651_v7  ;;  %v6541_v8 = vadd.f32 %v6525_v58, %v13654_v41  ;;  %v13666_v27 = vpop.permute.xlu1 %6718 }
0x123c   :  { %v10013_v43 = vmul.f32 -1.442695, %v6538_v11  ;;  %v6542_v62 = vadd.f32 %v6526_v37, %v13659_v17  ;;  %v6543_v24 = vadd.f32 %v6527_v25, %v13662_v46  ;;  %v6528_v60 = vrot.slane %v13603_v44, 7 }
0x123d   :  { %6606 = vrot.lane.b32.xlu1 %v6596_v33, %s10784_s25  ;;  %10601 = vpow2.f32 %v10012_v63  ;;  %v10014_v20 = vmul.f32 -1.442695, %v6539_v3  ;;  %v10015_v34 = vmul.f32 -1.442695, %v6540_v21  ;;  %v10016_v2 = vmul.f32 -1.442695, %v6541_v8  ;;  %v13668_v33 = vpop.permute.xlu0 %6715 }
0x123e   :  { %10603 = vpow2.f32 %v10013_v43 }
0x123f   :  { %6608 = vrot.lane.b32.xlu0 %v6597_v6, %s10784_s25  ;;  %10605 = vpow2.f32 %v10014_v20  ;;  %v10017_v6 = vmul.f32 -1.442695, %v6542_v62  ;;  %v13673_v56 = vpop.permute.xlu1 %6730 }
0x1240   :  { %10607 = vpow2.f32 %v10015_v34 }
0x1241   :  { %6610 = vrot.lane.b32.xlu1 %v6598_v42, %s10784_s25  ;;  %v13670_v42 = vld [vmem:[#allocation2 + $0x3d] sm:$0x1]  ;;  %10609 = vpow2.f32 %v10016_v2  ;;  %v13675_v44 = vpop.permute.xlu0 %6727 }
0x1242   :  { %10611 = vpow2.f32 %v10017_v6 }
0x1243   :  { %6612 = vrot.lane.b32.xlu0 %v6599_v31, %s10784_s25  ;;  %v10018_v31 = vmul.f32 -1.442695, %v6543_v24  ;;  %v13677_v58 = vpop.permute.xlu1 %6721 }
0x1245   :  { %6614 = vrot.lane.b32.xlu1 %v6600_v18, %s10784_s25  ;;  %v6544_v18 = vadd.f32 %v6528_v60, %v13670_v42  ;;  %10613 = vpow2.f32 %v10018_v31  ;;  %v13679_v37 = vpop.permute.xlu0 %6733 }
0x1247   :  { %6616 = vrot.lane.b32.xlu0 %v6601_v15, %s10784_s25  ;;  %v10602_v15 = vpop.eup %10601  ;;  %v10019_v14 = vmul.f32 -1.442695, %v6544_v18  ;;  %v13681_v62 = vpop.permute.xlu1 %6739 }
0x1248   :  { %v10604_v13 = vpop.eup %10603  ;;  %v6569_v11 = vadd.f32 1.0, %v10602_v15 }
0x1249   :  { %6736 = vperm.xlu1 %10228, %v13409_v53   ;;  %v10606_v28 = vpop.eup %10605  ;;  %v6570_v63 = vadd.f32 1.0, %v10604_v13  ;;  %10615 = vpow2.f32 %v10019_v14  ;;  %v13683_v24 = vpop.permute.xlu0 %6742 }
0x124a   :  { %v10608_v3 = vpop.eup %10607  ;;  %10617 = vrcp.f32 %v6569_v11  ;;  %v6571_v43 = vadd.f32 1.0, %v10606_v28 }
0x124b   :  { %6724 = vperm.xlu0 %10227, %v13391_v32   ;;  %v10610_v21 = vpop.eup %10609  ;;  %10619 = vrcp.f32 %v6570_v63  ;;  %v6572_v20 = vadd.f32 1.0, %v10608_v3 }
0x124c   :  { %v10612_v8 = vpop.eup %10611  ;;  %10621 = vrcp.f32 %v6571_v43  ;;  %v6573_v25 = vadd.f32 1.0, %v10610_v21 }
0x124d   :  { %6751 = vperm.xlu1 %10228, %v13438_v22   ;;  %10623 = vrcp.f32 %v6572_v20  ;;  %v6574_v2 = vadd.f32 1.0, %v10612_v8 }
0x124e   :  { %10625 = vrcp.f32 %v6573_v25 }
0x124f   :  { %6745 = vperm.xlu0 %10227, %v13430_v45   ;;  %v10614_v34 = vpop.eup %10613  ;;  %10627 = vrcp.f32 %v6574_v2 }
0x1250   :  { %v6575_v60 = vadd.f32 1.0, %v10614_v34 }
0x1251   :  { %6757 = vperm.xlu1 %10228, %v13448_v38  }
0x1252   :  { %10629 = vrcp.f32 %v6575_v60 }
0x1253   :  { %6754 = vperm.xlu0 %10227, %v13435_v51   ;;  %v10616_v6 = vpop.eup %10615 }
0x1254   :  { %v10618_v31 = vpop.eup %10617  ;;  %v6576_v11 = vadd.f32 1.0, %v10616_v6 }
0x1255   :  { %6766 = vperm.xlu1 %10228, %v13453_v55   ;;  %v10620_v13 = vpop.eup %10619 }
0x1256   :  { %v10622_v63 = vpop.eup %10621  ;;  %10631 = vrcp.f32 %v6576_v11 }
0x1257   :  { %6748 = vperm.xlu0 %10227, %v13427_v59   ;;  %v10624_v21 = vpop.eup %10623 }
0x1258   :  { %v10626_v25 = vpop.eup %10625 }
0x1259   :  { %6760 = vperm.xlu1 %10228, %v13445_v9   ;;  %v10628_v6 = vpop.eup %10627 }
0x125b   :  { %6763 = vperm.xlu0 %10227, %v13456_v0  }
0x125d   :  { %6775 = vperm.xlu1 %10228, %v13474_v19  }
0x125f   :  { %6769 = vperm.xlu0 %10227, %v13466_v4  }
0x1261   :  { %6781 = vperm.xlu1 %10228, %v13484_v52  }
0x1263   :  { %6778 = vperm.xlu0 %10227, %v13471_v26  }
0x1265   :  { %6790 = vperm.xlu1 %10228, %v13489_v16   ;;  %v15413_v16 = vld [vmem:[#allocation7_spill] sm:$0xff] }
0x1266   :  { %v6817_v52 = vrot.slane %v13666_v27, %v15413_v16  ;;  %v6836_v27 = vrot.slane %v13673_v56, %v15413_v16  ;;  %v6855_v56 = vrot.slane %v13683_v24, %v15413_v16 }
0x1267   :  { %6772 = vperm.xlu0 %10227, %v13463_v5  }
0x1269   :  { %6793 = vperm.xlu1 %10228, %v13502_v12   ;;  %v15412_v12 = vld [vmem:[#allocation50_spill] sm:$0xff] }
0x126b   :  { %6787 = vperm.xlu0 %10227, %v13492_v10  }
0x126d   :  { %6802 = vperm.xlu1 %10228, %v13507_v1  }
0x126f   :  { %6784 = vperm.xlu0 %10227, %v13481_v36   ;;  %v15414_v36 = vld [vmem:[#allocation51_spill] sm:$0xff] }
0x1273   :  { %6799 = vperm.xlu0 %10227, %v13510_v23   ;;  %v15411_v23 = vld [vmem:[#allocation9_spill] sm:$0xff] }
0x1274   :  { %v6813_v1 = vrot.slane %v13668_v33, %v15411_v23 }
0x1276   :  { %v6818_v26 = vsel %vm2317_vm15, %v6817_v52, %v6813_v1 }
0x1277   :  { %6796 = vperm.xlu0 %10227, %v13499_v39   ;;  %v6822_v39 = vrot.slane %v13677_v58, %v15412_v12 }
0x12ab   :  { %v6603_v18 = vpop.permute.xlu1 %6602 }
0x12ac   :  { %v6626_v15 = vmul.f32 %v10618_v31, %v6603_v18  ;;  %v10630_v31 = vpop.eup %10629 }
0x12ad   :  { %v6605_v14 = vpop.permute.xlu0 %6604  ;;  %v10632_v11 = vpop.eup %10631 }
0x12ae   :  { %v6627_v28 = vmul.f32 %v10620_v13, %v6605_v14  ;;  %6642 = vrot.lane.b32.xlu1 %v6626_v15, %s10782_s30 }
0x12af   :  { %v6607_v3 = vpop.permute.xlu1 %6606 }
0x12b0   :  { %v6628_v43 = vmul.f32 %v10622_v63, %v6607_v3  ;;  %6644 = vrot.lane.b32.xlu0 %v6627_v28, %s10782_s30 }
0x12b1   :  { %v6609_v20 = vpop.permute.xlu0 %6608 }
0x12b2   :  { %v6629_v8 = vmul.f32 %v10624_v21, %v6609_v20  ;;  %6646 = vrot.lane.b32.xlu1 %v6628_v43, %s10782_s30 }
0x12b3   :  { %v6611_v34 = vpop.permute.xlu1 %6610 }
0x12b4   :  { %v6630_v2 = vmul.f32 %v10626_v25, %v6611_v34  ;;  %6648 = vrot.lane.b32.xlu0 %v6629_v8, %s10782_s30 }
0x12b5   :  { %v6613_v60 = vpop.permute.xlu0 %6612 }
0x12b6   :  { %6650 = vrot.lane.b32.xlu1 %v6630_v2, %s10782_s30  ;;  %v6631_v15 = vmul.f32 %v10628_v6, %v6613_v60 }
0x12b7   :  { %v6615_v18 = vpop.permute.xlu1 %6614 }
0x12b8   :  { %v6632_v13 = vmul.f32 %v10630_v31, %v6615_v18 }
0x12b9   :  { %v6617_v14 = vpop.permute.xlu0 %6616 }
0x12ba   :  { %6652 = vrot.lane.b32.xlu1 %v6631_v15, %s10782_s30  ;;  %6654 = vrot.lane.b32.xlu0 %v6632_v13, %s10782_s30  ;;  %v6633_v28 = vmul.f32 %v10632_v11, %v6617_v14 }
0x12be   :  { %6656 = vrot.lane.b32.xlu1 %v6633_v28, %s10782_s30  ;;  %6808 = vperm.xlu0 %10227, %v13515_v54  }
0x12c2   :  { %6805 = vperm.xlu1 %10228, %v13518_v47  }
0x12c8   :  { %v6737_v43 = vpop.permute.xlu1 %6736 }
0x12c9   :  { %v6846_v58 = vrot.slane %v6737_v43, %v15414_v36  ;;  %v6851_v43 = vrot.slane %v13681_v62, %v15411_v23 }
0x12ca   :  { %v6725_v63 = vpop.permute.xlu0 %6724 }
0x12cb   :  { %v6827_v19 = vrot.slane %v6725_v63, %v15414_v36 }
0x12cc   :  { %v13699_v20 = vpop.permute.xlu1 %6751 }
0x12ce   :  { %v13695_v3 = vpop.permute.xlu0 %6745 }
0x12cf   :  { %v6860_v63 = vrot.slane %v13695_v3, %v15412_v12 }
0x12d0   :  { %v13703_v25 = vpop.permute.xlu1 %6757 }
0x12d2   :  { %v13697_v21 = vpop.permute.xlu0 %6754 }
0x12d3   :  { %v6874_v3 = vrot.slane %v13697_v21, %v15413_v16 }
0x12d4   :  { %v13707_v2 = vpop.permute.xlu1 %6766 }
0x12d6   :  { %v13701_v8 = vpop.permute.xlu0 %6748 }
0x12d8   :  { %v13711_v6 = vpop.permute.xlu1 %6760 }
0x12da   :  { %v13705_v34 = vpop.permute.xlu0 %6763 }
0x12dc   :  { %v13715_v18 = vpop.permute.xlu1 %6775 }
0x12de   :  { %v13709_v60 = vpop.permute.xlu0 %6769 }
0x12e0   :  { %v13719_v13 = vpop.permute.xlu1 %6781 }
0x12e2   :  { %v13713_v31 = vpop.permute.xlu0 %6778 }
0x12e4   :  { %v13723_v11 = vpop.permute.xlu1 %6790 }
0x12e6   :  { %v13717_v15 = vpop.permute.xlu0 %6772 }
0x12e8   :  { %v13727_v35 = vpop.permute.xlu1 %6793 }
0x12ea   :  { %v13721_v14 = vpop.permute.xlu0 %6787 }
0x12ec   :  { %v13731_v40 = vpop.permute.xlu1 %6802 }
0x12ee   :  { %v13725_v28 = vpop.permute.xlu0 %6784 }
0x12f2   :  { %v13729_v30 = vpop.permute.xlu0 %6799 }
0x12f6   :  { %v13733_v29 = vpop.permute.xlu0 %6796 }
0x1320   :  { %v6643_v48 = vpop.permute.xlu1 %6642 }
0x1321   :  { %v6666_v49 = vadd.f32 %v6643_v48, %v13638_v50  ;;  %v6832_v50 = vrot.slane %v13675_v44, %v15411_v23 }
0x1322   :  { %v6645_v47 = vpop.permute.xlu0 %6644 }
0x1323   :  { %10633 = vtanh.f32 %v6666_v49  ;;  %v6667_v54 = vadd.f32 %v6645_v47, %v13643_v61  ;;  %v6823_v49 = vsel %vm2324_vm11, %v6822_v39, %v6818_v26  ;;  %v6841_v61 = vrot.slane %v13679_v37, %v15412_v12 }
0x1324   :  { %v6647_v10 = vpop.permute.xlu1 %6646  ;;  %v6837_v39 = vsel %vm2317_vm15, %v6836_v27, %v6832_v50  ;;  %v6856_v50 = vsel %vm2317_vm15, %v6855_v56, %v6851_v43  ;;  %v6884_v27 = vrot.slane %v13711_v6, %v15414_v36  ;;  %v6889_v6 = vrot.slane %v13705_v34, %v15411_v23 }
0x1325   :  { %10635 = vtanh.f32 %v6667_v54  ;;  %v6668_v48 = vadd.f32 %v6647_v10, %v13647_v57  ;;  %v6828_v54 = vsel %vm2331_vm3, %v6827_v19, %v6823_v49  ;;  %v15415_v10 = vld [vmem:[#allocation8_spill] sm:$0xff]  ;;  %v6842_v57 = vsel %vm2324_vm11, %v6841_v61, %v6837_v39 }
0x1326   :  { %v6649_v52 = vpop.permute.xlu0 %6648  ;;  %v6847_v19 = vsel %vm2331_vm3, %v6846_v58, %v6842_v57  ;;  %v6861_v24 = vsel %vm2324_vm11, %v6860_v63, %v6856_v50  ;;  %v6879_v58 = vrot.slane %v13703_v25, %v15412_v12  ;;  %v6898_v57 = vrot.slane %v13709_v60, %v15412_v12 }
0x1327   :  { %10637 = vtanh.f32 %v6668_v48  ;;  %v6669_v44 = vadd.f32 %v6649_v52, %v13651_v7  ;;  %v6865_v48 = vrot.slane %v13701_v8, %v15414_v36  ;;  %v6870_v8 = vrot.slane %v13699_v20, %v15411_v23 }
0x1328   :  { %v6651_v49 = vpop.permute.xlu1 %6650  ;;  %v6893_v25 = vrot.slane %v13707_v2, %v15413_v16  ;;  %v6912_v60 = vrot.slane %v13713_v31, %v15413_v16 }
0x1329   :  { %10639 = vtanh.f32 %v6669_v44  ;;  %v6670_v62 = vadd.f32 %v6651_v49, %v13654_v41  ;;  %v6922_v49 = vrot.slane %v13725_v28, %v15414_v36  ;;  %v6931_v28 = vrot.slane %v13723_v11, %v15413_v16 }
0x132a   :  { %v6894_v56 = vsel %vm2317_vm15, %v6893_v25, %v6889_v6  ;;  %v15416_v6 = vld [vmem:[#allocation15_spill] sm:$0xff] }
0x132b   :  { %10641 = vtanh.f32 %v6670_v62  ;;  %v6899_v34 = vsel %vm2324_vm11, %v6898_v57, %v6894_v56  ;;  %v6941_v62 = vrot.slane %v13733_v29, %v15414_v36  ;;  %v6950_v29 = vrot.slane %v13731_v40, %v15413_v16  ;;  %v15417_v57 = vld [vmem:[#allocation19_spill] sm:$0xff]  ;;  %v15418_v56 = vld [vmem:[#allocation44_spill] sm:$0xff] }
0x132c   :  { %v6653_v21 = vpop.permute.xlu1 %6652  ;;  %v6655_v44 = vpop.permute.xlu0 %6654  ;;  %v6981_v25 = vrot.slane %v15417_v57, %v15416_v6 }
0x132d   :  { %v10634_v47 = vpop.eup %10633  ;;  %v6672_v2 = vadd.f32 %v6655_v44, %v13662_v46 }
0x132e   :  { %v6970_v33 = vsub.f32 %v10634_v47, %v6828_v54  ;;  %v6866_v54 = vsel %vm2331_vm3, %v6865_v48, %v6861_v24 }
0x132f   :  { %v10636_v26 = vpop.eup %10635 }
0x1330   :  { %v7021_v1 = vrot.slane %v6970_v33, %v15415_v10  ;;  %v6971_v37 = vsub.f32 %v10636_v26, %v6847_v19  ;;  %v6875_v33 = vsel %vm2317_vm15, %v6874_v3, %v6870_v8  ;;  %v6671_v26 = vadd.f32 %v6653_v21, %v13659_v17  ;;  %v6657_v50 = vpop.permute.xlu1 %6656 }
0x1331   :  { %v10638_v7 = vpop.eup %10637  ;;  %v6880_v41 = vsel %vm2324_vm11, %v6879_v58, %v6875_v33  ;;  %v6903_v19 = vrot.slane %v13717_v15, %v15414_v36  ;;  %v6908_v15 = vrot.slane %v13715_v18, %v15411_v23  ;;  %v6927_v18 = vrot.slane %v13721_v14, %v15411_v23 }
0x1332   :  { %7028 = vbcast.lane.b32.xlu0 %v7021_v1, 296  ;;  %7024 = vbcast.lane.b32.xlu1 %v7021_v1, 288  ;;  %v7041_v47 = vrot.slane %v6971_v37, %v15415_v10  ;;  %v6972_v61 = vsub.f32 %v10638_v7, %v6866_v54  ;;  %v6885_v20 = vsel %vm2331_vm3, %v6884_v27, %v6880_v41  ;;  %10643 = vtanh.f32 %v6671_v26 }
0x1333   :  { %v6904_v63 = vsel %vm2331_vm3, %v6903_v19, %v6899_v34  ;;  %v6913_v48 = vsel %vm2317_vm15, %v6912_v60, %v6908_v15  ;;  %10645 = vtanh.f32 %v6672_v2  ;;  %v6673_v54 = vadd.f32 %v6657_v50, %v13670_v42  ;;  %v15420_v60 = vld [vmem:[#allocation43_spill] sm:$0xff] }
0x1334   :  { %v7061_v52 = vrot.slane %v6972_v61, %v15415_v10  ;;  %v6936_v8 = vrot.slane %v13727_v35, %v15412_v12  ;;  %v6946_v27 = vrot.slane %v13729_v30, %v15411_v23 }
0x1335   :  { %10647 = vtanh.f32 %v6673_v54 }
0x1336   :  { %7036 = vbcast.lane.b32.xlu0 %v7021_v1, 312  ;;  %7032 = vbcast.lane.b32.xlu1 %v7021_v1, 304  ;;  %v10640_v1 = vpop.eup %10639 }
0x1337   :  { %v6973_v39 = vsub.f32 %v10640_v1, %v6885_v20  ;;  %v10642_v17 = vpop.eup %10641 }
0x1338   :  { %v6974_v43 = vsub.f32 %v10642_v17, %v6904_v63 }
0x1339   :  { %v7081_v37 = vrot.slane %v6973_v39, %v15415_v10 }
0x133a   :  { %7048 = vbcast.lane.b32.xlu0 %v7041_v47, 296  ;;  %7044 = vbcast.lane.b32.xlu1 %v7041_v47, 288  ;;  %v7101_v31 = vrot.slane %v6974_v43, %v15415_v10 }
0x133c   :  { %v10644_v7 = vpop.eup %10643 }
0x133d   :  { %v10646_v33 = vpop.eup %10645  ;;  %v6809_v21 = vpop.permute.xlu0 %6808 }
0x133e   :  { %7056 = vbcast.lane.b32.xlu0 %v7041_v47, 312  ;;  %7052 = vbcast.lane.b32.xlu1 %v7041_v47, 304  ;;  %v6917_v47 = vrot.slane %v13719_v13, %v15412_v12  ;;  %v6932_v13 = vsel %vm2317_vm15, %v6931_v28, %v6927_v18  ;;  %v6960_v30 = vrot.slane %v6809_v21, %v15414_v36  ;;  %v15429_v21 = vld [vmem:[#allocation21_spill] sm:$0xff] }
0x133f   :  { %v6937_v42 = vsel %vm2324_vm11, %v6936_v8, %v6932_v13  ;;  %v10648_v26 = vpop.eup %10647 }
0x1340   :  { %v6918_v46 = vsel %vm2324_vm11, %v6917_v47, %v6913_v48  ;;  %v6942_v58 = vsel %vm2331_vm3, %v6941_v62, %v6937_v42  ;;  %v15422_v47 = vld [vmem:[#allocation20_spill] sm:$0xff] }
0x1341   :  { %v6923_v24 = vsel %vm2331_vm3, %v6922_v49, %v6918_v46  ;;  %v6806_v61 = vpop.permute.xlu1 %6805  ;;  %v6976_v35 = vsub.f32 %v10646_v33, %v6942_v58  ;;  %v15423_v46 = vld [vmem:[#allocation41_spill] sm:$0xff] }
0x1342   :  { %7068 = vbcast.lane.b32.xlu0 %v7061_v52, 296  ;;  %7064 = vbcast.lane.b32.xlu1 %v7061_v52, 288  ;;  %v6975_v3 = vsub.f32 %v10644_v7, %v6923_v24  ;;  %v6955_v11 = vrot.slane %v6806_v61, %v15412_v12  ;;  %v15425_v61 = vld [vmem:[#allocation16_spill] sm:$0xff] }
0x1343   :  { %v7141_v41 = vrot.slane %v6976_v35, %v15415_v10  ;;  %v6989_v35 = vrot.slane %v15429_v21, %v15416_v6 }
0x1344   :  { %v7121_v14 = vrot.slane %v6975_v3, %v15415_v10 }
0x1346   :  { %7076 = vbcast.lane.b32.xlu0 %v7061_v52, 312  ;;  %7072 = vbcast.lane.b32.xlu1 %v7061_v52, 304  ;;  %v6951_v52 = vsel %vm2317_vm15, %v6950_v29, %v6946_v27 }
0x1347   :  { %v6956_v1 = vsel %vm2324_vm11, %v6955_v11, %v6951_v52 }
0x1348   :  { %v6961_v20 = vsel %vm2331_vm3, %v6960_v30, %v6956_v1  ;;  %v15430_v1 = vld [vmem:[#allocation45_spill] sm:$0xff] }
0x1349   :  { %v6977_v40 = vsub.f32 %v10648_v26, %v6961_v20 }
0x134a   :  { %7088 = vbcast.lane.b32.xlu0 %v7081_v37, 296  ;;  %7084 = vbcast.lane.b32.xlu1 %v7081_v37, 288 }
0x134b   :  { %v7161_v39 = vrot.slane %v6977_v40, %v15415_v10 }
0x134e   :  { %7096 = vbcast.lane.b32.xlu0 %v7081_v37, 312  ;;  %7092 = vbcast.lane.b32.xlu1 %v7081_v37, 304 }
0x1352   :  { %7108 = vbcast.lane.b32.xlu0 %v7101_v31, 296  ;;  %7104 = vbcast.lane.b32.xlu1 %v7101_v31, 288 }
0x1356   :  { %7116 = vbcast.lane.b32.xlu0 %v7101_v31, 312  ;;  %7112 = vbcast.lane.b32.xlu1 %v7101_v31, 304  ;;  %v6985_v31 = vrot.slane %v15422_v47, %v15416_v6 }
0x135a   :  { %7128 = vbcast.lane.b32.xlu0 %v7121_v14, 296  ;;  %7124 = vbcast.lane.b32.xlu1 %v7121_v14, 288 }
0x135e   :  { %7136 = vbcast.lane.b32.xlu0 %v7121_v14, 312  ;;  %7132 = vbcast.lane.b32.xlu1 %v7121_v14, 304  ;;  %v15427_v14 = vld [vmem:[#allocation42_spill] sm:$0xff] }
0x1362   :  { %7148 = vbcast.lane.b32.xlu0 %v7141_v41, 296  ;;  %7144 = vbcast.lane.b32.xlu1 %v7141_v41, 288 }
0x1366   :  { %7156 = vbcast.lane.b32.xlu0 %v7141_v41, 312  ;;  %7152 = vbcast.lane.b32.xlu1 %v7141_v41, 304 }
0x136a   :  { %7168 = vbcast.lane.b32.xlu0 %v7161_v39, 296  ;;  %7164 = vbcast.lane.b32.xlu1 %v7161_v39, 288 }
0x136e   :  { %7176 = vbcast.lane.b32.xlu0 %v7161_v39, 312  ;;  %7172 = vbcast.lane.b32.xlu1 %v7161_v39, 304 }
0x13a4   :  { %v7029_v19 = vpop.permute.xlu0 %7028  ;;  %v7025_v44 = vpop.permute.xlu1 %7024 }
0x13a5   :  { %v7211_v37 = vmul.f32 %v7029_v19, %v6981_v25  ;;  %v7210_v17 = vmul.f32 %v7025_v44, %v6981_v25  ;;  %v15432_v44 = vld [vmem:[#allocation14_spill] sm:$0xff] }
0x13a7   :  { %v13838_v34 = vadd.f32 %v7211_v37, %v15418_v56  ;;  %v13841_v63 = vadd.f32 %v7210_v17, %v15420_v60  ;;  %v15434_v17 = vld [vmem:[#allocation46_spill] sm:$0xff] }
0x13a8   :  { %v7037_v2 = vpop.permute.xlu0 %7036  ;;  %v7033_v43 = vpop.permute.xlu1 %7032 }
0x13a9   :  { %15419 = vst [vmem:[#allocation40_spill] sm:$0xff] %v13838_v34  ;;  %15421 = vst [vmem:[#allocation39_spill] sm:$0xff] %v13841_v63  ;;  %v7282_v15 = vpack.c.bf16 %v13838_v34, %v13841_v63  ;;  %v7213_v48 = vmul.f32 %v7037_v2, %v6981_v25  ;;  %v7212_v49 = vmul.f32 %v7033_v43, %v6981_v25 }
0x13ab   :  { %v13848_v7 = vadd.f32 %v7213_v48, %v13391_v32  ;;  %v13851_v50 = vadd.f32 %v7212_v49, %v15423_v46  ;;  %v7315_v18 = vunpack.c.h.b16 %v7282_v15  ;;  %v7314_v24 = vunpack.c.l.b16 %v7282_v15 }
0x13ac   :  { %v7049_v3 = vpop.permute.xlu0 %7048  ;;  %v7045_v28 = vpop.permute.xlu1 %7044 }
0x13ad   :  { %15424 = vst [vmem:[#allocation38_spill] sm:$0xff] %v13851_v50  ;;  %v7283_v54 = vpack.c.bf16 %v13848_v7, %v13851_v50  ;;  %v7215_v13 = vmul.f32 %v7049_v3, %v6985_v31  ;;  %v7214_v62 = vmul.f32 %v7045_v28, %v6985_v31  ;;  %7350 = vperm.xlu0 %10227, %v7315_v18  }
0x13ae   :  { %7347 = vperm.xlu1 %10228, %v7314_v24  }
0x13af   :  { %v13856_v8 = vadd.f32 %v7215_v13, %v15425_v61  ;;  %v13859_v32 = vadd.f32 %v7214_v62, %v15427_v14  ;;  %v7316_v33 = vunpack.c.l.b16 %v7283_v54  ;;  %v7317_v41 = vunpack.c.h.b16 %v7283_v54 }
0x13b0   :  { %v7057_v27 = vpop.permute.xlu0 %7056  ;;  %v7053_v42 = vpop.permute.xlu1 %7052 }
0x13b1   :  { %15426 = vst [vmem:[#allocation37_spill] sm:$0xff] %v13856_v8  ;;  %15428 = vst [vmem:[#allocation15_spill] sm:$0xff] %v13859_v32  ;;  %v7284_v11 = vpack.c.bf16 %v13856_v8, %v13859_v32  ;;  %v7217_v29 = vmul.f32 %v7057_v27, %v6985_v31  ;;  %v7216_v58 = vmul.f32 %v7053_v42, %v6985_v31  ;;  %v15436_v31 = vld [vmem:[#allocation29_spill] sm:$0xff] }
0x13b2   :  { %7353 = vperm.xlu1 %10228, %v7316_v33   ;;  %v6993_v46 = vrot.slane %v15436_v31, %v15416_v6  ;;  %v15465_v31 = vld [vmem:[#allocation10_spill] sm:$0xff] }
0x13b3   :  { %v13866_v52 = vadd.f32 %v7217_v29, %v13409_v53  ;;  %v13869_v30 = vadd.f32 %v7216_v58, %v15430_v1  ;;  %v7319_v20 = vunpack.c.h.b16 %v7284_v11  ;;  %v7318_v56 = vunpack.c.l.b16 %v7284_v11  ;;  %v15437_v1 = vld [vmem:[#allocation31_spill] sm:$0xff] }
0x13b4   :  { %v7069_v26 = vpop.permute.xlu0 %7068  ;;  %v7065_v40 = vpop.permute.xlu1 %7064 }
0x13b5   :  { %15431 = vst [vmem:[#allocation44_spill] sm:$0xff] %v13869_v30  ;;  %v7285_v39 = vpack.c.bf16 %v13866_v52, %v13869_v30  ;;  %v7219_v25 = vmul.f32 %v7069_v26, %v6989_v35  ;;  %v7218_v19 = vmul.f32 %v7065_v40, %v6989_v35  ;;  %7362 = vperm.xlu0 %10227, %v7319_v20  }
0x13b6   :  { %7356 = vperm.xlu1 %10228, %v7317_v41   ;;  %v6997_v41 = vrot.slane %v15437_v1, %v15416_v6 }
0x13b7   :  { %v13874_v37 = vadd.f32 %v7219_v25, %v15432_v44  ;;  %v13877_v53 = vadd.f32 %v7218_v19, %v15434_v17  ;;  %v7320_v60 = vunpack.c.l.b16 %v7285_v39  ;;  %v7321_v27 = vunpack.c.h.b16 %v7285_v39 }
0x13b8   :  { %v7077_v2 = vpop.permute.xlu0 %7076  ;;  %v7073_v43 = vpop.permute.xlu1 %7072 }
0x13b9   :  { %15433 = vst [vmem:[#allocation43_spill] sm:$0xff] %v13874_v37  ;;  %15435 = vst [vmem:[#allocation41_spill] sm:$0xff] %v13877_v53  ;;  %v7286_v15 = vpack.c.bf16 %v13874_v37, %v13877_v53  ;;  %v7221_v48 = vmul.f32 %v7077_v2, %v6989_v35  ;;  %v7220_v49 = vmul.f32 %v7073_v43, %v6989_v35  ;;  %7365 = vperm.xlu0 %10227, %v7320_v60  }
0x13ba   :  { %7359 = vperm.xlu1 %10228, %v7318_v56  }
0x13bb   :  { %v13884_v18 = vadd.f32 %v7221_v48, %v13427_v59  ;;  %v13887_v24 = vadd.f32 %v7220_v49, %v13430_v45  ;;  %v7323_v3 = vunpack.c.h.b16 %v7286_v15  ;;  %v7322_v28 = vunpack.c.l.b16 %v7286_v15  ;;  %v15438_v49 = vld [vmem:[#allocation32_spill] sm:$0xff] }
0x13bc   :  { %v7089_v54 = vpop.permute.xlu0 %7088  ;;  %v7085_v13 = vpop.permute.xlu1 %7084 }
0x13bd   :  { %v7287_v62 = vpack.c.bf16 %v13884_v18, %v13887_v24  ;;  %v7223_v61 = vmul.f32 %v7089_v54, %v6993_v46  ;;  %v7222_v14 = vmul.f32 %v7085_v13, %v6993_v46  ;;  %7374 = vperm.xlu0 %10227, %v7323_v3  }
0x13be   :  { %7371 = vperm.xlu1 %10228, %v7322_v28  }
0x13bf   :  { %v13892_v33 = vadd.f32 %v7223_v61, %v13435_v51  ;;  %v13895_v59 = vadd.f32 %v7222_v14, %v13438_v22  ;;  %v7324_v45 = vunpack.c.l.b16 %v7287_v62  ;;  %v7325_v56 = vunpack.c.h.b16 %v7287_v62 }
0x13c0   :  { %v7097_v42 = vpop.permute.xlu0 %7096  ;;  %v7093_v11 = vpop.permute.xlu1 %7092 }
0x13c1   :  { %v7288_v29 = vpack.c.bf16 %v13892_v33, %v13895_v59  ;;  %v7225_v58 = vmul.f32 %v7097_v42, %v6993_v46  ;;  %v7224_v35 = vmul.f32 %v7093_v11, %v6993_v46  ;;  %7368 = vperm.xlu0 %10227, %v7321_v27   ;;  %v7001_v46 = vrot.slane %v15438_v49, %v15416_v6  ;;  %v15439_v27 = vld [vmem:[#allocation13_spill] sm:$0xff]  ;;  %v15441_v42 = vld [vmem:[#allocation12_spill] sm:$0xff] }
0x13c2   :  { %7377 = vperm.xlu1 %10228, %v7324_v45  }
0x13c3   :  { %v13902_v51 = vadd.f32 %v7225_v58, %v13445_v9  ;;  %v13905_v22 = vadd.f32 %v7224_v35, %v13448_v38  ;;  %v7327_v20 = vunpack.c.h.b16 %v7288_v29  ;;  %v7326_v26 = vunpack.c.l.b16 %v7288_v29 }
0x13c4   :  { %v7109_v40 = vpop.permute.xlu0 %7108  ;;  %v7105_v39 = vpop.permute.xlu1 %7104 }
0x13c5   :  { %v7289_v25 = vpack.c.bf16 %v13902_v51, %v13905_v22  ;;  %v7227_v19 = vmul.f32 %v7109_v40, %v6997_v41  ;;  %v7226_v44 = vmul.f32 %v7105_v39, %v6997_v41  ;;  %7383 = vperm.xlu0 %10227, %v7326_v26   ;;  %v15443_v26 = vld [vmem:[#allocation35_spill] sm:$0xff] }
0x13c6   :  { %7386 = vperm.xlu1 %10228, %v7327_v20   ;;  %v7005_v40 = vrot.slane %v15443_v26, %v15416_v6  ;;  %v15444_v39 = vld [vmem:[#allocation23_spill] sm:$0xff] }
0x13c7   :  { %v13910_v17 = vadd.f32 %v7227_v19, %v13453_v55  ;;  %v13913_v9 = vadd.f32 %v7226_v44, %v13456_v0  ;;  %v7328_v38 = vunpack.c.l.b16 %v7289_v25  ;;  %v7329_v11 = vunpack.c.h.b16 %v7289_v25  ;;  %v15446_v44 = vld [vmem:[#allocation22_spill] sm:$0xff] }
0x13c8   :  { %v7117_v60 = vpop.permute.xlu0 %7116  ;;  %v7113_v2 = vpop.permute.xlu1 %7112 }
0x13c9   :  { %v7290_v43 = vpack.c.bf16 %v13910_v17, %v13913_v9  ;;  %v7229_v15 = vmul.f32 %v7117_v60, %v6997_v41  ;;  %v7228_v48 = vmul.f32 %v7113_v2, %v6997_v41  ;;  %7380 = vperm.xlu0 %10227, %v7325_v56  }
0x13ca   :  { %7389 = vperm.xlu1 %10228, %v7328_v38  }
0x13cb   :  { %v13920_v55 = vadd.f32 %v7229_v15, %v13463_v5  ;;  %v13923_v0 = vadd.f32 %v7228_v48, %v13466_v4  ;;  %v7331_v3 = vunpack.c.h.b16 %v7290_v43  ;;  %v7330_v28 = vunpack.c.l.b16 %v7290_v43 }
0x13cc   :  { %v7129_v54 = vpop.permute.xlu0 %7128  ;;  %v7125_v13 = vpop.permute.xlu1 %7124 }
0x13cd   :  { %v7291_v62 = vpack.c.bf16 %v13920_v55, %v13923_v0  ;;  %v7231_v61 = vmul.f32 %v7129_v54, %v7001_v46  ;;  %v7230_v14 = vmul.f32 %v7125_v13, %v7001_v46  ;;  %7395 = vperm.xlu0 %10227, %v7330_v28   ;;  %v15450_v28 = vld [vmem:[#allocation25_spill] sm:$0xff] }
0x13ce   :  { %7398 = vperm.xlu1 %10228, %v7331_v3  }
0x13cf   :  { %v13928_v45 = vadd.f32 %v7231_v61, %v15439_v27  ;;  %v13931_v5 = vadd.f32 %v7230_v14, %v15441_v42  ;;  %v7332_v4 = vunpack.c.l.b16 %v7291_v62  ;;  %v7333_v13 = vunpack.c.h.b16 %v7291_v62 }
0x13d0   :  { %v7137_v29 = vpop.permute.xlu0 %7136  ;;  %v7133_v58 = vpop.permute.xlu1 %7132 }
0x13d1   :  { %15440 = vst [vmem:[#allocation16_spill] sm:$0xff] %v13928_v45  ;;  %15442 = vst [vmem:[#allocation42_spill] sm:$0xff] %v13931_v5  ;;  %v7292_v35 = vpack.c.bf16 %v13928_v45, %v13931_v5  ;;  %v7233_v41 = vmul.f32 %v7137_v29, %v7001_v46  ;;  %v7232_v20 = vmul.f32 %v7133_v58, %v7001_v46  ;;  %7392 = vperm.xlu0 %10227, %v7329_v11   ;;  %v15448_v46 = vld [vmem:[#allocation27_spill] sm:$0xff]  ;;  %v15452_v29 = vld [vmem:[#allocation36_spill] sm:$0xff] }
0x13d2   :  { %7401 = vperm.xlu1 %10228, %v7332_v4   ;;  %v7009_v58 = vrot.slane %v15452_v29, %v15416_v6  ;;  %v15459_v6 = vld [vmem:[#allocation28_spill] sm:$0xff] }
0x13d3   :  { %v13938_v19 = vadd.f32 %v7233_v41, %v15444_v39  ;;  %v13941_v56 = vadd.f32 %v7232_v20, %v15446_v44  ;;  %v7335_v25 = vunpack.c.h.b16 %v7292_v35  ;;  %v7334_v38 = vunpack.c.l.b16 %v7292_v35  ;;  %v15453_v35 = vld [vmem:[#allocation24_spill] sm:$0xff]  ;;  %v15455_v20 = vld [vmem:[#allocation26_spill] sm:$0xff] }
0x13d4   :  { %v7149_v60 = vpop.permute.xlu0 %7148  ;;  %v7145_v2 = vpop.permute.xlu1 %7144 }
0x13d5   :  { %15445 = vst [vmem:[#allocation45_spill] sm:$0xff] %v13938_v19  ;;  %15447 = vst [vmem:[#allocation14_spill] sm:$0xff] %v13941_v56  ;;  %v7293_v43 = vpack.c.bf16 %v13938_v19, %v13941_v56  ;;  %v7235_v15 = vmul.f32 %v7149_v60, %v7005_v40  ;;  %v7234_v48 = vmul.f32 %v7145_v2, %v7005_v40  ;;  %7407 = vperm.xlu0 %10227, %v7334_v38  }
0x13d6   :  { %7410 = vperm.xlu1 %10228, %v7335_v25  }
0x13d7   :  { %v13946_v3 = vadd.f32 %v7235_v15, %v15448_v46  ;;  %v13949_v54 = vadd.f32 %v7234_v48, %v15450_v28  ;;  %v7336_v61 = vunpack.c.l.b16 %v7293_v43  ;;  %v15457_v15 = vld [vmem:[#allocation30_spill] sm:$0xff]  ;;  %v7337_v28 = vunpack.c.h.b16 %v7293_v43 }
0x13d8   :  { %v7157_v14 = vpop.permute.xlu0 %7156  ;;  %v7153_v27 = vpop.permute.xlu1 %7152 }
0x13d9   :  { %15449 = vst [vmem:[#allocation46_spill] sm:$0xff] %v13946_v3  ;;  %15451 = vst [vmem:[#allocation13_spill] sm:$0xff] %v13949_v54  ;;  %v7294_v42 = vpack.c.bf16 %v13946_v3, %v13949_v54  ;;  %v7237_v11 = vmul.f32 %v7157_v14, %v7005_v40  ;;  %v7236_v4 = vmul.f32 %v7153_v27, %v7005_v40  ;;  %7404 = vperm.xlu0 %10227, %v7333_v13  }
0x13da   :  { %7413 = vperm.xlu1 %10228, %v7336_v61  }
0x13db   :  { %v13956_v41 = vadd.f32 %v7237_v11, %v15453_v35  ;;  %v13959_v39 = vadd.f32 %v7236_v4, %v15455_v20  ;;  %v7339_v62 = vunpack.c.h.b16 %v7294_v42  ;;  %v7338_v44 = vunpack.c.l.b16 %v7294_v42  ;;  %v15461_v4 = vld [vmem:[#allocation34_spill] sm:$0xff]  ;;  %v15463_v20 = vld [vmem:[#allocation33_spill] sm:$0xff] }
0x13dc   :  { %v7169_v25 = vpop.permute.xlu0 %7168  ;;  %v7165_v38 = vpop.permute.xlu1 %7164 }
0x13dd   :  { %15454 = vst [vmem:[#allocation12_spill] sm:$0xff] %v13956_v41  ;;  %15456 = vst [vmem:[#allocation23_spill] sm:$0xff] %v13959_v39  ;;  %v7295_v60 = vpack.c.bf16 %v13956_v41, %v13959_v39  ;;  %v7239_v2 = vmul.f32 %v7169_v25, %v7009_v58  ;;  %v7238_v40 = vmul.f32 %v7165_v38, %v7009_v58  ;;  %7419 = vperm.xlu0 %10227, %v7338_v44  }
0x13de   :  { %7422 = vperm.xlu1 %10228, %v7339_v62  }
0x13df   :  { %v13964_v48 = vadd.f32 %v7239_v2, %v15457_v15  ;;  %v13967_v46 = vadd.f32 %v7238_v40, %v15459_v6  ;;  %v7340_v13 = vunpack.c.l.b16 %v7295_v60  ;;  %v7341_v38 = vunpack.c.h.b16 %v7295_v60 }
0x13e0   :  { %v7177_v61 = vpop.permute.xlu0 %7176  ;;  %v7173_v14 = vpop.permute.xlu1 %7172 }
0x13e1   :  { %15458 = vst [vmem:[#allocation22_spill] sm:$0xff] %v13964_v48  ;;  %15460 = vst [vmem:[#allocation27_spill] sm:$0xff] %v13967_v46  ;;  %v7296_v27 = vpack.c.bf16 %v13964_v48, %v13967_v46  ;;  %v7241_v42 = vmul.f32 %v7177_v61, %v7009_v58  ;;  %v7240_v11 = vmul.f32 %v7173_v14, %v7009_v58  ;;  %7416 = vperm.xlu0 %10227, %v7337_v28  }
0x13e2   :  { %7425 = vperm.xlu1 %10228, %v7340_v13  }
0x13e3   :  { %v13972_v35 = vadd.f32 %v7241_v42, %v15461_v4  ;;  %v13975_v62 = vadd.f32 %v7240_v11, %v15463_v20  ;;  %v7343_v44 = vunpack.c.h.b16 %v7296_v27  ;;  %v7342_v25 = vunpack.c.l.b16 %v7296_v27 }
0x13e5   :  { %15462 = vst [vmem:[#allocation25_spill] sm:$0xff] %v13972_v35  ;;  %15464 = vst [vmem:[#allocation24_spill] sm:$0xff] %v13975_v62  ;;  %v7297_v43 = vpack.c.bf16 %v13972_v35, %v13975_v62  ;;  %7431 = vperm.xlu0 %10227, %v7342_v25  }
0x13e6   :  { %7434 = vperm.xlu1 %10228, %v7343_v44  }
0x13e7   :  { %v7344_v2 = vunpack.c.l.b16 %v7297_v43  ;;  %v7345_v58 = vunpack.c.h.b16 %v7297_v43 }
0x13e9   :  { %7428 = vperm.xlu0 %10227, %v7341_v38  }
0x13ea   :  { %7437 = vperm.xlu1 %10228, %v7344_v2  }
0x13ed   :  { %7440 = vperm.xlu0 %10227, %v7345_v58  }
0x13ee   :  { %7842 = vperm.xlu1 %10228, %v13838_v34   ;;  %v15468_v34 = vld [vmem:[#allocation49_spill] sm:$0xff] }
0x13f1   :  { %7839 = vperm.xlu0 %10227, %v13841_v63  }
0x13f2   :  { %7854 = vperm.xlu1 %10228, %v13856_v8  }
0x13f5   :  { %7851 = vperm.xlu0 %10227, %v13859_v32  }
0x13f6   :  { %7845 = vperm.xlu1 %10228, %v13851_v50   ;;  %v15467_v50 = vld [vmem:[#allocation48_spill] sm:$0xff] }
0x13f9   :  { %7857 = vperm.xlu0 %10227, %v13869_v30  }
0x13fa   :  { %7863 = vperm.xlu1 %10228, %v13877_v53  }
0x13fd   :  { %7866 = vperm.xlu0 %10227, %v13874_v37   ;;  %v15466_v37 = vld [vmem:[#allocation47_spill] sm:$0xff] }
0x142c   :  { %v7351_v40 = vpop.permute.xlu0 %7350 }
0x142d   :  { %v7348_v60 = vpop.permute.xlu1 %7347  ;;  %v7449_v30 = vrot.slane %v7351_v40, %v15466_v37 }
0x142e   :  { %v7445_v21 = vrot.slane %v7348_v60, %v15465_v31 }
0x1430   :  { %v7450_v40 = vsel %vm1818_vm12, %v7449_v30, %v7445_v21 }
0x1431   :  { %v7354_v15 = vpop.permute.xlu1 %7353 }
0x1432   :  { %v7454_v47 = vrot.slane %v7354_v15, %v15467_v50 }
0x1434   :  { %v7363_v6 = vpop.permute.xlu0 %7362  ;;  %v7455_v15 = vsel %vm1825_vm13, %v7454_v47, %v7450_v40 }
0x1435   :  { %v7357_v28 = vpop.permute.xlu1 %7356  ;;  %v7468_v63 = vrot.slane %v7363_v6, %v15466_v37 }
0x1436   :  { %v7459_v57 = vrot.slane %v7357_v28, %v15468_v34 }
0x1438   :  { %v7366_v13 = vpop.permute.xlu0 %7365 }
0x1439   :  { %v7360_v61 = vpop.permute.xlu1 %7359  ;;  %v7473_v10 = vrot.slane %v7366_v13, %v15467_v50 }
0x143a   :  { %v7464_v53 = vrot.slane %v7360_v61, %v15465_v31 }
0x143c   :  { %v7375_v14 = vpop.permute.xlu0 %7374  ;;  %v7469_v36 = vsel %vm1818_vm12, %v7468_v63, %v7464_v53  ;;  %v7460_v63 = vsel %vm1832_vm14, %v7459_v57, %v7455_v15 }
0x143d   :  { %v7372_v27 = vpop.permute.xlu1 %7371  ;;  %v7487_v16 = vrot.slane %v7375_v14, %v15466_v37  ;;  %v7474_v53 = vsel %vm1825_vm13, %v7473_v10, %v7469_v36 }
0x143e   :  { %v7483_v61 = vrot.slane %v7372_v27, %v15465_v31 }
0x1440   :  { %v7369_v42 = vpop.permute.xlu0 %7368  ;;  %v7488_v14 = vsel %vm1818_vm12, %v7487_v16, %v7483_v61 }
0x1441   :  { %v7378_v11 = vpop.permute.xlu1 %7377  ;;  %v7478_v60 = vrot.slane %v7369_v42, %v15468_v34 }
0x1442   :  { %v7492_v6 = vrot.slane %v7378_v11, %v15467_v50 }
0x1443   :  { %v7479_v47 = vsel %vm1832_vm14, %v7478_v60, %v7474_v53 }
0x1444   :  { %v7384_v4 = vpop.permute.xlu0 %7383  ;;  %v7493_v36 = vsel %vm1825_vm13, %v7492_v6, %v7488_v14 }
0x1445   :  { %v7387_v20 = vpop.permute.xlu1 %7386  ;;  %v7502_v28 = vrot.slane %v7384_v4, %v15465_v31 }
0x1446   :  { %v7506_v13 = vrot.slane %v7387_v20, %v15466_v37 }
0x1448   :  { %v7381_v44 = vpop.permute.xlu0 %7380  ;;  %v7507_v16 = vsel %vm1818_vm12, %v7506_v13, %v7502_v28 }
0x1449   :  { %v7390_v25 = vpop.permute.xlu1 %7389  ;;  %v7497_v42 = vrot.slane %v7381_v44, %v15468_v34 }
0x144a   :  { %v7511_v21 = vrot.slane %v7390_v25, %v15467_v50 }
0x144c   :  { %v7396_v43 = vpop.permute.xlu0 %7395 }
0x144d   :  { %v7399_v38 = vpop.permute.xlu1 %7398  ;;  %v7521_v30 = vrot.slane %v7396_v43, %v15465_v31 }
0x144e   :  { %v7525_v27 = vrot.slane %v7399_v38, %v15466_v37 }
0x1450   :  { %v7393_v2 = vpop.permute.xlu0 %7392  ;;  %v7526_v61 = vsel %vm1818_vm12, %v7525_v27, %v7521_v30 }
0x1451   :  { %v7402_v58 = vpop.permute.xlu1 %7401  ;;  %v7516_v11 = vrot.slane %v7393_v2, %v15468_v34 }
0x1452   :  { %v7530_v4 = vrot.slane %v7402_v58, %v15467_v50  ;;  %v7512_v58 = vsel %vm1825_vm13, %v7511_v21, %v7507_v16 }
0x1454   :  { %v7408_v29 = vpop.permute.xlu0 %7407 }
0x1455   :  { %v7411_v26 = vpop.permute.xlu1 %7410  ;;  %v7540_v10 = vrot.slane %v7408_v29, %v15465_v31  ;;  %v7594_v29 = vsel %vm763_vm4, %v7479_v47, %v7460_v63 }
0x1456   :  { %v7544_v25 = vrot.slane %v7411_v26, %v15466_v37  ;;  %v7498_v26 = vsel %vm1832_vm14, %v7497_v42, %v7493_v36 }
0x1457   :  { %v7595_v14 = vsel %vm765_vm5, %v7498_v26, %v7594_v29 }
0x1458   :  { %v7405_v49 = vpop.permute.xlu0 %7404 }
0x1459   :  { %v7414_v1 = vpop.permute.xlu1 %7413  ;;  %v7535_v43 = vrot.slane %v7405_v49, %v15468_v34  ;;  %v7517_v49 = vsel %vm1832_vm14, %v7516_v11, %v7512_v58 }
0x145a   :  { %v7549_v38 = vrot.slane %v7414_v1, %v15467_v50  ;;  %v7531_v1 = vsel %vm1825_vm13, %v7530_v4, %v7526_v61  ;;  %v7596_v27 = vsel %vm767_vm6, %v7517_v49, %v7595_v14  ;;  %v14097_v14 = vld [vmem:[#allocation2 + $0x16] sm:$0x1] }
0x145c   :  { %v7420_v32 = vpop.permute.xlu0 %7419 }
0x145d   :  { %v7423_v8 = vpop.permute.xlu1 %7422  ;;  %v7559_v44 = vrot.slane %v7420_v32, %v15465_v31 }
0x145e   :  { %v7563_v2 = vrot.slane %v7423_v8, %v15466_v37  ;;  %v7545_v8 = vsel %vm1818_vm12, %v7544_v25, %v7540_v10 }
0x145f   :  { %v7550_v13 = vsel %vm1825_vm13, %v7549_v38, %v7545_v8  ;;  %v15469_v38 = vmov 0.0  }
0x1460   :  { %v7417_v12 = vpop.permute.xlu0 %7416  ;;  %v7564_v63 = vsel %vm1818_vm12, %v7563_v2, %v7559_v44  ;;  %v15470_v2 = vld [vmem:[#allocation11_spill] sm:$0xff] }
0x1461   :  { %v7426_v23 = vpop.permute.xlu1 %7425  ;;  %v7554_v40 = vrot.slane %v7417_v12, %v15468_v34 }
0x1462   :  { %v7568_v60 = vrot.slane %v7426_v23, %v15467_v50  ;;  %v7536_v23 = vsel %vm1832_vm14, %v7535_v43, %v7531_v1 }
0x1463   :  { %v7555_v21 = vsel %vm1832_vm14, %v7554_v40, %v7550_v13  ;;  %v7597_v11 = vsel %vm769_vm7, %v7536_v23, %v7596_v27  ;;  %v14093_v13 = vld [vmem:[#allocation2 + $0xe] sm:$0x1] }
0x1464   :  { %v7432_v20 = vpop.permute.xlu0 %7431  ;;  %v7569_v30 = vsel %vm1825_vm13, %v7568_v60, %v7564_v63 }
0x1465   :  { %v7435_v57 = vpop.permute.xlu1 %7434  ;;  %v7578_v6 = vrot.slane %v7432_v20, %v15465_v31 }
0x1466   :  { %v7582_v28 = vrot.slane %v7435_v57, %v15466_v37  ;;  %v7598_v57 = vsel %vm771_vm8, %v7555_v21, %v7597_v11 }
0x1468   :  { %v7429_v15 = vpop.permute.xlu0 %7428  ;;  %v7583_v4 = vsel %vm1818_vm12, %v7582_v28, %v7578_v6  ;;  %v14088_v28 = vld [vmem:[#allocation2 + $0x6] sm:$0x1] }
0x1469   :  { %v7438_v32 = vpop.permute.xlu1 %7437  ;;  %v7573_v12 = vrot.slane %v7429_v15, %v15468_v34 }
0x146a   :  { %v7587_v53 = vrot.slane %v7438_v32, %v15467_v50 }
0x146b   :  { %v7574_v47 = vsel %vm1832_vm14, %v7573_v12, %v7569_v30 }
0x146c   :  { %v7441_v42 = vpop.permute.xlu0 %7440  ;;  %v7588_v36 = vsel %vm1825_vm13, %v7587_v53, %v7583_v4  ;;  %v7599_v16 = vsel %vm773_vm9, %v7574_v47, %v7598_v57  ;;  %v14101_v47 = vld [vmem:[#allocation2 + $0x1e] sm:$0x1]  ;;  %v14104_v4 = vld [vmem:[#allocation2 + $0x26] sm:$0x1] }
0x146d   :  { %v7592_v20 = vrot.slane %v7441_v42, %v15468_v34 }
0x146f   :  { %v7593_v10 = vsel %vm1832_vm14, %v7592_v20, %v7588_v36 }
0x1470   :  { %v7600_v25 = vsel %vm775_vm10, %v7593_v10, %v7599_v16 }
0x1471   :  { %v7601_v43 = vpack.c.b16 %v7600_v25, %v7600_v25  ;;  %v14109_v25 = vld [vmem:[#allocation2 + $0x2e] sm:$0x1] }
0x1473   :  { %10188 = vmatmul.mubr.msk.bf16.vlgmr.msra.gmra.mrb[20].mxu1 %vm445_vm0, %v7601_v43 }
0x1474   :  { %10211 = vmatprep.mubr.msk.bf16.mxu1 %vm10787_vm1, %v15469_v38  ;;  %vm15551_vm1 = vcmask 785408  }
0x1546   :  { %v14053_v44 = vpop.f32.mrb[20].mxu1 }
0x1547   :  { %v7717_v58 = vadd.f32 %v14053_v44, %v15470_v2  ;;  %v10189_v61 = vpop.f32.mrb[21].mxu1  ;;  %v7646_v6 = vrot.slane %v14053_v44, 1  ;;  %v7661_v12 = vadd.f32 %v14053_v44, %v14088_v28  ;;  %v7647_v23 = vrot.slane %v14053_v44, 2 }
0x1548   :  { %v7642_v40 = vpop.f32.mrb[22].mxu1  ;;  %v7648_v53 = vrot.slane %v14053_v44, 3  ;;  %v7649_v27 = vrot.slane %v14053_v44, 4  ;;  %v7650_v20 = vrot.slane %v14053_v44, 5  ;;  %v7651_v16 = vrot.slane %v14053_v44, 6 }
0x1549   :  { %7726 = vrot.lane.b32.xlu1 %v7717_v58, %s10784_s25  ;;  %v10190_v60 = vpop.f32.mrb[23].mxu1  ;;  %v7719_v29 = vrot.slane %v7717_v58, 1  ;;  %v7720_v26 = vrot.slane %v7717_v58, 2  ;;  %v7721_v49 = vrot.slane %v7717_v58, 3  ;;  %v7722_v1 = vrot.slane %v7717_v58, 4 }
0x154a   :  { %v7723_v15 = vrot.slane %v7717_v58, 5  ;;  %v7724_v32 = vrot.slane %v7717_v58, 6  ;;  %v7725_v8 = vrot.slane %v7717_v58, 7  ;;  %v7662_v63 = vadd.f32 %v7646_v6, %v14093_v13  ;;  %v14112_v58 = vld [vmem:[#allocation2 + $0x36] sm:$0x1] }
0x154b   :  { %7728 = vrot.lane.b32.xlu0 %v7719_v29, %s10784_s25  ;;  %v10021_v21 = vmul.f32 -1.442695, %v7661_v12  ;;  %v7663_v30 = vadd.f32 %v7647_v23, %v14097_v14  ;;  %v7664_v11 = vadd.f32 %v7648_v53, %v14101_v47  ;;  %v7665_v36 = vadd.f32 %v7649_v27, %v14104_v4  ;;  %v14116_v29 = vpop.permute.xlu1 %7842 }
0x154c   :  { %v10022_v42 = vmul.f32 -1.442695, %v7662_v63  ;;  %v7666_v43 = vadd.f32 %v7650_v20, %v14109_v25  ;;  %v7667_v40 = vadd.f32 %v7651_v16, %v14112_v58  ;;  %v7652_v60 = vrot.slane %v14053_v44, 7 }
0x154d   :  { %7730 = vrot.lane.b32.xlu1 %v7720_v26, %s10784_s25  ;;  %10649 = vpow2.f32 %v10021_v21  ;;  %v10023_v57 = vmul.f32 -1.442695, %v7663_v30  ;;  %v10024_v10 = vmul.f32 -1.442695, %v7664_v11  ;;  %v10025_v61 = vmul.f32 -1.442695, %v7665_v36  ;;  %v14118_v26 = vpop.permute.xlu0 %7839 }
0x154e   :  { %10651 = vpow2.f32 %v10022_v42 }
0x154f   :  { %7732 = vrot.lane.b32.xlu0 %v7721_v49, %s10784_s25  ;;  %10653 = vpow2.f32 %v10023_v57  ;;  %v10026_v49 = vmul.f32 -1.442695, %v7666_v43  ;;  %v14123_v6 = vpop.permute.xlu1 %7854 }
0x1550   :  { %10655 = vpow2.f32 %v10024_v10 }
0x1551   :  { %7734 = vrot.lane.b32.xlu1 %v7722_v1, %s10784_s25  ;;  %v14120_v1 = vld [vmem:[#allocation2 + $0x3e] sm:$0x1]  ;;  %10657 = vpow2.f32 %v10025_v61  ;;  %v14125_v44 = vpop.permute.xlu0 %7851 }
0x1552   :  { %10659 = vpow2.f32 %v10026_v49 }
0x1553   :  { %7736 = vrot.lane.b32.xlu0 %v7723_v15, %s10784_s25  ;;  %v10027_v15 = vmul.f32 -1.442695, %v7667_v40  ;;  %v14127_v27 = vpop.permute.xlu1 %7845 }
0x1555   :  { %7738 = vrot.lane.b32.xlu1 %v7724_v32, %s10784_s25  ;;  %v7668_v32 = vadd.f32 %v7652_v60, %v14120_v1  ;;  %10661 = vpow2.f32 %v10027_v15  ;;  %v14129_v20 = vpop.permute.xlu0 %7857 }
0x1557   :  { %7740 = vrot.lane.b32.xlu0 %v7725_v8, %s10784_s25  ;;  %v10650_v8 = vpop.eup %10649  ;;  %v10028_v23 = vmul.f32 -1.442695, %v7668_v32  ;;  %v14131_v43 = vpop.permute.xlu1 %7863 }
0x1558   :  { %v10652_v12 = vpop.eup %10651  ;;  %v7693_v63 = vadd.f32 1.0, %v10650_v8 }
0x1559   :  { %7860 = vperm.xlu1 %10228, %v13866_v52   ;;  %v10654_v53 = vpop.eup %10653  ;;  %v7694_v21 = vadd.f32 1.0, %v10652_v12  ;;  %10663 = vpow2.f32 %v10028_v23  ;;  %v14133_v40 = vpop.permute.xlu0 %7866 }
0x155a   :  { %v10656_v30 = vpop.eup %10655  ;;  %10665 = vrcp.f32 %v7693_v63  ;;  %v7695_v42 = vadd.f32 1.0, %v10654_v53 }
0x155b   :  { %7848 = vperm.xlu0 %10227, %v13848_v7   ;;  %v10658_v11 = vpop.eup %10657  ;;  %10667 = vrcp.f32 %v7694_v21  ;;  %v7696_v57 = vadd.f32 1.0, %v10656_v30 }
0x155c   :  { %v10660_v36 = vpop.eup %10659  ;;  %10669 = vrcp.f32 %v7695_v42  ;;  %v7697_v16 = vadd.f32 1.0, %v10658_v11 }
0x155d   :  { %7875 = vperm.xlu1 %10228, %v13895_v59   ;;  %10671 = vrcp.f32 %v7696_v57  ;;  %v7698_v61 = vadd.f32 1.0, %v10660_v36 }
0x155e   :  { %10673 = vrcp.f32 %v7697_v16 }
0x155f   :  { %7869 = vperm.xlu0 %10227, %v13887_v24   ;;  %v10662_v10 = vpop.eup %10661  ;;  %10675 = vrcp.f32 %v7698_v61 }
0x1560   :  { %v7699_v60 = vadd.f32 1.0, %v10662_v10 }
0x1561   :  { %7881 = vperm.xlu1 %10228, %v13905_v22  }
0x1562   :  { %10677 = vrcp.f32 %v7699_v60 }
0x1563   :  { %7878 = vperm.xlu0 %10227, %v13892_v33   ;;  %v10664_v49 = vpop.eup %10663 }
0x1564   :  { %v10666_v15 = vpop.eup %10665  ;;  %v7700_v63 = vadd.f32 1.0, %v10664_v49 }
0x1565   :  { %7890 = vperm.xlu1 %10228, %v13910_v17   ;;  %v10668_v12 = vpop.eup %10667 }
0x1566   :  { %v10670_v21 = vpop.eup %10669  ;;  %10679 = vrcp.f32 %v7700_v63 }
0x1567   :  { %7872 = vperm.xlu0 %10227, %v13884_v18   ;;  %v10672_v11 = vpop.eup %10671 }
0x1568   :  { %v10674_v16 = vpop.eup %10673 }
0x1569   :  { %7884 = vperm.xlu1 %10228, %v13902_v51   ;;  %v10676_v49 = vpop.eup %10675 }
0x156b   :  { %7887 = vperm.xlu0 %10227, %v13913_v9  }
0x156d   :  { %7899 = vperm.xlu1 %10228, %v13931_v5  }
0x156f   :  { %7893 = vperm.xlu0 %10227, %v13923_v0  }
0x1571   :  { %7905 = vperm.xlu1 %10228, %v13941_v56  }
0x1573   :  { %7902 = vperm.xlu0 %10227, %v13928_v45  }
0x1575   :  { %7914 = vperm.xlu1 %10228, %v13946_v3   ;;  %v15473_v3 = vld [vmem:[#allocation7_spill] sm:$0xff] }
0x1576   :  { %v7941_v56 = vrot.slane %v14116_v29, %v15473_v3  ;;  %v7960_v29 = vrot.slane %v14123_v6, %v15473_v3  ;;  %v7979_v6 = vrot.slane %v14133_v40, %v15473_v3 }
0x1577   :  { %7896 = vperm.xlu0 %10227, %v13920_v55  }
0x1579   :  { %7917 = vperm.xlu1 %10228, %v13959_v39   ;;  %v15472_v39 = vld [vmem:[#allocation50_spill] sm:$0xff] }
0x157b   :  { %7911 = vperm.xlu0 %10227, %v13949_v54  }
0x157d   :  { %7926 = vperm.xlu1 %10228, %v13964_v48  }
0x157f   :  { %7908 = vperm.xlu0 %10227, %v13938_v19   ;;  %v15474_v19 = vld [vmem:[#allocation51_spill] sm:$0xff] }
0x1583   :  { %7923 = vperm.xlu0 %10227, %v13967_v46   ;;  %v15471_v46 = vld [vmem:[#allocation9_spill] sm:$0xff] }
0x1584   :  { %v7937_v48 = vrot.slane %v14118_v26, %v15471_v46 }
0x1586   :  { %v7942_v45 = vsel %vm2317_vm15, %v7941_v56, %v7937_v48 }
0x1587   :  { %7920 = vperm.xlu0 %10227, %v13956_v41   ;;  %v7946_v41 = vrot.slane %v14127_v27, %v15472_v39 }
0x15bb   :  { %v7727_v32 = vpop.permute.xlu1 %7726 }
0x15bc   :  { %v7750_v8 = vmul.f32 %v10666_v15, %v7727_v32  ;;  %v10678_v15 = vpop.eup %10677 }
0x15bd   :  { %v7729_v23 = vpop.permute.xlu0 %7728  ;;  %v10680_v63 = vpop.eup %10679 }
0x15be   :  { %v7751_v53 = vmul.f32 %v10668_v12, %v7729_v23  ;;  %7766 = vrot.lane.b32.xlu1 %v7750_v8, %s10782_s30 }
0x15bf   :  { %v7731_v30 = vpop.permute.xlu1 %7730 }
0x15c0   :  { %v7752_v42 = vmul.f32 %v10670_v21, %v7731_v30  ;;  %7768 = vrot.lane.b32.xlu0 %v7751_v53, %s10782_s30 }
0x15c1   :  { %v7733_v57 = vpop.permute.xlu0 %7732 }
0x15c2   :  { %v7753_v36 = vmul.f32 %v10672_v11, %v7733_v57  ;;  %7770 = vrot.lane.b32.xlu1 %v7752_v42, %s10782_s30 }
0x15c3   :  { %v7735_v10 = vpop.permute.xlu1 %7734 }
0x15c4   :  { %v7754_v61 = vmul.f32 %v10674_v16, %v7735_v10  ;;  %7772 = vrot.lane.b32.xlu0 %v7753_v36, %s10782_s30 }
0x15c5   :  { %v7737_v60 = vpop.permute.xlu0 %7736 }
0x15c6   :  { %7774 = vrot.lane.b32.xlu1 %v7754_v61, %s10782_s30  ;;  %v7755_v8 = vmul.f32 %v10676_v49, %v7737_v60 }
0x15c7   :  { %v7739_v32 = vpop.permute.xlu1 %7738 }
0x15c8   :  { %v7756_v12 = vmul.f32 %v10678_v15, %v7739_v32 }
0x15c9   :  { %v7741_v23 = vpop.permute.xlu0 %7740 }
0x15ca   :  { %7776 = vrot.lane.b32.xlu1 %v7755_v8, %s10782_s30  ;;  %7778 = vrot.lane.b32.xlu0 %v7756_v12, %s10782_s30  ;;  %v7757_v53 = vmul.f32 %v10680_v63, %v7741_v23 }
0x15ce   :  { %7780 = vrot.lane.b32.xlu1 %v7757_v53, %s10782_s30  ;;  %7932 = vperm.xlu0 %10227, %v13972_v35  }
0x15d2   :  { %7929 = vperm.xlu1 %10228, %v13975_v62  }
0x15d8   :  { %v7861_v42 = vpop.permute.xlu1 %7860 }
0x15d9   :  { %v7970_v27 = vrot.slane %v7861_v42, %v15474_v19  ;;  %v7975_v42 = vrot.slane %v14131_v43, %v15471_v46 }
0x15da   :  { %v7849_v21 = vpop.permute.xlu0 %7848 }
0x15db   :  { %v7951_v5 = vrot.slane %v7849_v21, %v15474_v19 }
0x15dc   :  { %v14149_v57 = vpop.permute.xlu1 %7875 }
0x15de   :  { %v14145_v30 = vpop.permute.xlu0 %7869 }
0x15df   :  { %v7984_v21 = vrot.slane %v14145_v30, %v15472_v39 }
0x15e0   :  { %v14153_v16 = vpop.permute.xlu1 %7881 }
0x15e2   :  { %v14147_v11 = vpop.permute.xlu0 %7878 }
0x15e3   :  { %v7998_v30 = vrot.slane %v14147_v11, %v15473_v3 }
0x15e4   :  { %v14157_v61 = vpop.permute.xlu1 %7890 }
0x15e6   :  { %v14151_v36 = vpop.permute.xlu0 %7872 }
0x15e8   :  { %v14161_v49 = vpop.permute.xlu1 %7884 }
0x15ea   :  { %v14155_v10 = vpop.permute.xlu0 %7887 }
0x15ec   :  { %v14165_v32 = vpop.permute.xlu1 %7899 }
0x15ee   :  { %v14159_v60 = vpop.permute.xlu0 %7893 }
0x15f0   :  { %v14169_v12 = vpop.permute.xlu1 %7905 }
0x15f2   :  { %v14163_v15 = vpop.permute.xlu0 %7902 }
0x15f4   :  { %v14173_v63 = vpop.permute.xlu1 %7914 }
0x15f6   :  { %v14167_v8 = vpop.permute.xlu0 %7896 }
0x15f8   :  { %v14177_v38 = vpop.permute.xlu1 %7917 }
0x15fa   :  { %v14171_v23 = vpop.permute.xlu0 %7911 }
0x15fc   :  { %v14181_v34 = vpop.permute.xlu1 %7926 }
0x15fe   :  { %v14175_v53 = vpop.permute.xlu0 %7908 }
0x1602   :  { %v14179_v2 = vpop.permute.xlu0 %7923 }
0x1606   :  { %v14183_v50 = vpop.permute.xlu0 %7920 }
0x1630   :  { %v7767_v37 = vpop.permute.xlu1 %7766 }
0x1631   :  { %v7790_v31 = vadd.f32 %v7767_v37, %v14088_v28  ;;  %v7956_v28 = vrot.slane %v14125_v44, %v15471_v46 }
0x1632   :  { %v7769_v62 = vpop.permute.xlu0 %7768 }
0x1633   :  { %10681 = vtanh.f32 %v7790_v31  ;;  %v7791_v35 = vadd.f32 %v7769_v62, %v14093_v13  ;;  %v7947_v31 = vsel %vm2324_vm11, %v7946_v41, %v7942_v45  ;;  %v7965_v13 = vrot.slane %v14129_v20, %v15472_v39 }
0x1634   :  { %v7771_v54 = vpop.permute.xlu1 %7770  ;;  %v7961_v41 = vsel %vm2317_vm15, %v7960_v29, %v7956_v28  ;;  %v7980_v28 = vsel %vm2317_vm15, %v7979_v6, %v7975_v42  ;;  %v8008_v29 = vrot.slane %v14161_v49, %v15474_v19  ;;  %v8013_v49 = vrot.slane %v14155_v10, %v15471_v46 }
0x1635   :  { %10683 = vtanh.f32 %v7791_v35  ;;  %v7792_v37 = vadd.f32 %v7771_v54, %v14097_v14  ;;  %v7952_v35 = vsel %vm2331_vm3, %v7951_v5, %v7947_v31  ;;  %v15475_v54 = vld [vmem:[#allocation8_spill] sm:$0xff]  ;;  %v7966_v14 = vsel %vm2324_vm11, %v7965_v13, %v7961_v41 }
0x1636   :  { %v7773_v56 = vpop.permute.xlu0 %7772  ;;  %v7971_v5 = vsel %vm2331_vm3, %v7970_v27, %v7966_v14  ;;  %v7985_v40 = vsel %vm2324_vm11, %v7984_v21, %v7980_v28  ;;  %v8003_v27 = vrot.slane %v14153_v16, %v15472_v39  ;;  %v8022_v14 = vrot.slane %v14159_v60, %v15472_v39 }
0x1637   :  { %10685 = vtanh.f32 %v7792_v37  ;;  %v7793_v44 = vadd.f32 %v7773_v56, %v14101_v47  ;;  %v7989_v37 = vrot.slane %v14151_v36, %v15474_v19  ;;  %v7994_v36 = vrot.slane %v14149_v57, %v15471_v46 }
0x1638   :  { %v7775_v31 = vpop.permute.xlu1 %7774  ;;  %v8017_v16 = vrot.slane %v14157_v61, %v15473_v3  ;;  %v8036_v60 = vrot.slane %v14163_v15, %v15473_v3 }
0x1639   :  { %10687 = vtanh.f32 %v7793_v44  ;;  %v7794_v43 = vadd.f32 %v7775_v31, %v14104_v4  ;;  %v8046_v31 = vrot.slane %v14175_v53, %v15474_v19  ;;  %v8055_v53 = vrot.slane %v14173_v63, %v15473_v3 }
0x163a   :  { %v8018_v6 = vsel %vm2317_vm15, %v8017_v16, %v8013_v49  ;;  %v15476_v49 = vld [vmem:[#allocation18_spill] sm:$0xff] }
0x163b   :  { %10689 = vtanh.f32 %v7794_v43  ;;  %v8023_v10 = vsel %vm2324_vm11, %v8022_v14, %v8018_v6  ;;  %v8065_v43 = vrot.slane %v14183_v50, %v15474_v19  ;;  %v8074_v50 = vrot.slane %v14181_v34, %v15473_v3  ;;  %v15477_v14 = vld [vmem:[#allocation19_spill] sm:$0xff]  ;;  %v15478_v6 = vld [vmem:[#allocation40_spill] sm:$0xff] }
0x163c   :  { %v7777_v11 = vpop.permute.xlu1 %7776  ;;  %v7779_v44 = vpop.permute.xlu0 %7778  ;;  %v8105_v16 = vrot.slane %v15477_v14, %v15476_v49 }
0x163d   :  { %v10682_v62 = vpop.eup %10681  ;;  %v7796_v61 = vadd.f32 %v7779_v44, %v14112_v58 }
0x163e   :  { %v8094_v26 = vsub.f32 %v10682_v62, %v7952_v35  ;;  %v7990_v35 = vsel %vm2331_vm3, %v7989_v37, %v7985_v40 }
0x163f   :  { %v10684_v45 = vpop.eup %10683 }
0x1640   :  { %v8145_v48 = vrot.slane %v8094_v26, %v15475_v54  ;;  %v8095_v20 = vsub.f32 %v10684_v45, %v7971_v5  ;;  %v7999_v26 = vsel %vm2317_vm15, %v7998_v30, %v7994_v36  ;;  %v7795_v45 = vadd.f32 %v7777_v11, %v14109_v25  ;;  %v7781_v28 = vpop.permute.xlu1 %7780 }
0x1641   :  { %v10686_v47 = vpop.eup %10685  ;;  %v8004_v4 = vsel %vm2324_vm11, %v8003_v27, %v7999_v26  ;;  %v8027_v5 = vrot.slane %v14167_v8, %v15474_v19  ;;  %v8032_v8 = vrot.slane %v14165_v32, %v15471_v46  ;;  %v8051_v32 = vrot.slane %v14171_v23, %v15471_v46 }
0x1642   :  { %8152 = vbcast.lane.b32.xlu0 %v8145_v48, 296  ;;  %8148 = vbcast.lane.b32.xlu1 %v8145_v48, 288  ;;  %v8165_v62 = vrot.slane %v8095_v20, %v15475_v54  ;;  %v8096_v13 = vsub.f32 %v10686_v47, %v7990_v35  ;;  %v8009_v57 = vsel %vm2331_vm3, %v8008_v29, %v8004_v4  ;;  %10691 = vtanh.f32 %v7795_v45 }
0x1643   :  { %v8028_v21 = vsel %vm2331_vm3, %v8027_v5, %v8023_v10  ;;  %v8037_v37 = vsel %vm2317_vm15, %v8036_v60, %v8032_v8  ;;  %10693 = vtanh.f32 %v7796_v61  ;;  %v7797_v35 = vadd.f32 %v7781_v28, %v14120_v1  ;;  %v15480_v60 = vld [vmem:[#allocation39_spill] sm:$0xff] }
0x1644   :  { %v8185_v56 = vrot.slane %v8096_v13, %v15475_v54  ;;  %v8060_v36 = vrot.slane %v14177_v38, %v15472_v39  ;;  %v8070_v29 = vrot.slane %v14179_v2, %v15471_v46 }
0x1645   :  { %10695 = vtanh.f32 %v7797_v35 }
0x1646   :  { %8160 = vbcast.lane.b32.xlu0 %v8145_v48, 312  ;;  %8156 = vbcast.lane.b32.xlu1 %v8145_v48, 304  ;;  %v10688_v48 = vpop.eup %10687 }
0x1647   :  { %v8097_v41 = vsub.f32 %v10688_v48, %v8009_v57  ;;  %v10690_v25 = vpop.eup %10689 }
0x1648   :  { %v8098_v42 = vsub.f32 %v10690_v25, %v8028_v21 }
0x1649   :  { %v8205_v20 = vrot.slane %v8097_v41, %v15475_v54 }
0x164a   :  { %8172 = vbcast.lane.b32.xlu0 %v8165_v62, 296  ;;  %8168 = vbcast.lane.b32.xlu1 %v8165_v62, 288  ;;  %v8225_v15 = vrot.slane %v8098_v42, %v15475_v54 }
0x164c   :  { %v10692_v47 = vpop.eup %10691 }
0x164d   :  { %v10694_v26 = vpop.eup %10693  ;;  %v7933_v11 = vpop.permute.xlu0 %7932 }
0x164e   :  { %8180 = vbcast.lane.b32.xlu0 %v8165_v62, 312  ;;  %8176 = vbcast.lane.b32.xlu1 %v8165_v62, 304  ;;  %v8041_v62 = vrot.slane %v14169_v12, %v15472_v39  ;;  %v8056_v12 = vsel %vm2317_vm15, %v8055_v53, %v8051_v32  ;;  %v8084_v2 = vrot.slane %v7933_v11, %v15474_v19  ;;  %v15489_v11 = vld [vmem:[#allocation21_spill] sm:$0xff] }
0x164f   :  { %v8061_v1 = vsel %vm2324_vm11, %v8060_v36, %v8056_v12  ;;  %v10696_v45 = vpop.eup %10695 }
0x1650   :  { %v8042_v58 = vsel %vm2324_vm11, %v8041_v62, %v8037_v37  ;;  %v8066_v27 = vsel %vm2331_vm3, %v8065_v43, %v8061_v1  ;;  %v15482_v62 = vld [vmem:[#allocation20_spill] sm:$0xff] }
0x1651   :  { %v8047_v40 = vsel %vm2331_vm3, %v8046_v31, %v8042_v58  ;;  %v7930_v13 = vpop.permute.xlu1 %7929  ;;  %v8100_v38 = vsub.f32 %v10694_v26, %v8066_v27  ;;  %v15483_v58 = vld [vmem:[#allocation38_spill] sm:$0xff] }
0x1652   :  { %8192 = vbcast.lane.b32.xlu0 %v8185_v56, 296  ;;  %8188 = vbcast.lane.b32.xlu1 %v8185_v56, 288  ;;  %v8099_v30 = vsub.f32 %v10692_v47, %v8047_v40  ;;  %v8079_v63 = vrot.slane %v7930_v13, %v15472_v39  ;;  %v15485_v13 = vld [vmem:[#allocation37_spill] sm:$0xff] }
0x1653   :  { %v8265_v4 = vrot.slane %v8100_v38, %v15475_v54  ;;  %v8113_v38 = vrot.slane %v15489_v11, %v15476_v49 }
0x1654   :  { %v8245_v23 = vrot.slane %v8099_v30, %v15475_v54 }
0x1656   :  { %8200 = vbcast.lane.b32.xlu0 %v8185_v56, 312  ;;  %8196 = vbcast.lane.b32.xlu1 %v8185_v56, 304  ;;  %v8075_v56 = vsel %vm2317_vm15, %v8074_v50, %v8070_v29 }
0x1657   :  { %v8080_v48 = vsel %vm2324_vm11, %v8079_v63, %v8075_v56 }
0x1658   :  { %v8085_v57 = vsel %vm2331_vm3, %v8084_v2, %v8080_v48  ;;  %v15490_v48 = vld [vmem:[#allocation44_spill] sm:$0xff] }
0x1659   :  { %v8101_v34 = vsub.f32 %v10696_v45, %v8085_v57 }
0x165a   :  { %8212 = vbcast.lane.b32.xlu0 %v8205_v20, 296  ;;  %8208 = vbcast.lane.b32.xlu1 %v8205_v20, 288 }
0x165b   :  { %v8285_v41 = vrot.slane %v8101_v34, %v15475_v54 }
0x165e   :  { %8220 = vbcast.lane.b32.xlu0 %v8205_v20, 312  ;;  %8216 = vbcast.lane.b32.xlu1 %v8205_v20, 304 }
0x1662   :  { %8232 = vbcast.lane.b32.xlu0 %v8225_v15, 296  ;;  %8228 = vbcast.lane.b32.xlu1 %v8225_v15, 288 }
0x1666   :  { %8240 = vbcast.lane.b32.xlu0 %v8225_v15, 312  ;;  %8236 = vbcast.lane.b32.xlu1 %v8225_v15, 304  ;;  %v8109_v15 = vrot.slane %v15482_v62, %v15476_v49 }
0x166a   :  { %8252 = vbcast.lane.b32.xlu0 %v8245_v23, 296  ;;  %8248 = vbcast.lane.b32.xlu1 %v8245_v23, 288 }
0x166e   :  { %8260 = vbcast.lane.b32.xlu0 %v8245_v23, 312  ;;  %8256 = vbcast.lane.b32.xlu1 %v8245_v23, 304  ;;  %v15487_v23 = vld [vmem:[#allocation15_spill] sm:$0xff] }
0x1672   :  { %8272 = vbcast.lane.b32.xlu0 %v8265_v4, 296  ;;  %8268 = vbcast.lane.b32.xlu1 %v8265_v4, 288 }
0x1676   :  { %8280 = vbcast.lane.b32.xlu0 %v8265_v4, 312  ;;  %8276 = vbcast.lane.b32.xlu1 %v8265_v4, 304 }
0x167a   :  { %8292 = vbcast.lane.b32.xlu0 %v8285_v41, 296  ;;  %8288 = vbcast.lane.b32.xlu1 %v8285_v41, 288 }
0x167e   :  { %8300 = vbcast.lane.b32.xlu0 %v8285_v41, 312  ;;  %8296 = vbcast.lane.b32.xlu1 %v8285_v41, 304 }
0x16b4   :  { %v8153_v5 = vpop.permute.xlu0 %8152  ;;  %v8149_v44 = vpop.permute.xlu1 %8148 }
0x16b5   :  { %v8335_v20 = vmul.f32 %v8153_v5, %v8105_v16  ;;  %v8334_v25 = vmul.f32 %v8149_v44, %v8105_v16  ;;  %v15492_v44 = vld [vmem:[#allocation43_spill] sm:$0xff] }
0x16b7   :  { %v14288_v10 = vadd.f32 %v8335_v20, %v15478_v6  ;;  %v14291_v21 = vadd.f32 %v8334_v25, %v15480_v60  ;;  %v15494_v25 = vld [vmem:[#allocation41_spill] sm:$0xff] }
0x16b8   :  { %v8161_v61 = vpop.permute.xlu0 %8160  ;;  %v8157_v42 = vpop.permute.xlu1 %8156 }
0x16b9   :  { %15479 = vst [vmem:[#allocation26_spill] sm:$0xff] %v14288_v10  ;;  %15481 = vst [vmem:[#allocation30_spill] sm:$0xff] %v14291_v21  ;;  %v8406_v8 = vpack.c.bf16 %v14288_v10, %v14291_v21  ;;  %v8337_v37 = vmul.f32 %v8161_v61, %v8105_v16  ;;  %v8336_v31 = vmul.f32 %v8157_v42, %v8105_v16 }
0x16bb   :  { %v14298_v47 = vadd.f32 %v8337_v37, %v13848_v7  ;;  %v14301_v28 = vadd.f32 %v8336_v31, %v15483_v58  ;;  %v8439_v32 = vunpack.c.h.b16 %v8406_v8  ;;  %v8438_v40 = vunpack.c.l.b16 %v8406_v8 }
0x16bc   :  { %v8173_v30 = vpop.permute.xlu0 %8172  ;;  %v8169_v53 = vpop.permute.xlu1 %8168 }
0x16bd   :  { %15484 = vst [vmem:[#allocation28_spill] sm:$0xff] %v14301_v28  ;;  %v8407_v35 = vpack.c.bf16 %v14298_v47, %v14301_v28  ;;  %v8339_v12 = vmul.f32 %v8173_v30, %v8109_v15  ;;  %v8338_v43 = vmul.f32 %v8169_v53, %v8109_v15  ;;  %8474 = vperm.xlu0 %10227, %v8439_v32  }
0x16be   :  { %8471 = vperm.xlu1 %10228, %v8438_v40  }
0x16bf   :  { %v14306_v36 = vadd.f32 %v8339_v12, %v15485_v13  ;;  %v14309_v7 = vadd.f32 %v8338_v43, %v15487_v23  ;;  %v8440_v26 = vunpack.c.l.b16 %v8407_v35  ;;  %v8441_v4 = vunpack.c.h.b16 %v8407_v35 }
0x16c0   :  { %v8181_v29 = vpop.permute.xlu0 %8180  ;;  %v8177_v1 = vpop.permute.xlu1 %8176 }
0x16c1   :  { %15486 = vst [vmem:[#allocation34_spill] sm:$0xff] %v14306_v36  ;;  %15488 = vst [vmem:[#allocation33_spill] sm:$0xff] %v14309_v7  ;;  %v8408_v63 = vpack.c.bf16 %v14306_v36, %v14309_v7  ;;  %v8341_v50 = vmul.f32 %v8181_v29, %v8109_v15  ;;  %v8340_v27 = vmul.f32 %v8177_v1, %v8109_v15  ;;  %v15496_v15 = vld [vmem:[#allocation29_spill] sm:$0xff] }
0x16c2   :  { %8477 = vperm.xlu1 %10228, %v8440_v26   ;;  %v8117_v58 = vrot.slane %v15496_v15, %v15476_v49  ;;  %v15519_v15 = vld [vmem:[#allocation47_spill] sm:$0xff] }
0x16c3   :  { %v14316_v56 = vadd.f32 %v8341_v50, %v13866_v52  ;;  %v14319_v2 = vadd.f32 %v8340_v27, %v15490_v48  ;;  %v8443_v57 = vunpack.c.h.b16 %v8408_v63  ;;  %v8442_v6 = vunpack.c.l.b16 %v8408_v63  ;;  %v15497_v48 = vld [vmem:[#allocation31_spill] sm:$0xff] }
0x16c4   :  { %v8193_v45 = vpop.permute.xlu0 %8192  ;;  %v8189_v34 = vpop.permute.xlu1 %8188 }
0x16c5   :  { %15491 = vst [vmem:[#allocation9_spill] sm:$0xff] %v14319_v2  ;;  %v8409_v41 = vpack.c.bf16 %v14316_v56, %v14319_v2  ;;  %v8343_v16 = vmul.f32 %v8193_v45, %v8113_v38  ;;  %v8342_v5 = vmul.f32 %v8189_v34, %v8113_v38  ;;  %8486 = vperm.xlu0 %10227, %v8443_v57  }
0x16c6   :  { %8480 = vperm.xlu1 %10228, %v8441_v4   ;;  %v8121_v4 = vrot.slane %v15497_v48, %v15476_v49 }
0x16c7   :  { %v14324_v20 = vadd.f32 %v8343_v16, %v15492_v44  ;;  %v14327_v52 = vadd.f32 %v8342_v5, %v15494_v25  ;;  %v8444_v60 = vunpack.c.l.b16 %v8409_v41  ;;  %v8445_v29 = vunpack.c.h.b16 %v8409_v41 }
0x16c8   :  { %v8201_v61 = vpop.permute.xlu0 %8200  ;;  %v8197_v42 = vpop.permute.xlu1 %8196 }
0x16c9   :  { %15493 = vst [vmem:[#allocation50_spill] sm:$0xff] %v14324_v20  ;;  %15495 = vst [vmem:[#allocation7_spill] sm:$0xff] %v14327_v52  ;;  %v8410_v8 = vpack.c.bf16 %v14324_v20, %v14327_v52  ;;  %v8345_v37 = vmul.f32 %v8201_v61, %v8113_v38  ;;  %v8344_v31 = vmul.f32 %v8197_v42, %v8113_v38  ;;  %8489 = vperm.xlu0 %10227, %v8444_v60  }
0x16ca   :  { %8483 = vperm.xlu1 %10228, %v8442_v6  }
0x16cb   :  { %v14334_v32 = vadd.f32 %v8345_v37, %v13884_v18  ;;  %v14337_v40 = vadd.f32 %v8344_v31, %v13887_v24  ;;  %v8447_v30 = vunpack.c.h.b16 %v8410_v8  ;;  %v8446_v53 = vunpack.c.l.b16 %v8410_v8  ;;  %v15498_v31 = vld [vmem:[#allocation32_spill] sm:$0xff] }
0x16cc   :  { %v8213_v35 = vpop.permute.xlu0 %8212  ;;  %v8209_v12 = vpop.permute.xlu1 %8208 }
0x16cd   :  { %v8411_v43 = vpack.c.bf16 %v14334_v32, %v14337_v40  ;;  %v8347_v13 = vmul.f32 %v8213_v35, %v8117_v58  ;;  %v8346_v23 = vmul.f32 %v8209_v12, %v8117_v58  ;;  %8498 = vperm.xlu0 %10227, %v8447_v30  }
0x16ce   :  { %8495 = vperm.xlu1 %10228, %v8446_v53  }
0x16cf   :  { %v14342_v26 = vadd.f32 %v8347_v13, %v13892_v33  ;;  %v14345_v18 = vadd.f32 %v8346_v23, %v13895_v59  ;;  %v8448_v24 = vunpack.c.l.b16 %v8411_v43  ;;  %v8449_v6 = vunpack.c.h.b16 %v8411_v43 }
0x16d0   :  { %v8221_v1 = vpop.permute.xlu0 %8220  ;;  %v8217_v63 = vpop.permute.xlu1 %8216 }
0x16d1   :  { %v8412_v50 = vpack.c.bf16 %v14342_v26, %v14345_v18  ;;  %v8349_v27 = vmul.f32 %v8221_v1, %v8117_v58  ;;  %v8348_v38 = vmul.f32 %v8217_v63, %v8117_v58  ;;  %8492 = vperm.xlu0 %10227, %v8445_v29   ;;  %v8125_v58 = vrot.slane %v15498_v31, %v15476_v49  ;;  %v15499_v29 = vld [vmem:[#allocation16_spill] sm:$0xff]  ;;  %v15500_v1 = vld [vmem:[#allocation42_spill] sm:$0xff] }
0x16d2   :  { %8501 = vperm.xlu1 %10228, %v8448_v24  }
0x16d3   :  { %v14352_v33 = vadd.f32 %v8349_v27, %v13902_v51  ;;  %v14355_v59 = vadd.f32 %v8348_v38, %v13905_v22  ;;  %v8451_v57 = vunpack.c.h.b16 %v8412_v50  ;;  %v8450_v45 = vunpack.c.l.b16 %v8412_v50 }
0x16d4   :  { %v8233_v34 = vpop.permute.xlu0 %8232  ;;  %v8229_v41 = vpop.permute.xlu1 %8228 }
0x16d5   :  { %v8413_v16 = vpack.c.bf16 %v14352_v33, %v14355_v59  ;;  %v8351_v5 = vmul.f32 %v8233_v34, %v8121_v4  ;;  %v8350_v44 = vmul.f32 %v8229_v41, %v8121_v4  ;;  %8507 = vperm.xlu0 %10227, %v8450_v45   ;;  %v15501_v45 = vld [vmem:[#allocation35_spill] sm:$0xff]  ;;  %v15502_v41 = vld [vmem:[#allocation45_spill] sm:$0xff] }
0x16d6   :  { %8510 = vperm.xlu1 %10228, %v8451_v57   ;;  %v8129_v34 = vrot.slane %v15501_v45, %v15476_v49 }
0x16d7   :  { %v14360_v25 = vadd.f32 %v8351_v5, %v13910_v17  ;;  %v14363_v51 = vadd.f32 %v8350_v44, %v13913_v9  ;;  %v8452_v22 = vunpack.c.l.b16 %v8413_v16  ;;  %v8453_v63 = vunpack.c.h.b16 %v8413_v16  ;;  %v15503_v44 = vld [vmem:[#allocation14_spill] sm:$0xff] }
0x16d8   :  { %v8241_v60 = vpop.permute.xlu0 %8240  ;;  %v8237_v61 = vpop.permute.xlu1 %8236 }
0x16d9   :  { %v8414_v42 = vpack.c.bf16 %v14360_v25, %v14363_v51  ;;  %v8353_v8 = vmul.f32 %v8241_v60, %v8121_v4  ;;  %v8352_v37 = vmul.f32 %v8237_v61, %v8121_v4  ;;  %8504 = vperm.xlu0 %10227, %v8449_v6  }
0x16da   :  { %8513 = vperm.xlu1 %10228, %v8452_v22  }
0x16db   :  { %v14370_v17 = vadd.f32 %v8353_v8, %v13920_v55  ;;  %v14373_v9 = vadd.f32 %v8352_v37, %v13923_v0  ;;  %v8455_v30 = vunpack.c.h.b16 %v8414_v42  ;;  %v8454_v53 = vunpack.c.l.b16 %v8414_v42 }
0x16dc   :  { %v8253_v35 = vpop.permute.xlu0 %8252  ;;  %v8249_v12 = vpop.permute.xlu1 %8248 }
0x16dd   :  { %v8415_v43 = vpack.c.bf16 %v14370_v17, %v14373_v9  ;;  %v8355_v13 = vmul.f32 %v8253_v35, %v8125_v58  ;;  %v8354_v23 = vmul.f32 %v8249_v12, %v8125_v58  ;;  %8519 = vperm.xlu0 %10227, %v8454_v53   ;;  %v15505_v53 = vld [vmem:[#allocation13_spill] sm:$0xff] }
0x16de   :  { %8522 = vperm.xlu1 %10228, %v8455_v30  }
0x16df   :  { %v14378_v24 = vadd.f32 %v8355_v13, %v15499_v29  ;;  %v14381_v55 = vadd.f32 %v8354_v23, %v15500_v1  ;;  %v8456_v0 = vunpack.c.l.b16 %v8415_v43  ;;  %v8457_v12 = vunpack.c.h.b16 %v8415_v43 }
0x16e0   :  { %v8261_v50 = vpop.permute.xlu0 %8260  ;;  %v8257_v27 = vpop.permute.xlu1 %8256 }
0x16e1   :  { %v8416_v38 = vpack.c.bf16 %v14378_v24, %v14381_v55  ;;  %v8357_v4 = vmul.f32 %v8261_v50, %v8125_v58  ;;  %v8356_v57 = vmul.f32 %v8257_v27, %v8125_v58  ;;  %8516 = vperm.xlu0 %10227, %v8453_v63   ;;  %v15504_v58 = vld [vmem:[#allocation46_spill] sm:$0xff]  ;;  %v15506_v50 = vld [vmem:[#allocation36_spill] sm:$0xff] }
0x16e2   :  { %8525 = vperm.xlu1 %10228, %v8456_v0   ;;  %v8133_v27 = vrot.slane %v15506_v50, %v15476_v49  ;;  %v15513_v49 = vld [vmem:[#allocation27_spill] sm:$0xff] }
0x16e3   :  { %v14388_v5 = vadd.f32 %v8357_v4, %v15502_v41  ;;  %v14391_v6 = vadd.f32 %v8356_v57, %v15503_v44  ;;  %v8459_v16 = vunpack.c.h.b16 %v8416_v38  ;;  %v8458_v22 = vunpack.c.l.b16 %v8416_v38  ;;  %v15507_v38 = vld [vmem:[#allocation12_spill] sm:$0xff]  ;;  %v15509_v57 = vld [vmem:[#allocation23_spill] sm:$0xff] }
0x16e4   :  { %v8273_v60 = vpop.permute.xlu0 %8272  ;;  %v8269_v61 = vpop.permute.xlu1 %8268 }
0x16e5   :  { %v8417_v42 = vpack.c.bf16 %v14388_v5, %v14391_v6  ;;  %v8359_v8 = vmul.f32 %v8273_v60, %v8129_v34  ;;  %v8358_v37 = vmul.f32 %v8269_v61, %v8129_v34  ;;  %8531 = vperm.xlu0 %10227, %v8458_v22  }
0x16e6   :  { %8534 = vperm.xlu1 %10228, %v8459_v16  }
0x16e7   :  { %v14396_v30 = vadd.f32 %v8359_v8, %v15504_v58  ;;  %v14399_v35 = vadd.f32 %v8358_v37, %v15505_v53  ;;  %v8460_v13 = vunpack.c.l.b16 %v8417_v42  ;;  %v15511_v8 = vld [vmem:[#allocation22_spill] sm:$0xff]  ;;  %v8461_v53 = vunpack.c.h.b16 %v8417_v42 }
0x16e8   :  { %v8281_v23 = vpop.permute.xlu0 %8280  ;;  %v8277_v29 = vpop.permute.xlu1 %8276 }
0x16e9   :  { %v8418_v1 = vpack.c.bf16 %v14396_v30, %v14399_v35  ;;  %v8361_v63 = vmul.f32 %v8281_v23, %v8129_v34  ;;  %v8360_v0 = vmul.f32 %v8277_v29, %v8129_v34  ;;  %8528 = vperm.xlu0 %10227, %v8457_v12  }
0x16ea   :  { %8537 = vperm.xlu1 %10228, %v8460_v13  }
0x16eb   :  { %v14406_v4 = vadd.f32 %v8361_v63, %v15507_v38  ;;  %v14409_v41 = vadd.f32 %v8360_v0, %v15509_v57  ;;  %v8463_v43 = vunpack.c.h.b16 %v8418_v1  ;;  %v8462_v44 = vunpack.c.l.b16 %v8418_v1  ;;  %v15514_v0 = vld [vmem:[#allocation25_spill] sm:$0xff]  ;;  %v15516_v57 = vld [vmem:[#allocation24_spill] sm:$0xff] }
0x16ec   :  { %v8293_v16 = vpop.permute.xlu0 %8292  ;;  %v8289_v22 = vpop.permute.xlu1 %8288 }
0x16ed   :  { %15508 = vst [vmem:[#allocation18_spill] sm:$0xff] %v14406_v4  ;;  %15510 = vst [vmem:[#allocation40_spill] sm:$0xff] %v14409_v41  ;;  %v8419_v60 = vpack.c.bf16 %v14406_v4, %v14409_v41  ;;  %v8363_v61 = vmul.f32 %v8293_v16, %v8133_v27  ;;  %v8362_v34 = vmul.f32 %v8289_v22, %v8133_v27  ;;  %8543 = vperm.xlu0 %10227, %v8462_v44  }
0x16ee   :  { %8546 = vperm.xlu1 %10228, %v8463_v43  }
0x16ef   :  { %v14414_v37 = vadd.f32 %v8363_v61, %v15511_v8  ;;  %v14417_v58 = vadd.f32 %v8362_v34, %v15513_v49  ;;  %v8464_v12 = vunpack.c.l.b16 %v8419_v60  ;;  %v8465_v22 = vunpack.c.h.b16 %v8419_v60 }
0x16f0   :  { %v8301_v13 = vpop.permute.xlu0 %8300  ;;  %v8297_v23 = vpop.permute.xlu1 %8296 }
0x16f1   :  { %15512 = vst [vmem:[#allocation39_spill] sm:$0xff] %v14414_v37  ;;  %v8420_v29 = vpack.c.bf16 %v14414_v37, %v14417_v58  ;;  %v8365_v1 = vmul.f32 %v8301_v13, %v8133_v27  ;;  %v8364_v63 = vmul.f32 %v8297_v23, %v8133_v27  ;;  %8540 = vperm.xlu0 %10227, %v8461_v53  }
0x16f2   :  { %8549 = vperm.xlu1 %10228, %v8464_v12  }
0x16f3   :  { %v14422_v38 = vadd.f32 %v8365_v1, %v15514_v0  ;;  %v14425_v43 = vadd.f32 %v8364_v63, %v15516_v57  ;;  %v8467_v44 = vunpack.c.h.b16 %v8420_v29  ;;  %v8466_v16 = vunpack.c.l.b16 %v8420_v29 }
0x16f5   :  { %15515 = vst [vmem:[#allocation38_spill] sm:$0xff] %v14422_v38  ;;  %15517 = vst [vmem:[#allocation37_spill] sm:$0xff] %v14425_v43  ;;  %v8421_v42 = vpack.c.bf16 %v14422_v38, %v14425_v43  ;;  %8555 = vperm.xlu0 %10227, %v8466_v16  }
0x16f6   :  { %8558 = vperm.xlu1 %10228, %v8467_v44  }
0x16f7   :  { %v8468_v61 = vunpack.c.l.b16 %v8421_v42  ;;  %v8469_v27 = vunpack.c.h.b16 %v8421_v42 }
0x16f9   :  { %8552 = vperm.xlu0 %10227, %v8465_v22  }
0x16fa   :  { %8561 = vperm.xlu1 %10228, %v8468_v61  }
0x16fd   :  { %8564 = vperm.xlu0 %10227, %v8469_v27  }
0x16fe   :  { %8966 = vperm.xlu1 %10228, %v14288_v10   ;;  %v15521_v10 = vld [vmem:[#allocation49_spill] sm:$0xff] }
0x1701   :  { %8963 = vperm.xlu0 %10227, %v14291_v21  }
0x1702   :  { %8978 = vperm.xlu1 %10228, %v14306_v36  }
0x1705   :  { %8975 = vperm.xlu0 %10227, %v14309_v7  }
0x1706   :  { %8969 = vperm.xlu1 %10228, %v14301_v28   ;;  %v15520_v28 = vld [vmem:[#allocation48_spill] sm:$0xff] }
0x1709   :  { %8981 = vperm.xlu0 %10227, %v14319_v2  }
0x170a   :  { %8987 = vperm.xlu1 %10228, %v14327_v52   ;;  %v15518_v52 = vld [vmem:[#allocation10_spill] sm:$0xff] }
0x170d   :  { %8990 = vperm.xlu0 %10227, %v14324_v20  }
0x173c   :  { %v8475_v34 = vpop.permute.xlu0 %8474 }
0x173d   :  { %v8472_v60 = vpop.permute.xlu1 %8471  ;;  %v8573_v7 = vrot.slane %v8475_v34, %v15519_v15 }
0x173e   :  { %v8569_v36 = vrot.slane %v8472_v60, %v15518_v52 }
0x1740   :  { %v8574_v34 = vsel %vm1818_vm12, %v8573_v7, %v8569_v36 }
0x1741   :  { %v8478_v8 = vpop.permute.xlu1 %8477 }
0x1742   :  { %v8578_v62 = vrot.slane %v8478_v8, %v15520_v28 }
0x1744   :  { %v8487_v49 = vpop.permute.xlu0 %8486  ;;  %v8579_v8 = vsel %vm1825_vm13, %v8578_v62, %v8574_v34 }
0x1745   :  { %v8481_v53 = vpop.permute.xlu1 %8480  ;;  %v8592_v21 = vrot.slane %v8487_v49, %v15519_v15 }
0x1746   :  { %v8583_v14 = vrot.slane %v8481_v53, %v15521_v10 }
0x1748   :  { %v8490_v12 = vpop.permute.xlu0 %8489 }
0x1749   :  { %v8484_v13 = vpop.permute.xlu1 %8483  ;;  %v8597_v54 = vrot.slane %v8490_v12, %v15520_v28 }
0x174a   :  { %v8588_v20 = vrot.slane %v8484_v13, %v15518_v52 }
0x174c   :  { %v8499_v23 = vpop.permute.xlu0 %8498  ;;  %v8593_v19 = vsel %vm1818_vm12, %v8592_v21, %v8588_v20  ;;  %v8584_v21 = vsel %vm1832_vm14, %v8583_v14, %v8579_v8 }
0x174d   :  { %v8496_v29 = vpop.permute.xlu1 %8495  ;;  %v8611_v43 = vrot.slane %v8499_v23, %v15519_v15  ;;  %v8598_v20 = vsel %vm1825_vm13, %v8597_v54, %v8593_v19 }
0x174e   :  { %v8607_v13 = vrot.slane %v8496_v29, %v15518_v52 }
0x1750   :  { %v8493_v1 = vpop.permute.xlu0 %8492  ;;  %v8612_v23 = vsel %vm1818_vm12, %v8611_v43, %v8607_v13 }
0x1751   :  { %v8502_v63 = vpop.permute.xlu1 %8501  ;;  %v8602_v60 = vrot.slane %v8493_v1, %v15521_v10 }
0x1752   :  { %v8616_v49 = vrot.slane %v8502_v63, %v15520_v28 }
0x1753   :  { %v8603_v62 = vsel %vm1832_vm14, %v8602_v60, %v8598_v20 }
0x1754   :  { %v8508_v0 = vpop.permute.xlu0 %8507  ;;  %v8617_v19 = vsel %vm1825_vm13, %v8616_v49, %v8612_v23 }
0x1755   :  { %v8511_v57 = vpop.permute.xlu1 %8510  ;;  %v8626_v53 = vrot.slane %v8508_v0, %v15518_v52 }
0x1756   :  { %v8630_v12 = vrot.slane %v8511_v57, %v15519_v15 }
0x1758   :  { %v8505_v44 = vpop.permute.xlu0 %8504  ;;  %v8631_v54 = vsel %vm1818_vm12, %v8630_v12, %v8626_v53 }
0x1759   :  { %v8514_v16 = vpop.permute.xlu1 %8513  ;;  %v8621_v1 = vrot.slane %v8505_v44, %v15521_v10 }
0x175a   :  { %v8635_v36 = vrot.slane %v8514_v16, %v15520_v28 }
0x175c   :  { %v8520_v42 = vpop.permute.xlu0 %8519 }
0x175d   :  { %v8523_v22 = vpop.permute.xlu1 %8522  ;;  %v8645_v7 = vrot.slane %v8520_v42, %v15518_v52 }
0x175e   :  { %v8649_v29 = vrot.slane %v8523_v22, %v15519_v15 }
0x1760   :  { %v8517_v61 = vpop.permute.xlu0 %8516  ;;  %v8650_v13 = vsel %vm1818_vm12, %v8649_v29, %v8645_v7 }
0x1761   :  { %v8526_v27 = vpop.permute.xlu1 %8525  ;;  %v8640_v63 = vrot.slane %v8517_v61, %v15521_v10 }
0x1762   :  { %v8654_v0 = vrot.slane %v8526_v27, %v15520_v28  ;;  %v8636_v27 = vsel %vm1825_vm13, %v8635_v36, %v8631_v54 }
0x1764   :  { %v8532_v50 = vpop.permute.xlu0 %8531 }
0x1765   :  { %v8535_v45 = vpop.permute.xlu1 %8534  ;;  %v8664_v43 = vrot.slane %v8532_v50, %v15518_v52  ;;  %v8718_v50 = vsel %vm763_vm4, %v8603_v62, %v8584_v21 }
0x1766   :  { %v8668_v16 = vrot.slane %v8535_v45, %v15519_v15  ;;  %v8622_v45 = vsel %vm1832_vm14, %v8621_v1, %v8617_v19 }
0x1767   :  { %v8719_v23 = vsel %vm765_vm5, %v8622_v45, %v8718_v50 }
0x1768   :  { %v8529_v31 = vpop.permute.xlu0 %8528 }
0x1769   :  { %v8538_v48 = vpop.permute.xlu1 %8537  ;;  %v8659_v42 = vrot.slane %v8529_v31, %v15521_v10  ;;  %v8641_v31 = vsel %vm1832_vm14, %v8640_v63, %v8636_v27 }
0x176a   :  { %v8673_v22 = vrot.slane %v8538_v48, %v15520_v28  ;;  %v8655_v48 = vsel %vm1825_vm13, %v8654_v0, %v8650_v13 }
0x176c   :  { %v8544_v11 = vpop.permute.xlu0 %8543 }
0x176d   :  { %v8547_v2 = vpop.permute.xlu1 %8546  ;;  %v8683_v44 = vrot.slane %v8544_v11, %v15518_v52 }
0x176e   :  { %v8687_v61 = vrot.slane %v8547_v2, %v15519_v15  ;;  %v8669_v2 = vsel %vm1818_vm12, %v8668_v16, %v8664_v43 }
0x176f   :  { %v8674_v12 = vsel %vm1825_vm13, %v8673_v22, %v8669_v2  ;;  %v15522_v2 = vld [vmem:[#allocation11_spill] sm:$0xff] }
0x1770   :  { %v8541_v38 = vpop.permute.xlu0 %8540  ;;  %v8688_v21 = vsel %vm1818_vm12, %v8687_v61, %v8683_v44 }
0x1771   :  { %v8550_v4 = vpop.permute.xlu1 %8549  ;;  %v8678_v34 = vrot.slane %v8541_v38, %v15521_v10 }
0x1772   :  { %v8692_v60 = vrot.slane %v8550_v4, %v15520_v28  ;;  %v8660_v4 = vsel %vm1832_vm14, %v8659_v42, %v8655_v48 }
0x1773   :  { %v8679_v36 = vsel %vm1832_vm14, %v8678_v34, %v8674_v12 }
0x1774   :  { %v8556_v57 = vpop.permute.xlu0 %8555  ;;  %v8693_v7 = vsel %vm1825_vm13, %v8692_v60, %v8688_v21 }
0x1775   :  { %v8559_v14 = vpop.permute.xlu1 %8558  ;;  %v8702_v49 = vrot.slane %v8556_v57, %v15518_v52  ;;  %v8720_v52 = vsel %vm767_vm6, %v8641_v31, %v8719_v23 }
0x1776   :  { %v8706_v53 = vrot.slane %v8559_v14, %v15519_v15  ;;  %v8721_v1 = vsel %vm769_vm7, %v8660_v4, %v8720_v52 }
0x1778   :  { %v8553_v8 = vpop.permute.xlu0 %8552  ;;  %v8707_v63 = vsel %vm1818_vm12, %v8706_v53, %v8702_v49 }
0x1779   :  { %v8562_v11 = vpop.permute.xlu1 %8561  ;;  %v8697_v38 = vrot.slane %v8553_v8, %v15521_v10 }
0x177a   :  { %v8711_v20 = vrot.slane %v8562_v11, %v15520_v28  ;;  %v8722_v28 = vsel %vm771_vm8, %v8679_v36, %v8721_v1 }
0x177b   :  { %v8698_v15 = vsel %vm1832_vm14, %v8697_v38, %v8693_v7 }
0x177c   :  { %v8565_v29 = vpop.permute.xlu0 %8564  ;;  %v8712_v57 = vsel %vm1825_vm13, %v8711_v20, %v8707_v63  ;;  %v8723_v14 = vsel %vm773_vm9, %v8698_v15, %v8722_v28  ;;  %v15523_v15 = vld [vmem:[#allocation18_spill] sm:$0xff] }
0x177d   :  { %v8967_v62 = vpop.permute.xlu1 %8966  ;;  %v8716_v0 = vrot.slane %v8565_v29, %v15521_v10 }
0x177e   :  { %v9065_v22 = vrot.slane %v8967_v62, %v15473_v3  ;;  %v14550_v62 = vld [vmem:[#allocation2 + $0x7] sm:$0x1] }
0x177f   :  { %v8717_v19 = vsel %vm1832_vm14, %v8716_v0, %v8712_v57  ;;  %v14555_v0 = vld [vmem:[#allocation2 + $0xf] sm:$0x1] }
0x1780   :  { %v8724_v54 = vsel %vm775_vm10, %v8717_v19, %v8723_v14  ;;  %v8964_v43 = vpop.permute.xlu0 %8963  ;;  %v14559_v14 = vld [vmem:[#allocation2 + $0x17] sm:$0x1] }
0x1781   :  { %v8979_v16 = vpop.permute.xlu1 %8978  ;;  %v8725_v42 = vpack.c.b16 %v8724_v54, %v8724_v54  ;;  %v9061_v44 = vrot.slane %v8964_v43, %v15471_v46 }
0x1782   :  { %v9084_v13 = vrot.slane %v8979_v16, %v15473_v3  ;;  %v14563_v16 = vld [vmem:[#allocation2 + $0x1f] sm:$0x1] }
0x1783   :  { %v9066_v61 = vsel %vm2317_vm15, %v9065_v22, %v9061_v44  ;;  %10196 = vmatmul.mubr.msk.bf16.vlgmr.msra.gmra.mrb[20].mxu0 %vm445_vm0, %v8725_v42  ;;  %v14566_v44 = vld [vmem:[#allocation2 + $0x27] sm:$0x1] }
0x1784   :  { %v8976_v10 = vpop.permute.xlu0 %8975 }
0x1785   :  { %v8970_v27 = vpop.permute.xlu1 %8969  ;;  %v9080_v34 = vrot.slane %v8976_v10, %v15471_v46 }
0x1786   :  { %v9070_v60 = vrot.slane %v8970_v27, %v15472_v39 }
0x1787   :  { %v9085_v50 = vsel %vm2317_vm15, %v9084_v13, %v9080_v34 }
0x1788   :  { %v14509_v45 = vsel %vm2324_vm11, %v9070_v60, %v9066_v61  ;;  %v8982_v31 = vpop.permute.xlu0 %8981  ;;  %v14571_v60 = vld [vmem:[#allocation2 + $0x2f] sm:$0x1] }
0x1789   :  { %v9089_v48 = vrot.slane %v8982_v31, %v15472_v39  ;;  %v14574_v31 = vld [vmem:[#allocation2 + $0x37] sm:$0x1] }
0x178b   :  { %v14513_v8 = vsel %vm2324_vm11, %v9089_v48, %v9085_v50 }
0x1856   :  { %v14515_v11 = vpop.f32.mrb[20].mxu0 }
0x1857   :  { %v8841_v49 = vadd.f32 %v14515_v11, %v15522_v2  ;;  %v10197_v53 = vpop.f32.mrb[21].mxu0  ;;  %v8770_v29 = vrot.slane %v14515_v11, 1  ;;  %v8785_v1 = vadd.f32 %v14515_v11, %v14550_v62  ;;  %v8771_v63 = vrot.slane %v14515_v11, 2 }
0x1858   :  { %v8766_v38 = vpop.f32.mrb[22].mxu0  ;;  %v8772_v57 = vrot.slane %v14515_v11, 3  ;;  %v8773_v43 = vrot.slane %v14515_v11, 4  ;;  %v8774_v61 = vrot.slane %v14515_v11, 5  ;;  %v8775_v13 = vrot.slane %v14515_v11, 6 }
0x1859   :  { %8850 = vrot.lane.b32.xlu1 %v8841_v49, %s10784_s25  ;;  %v10198_v4 = vpop.f32.mrb[23].mxu0  ;;  %v8843_v12 = vrot.slane %v8841_v49, 1  ;;  %v8844_v21 = vrot.slane %v8841_v49, 2  ;;  %v8845_v20 = vrot.slane %v8841_v49, 3  ;;  %v8846_v23 = vrot.slane %v8841_v49, 4 }
0x185a   :  { %v8847_v36 = vrot.slane %v8841_v49, 5  ;;  %v8848_v7 = vrot.slane %v8841_v49, 6  ;;  %v8849_v52 = vrot.slane %v8841_v49, 7  ;;  %v8786_v28 = vadd.f32 %v8770_v29, %v14555_v0  ;;  %v14578_v38 = vld [vmem:[#allocation2 + $0x3f] sm:$0x1] }
0x185b   :  { %8852 = vrot.lane.b32.xlu0 %v8843_v12, %s10784_s25  ;;  %v10030_v19 = vmul.f32 -1.442695, %v8785_v1  ;;  %v8787_v54 = vadd.f32 %v8771_v63, %v14559_v14  ;;  %v8788_v22 = vadd.f32 %v8772_v57, %v14563_v16  ;;  %v8789_v27 = vadd.f32 %v8773_v43, %v14566_v44 }
0x185c   :  { %v10031_v42 = vmul.f32 -1.442695, %v8786_v28  ;;  %v8790_v50 = vadd.f32 %v8774_v61, %v14571_v60  ;;  %v8791_v2 = vadd.f32 %v8775_v13, %v14574_v31  ;;  %v8776_v49 = vrot.slane %v14515_v11, 7 }
0x185d   :  { %8854 = vrot.lane.b32.xlu1 %v8844_v21, %s10784_s25  ;;  %10697 = vpow2.f32 %v10030_v19  ;;  %v10032_v10 = vmul.f32 -1.442695, %v8787_v54  ;;  %v10033_v34 = vmul.f32 -1.442695, %v8788_v22  ;;  %v10034_v48 = vmul.f32 -1.442695, %v8789_v27  ;;  %v14581_v54 = vpop.permute.xlu1 %8987 }
0x185e   :  { %10699 = vpow2.f32 %v10031_v42  ;;  %v10035_v53 = vmul.f32 -1.442695, %v8790_v50  ;;  %v10036_v4 = vmul.f32 -1.442695, %v8791_v2  ;;  %v8792_v12 = vadd.f32 %v8776_v49, %v14578_v38  ;;  %v14583_v42 = vpop.permute.xlu0 %8990 }
0x185f   :  { %8856 = vrot.lane.b32.xlu0 %v8845_v20, %s10784_s25  ;;  %10701 = vpow2.f32 %v10032_v10 }
0x1860   :  { %10703 = vpow2.f32 %v10033_v34 }
0x1861   :  { %8858 = vrot.lane.b32.xlu1 %v8846_v23, %s10784_s25  ;;  %10705 = vpow2.f32 %v10034_v48  ;;  %v10037_v23 = vmul.f32 -1.442695, %v8792_v12 }
0x1862   :  { %10707 = vpow2.f32 %v10035_v53 }
0x1863   :  { %8860 = vrot.lane.b32.xlu0 %v8847_v36, %s10784_s25  ;;  %10709 = vpow2.f32 %v10036_v4 }
0x1864   :  { %10711 = vpow2.f32 %v10037_v23 }
0x1865   :  { %8862 = vrot.lane.b32.xlu1 %v8848_v7, %s10784_s25 }
0x1867   :  { %8864 = vrot.lane.b32.xlu0 %v8849_v52, %s10784_s25  ;;  %v10698_v21 = vpop.eup %10697 }
0x1868   :  { %v10700_v20 = vpop.eup %10699  ;;  %v8817_v36 = vadd.f32 1.0, %v10698_v21 }
0x1869   :  { %8984 = vperm.xlu1 %10228, %v14316_v56   ;;  %v10702_v7 = vpop.eup %10701  ;;  %v8818_v52 = vadd.f32 1.0, %v10700_v20 }
0x186a   :  { %v10704_v29 = vpop.eup %10703  ;;  %10713 = vrcp.f32 %v8817_v36  ;;  %v8819_v11 = vadd.f32 1.0, %v10702_v7 }
0x186b   :  { %8972 = vperm.xlu0 %10227, %v14298_v47   ;;  %v10706_v1 = vpop.eup %10705  ;;  %10715 = vrcp.f32 %v8818_v52  ;;  %v8820_v63 = vadd.f32 1.0, %v10704_v29 }
0x186c   :  { %v10708_v28 = vpop.eup %10707  ;;  %10717 = vrcp.f32 %v8819_v11  ;;  %v8821_v57 = vadd.f32 1.0, %v10706_v1 }
0x186d   :  { %8999 = vperm.xlu1 %10228, %v14345_v18   ;;  %v10710_v19 = vpop.eup %10709  ;;  %10719 = vrcp.f32 %v8820_v63  ;;  %v8822_v43 = vadd.f32 1.0, %v10708_v28 }
0x186e   :  { %10721 = vrcp.f32 %v8821_v57  ;;  %v8823_v22 = vadd.f32 1.0, %v10710_v19  ;;  %v10712_v61 = vpop.eup %10711 }
0x186f   :  { %8993 = vperm.xlu0 %10227, %v14337_v40   ;;  %10723 = vrcp.f32 %v8822_v43  ;;  %v8824_v48 = vadd.f32 1.0, %v10712_v61  ;;  %v15525_v61 = vld [vmem:[#allocation37_spill] sm:$0xff] }
0x1870   :  { %10725 = vrcp.f32 %v8823_v22  ;;  %v15524_v22 = vld [vmem:[#allocation38_spill] sm:$0xff] }
0x1871   :  { %9005 = vperm.xlu1 %10228, %v14355_v59   ;;  %10727 = vrcp.f32 %v8824_v48 }
0x1873   :  { %9002 = vperm.xlu0 %10227, %v14342_v26  }
0x1874   :  { %v10714_v10 = vpop.eup %10713 }
0x1875   :  { %9014 = vperm.xlu1 %10228, %v14360_v25   ;;  %v10716_v34 = vpop.eup %10715 }
0x1876   :  { %v10718_v49 = vpop.eup %10717 }
0x1877   :  { %8996 = vperm.xlu0 %10227, %v14334_v32   ;;  %v10720_v12 = vpop.eup %10719 }
0x1878   :  { %v10722_v23 = vpop.eup %10721 }
0x1879   :  { %9008 = vperm.xlu1 %10228, %v14352_v33   ;;  %v10724_v29 = vpop.eup %10723 }
0x187a   :  { %v10726_v11 = vpop.eup %10725 }
0x187b   :  { %9011 = vperm.xlu0 %10227, %v14363_v51   ;;  %v10728_v19 = vpop.eup %10727 }
0x187d   :  { %9023 = vperm.xlu1 %10228, %v14381_v55  }
0x187f   :  { %9017 = vperm.xlu0 %10227, %v14373_v9  }
0x1881   :  { %9029 = vperm.xlu1 %10228, %v14391_v6  }
0x1883   :  { %9026 = vperm.xlu0 %10227, %v14378_v24  }
0x1885   :  { %9038 = vperm.xlu1 %10228, %v14396_v30  }
0x1887   :  { %9020 = vperm.xlu0 %10227, %v14370_v17  }
0x1889   :  { %9041 = vperm.xlu1 %10228, %v14409_v41  }
0x188b   :  { %9035 = vperm.xlu0 %10227, %v14399_v35  }
0x188d   :  { %9050 = vperm.xlu1 %10228, %v14414_v37   ;;  %v15526_v37 = vld [vmem:[#allocation51_spill] sm:$0xff] }
0x188f   :  { %9032 = vperm.xlu0 %10227, %v14388_v5  }
0x1893   :  { %9047 = vperm.xlu0 %10227, %v14417_v58  }
0x1897   :  { %9044 = vperm.xlu0 %10227, %v15523_v15  }
0x18cb   :  { %v8851_v27 = vpop.permute.xlu1 %8850 }
0x18cc   :  { %v8874_v13 = vmul.f32 %v10714_v10, %v8851_v27 }
0x18cd   :  { %v8853_v50 = vpop.permute.xlu0 %8852 }
0x18ce   :  { %v8875_v2 = vmul.f32 %v10716_v34, %v8853_v50  ;;  %8890 = vrot.lane.b32.xlu1 %v8874_v13, %s10782_s30 }
0x18cf   :  { %v8855_v53 = vpop.permute.xlu1 %8854 }
0x18d0   :  { %v8876_v4 = vmul.f32 %v10718_v49, %v8855_v53  ;;  %8892 = vrot.lane.b32.xlu0 %v8875_v2, %s10782_s30 }
0x18d1   :  { %v8857_v21 = vpop.permute.xlu0 %8856 }
0x18d2   :  { %v8877_v20 = vmul.f32 %v10720_v12, %v8857_v21  ;;  %8894 = vrot.lane.b32.xlu1 %v8876_v4, %s10782_s30 }
0x18d3   :  { %v8859_v36 = vpop.permute.xlu1 %8858 }
0x18d4   :  { %v8878_v7 = vmul.f32 %v10722_v23, %v8859_v36  ;;  %8896 = vrot.lane.b32.xlu0 %v8877_v20, %s10782_s30 }
0x18d5   :  { %v8861_v52 = vpop.permute.xlu0 %8860 }
0x18d6   :  { %8898 = vrot.lane.b32.xlu1 %v8878_v7, %s10782_s30  ;;  %v8879_v63 = vmul.f32 %v10724_v29, %v8861_v52 }
0x18d7   :  { %v8863_v1 = vpop.permute.xlu1 %8862 }
0x18d8   :  { %v8880_v28 = vmul.f32 %v10726_v11, %v8863_v1 }
0x18d9   :  { %v8865_v57 = vpop.permute.xlu0 %8864 }
0x18da   :  { %8900 = vrot.lane.b32.xlu1 %v8879_v63, %s10782_s30  ;;  %8902 = vrot.lane.b32.xlu0 %v8880_v28, %s10782_s30  ;;  %v8881_v43 = vmul.f32 %v10728_v19, %v8865_v57 }
0x18de   :  { %8904 = vrot.lane.b32.xlu1 %v8881_v43, %s10782_s30  ;;  %9056 = vperm.xlu0 %10227, %v15524_v22  }
0x18e2   :  { %9053 = vperm.xlu1 %10228, %v15525_v61  }
0x18e8   :  { %v8985_v10 = vpop.permute.xlu1 %8984 }
0x18ea   :  { %v8973_v27 = vpop.permute.xlu0 %8972 }
0x18ec   :  { %v9000_v13 = vpop.permute.xlu1 %8999 }
0x18ed   :  { %v9118_v2 = vrot.slane %v9000_v13, %v15471_v46 }
0x18ee   :  { %v14595_v34 = vpop.permute.xlu0 %8993 }
0x18f0   :  { %v14597_v50 = vpop.permute.xlu1 %9005 }
0x18f2   :  { %v9003_v48 = vpop.permute.xlu0 %9002 }
0x18f3   :  { %v9122_v49 = vrot.slane %v9003_v48, %v15473_v3 }
0x18f4   :  { %v9015_v53 = vpop.permute.xlu1 %9014 }
0x18f5   :  { %v14602_v4 = vsel %vm2317_vm15, %v9122_v49, %v9118_v2  ;;  %v9141_v23 = vrot.slane %v9015_v53, %v15473_v3 }
0x18f6   :  { %v14604_v12 = vpop.permute.xlu0 %8996 }
0x18f8   :  { %v14606_v21 = vpop.permute.xlu1 %9008 }
0x18fa   :  { %v9012_v20 = vpop.permute.xlu0 %9011 }
0x18fb   :  { %v9137_v36 = vrot.slane %v9012_v20, %v15471_v46 }
0x18fc   :  { %v9024_v7 = vpop.permute.xlu1 %9023 }
0x18fd   :  { %v14611_v52 = vsel %vm2317_vm15, %v9141_v23, %v9137_v36  ;;  %v9156_v63 = vrot.slane %v9024_v7, %v15471_v46 }
0x18fe   :  { %v14613_v29 = vpop.permute.xlu0 %9017 }
0x1900   :  { %v14615_v11 = vpop.permute.xlu1 %9029 }
0x1902   :  { %v9027_v1 = vpop.permute.xlu0 %9026 }
0x1903   :  { %v9160_v28 = vrot.slane %v9027_v1, %v15473_v3 }
0x1904   :  { %v9039_v57 = vpop.permute.xlu1 %9038 }
0x1905   :  { %v14620_v19 = vsel %vm2317_vm15, %v9160_v28, %v9156_v63  ;;  %v9179_v2 = vrot.slane %v9039_v57, %v15473_v3 }
0x1906   :  { %v14622_v43 = vpop.permute.xlu0 %9020 }
0x1908   :  { %v14624_v13 = vpop.permute.xlu1 %9041 }
0x190a   :  { %v9036_v48 = vpop.permute.xlu0 %9035 }
0x190b   :  { %v9175_v49 = vrot.slane %v9036_v48, %v15471_v46 }
0x190c   :  { %v9051_v23 = vpop.permute.xlu1 %9050 }
0x190d   :  { %v14629_v53 = vsel %vm2317_vm15, %v9179_v2, %v9175_v49  ;;  %v9198_v7 = vrot.slane %v9051_v23, %v15473_v3  ;;  %v9075_v23 = vrot.slane %v8973_v27, %v15526_v37  ;;  %v9103_v27 = vrot.slane %v14583_v42, %v15473_v3 }
0x190e   :  { %v14631_v20 = vpop.permute.xlu0 %9032 }
0x190f   :  { %v9076_v15 = vsel %vm2331_vm3, %v9075_v23, %v14509_v45  ;;  %v9099_v45 = vrot.slane %v14581_v54, %v15471_v46  ;;  %v9132_v54 = vrot.slane %v14606_v21, %v15526_v37  ;;  %v9146_v21 = vrot.slane %v14613_v29, %v15472_v39 }
0x1912   :  { %v9048_v36 = vpop.permute.xlu0 %9047 }
0x1913   :  { %v9194_v1 = vrot.slane %v9048_v36, %v15471_v46  ;;  %v9094_v36 = vrot.slane %v8985_v10, %v15526_v37  ;;  %v9104_v10 = vsel %vm2317_vm15, %v9103_v27, %v9099_v45 }
0x1915   :  { %v14636_v63 = vsel %vm2317_vm15, %v9198_v7, %v9194_v1 }
0x1916   :  { %v14638_v28 = vpop.permute.xlu0 %9044 }
0x1940   :  { %v8891_v61 = vpop.permute.xlu1 %8890 }
0x1941   :  { %v8914_v57 = vadd.f32 %v8891_v61, %v14550_v62  ;;  %v9095_v61 = vsel %vm2331_vm3, %v9094_v36, %v14513_v8 }
0x1942   :  { %v8893_v48 = vpop.permute.xlu0 %8892 }
0x1943   :  { %10729 = vtanh.f32 %v8914_v57  ;;  %v8915_v2 = vadd.f32 %v8893_v48, %v14555_v0  ;;  %v15527_v57 = vld [vmem:[#allocation8_spill] sm:$0xff] }
0x1944   :  { %v8895_v49 = vpop.permute.xlu1 %8894 }
0x1945   :  { %10731 = vtanh.f32 %v8915_v2  ;;  %v8916_v22 = vadd.f32 %v8895_v49, %v14559_v14 }
0x1946   :  { %v8897_v7 = vpop.permute.xlu0 %8896 }
0x1947   :  { %10733 = vtanh.f32 %v8916_v22  ;;  %v8917_v0 = vadd.f32 %v8897_v7, %v14563_v16  ;;  %v9108_v22 = vrot.slane %v14595_v34, %v15472_v39 }
0x1948   :  { %v8899_v8 = vpop.permute.xlu1 %8898 }
0x1949   :  { %10735 = vtanh.f32 %v8917_v0  ;;  %v9109_v42 = vsel %vm2324_vm11, %v9108_v22, %v9104_v10  ;;  %v8918_v2 = vadd.f32 %v8899_v8, %v14566_v44  ;;  %v9165_v22 = vrot.slane %v14615_v11, %v15472_v39 }
0x194a   :  { %v9184_v10 = vrot.slane %v14624_v13, %v15472_v39 }
0x194b   :  { %10737 = vtanh.f32 %v8918_v2 }
0x194c   :  { %v8901_v23 = vpop.permute.xlu1 %8900  ;;  %v8903_v0 = vpop.permute.xlu0 %8902 }
0x194d   :  { %v10730_v1 = vpop.eup %10729  ;;  %v8920_v27 = vadd.f32 %v8903_v0, %v14574_v31  ;;  %v15530_v0 = vld [vmem:[#allocation26_spill] sm:$0xff] }
0x194e   :  { %v9218_v41 = vsub.f32 %v10730_v1, %v9076_v15  ;;  %v9113_v15 = vrot.slane %v14604_v12, %v15526_v37  ;;  %v9127_v12 = vrot.slane %v14597_v50, %v15472_v39  ;;  %v9151_v50 = vrot.slane %v14622_v43, %v15526_v37 }
0x194f   :  { %v10732_v62 = vpop.eup %10731  ;;  %v9170_v43 = vrot.slane %v14631_v20, %v15526_v37  ;;  %v9189_v20 = vrot.slane %v14638_v28, %v15526_v37 }
0x1950   :  { %v9269_v48 = vrot.slane %v9218_v41, %v15527_v57  ;;  %v9219_v14 = vsub.f32 %v10732_v62, %v9095_v61  ;;  %v9114_v34 = vsel %vm2331_vm3, %v9113_v15, %v9109_v42  ;;  %v9128_v1 = vsel %vm2324_vm11, %v9127_v12, %v14602_v4  ;;  %v8905_v8 = vpop.permute.xlu1 %8904 }
0x1951   :  { %v10734_v41 = vpop.eup %10733  ;;  %v9133_v44 = vsel %vm2331_vm3, %v9132_v54, %v9128_v1  ;;  %v8919_v62 = vadd.f32 %v8901_v23, %v14571_v60  ;;  %v15529_v1 = vld [vmem:[#allocation19_spill] sm:$0xff] }
0x1952   :  { %9276 = vbcast.lane.b32.xlu0 %v9269_v48, 296  ;;  %9272 = vbcast.lane.b32.xlu1 %v9269_v48, 288  ;;  %v9289_v16 = vrot.slane %v9219_v14, %v15527_v57  ;;  %v9220_v49 = vsub.f32 %v10734_v41, %v9114_v34  ;;  %v9147_v14 = vsel %vm2324_vm11, %v9146_v21, %v14611_v52 }
0x1953   :  { %v10736_v7 = vpop.eup %10735  ;;  %10739 = vtanh.f32 %v8919_v62  ;;  %v9152_v60 = vsel %vm2331_vm3, %v9151_v50, %v9147_v14  ;;  %v9166_v52 = vsel %vm2324_vm11, %v9165_v22, %v14620_v19  ;;  %v8921_v41 = vadd.f32 %v8905_v8, %v14578_v38 }
0x1954   :  { %v9309_v36 = vrot.slane %v9220_v49, %v15527_v57  ;;  %v9221_v61 = vsub.f32 %v10736_v7, %v9133_v44  ;;  %10741 = vtanh.f32 %v8920_v27  ;;  %v9171_v31 = vsel %vm2331_vm3, %v9170_v43, %v9166_v52 }
0x1955   :  { %v10738_v4 = vpop.eup %10737  ;;  %10743 = vtanh.f32 %v8921_v41  ;;  %v9185_v34 = vsel %vm2324_vm11, %v9184_v10, %v14629_v53  ;;  %v15534_v41 = vld [vmem:[#allocation9_spill] sm:$0xff] }
0x1956   :  { %9296 = vbcast.lane.b32.xlu0 %v9289_v16, 296  ;;  %9280 = vbcast.lane.b32.xlu1 %v9269_v48, 304  ;;  %v9222_v29 = vsub.f32 %v10738_v4, %v9152_v60  ;;  %v9190_v38 = vsel %vm2331_vm3, %v9189_v20, %v9185_v34  ;;  %v15531_v4 = vld [vmem:[#allocation30_spill] sm:$0xff] }
0x1958   :  { %v9349_v45 = vrot.slane %v9222_v29, %v15527_v57  ;;  %v15532_v29 = vld [vmem:[#allocation20_spill] sm:$0xff] }
0x195a   :  { %9300 = vbcast.lane.b32.xlu0 %v9289_v16, 304  ;;  %9284 = vbcast.lane.b32.xlu1 %v9269_v48, 312  ;;  %v9329_v48 = vrot.slane %v9221_v61, %v15527_v57 }
0x195d   :  { %v10740_v15 = vpop.eup %10739  ;;  %v9057_v49 = vpop.permute.xlu0 %9056 }
0x195e   :  { %9292 = vbcast.lane.b32.xlu1 %v9289_v16, 288  ;;  %9316 = vbcast.lane.b32.xlu0 %v9309_v36, 296  ;;  %v10742_v19 = vpop.eup %10741  ;;  %v9208_v13 = vrot.slane %v9057_v49, %v15526_v37 }
0x195f   :  { %v9224_v54 = vsub.f32 %v10742_v19, %v9190_v38  ;;  %v10744_v53 = vpop.eup %10743  ;;  %v15535_v19 = vld [vmem:[#allocation21_spill] sm:$0xff]  ;;  %v15536_v38 = vld [vmem:[#allocation34_spill] sm:$0xff] }
0x1961   :  { %v9054_v11 = vpop.permute.xlu1 %9053  ;;  %v9389_v12 = vrot.slane %v9224_v54, %v15527_v57 }
0x1962   :  { %9304 = vbcast.lane.b32.xlu0 %v9289_v16, 312  ;;  %9312 = vbcast.lane.b32.xlu1 %v9309_v36, 288  ;;  %v9223_v16 = vsub.f32 %v10740_v15, %v9171_v31  ;;  %v9203_v2 = vrot.slane %v9054_v11, %v15472_v39  ;;  %v15533_v31 = vld [vmem:[#allocation28_spill] sm:$0xff] }
0x1964   :  { %v9369_v42 = vrot.slane %v9223_v16, %v15527_v57  ;;  %v9204_v28 = vsel %vm2324_vm11, %v9203_v2, %v14636_v63  ;;  %v15528_v63 = vld [vmem:[#allocation17_spill] sm:$0xff] }
0x1965   :  { %v9209_v23 = vsel %vm2331_vm3, %v9208_v13, %v9204_v28  ;;  %v9229_v44 = vrot.slane %v15529_v1, %v15528_v63  ;;  %v9233_v43 = vrot.slane %v15532_v29, %v15528_v63  ;;  %v9237_v34 = vrot.slane %v15535_v19, %v15528_v63  ;;  %v15537_v13 = vld [vmem:[#allocation33_spill] sm:$0xff] }
0x1966   :  { %9332 = vbcast.lane.b32.xlu0 %v9329_v48, 288  ;;  %9320 = vbcast.lane.b32.xlu1 %v9309_v36, 304 }
0x196a   :  { %9324 = vbcast.lane.b32.xlu0 %v9309_v36, 312  ;;  %9336 = vbcast.lane.b32.xlu1 %v9329_v48, 296  ;;  %v9225_v36 = vsub.f32 %v10744_v53, %v9209_v23 }
0x196c   :  { %v9409_v7 = vrot.slane %v9225_v36, %v15527_v57 }
0x196e   :  { %9340 = vbcast.lane.b32.xlu1 %v9329_v48, 304  ;;  %9352 = vbcast.lane.b32.xlu0 %v9349_v45, 288 }
0x1972   :  { %9356 = vbcast.lane.b32.xlu1 %v9349_v45, 296  ;;  %9344 = vbcast.lane.b32.xlu0 %v9329_v48, 312 }
0x1976   :  { %9360 = vbcast.lane.b32.xlu1 %v9349_v45, 304  ;;  %9372 = vbcast.lane.b32.xlu0 %v9369_v42, 288 }
0x197a   :  { %9376 = vbcast.lane.b32.xlu1 %v9369_v42, 296  ;;  %9364 = vbcast.lane.b32.xlu0 %v9349_v45, 312 }
0x197e   :  { %9380 = vbcast.lane.b32.xlu1 %v9369_v42, 304  ;;  %9392 = vbcast.lane.b32.xlu0 %v9389_v12, 288 }
0x1982   :  { %9396 = vbcast.lane.b32.xlu1 %v9389_v12, 296  ;;  %9384 = vbcast.lane.b32.xlu0 %v9369_v42, 312 }
0x1986   :  { %9400 = vbcast.lane.b32.xlu1 %v9389_v12, 304  ;;  %9412 = vbcast.lane.b32.xlu0 %v9409_v7, 288 }
0x198a   :  { %9416 = vbcast.lane.b32.xlu1 %v9409_v7, 296  ;;  %9404 = vbcast.lane.b32.xlu0 %v9389_v12, 312 }
0x198e   :  { %9420 = vbcast.lane.b32.xlu1 %v9409_v7, 304  ;;  %9424 = vbcast.lane.b32.xlu0 %v9409_v7, 312 }
0x19c4   :  { %v9277_v62 = vpop.permute.xlu0 %9276  ;;  %v9273_v61 = vpop.permute.xlu1 %9272 }
0x19c5   :  { %v9459_v21 = vmul.f32 %v9277_v62, %v9229_v44  ;;  %v9458_v50 = vmul.f32 %v9273_v61, %v9229_v44  ;;  %v15538_v62 = vld [vmem:[#allocation29_spill] sm:$0xff] }
0x19c6   :  { %v9241_v61 = vrot.slane %v15538_v62, %v15528_v63 }
0x19c7   :  { %v9491_v48 = vadd.f32 %v9459_v21, %v15530_v0  ;;  %v9490_v14 = vadd.f32 %v9458_v50, %v15531_v4  ;;  %v15539_v50 = vld [vmem:[#allocation50_spill] sm:$0xff]  ;;  %v15540_v4 = vld [vmem:[#allocation7_spill] sm:$0xff] }
0x19c8   :  { %v9297_v60 = vpop.permute.xlu0 %9296  ;;  %v9281_v27 = vpop.permute.xlu1 %9280 }
0x19c9   :  { %v10229_v57 = vpack.i.bf16 %v9491_v48, %v9490_v14  ;;  %v9460_v22 = vmul.f32 %v9281_v27, %v9229_v44  ;;  %v9463_v8 = vmul.f32 %v9297_v60, %v9233_v43 }
0x19cb   :  { %10230 = vperm.xlu1 %10228, %v10229_v57   ;;  %v9492_v16 = vadd.f32 %v9460_v22, %v15533_v31  ;;  %v9495_v49 = vadd.f32 %v9463_v8, %v15536_v38 }
0x19cc   :  { %v9301_v45 = vpop.permute.xlu0 %9300  ;;  %v9285_v15 = vpop.permute.xlu1 %9284 }
0x19cd   :  { %v9464_v52 = vmul.f32 %v9301_v45, %v9233_v43  ;;  %v9461_v54 = vmul.f32 %v9285_v15, %v9229_v44 }
0x19cf   :  { %v9496_v20 = vadd.f32 %v9464_v52, %v15534_v41  ;;  %v9493_v21 = vadd.f32 %v9461_v54, %v14298_v47  ;;  %v15541_v41 = vld [vmem:[#allocation31_spill] sm:$0xff] }
0x19d0   :  { %v9317_v11 = vpop.permute.xlu0 %9316  ;;  %v9293_v10 = vpop.permute.xlu1 %9292 }
0x19d1   :  { %v10239_v42 = vpack.i.bf16 %v9496_v20, %v9492_v16  ;;  %v9462_v2 = vmul.f32 %v9293_v10, %v9233_v43  ;;  %v9467_v28 = vmul.f32 %v9317_v11, %v9237_v34  ;;  %v9245_v20 = vrot.slane %v15541_v41, %v15528_v63  ;;  %v15545_v41 = vld [vmem:[#allocation40_spill] sm:$0xff] }
0x19d3   :  { %v9494_v12 = vadd.f32 %v9462_v2, %v15537_v13  ;;  %10240 = vperm.xlu1 %10228, %v10239_v42   ;;  %v9499_v0 = vadd.f32 %v9467_v28, %v15539_v50  ;;  %v15542_v13 = vld [vmem:[#allocation32_spill] sm:$0xff] }
0x19d4   :  { %v9305_v23 = vpop.permute.xlu0 %9304  ;;  %v9313_v53 = vpop.permute.xlu1 %9312 }
0x19d5   :  { %v10234_v36 = vpack.i.bf16 %v9495_v49, %v9494_v12  ;;  %v9465_v7 = vmul.f32 %v9305_v23, %v9233_v43  ;;  %v9466_v1 = vmul.f32 %v9313_v53, %v9237_v34  ;;  %v9249_v12 = vrot.slane %v15542_v13, %v15528_v63 }
0x19d7   :  { %v9497_v48 = vadd.f32 %v9465_v7, %v14316_v56  ;;  %v9498_v44 = vadd.f32 %v9466_v1, %v15540_v4  ;;  %10235 = vperm.xlu0 %10227, %v10234_v36  }
0x19d8   :  { %v9333_v14 = vpop.permute.xlu0 %9332  ;;  %v9321_v60 = vpop.permute.xlu1 %9320 }
0x19d9   :  { %v10249_v27 = vpack.i.bf16 %v9497_v48, %v9493_v21  ;;  %v10244_v57 = vpack.i.bf16 %v9499_v0, %v9498_v44  ;;  %v9470_v29 = vmul.f32 %v9333_v14, %v9241_v61  ;;  %v9468_v22 = vmul.f32 %v9321_v60, %v9237_v34  ;;  %v15543_v48 = vld [vmem:[#allocation35_spill] sm:$0xff] }
0x19da   :  { %v9253_v4 = vrot.slane %v15543_v48, %v15528_v63 }
0x19db   :  { %v9502_v43 = vadd.f32 %v9470_v29, %v14345_v18  ;;  %v9500_v45 = vadd.f32 %v9468_v22, %v14337_v40  ;;  %10250 = vperm.xlu1 %10228, %v10249_v27   ;;  %10245 = vperm.xlu0 %10227, %v10244_v57  }
0x19dc   :  { %v9325_v47 = vpop.permute.xlu0 %9324  ;;  %v9337_v15 = vpop.permute.xlu1 %9336 }
0x19dd   :  { %v10254_v52 = vpack.i.bf16 %v9502_v43, %v9500_v45  ;;  %v9469_v8 = vmul.f32 %v9325_v47, %v9237_v34  ;;  %v9471_v56 = vmul.f32 %v9337_v15, %v9241_v61  ;;  %v15544_v15 = vld [vmem:[#allocation36_spill] sm:$0xff] }
0x19df   :  { %v9501_v31 = vadd.f32 %v9469_v8, %v14334_v32  ;;  %v9503_v16 = vadd.f32 %v9471_v56, %v14342_v26  ;;  %10255 = vperm.xlu0 %10227, %v10254_v52   ;;  %v9257_v52 = vrot.slane %v15544_v15, %v15528_v63 }
0x19e0   :  { %v9353_v11 = vpop.permute.xlu0 %9352  ;;  %v9341_v10 = vpop.permute.xlu1 %9340 }
0x19e1   :  { %v10259_v18 = vpack.i.bf16 %v9501_v31, %v9503_v16  ;;  %v9474_v42 = vmul.f32 %v9353_v11, %v9245_v20  ;;  %v9472_v40 = vmul.f32 %v9341_v10, %v9241_v61 }
0x19e3   :  { %v9506_v19 = vadd.f32 %v9474_v42, %v14363_v51  ;;  %v9504_v2 = vadd.f32 %v9472_v40, %v14355_v59  ;;  %10260 = vperm.xlu1 %10228, %v10259_v18  }
0x19e4   :  { %v9345_v34 = vpop.permute.xlu0 %9344  ;;  %v9357_v38 = vpop.permute.xlu1 %9356 }
0x19e5   :  { %v10264_v49 = vpack.i.bf16 %v9506_v19, %v9504_v2  ;;  %v9473_v32 = vmul.f32 %v9345_v34, %v9241_v61  ;;  %v9475_v54 = vmul.f32 %v9357_v38, %v9245_v20  ;;  %v15547_v19 = vld [vmem:[#allocation39_spill] sm:$0xff]  ;;  %v10321_v38 = vld [vmem:[%s14877_s11] sm:$0xff]  }
0x19e6   :  { %10200 = vmatpush3.bf16.msra.mxu1 %v10321_v38 }
0x19e7   :  { %v9505_v26 = vadd.f32 %v9473_v32, %v14352_v33  ;;  %v9507_v28 = vadd.f32 %v9475_v54, %v14360_v25  ;;  %10265 = vperm.xlu0 %10227, %v10264_v49   ;;  %v15548_v54 = vld [vmem:[#allocation38_spill] sm:$0xff] }
0x19e8   :  { %v9373_v23 = vpop.permute.xlu0 %9372  ;;  %v9361_v53 = vpop.permute.xlu1 %9360 }
0x19e9   :  { %v10269_v36 = vpack.i.bf16 %v9505_v26, %v9507_v28  ;;  %v9478_v51 = vmul.f32 %v9373_v23, %v9249_v12  ;;  %v9476_v7 = vmul.f32 %v9361_v53, %v9245_v20  ;;  %v15549_v28 = vld [vmem:[#allocation37_spill] sm:$0xff]  ;;  %v10322_v23 = vld [vmem:[%s14877_s11 + $0x8] sm:$0xff]  }
0x19eb   :  { %v9510_v59 = vadd.f32 %v9478_v51, %v14381_v55  ;;  %v9508_v1 = vadd.f32 %v9476_v7, %v14373_v9  ;;  %10270 = vperm.xlu1 %10228, %v10269_v36   ;;  %v10755_v36 = vld [vmem:[%s14867_s1] sm:$0xff]  ;;  %v10323_v51 = vld [vmem:[%s14877_s11 + $0x10] sm:$0xff]   ;;  %v10324_v7 = vld [vmem:[%s14877_s11 + $0x18] sm:$0xff]  }
0x19ec   :  { %v9365_v62 = vpop.permute.xlu0 %9364  ;;  %v9377_v61 = vpop.permute.xlu1 %9376 }
0x19ed   :  { %v10274_v21 = vpack.i.bf16 %v9510_v59, %v9508_v1  ;;  %v9477_v33 = vmul.f32 %v9365_v62, %v9245_v20  ;;  %v9479_v50 = vmul.f32 %v9377_v61, %v9249_v12  ;;  %v10325_v59 = vld [vmem:[%s14877_s11 + $0x20] sm:$0xff]   ;;  %v10326_v1 = vld [vmem:[%s14877_s11 + $0x28] sm:$0xff]  }
0x19ef   :  { %v9509_v25 = vadd.f32 %v9477_v33, %v14370_v17  ;;  %v9511_v0 = vadd.f32 %v9479_v50, %v14378_v24  ;;  %10275 = vperm.xlu0 %10227, %v10274_v21  }
0x19f0   :  { %v9393_v44 = vpop.permute.xlu0 %9392  ;;  %v9381_v14 = vpop.permute.xlu1 %9380 }
0x19f1   :  { %v10279_v60 = vpack.i.bf16 %v9509_v25, %v9511_v0  ;;  %v9482_v55 = vmul.f32 %v9393_v44, %v9253_v4  ;;  %v9480_v27 = vmul.f32 %v9381_v14, %v9249_v12 }
0x19f3   :  { %v9514_v9 = vadd.f32 %v9482_v55, %v14399_v35  ;;  %v9512_v57 = vadd.f32 %v9480_v27, %v14391_v6  ;;  %10280 = vperm.xlu1 %10228, %v10279_v60  }
0x19f4   :  { %v9385_v29 = vpop.permute.xlu0 %9384  ;;  %v9397_v22 = vpop.permute.xlu1 %9396 }
0x19f5   :  { %v10284_v43 = vpack.i.bf16 %v9514_v9, %v9512_v57  ;;  %v9481_v17 = vmul.f32 %v9385_v29, %v9249_v12  ;;  %v9483_v45 = vmul.f32 %v9397_v22, %v9253_v4  ;;  %v15550_v12 = vmov 0.0  }
0x19f6   :  { %10201 = vmatprep.subr.bf16.mxu1 %v15550_v12 }
0x19f7   :  { %v9513_v24 = vadd.f32 %v9481_v17, %v14388_v5  ;;  %v9515_v47 = vadd.f32 %v9483_v45, %v14396_v30  ;;  %10285 = vperm.xlu0 %10227, %v10284_v43   ;;  %v15546_v30 = vld [vmem:[#allocation18_spill] sm:$0xff]  ;;  %10202 = vmatpush3.bf16.msra.mxu1 %v10322_v23 }
0x19f8   :  { %v9413_v8 = vpop.permute.xlu0 %9412  ;;  %v9401_v56 = vpop.permute.xlu1 %9400  ;;  %10203 = vmatprep.subr.bf16.mxu1 %v15550_v12 }
0x19f9   :  { %v10289_v31 = vpack.i.bf16 %v9513_v24, %v9515_v47  ;;  %v9486_v35 = vmul.f32 %v9413_v8, %v9257_v52  ;;  %v9484_v16 = vmul.f32 %v9401_v56, %v9253_v4 }
0x19fb   :  { %v9518_v6 = vadd.f32 %v9486_v35, %v14417_v58  ;;  %v9516_v20 = vadd.f32 %v9484_v16, %v15545_v41  ;;  %10290 = vperm.xlu1 %10228, %v10289_v31   ;;  %10204 = vmatpush3.bf16.msra.mxu1 %v10323_v51 }
0x19fc   :  { %v9405_v11 = vpop.permute.xlu0 %9404  ;;  %v9417_v10 = vpop.permute.xlu1 %9416  ;;  %10205 = vmatprep.subr.bf16.mxu1 %v15550_v12 }
0x19fd   :  { %v10294_v18 = vpack.i.bf16 %v9518_v6, %v9516_v20  ;;  %v9485_v5 = vmul.f32 %v9405_v11, %v9253_v4  ;;  %v9487_v42 = vmul.f32 %v9417_v10, %v9257_v52 }
0x19ff   :  { %v9517_v40 = vadd.f32 %v9485_v5, %v15546_v30  ;;  %v9519_v2 = vadd.f32 %v9487_v42, %v15547_v19  ;;  %10295 = vperm.xlu0 %10227, %v10294_v18   ;;  %10206 = vmatpush3.bf16.msra.mxu1 %v10324_v7 }
0x1a00   :  { %v9425_v63 = vpop.permute.xlu0 %9424  ;;  %v9421_v34 = vpop.permute.xlu1 %9420  ;;  %10207 = vmatprep.subr.bf16.mxu1 %v15550_v12 }
0x1a01   :  { %v10299_v58 = vpack.i.bf16 %v9517_v40, %v9519_v2  ;;  %v9489_v49 = vmul.f32 %v9425_v63, %v9257_v52  ;;  %v9488_v32 = vmul.f32 %v9421_v34, %v9257_v52 }
0x1a03   :  { %v9521_v26 = vadd.f32 %v9489_v49, %v15548_v54  ;;  %v9520_v13 = vadd.f32 %v9488_v32, %v15549_v28  ;;  %10300 = vperm.xlu1 %10228, %v10299_v58   ;;  %10208 = vmatpush3.bf16.msra.mxu1 %v10325_v59 }
0x1a04   :  { %10209 = vmatprep.subr.bf16.mxu1 %v15550_v12 }
0x1a05   :  { %v10304_v53 = vpack.i.bf16 %v9521_v26, %v9520_v13 }
0x1a07   :  { %10305 = vperm.xlu0 %10227, %v10304_v53   ;;  %9811 = vrot.lane.b32.xlu1 %v10755_v36, %s10783_s22 }
0x1a08   :  { %10210 = vmatpush3.bf16.msra.mxu1 %v10326_v1 }
0x1a4a   :  { %v10231_v61 = vpop.permute.xlu1 %10230 }
0x1a4b   :  { %v10233_v4 = vunpack.i.h.bf16 %v10231_v61  ;;  %v10232_v44 = vunpack.i.l.bf16 %v10231_v61 }
0x1a4d   :  { %v9657_v43 = vrot.slane %v10233_v4, %v15473_v3  ;;  %v9653_v17 = vrot.slane %v10232_v44, %v15471_v46 }
0x1a4f   :  { %v9658_v6 = vsel %vm2317_vm15, %v9657_v43, %v9653_v17 }
0x1a52   :  { %v10241_v21 = vpop.permute.xlu1 %10240 }
0x1a53   :  { %v10242_v14 = vunpack.i.l.bf16 %v10241_v21  ;;  %v10243_v29 = vunpack.i.h.bf16 %v10241_v21 }
0x1a55   :  { %v9662_v45 = vrot.slane %v10242_v14, %v15472_v39  ;;  %v9681_v35 = vrot.slane %v10243_v29, %v15472_v39 }
0x1a56   :  { %v10236_v62 = vpop.permute.xlu0 %10235 }
0x1a57   :  { %v10238_v25 = vunpack.i.h.bf16 %v10236_v62  ;;  %v10237_v0 = vunpack.i.l.bf16 %v10236_v62  ;;  %v9663_v20 = vsel %vm2324_vm11, %v9662_v45, %v9658_v6 }
0x1a59   :  { %v9676_v55 = vrot.slane %v10238_v25, %v15473_v3  ;;  %v9672_v27 = vrot.slane %v10237_v0, %v15471_v46 }
0x1a5a   :  { %v10246_v33 = vpop.permute.xlu0 %10245  ;;  %v10251_v50 = vpop.permute.xlu1 %10250 }
0x1a5b   :  { %v10253_v9 = vunpack.i.h.bf16 %v10251_v50  ;;  %v10252_v57 = vunpack.i.l.bf16 %v10251_v50  ;;  %v10248_v24 = vunpack.i.h.bf16 %v10246_v33  ;;  %v10247_v47 = vunpack.i.l.bf16 %v10246_v33 }
0x1a5c   :  { %v9677_v52 = vsel %vm2317_vm15, %v9676_v55, %v9672_v27 }
0x1a5d   :  { %v9686_v8 = vrot.slane %v10253_v9, %v15526_v37  ;;  %v9667_v56 = vrot.slane %v10252_v57, %v15526_v37  ;;  %v9695_v11 = vrot.slane %v10248_v24, %v15473_v3  ;;  %v9691_v10 = vrot.slane %v10247_v47, %v15471_v46 }
0x1a5e   :  { %v10256_v48 = vpop.permute.xlu0 %10255  ;;  %v9682_v18 = vsel %vm2324_vm11, %v9681_v35, %v9677_v52 }
0x1a5f   :  { %v10257_v31 = vunpack.i.l.bf16 %v10256_v48  ;;  %v9668_v42 = vsel %vm2331_vm3, %v9667_v56, %v9663_v20  ;;  %v9687_v30 = vsel %vm2331_vm3, %v9686_v8, %v9682_v18  ;;  %v10258_v34 = vunpack.i.h.bf16 %v10256_v48 }
0x1a60   :  { %v9696_v58 = vsel %vm2317_vm15, %v9695_v11, %v9691_v10  ;;  %v9802_v49 = vsel %vm763_vm4, %v9687_v30, %v9668_v42 }
0x1a61   :  { %v9700_v40 = vrot.slane %v10257_v31, %v15472_v39  ;;  %v9710_v59 = vrot.slane %v10258_v34, %v15471_v46 }
0x1a62   :  { %v10261_v60 = vpop.permute.xlu1 %10260 }
0x1a63   :  { %v10263_v41 = vunpack.i.h.bf16 %v10261_v60  ;;  %v10262_v19 = vunpack.i.l.bf16 %v10261_v60  ;;  %v9701_v26 = vsel %vm2324_vm11, %v9700_v40, %v9696_v58 }
0x1a65   :  { %v9705_v38 = vrot.slane %v10263_v41, %v15526_v37  ;;  %v9714_v28 = vrot.slane %v10262_v19, %v15473_v3 }
0x1a66   :  { %v10266_v22 = vpop.permute.xlu0 %10265 }
0x1a67   :  { %v10268_v32 = vunpack.i.h.bf16 %v10266_v22  ;;  %v10267_v13 = vunpack.i.l.bf16 %v10266_v22  ;;  %v9706_v1 = vsel %vm2331_vm3, %v9705_v38, %v9701_v26  ;;  %v9715_v0 = vsel %vm2317_vm15, %v9714_v28, %v9710_v59 }
0x1a69   :  { %v9729_v21 = vrot.slane %v10268_v32, %v15471_v46  ;;  %v9719_v48 = vrot.slane %v10267_v13, %v15472_v39 }
0x1a6a   :  { %v10271_v15 = vpop.permute.xlu1 %10270 }
0x1a6b   :  { %v10272_v2 = vunpack.i.l.bf16 %v10271_v15  ;;  %v10273_v23 = vunpack.i.h.bf16 %v10271_v15  ;;  %v9720_v15 = vsel %vm2324_vm11, %v9719_v48, %v9715_v0 }
0x1a6d   :  { %v9733_v53 = vrot.slane %v10272_v2, %v15473_v3  ;;  %v9724_v14 = vrot.slane %v10273_v23, %v15526_v37 }
0x1a6e   :  { %v10276_v16 = vpop.permute.xlu0 %10275 }
0x1a6f   :  { %v10277_v12 = vunpack.i.l.bf16 %v10276_v16  ;;  %v10278_v33 = vunpack.i.h.bf16 %v10276_v16  ;;  %v9734_v60 = vsel %vm2317_vm15, %v9733_v53, %v9729_v21  ;;  %v9725_v31 = vsel %vm2331_vm3, %v9724_v14, %v9720_v15 }
0x1a71   :  { %v9738_v4 = vrot.slane %v10277_v12, %v15472_v39  ;;  %v9748_v17 = vrot.slane %v10278_v33, %v15471_v46  ;;  %v10038_v12 = vld [vmem:[%s14878_s12] ss:$0 sm:$0xff] }
0x1a72   :  { %v10281_v5 = vpop.permute.xlu1 %10280 }
0x1a73   :  { %v10283_v36 = vunpack.i.h.bf16 %v10281_v5  ;;  %v10282_v51 = vunpack.i.l.bf16 %v10281_v5  ;;  %v9739_v52 = vsel %vm2324_vm11, %v9738_v4, %v9734_v60  ;;  %v9803_v5 = vsel %vm765_vm5, %v9706_v1, %v9802_v49 }
0x1a74   :  { %v9804_v19 = vsel %vm767_vm6, %v9725_v31, %v9803_v5 }
0x1a75   :  { %v9743_v55 = vrot.slane %v10283_v36, %v15526_v37  ;;  %v9752_v27 = vrot.slane %v10282_v51, %v15473_v3 }
0x1a76   :  { %v10286_v63 = vpop.permute.xlu0 %10285 }
0x1a77   :  { %v10287_v62 = vunpack.i.l.bf16 %v10286_v63  ;;  %v10288_v44 = vunpack.i.h.bf16 %v10286_v63  ;;  %v9744_v35 = vsel %vm2331_vm3, %v9743_v55, %v9739_v52  ;;  %v9753_v16 = vsel %vm2317_vm15, %v9752_v27, %v9748_v17 }
0x1a78   :  { %v9805_v34 = vsel %vm769_vm7, %v9744_v35, %v9804_v19 }
0x1a79   :  { %v9757_v57 = vrot.slane %v10287_v62, %v15472_v39  ;;  %v9767_v8 = vrot.slane %v10288_v44, %v15471_v46 }
0x1a7a   :  { %v10291_v54 = vpop.permute.xlu1 %10290 }
0x1a7b   :  { %v10292_v61 = vunpack.i.l.bf16 %v10291_v54  ;;  %v10293_v50 = vunpack.i.h.bf16 %v10291_v54  ;;  %v9758_v20 = vsel %vm2324_vm11, %v9757_v57, %v9753_v16 }
0x1a7d   :  { %v9771_v29 = vrot.slane %v10292_v61, %v15473_v3  ;;  %v9762_v45 = vrot.slane %v10293_v50, %v15526_v37 }
0x1a7e   :  { %v10296_v7 = vpop.permute.xlu0 %10295 }
0x1a7f   :  { %v10297_v25 = vunpack.i.l.bf16 %v10296_v7  ;;  %v10298_v24 = vunpack.i.h.bf16 %v10296_v7  ;;  %v9772_v11 = vsel %vm2317_vm15, %v9771_v29, %v9767_v8  ;;  %v9763_v42 = vsel %vm2331_vm3, %v9762_v45, %v9758_v20 }
0x1a80   :  { %v9806_v58 = vsel %vm771_vm8, %v9763_v42, %v9805_v34 }
0x1a81   :  { %v9776_v47 = vrot.slane %v10297_v25, %v15472_v39  ;;  %v9786_v30 = vrot.slane %v10298_v24, %v15471_v46 }
0x1a82   :  { %v10301_v9 = vpop.permute.xlu1 %10300 }
0x1a83   :  { %v10303_v22 = vunpack.i.h.bf16 %v10301_v9  ;;  %v10302_v43 = vunpack.i.l.bf16 %v10301_v9  ;;  %v9777_v40 = vsel %vm2324_vm11, %v9776_v47, %v9772_v11 }
0x1a85   :  { %v9781_v56 = vrot.slane %v10303_v22, %v15526_v37  ;;  %v9790_v6 = vrot.slane %v10302_v43, %v15473_v3 }
0x1a86   :  { %v10306_v41 = vpop.permute.xlu0 %10305  ;;  %v9812_v32 = vpop.permute.xlu1 %9811 }
0x1a87   :  { %v10308_v10 = vunpack.i.h.bf16 %v10306_v41  ;;  %v10307_v18 = vunpack.i.l.bf16 %v10306_v41  ;;  %v9782_v2 = vsel %vm2331_vm3, %v9781_v56, %v9777_v40  ;;  %v9791_v38 = vsel %vm2317_vm15, %v9790_v6, %v9786_v30 }
0x1a88   :  { %v9807_v54 = vsel %vm773_vm9, %v9782_v2, %v9806_v58 }
0x1a89   :  { %v9800_v3 = vrot.slane %v10308_v10, %v15526_v37  ;;  %v9795_v63 = vrot.slane %v10307_v18, %v15472_v39  ;;  %v10756_v37 = vld [vmem:[%s14868_s2] sm:$0xff]  ;;  %s10757_s2 = scalar_lea.vmem %s9924_s18, 128 }
0x1a8a   :  { %p10758_p0 = scmp.ne.s32.totalorder %s9924_s18, %s10757_s2  ;;  %p10763_p2 = scmp.lt.s32.totalorder %s10757_s2, %s10757_s2 }
0x1a8b   :  { %v9796_v49 = vsel %vm2324_vm11, %v9795_v63, %v9791_v38 }
0x1a8c   :  { %v9801_v46 = vsel %vm2331_vm3, %v9800_v3, %v9796_v49  ;;  %p10764_p3 = por %p10763_p2, %p10762_p1 }
0x1a8d   :  { %v9808_v26 = vsel %vm775_vm10, %v9801_v46, %v9807_v54 }
0x1a8e   :  { %v9814_v39 = vsel %vm445_vm0, %v10756_v37, %v9808_v26  ;;  %p10765_p4 = pnand %p10764_p3, %p10758_p0 }
0x1a8f   :  { %v9815_v28 = vsel %vm470_vm2, %v9814_v39, %v9812_v32 }
0x1a90   :  { %v9816_v13 = vpack.c.bf16 %v9815_v28, %v9815_v28 }
0x1a92   :  { %10212 = vmatmul.mubr.msk.bf16.vlgmr.msra.gmra.mrb[24].mxu1 %vm15551_vm1, %v9816_v13 }
0x1b65   :  { %v9909_v23 = vpop.f32.mrb[24].mxu1 }
0x1b66   :  { %v9910_v53 = vadd.f32 %v10038_v12, %v9909_v23  ;;  %v10213_v36 = vpop.f32.mrb[25].mxu1 }
0x1b67   :  { %v9912_v51 = vpop.f32.mrb[26].mxu1 }
0x1b68   :  { %v9915_v7 = vmax.f32 %v9910_v53, 0.0  ;;  %v10214_v59 = vpop.f32.mrb[27].mxu1 }
0x1b6a   :  { %9916 = vst.msk [vmem:[#allocation4] sm:$0xff] %vm445_vm0, %v9915_v7 }
0x1b6b   :  { %10768 = shalt.err (!%p10765_p4)
}
0x1b6c   :  { %s10769_s20 = scalar_lea.hbm %s14879_s13, 128 }
0x1b6d   :  { %p10770_p5 = scmp.ne.s32.totalorder %s14879_s13, %s10769_s20  ;;  %p10773_p6 = scmp.lt.u32.totalorder %s10769_s20, %s14879_s13 }
0x1b6f   :  { %p10775_p7 = pnand %p10773_p6, %p10770_p5 }
0x1b71   :  { %10778 = shalt.err (!%p10775_p7)
}
0x1b72   :  { %9926 = dma.vmem_to_hbm [thread:$0]  %s9924_s18, 128, %s14879_s13, [#allocation5]  }
0x1b73   :  { %10779 = dma.done.wait [#allocation5], 128  }
0x1b74   :  { %10780 = vsyncadd [#allocation5], 4294967168 }
0x1b75   :  { %9930 = vsyncpa [#allocation5], 1 }

</bundles_post_ra>
